<compile_context>
chip_gen: v6e
topology: v6e:2x2x1
jax: 0.10.0
libtpu: 0.0.40
codegen_flags: <defaults>
</compile_context>

<pallas_src>
from functools import partial

import jax
import jax.numpy as jnp
from jax import lax
from jax.experimental import pallas as pl
from jax.experimental.pallas import tpu as pltpu


# -------------------- fused Pallas kernel (B images per grid step) -----------

def _make_kernel(block_images):
    B = block_images
    BL = B * 256                       # lanes per conv2 tap (B images x 16x16)

    def kernel(p_ref,    # (1, 32, 9*B*256) bf16  conv1 patches (see wrapper)
               w1_ref,   # (64, 32)         bf16  conv1 weight, K padded 27->32
               b1_ref,   # (64, 1)          f32   conv1 bias
               w2_ref,   # (64, 576)        bf16  conv2 weight, K = t*64 + ci
               sc_ref,   # (64, 1)          f32   BN scale
               sh_ref,   # (64, 1)          f32   BN shift (conv2 bias folded in)
               w3_ref,   # (64, 256)        f32   linear weight, NCHW-flatten order
               b3_ref,   # (1, 1)           f32   linear bias
               o_ref,    # (1, B, 128)      f32   sigmoid output, one row / image
               h_scr):   # (576, B*256)     bf16  VMEM scratch: K-stacked conv2 operand
        # conv2 zero-padding masks.  Tap kh==0 (kw==0) reads y1 row -1 (col -1)
        # when ho2==0 (wo2==0); those positions must contribute nothing.
        lane = lax.broadcasted_iota(jnp.int32, (1, BL), 1)
        not_top = (lane & 255) >= 16       # False where ho2 == 0 (pos < 16)
        not_left = (lane & 15) != 0        # False where wo2 == 0

        # conv1 hoisted: ONE MXU pass for all 9 conv2 taps and all B images:
        #   (64, 32) @ (32, 9*B*256) -> f32.
        h_all = jnp.dot(w1_ref[...], p_ref[0],
                        preferred_element_type=jnp.float32)
        b1 = b1_ref[...]

        # Per-tap fused epilogue: bias + LeakyReLU(0.2) + padding mask + bf16
        # cast, written into the K-stacked conv2 operand (rows t*64 + ci).
        # TODO(synk): Dropout(0.4) is identity in eval mode; train-mode RNG
        # masking is not implemented.
        for t in range(9):
            kh, kw = divmod(t, 3)
            h_t = h_all[:, t * BL:(t + 1) * BL] + b1          # (64, B*256)
            h_t = jnp.where(h_t > 0.0, h_t, 0.2 * h_t)        # LeakyReLU(0.2)
            if kh == 0:
                h_t = jnp.where(not_top, h_t, 0.0)
            if kw == 0:
                h_t = jnp.where(not_left, h_t, 0.0)
            h_scr[t * 64:(t + 1) * 64, :] = h_t.astype(jnp.bfloat16)

        # conv2 as a single K=576 matmul: (64, 576) @ (576, B*256) -> f32.
        acc = jnp.dot(w2_ref[...], h_scr[...],
                      preferred_element_type=jnp.float32)

        sc = sc_ref[...]
        sh = sh_ref[...]
        w3 = w3_ref[...]
        # Per-image epilogue on 256-lane chunks: eval-mode BatchNorm (conv2 bias
        # folded into shift) + LeakyReLU + Flatten + Linear(16384->1) + Sigmoid.
        rows = []
        for b in range(B):
            yb = acc[:, b * 256:(b + 1) * 256] * sc + sh      # (64, 256)
            yb = jnp.where(yb > 0.0, yb, 0.2 * yb)
            part = jnp.sum(yb * w3, axis=1, keepdims=True)    # (64, 1)
            logit = jnp.sum(part, axis=0, keepdims=True) + b3_ref[...]   # (1,1)
            prob = 1.0 / (1.0 + jnp.exp(-logit))
            rows.append(jnp.broadcast_to(prob, (1, 128)))
        o_ref[0] = jnp.concatenate(rows, axis=0)              # (B, 128)

    return kernel


# -------------------- wrapper glue (pure layout, no heavy compute) -----------

def _build_conv1_patches(x_nchw, block_images):
    """(N,3,64,64) -> (N/B, 32, 9*B*256) bf16 conv1 patch tensor.

    Lane order is [tap t][image b][pos=ho2*16+wo2].  For conv2 tap t=(kh2,kw2)
    and output position (ho2,wo2), the 27-vector holds the conv1 input patch of
    the y1 position that tap reads.  K is zero-padded 27 -> 32; out-of-range
    (conv2-padded) y1 positions get placeholder columns the kernel masks out.
    Input is cast to bf16 up front to halve the wrapper's HBM traffic (v5e).
    """
    n = x_nchw.shape[0]
    B = block_images
    g = n // B
    xb = x_nchw.astype(jnp.bfloat16)
    xp = jnp.pad(xb, ((0, 0), (0, 0), (1, 1), (1, 1)))                # conv1 pad=1
    cols = [xp[:, :, kh:kh + 63:2, kw:kw + 63:2]                      # (N,3,32,32)
            for kh in range(3) for kw in range(3)]
    p_all = jnp.stack(cols, axis=2).reshape(n, 27, 32, 32)            # k = ci*9+kh*3+kw
    p_pad = jnp.pad(p_all, ((0, 0), (0, 0), (1, 0), (1, 0)))          # conv2 pad=1 placeholders
    taps = [p_pad[:, :, kh:kh + 31:2, kw:kw + 31:2]                   # (N,27,16,16)
            for kh in range(3) for kw in range(3)]
    p_exp = jnp.stack(taps, axis=2).reshape(g, B, 27, 9, 256)
    p_exp = jnp.transpose(p_exp, (0, 2, 3, 1, 4)).reshape(g, 27, 9 * B * 256)
    p_exp = jnp.pad(p_exp, ((0, 0), (0, 5), (0, 0)))                  # K 27 -> 32
    return p_exp


@partial(jax.jit, static_argnames=("block_images",))
def discriminator_forward(x_nchw, params, block_images=4):
    n = x_nchw.shape[0]
    B = max(1, min(block_images, n))          # images per grid step (8-16 ideal; keep N/B >= 2)
    n_pad = ((n + B - 1) // B) * B
    if n_pad != n:
        x_nchw = jnp.pad(x_nchw, ((0, n_pad - n), (0, 0), (0, 0), (0, 0)))
    g = n_pad // B
    bl = B * 256

    p_exp = _build_conv1_patches(x_nchw, B)
    out = pl.pallas_call(
        _make_kernel(B),
        out_shape=jax.ShapeDtypeStruct((g, B, 128), jnp.float32),
        grid_spec=pltpu.PrefetchScalarGridSpec(
            num_scalar_prefetch=0,
            grid=(g,),
            in_specs=[
                pl.BlockSpec((1, 32, 9 * bl), lambda i: (i, 0, 0)),
                pl.BlockSpec((64, 32), lambda i: (0, 0)),
                pl.BlockSpec((64, 1), lambda i: (0, 0)),
                pl.BlockSpec((64, 576), lambda i: (0, 0)),
                pl.BlockSpec((64, 1), lambda i: (0, 0)),
                pl.BlockSpec((64, 1), lambda i: (0, 0)),
                pl.BlockSpec((64, 256), lambda i: (0, 0)),
                pl.BlockSpec((1, 1), lambda i: (0, 0)),
            ],
            out_specs=pl.BlockSpec((1, B, 128), lambda i: (i, 0, 0)),
            scratch_shapes=[pltpu.VMEM((576, bl), jnp.bfloat16)],
        ),
        compiler_params=pltpu.CompilerParams(
            dimension_semantics=("parallel",),
            vmem_limit_bytes=32 * 1024 * 1024),
    )(p_exp, params["w1"], params["b1"], params["w2"],
      params["bn_scale"], params["bn_shift"], params["w3"], params["b3"])
    return out.reshape(n_pad, 128)[:n, :1]                            # (N, 1)


# -------------------- parameters (PyTorch-shaped, then repacked) -------------

def make_params(key):
    ks = jax.random.split(key, 6)
    w1_t = jax.random.normal(ks[0], (64, 3, 3, 3), jnp.float32) * 0.05   # (Cout,Cin,KH,KW)
    b1_t = jax.random.normal(ks[1], (64,), jnp.float32) * 0.05
    w2_t = jax.random.normal(ks[2], (64, 64, 3, 3), jnp.float32) * 0.02
    b2_t = jax.random.normal(ks[3], (64,), jnp.float32) * 0.02
    w3_t = jax.random.normal(ks[4], (1, 64 * 16 * 16), jnp.float32) * 0.01  # Linear (out,in)
    b3_t = jax.random.normal(ks[5], (1,), jnp.float32) * 0.01

    # BatchNorm2d(64) eval-mode parameters at PyTorch defaults.
    gamma = jnp.ones((64,), jnp.float32)
    beta = jnp.zeros((64,), jnp.float32)
    running_mean = jnp.zeros((64,), jnp.float32)
    running_var = jnp.ones((64,), jnp.float32)
    eps = 1e-5
    scale = gamma / jnp.sqrt(running_var + eps)
    shift = beta - running_mean * scale

    params = {
        # conv1 (Cout, Cin*KH*KW) padded to 32 columns, bf16 for the MXU.
        "w1": jnp.pad(w1_t.reshape(64, 27), ((0, 0), (0, 5))).astype(jnp.bfloat16),
        "b1": b1_t.reshape(64, 1),
        # conv2 K-stacked: column index = t*64 + ci with t = kh*3 + kw.
        "w2": jnp.transpose(w2_t, (0, 2, 3, 1)).reshape(64, 576).astype(jnp.bfloat16),
        "bn_scale": scale.reshape(64, 1),
        "bn_shift": (shift + scale * b2_t).reshape(64, 1),   # conv2 bias folded in
        # Linear weight in NCHW-flatten order -> (64, 256).
        "w3": w3_t.reshape(64, 256),
        "b3": b3_t.reshape(1, 1),
    }
    torch_params = {"w1": w1_t, "b1": b1_t, "w2": w2_t, "b2": b2_t,
                    "w3": w3_t, "b3": b3_t, "gamma": gamma, "beta": beta,
                    "mean": running_mean, "var": running_var, "eps": eps}
    return params, torch_params


# -------------------- pure-JAX reference (mirrors the bf16 casts) ------------

def _leaky(x):
    return jnp.where(x > 0, x, 0.2 * x)


def reference_forward(x, tp):
    f32 = jnp.float32
    xb = x.astype(jnp.bfloat16).astype(f32)
    w1b = tp["w1"].astype(jnp.bfloat16).astype(f32)
    w2b = tp["w2"].astype(jnp.bfloat16).astype(f32)
    dn = ("NCHW", "OIHW", "NCHW")
    y1 = lax.conv_general_dilated(xb, w1b, (2, 2), ((1, 1), (1, 1)),
                                  dimension_numbers=dn,
                                  precision=lax.Precision.HIGHEST)
    y1 = _leaky(y1 + tp["b1"][None, :, None, None])
    y1 = y1.astype(jnp.bfloat16).astype(f32)          # kernel feeds conv2 in bf16
    y2 = lax.conv_general_dilated(y1, w2b, (2, 2), ((1, 1), (1, 1)),
                                  dimension_numbers=dn,
                                  precision=lax.Precision.HIGHEST)
    y2 = y2 + tp["b2"][None, :, None, None]
    scale = tp["gamma"] / jnp.sqrt(tp["var"] + tp["eps"])
    shift = tp["beta"] - tp["mean"] * scale
    y2 = _leaky(y2 * scale[None, :, None, None] + shift[None, :, None, None])
    feat = y2.reshape(x.shape[0], -1)
    logit = jnp.dot(feat, tp["w3"].T, precision=lax.Precision.HIGHEST) + tp["b3"]
    return jax.nn.sigmoid(logit)


if __name__ == "__main__":
    key = jax.random.PRNGKey(0)
    kx, kp = jax.random.split(key)
    # Two stride-2 convs feeding Linear(64*16*16, 1) imply 3x64x64 inputs.
    # batch=6 with block_images=4 exercises both lane-batching and N-padding.
    x = jax.random.normal(kx, (6, 3, 64, 64), jnp.float32)
    params, torch_params = make_params(kp)

    out = jax.block_until_ready(discriminator_forward(x, params, block_images=4))
    ref = jax.block_until_ready(reference_forward(x, torch_params))

    assert out.shape == (6, 1), out.shape
    assert jnp.allclose(out, ref, rtol=1e-2, atol=1e-3), (out, ref)
    print("KERNEL_OK")
</pallas_src>

<mosaic_0001>
module attributes {stable_mosaic.version = 11 : i64} {
  func.func @kernel(%arg0: i32, %arg1: memref<1x32x9216xbf16, #tpu.memory_space<vmem>>, %arg2: memref<64x32xbf16, #tpu.memory_space<vmem>>, %arg3: memref<64x1xf32, #tpu.memory_space<vmem>>, %arg4: memref<64x576xbf16, #tpu.memory_space<vmem>>, %arg5: memref<64x1xf32, #tpu.memory_space<vmem>>, %arg6: memref<64x1xf32, #tpu.memory_space<vmem>>, %arg7: memref<64x256xf32, #tpu.memory_space<vmem>>, %arg8: memref<1x1xf32, #tpu.memory_space<vmem>>, %arg9: memref<1x4x128xf32, #tpu.memory_space<vmem>>, %arg10: memref<576x1024xbf16, #tpu.memory_space<vmem>>) attributes {dimension_semantics = [#tpu.dimension_semantics<parallel>], iteration_bounds = array<i64: 2>, scalar_prefetch = 0 : i64, scratch_operands = 1 : i64, tpu.core_type = #tpu.core_type<tc>, window_params = [{transform_indices = @transform_0, window_bounds = array<i64: 1, 32, 9216>}, {pipeline_mode = #tpu.pipeline_mode<synchronous>, transform_indices = @transform_1, window_bounds = array<i64: 64, 32>}, {pipeline_mode = #tpu.pipeline_mode<synchronous>, transform_indices = @transform_2, window_bounds = array<i64: 64, 1>}, {pipeline_mode = #tpu.pipeline_mode<synchronous>, transform_indices = @transform_3, window_bounds = array<i64: 64, 576>}, {pipeline_mode = #tpu.pipeline_mode<synchronous>, transform_indices = @transform_4, window_bounds = array<i64: 64, 1>}, {pipeline_mode = #tpu.pipeline_mode<synchronous>, transform_indices = @transform_5, window_bounds = array<i64: 64, 1>}, {pipeline_mode = #tpu.pipeline_mode<synchronous>, transform_indices = @transform_6, window_bounds = array<i64: 64, 256>}, {pipeline_mode = #tpu.pipeline_mode<synchronous>, transform_indices = @transform_7, window_bounds = array<i64: 1, 1>}, {transform_indices = @transform_8, window_bounds = array<i64: 1, 4, 128>}]} {
    %0 = tpu.iota {dimensions = array<i32: 1>} : vector<1x1024xi32>
    %c255_i32 = arith.constant 255 : i32
    %1 = vector.broadcast %c255_i32 : i32 to vector<1x1024xi32>
    %2 = arith.andi %0, %1 : vector<1x1024xi32>
    %c16_i32 = arith.constant 16 : i32
    %3 = vector.broadcast %c16_i32 : i32 to vector<1x1024xi32>
    %4 = arith.cmpi sge, %2, %3 : vector<1x1024xi32>
    %c15_i32 = arith.constant 15 : i32
    %5 = vector.broadcast %c15_i32 : i32 to vector<1x1024xi32>
    %6 = arith.andi %0, %5 : vector<1x1024xi32>
    %c0_i32 = arith.constant 0 : i32
    %7 = vector.broadcast %c0_i32 : i32 to vector<1x1024xi32>
    %8 = arith.cmpi ne, %6, %7 : vector<1x1024xi32>
    %c0 = arith.constant 0 : index
    %c0_0 = arith.constant 0 : index
    %9 = vector.load %arg2[%c0, %c0_0] : memref<64x32xbf16, #tpu.memory_space<vmem>>, vector<64x32xbf16>
    %c0_1 = arith.constant 0 : index
    %c0_2 = arith.constant 0 : index
    %c0_3 = arith.constant 0 : index
    %10 = vector.load %arg1[%c0_1, %c0_2, %c0_3] : memref<1x32x9216xbf16, #tpu.memory_space<vmem>>, vector<1x32x9216xbf16>
    %11 = vector.shape_cast %10 : vector<1x32x9216xbf16> to vector<32x9216xbf16>
    %cst = arith.constant dense<0.000000e+00> : vector<64x9216xf32>
    %12 = tpu.matmul %9, %11, %cst {dimension_numbers = #tpu.dot_dimension_numbers<[1], [0], [0], [1], [0, 0, 1, 1], [], []>} : vector<64x32xbf16>, vector<32x9216xbf16>, vector<64x9216xf32> -> vector<64x9216xf32>
    %c0_4 = arith.constant 0 : index
    %c0_5 = arith.constant 0 : index
    %13 = vector.load %arg3[%c0_4, %c0_5] : memref<64x1xf32, #tpu.memory_space<vmem>>, vector<64x1xf32>
    %14 = vector.extract_strided_slice %12 {offsets = [0, 0], sizes = [64, 1024], strides = [1, 1]} : vector<64x9216xf32> to vector<64x1024xf32>
    %15 = vector.broadcast %13 : vector<64x1xf32> to vector<64x1024xf32>
    %16 = arith.addf %14, %15 : vector<64x1024xf32>
    %cst_6 = arith.constant 0.000000e+00 : f32
    %17 = vector.broadcast %cst_6 : f32 to vector<64x1024xf32>
    %18 = arith.cmpf ogt, %16, %17 : vector<64x1024xf32>
    %cst_7 = arith.constant 2.000000e-01 : f32
    %19 = vector.broadcast %cst_7 : f32 to vector<64x1024xf32>
    %20 = arith.mulf %19, %16 : vector<64x1024xf32>
    %21 = arith.select %18, %16, %20 : vector<64x1024xi1>, vector<64x1024xf32>
    %cst_8 = arith.constant 0.000000e+00 : f32
    %22 = vector.shape_cast %4 : vector<1x1024xi1> to vector<1x1024xi1>
    %23 = vector.broadcast %22 : vector<1x1024xi1> to vector<64x1024xi1>
    %24 = vector.broadcast %cst_8 : f32 to vector<64x1024xf32>
    %25 = arith.select %23, %21, %24 : vector<64x1024xi1>, vector<64x1024xf32>
    %cst_9 = arith.constant 0.000000e+00 : f32
    %26 = vector.shape_cast %8 : vector<1x1024xi1> to vector<1x1024xi1>
    %27 = vector.broadcast %26 : vector<1x1024xi1> to vector<64x1024xi1>
    %28 = vector.broadcast %cst_9 : f32 to vector<64x1024xf32>
    %29 = arith.select %27, %25, %28 : vector<64x1024xi1>, vector<64x1024xf32>
    %30 = arith.truncf %29 : vector<64x1024xf32> to vector<64x1024xbf16>
    %c0_10 = arith.constant 0 : index
    %c0_11 = arith.constant 0 : index
    %31 = vector.load %arg10[%c0_10, %c0_11] : memref<576x1024xbf16, #tpu.memory_space<vmem>>, vector<64x1024xbf16>
    tpu.vector_store %arg10[%c0_10, %c0_11], %30 {strides = array<i32>} : memref<576x1024xbf16, #tpu.memory_space<vmem>>, vector<64x1024xbf16>,
    %32 = vector.extract_strided_slice %12 {offsets = [0, 1024], sizes = [64, 1024], strides = [1, 1]} : vector<64x9216xf32> to vector<64x1024xf32>
    %33 = vector.broadcast %13 : vector<64x1xf32> to vector<64x1024xf32>
    %34 = arith.addf %32, %33 : vector<64x1024xf32>
    %cst_12 = arith.constant 0.000000e+00 : f32
    %35 = vector.broadcast %cst_12 : f32 to vector<64x1024xf32>
    %36 = arith.cmpf ogt, %34, %35 : vector<64x1024xf32>
    %cst_13 = arith.constant 2.000000e-01 : f32
    %37 = vector.broadcast %cst_13 : f32 to vector<64x1024xf32>
    %38 = arith.mulf %37, %34 : vector<64x1024xf32>
    %39 = arith.select %36, %34, %38 : vector<64x1024xi1>, vector<64x1024xf32>
    %cst_14 = arith.constant 0.000000e+00 : f32
    %40 = vector.shape_cast %4 : vector<1x1024xi1> to vector<1x1024xi1>
    %41 = vector.broadcast %40 : vector<1x1024xi1> to vector<64x1024xi1>
    %42 = vector.broadcast %cst_14 : f32 to vector<64x1024xf32>
    %43 = arith.select %41, %39, %42 : vector<64x1024xi1>, vector<64x1024xf32>
    %44 = arith.truncf %43 : vector<64x1024xf32> to vector<64x1024xbf16>
    %c64 = arith.constant 64 : index
    %c0_15 = arith.constant 0 : index
    %45 = vector.load %arg10[%c64, %c0_15] : memref<576x1024xbf16, #tpu.memory_space<vmem>>, vector<64x1024xbf16>
    tpu.vector_store %arg10[%c64, %c0_15], %44 {strides = array<i32>} : memref<576x1024xbf16, #tpu.memory_space<vmem>>, vector<64x1024xbf16>,
    %46 = vector.extract_strided_slice %12 {offsets = [0, 2048], sizes = [64, 1024], strides = [1, 1]} : vector<64x9216xf32> to vector<64x1024xf32>
    %47 = vector.broadcast %13 : vector<64x1xf32> to vector<64x1024xf32>
    %48 = arith.addf %46, %47 : vector<64x1024xf32>
    %cst_16 = arith.constant 0.000000e+00 : f32
    %49 = vector.broadcast %cst_16 : f32 to vector<64x1024xf32>
    %50 = arith.cmpf ogt, %48, %49 : vector<64x1024xf32>
    %cst_17 = arith.constant 2.000000e-01 : f32
    %51 = vector.broadcast %cst_17 : f32 to vector<64x1024xf32>
    %52 = arith.mulf %51, %48 : vector<64x1024xf32>
    %53 = arith.select %50, %48, %52 : vector<64x1024xi1>, vector<64x1024xf32>
    %cst_18 = arith.constant 0.000000e+00 : f32
    %54 = vector.shape_cast %4 : vector<1x1024xi1> to vector<1x1024xi1>
    %55 = vector.broadcast %54 : vector<1x1024xi1> to vector<64x1024xi1>
    %56 = vector.broadcast %cst_18 : f32 to vector<64x1024xf32>
    %57 = arith.select %55, %53, %56 : vector<64x1024xi1>, vector<64x1024xf32>
    %58 = arith.truncf %57 : vector<64x1024xf32> to vector<64x1024xbf16>
    %c128 = arith.constant 128 : index
    %c0_19 = arith.constant 0 : index
    %59 = vector.load %arg10[%c128, %c0_19] : memref<576x1024xbf16, #tpu.memory_space<vmem>>, vector<64x1024xbf16>
    tpu.vector_store %arg10[%c128, %c0_19], %58 {strides = array<i32>} : memref<576x1024xbf16, #tpu.memory_space<vmem>>, vector<64x1024xbf16>,
    %60 = vector.extract_strided_slice %12 {offsets = [0, 3072], sizes = [64, 1024], strides = [1, 1]} : vector<64x9216xf32> to vector<64x1024xf32>
    %61 = vector.broadcast %13 : vector<64x1xf32> to vector<64x1024xf32>
    %62 = arith.addf %60, %61 : vector<64x1024xf32>
    %cst_20 = arith.constant 0.000000e+00 : f32
    %63 = vector.broadcast %cst_20 : f32 to vector<64x1024xf32>
    %64 = arith.cmpf ogt, %62, %63 : vector<64x1024xf32>
    %cst_21 = arith.constant 2.000000e-01 : f32
    %65 = vector.broadcast %cst_21 : f32 to vector<64x1024xf32>
    %66 = arith.mulf %65, %62 : vector<64x1024xf32>
    %67 = arith.select %64, %62, %66 : vector<64x1024xi1>, vector<64x1024xf32>
    %cst_22 = arith.constant 0.000000e+00 : f32
    %68 = vector.shape_cast %8 : vector<1x1024xi1> to vector<1x1024xi1>
    %69 = vector.broadcast %68 : vector<1x1024xi1> to vector<64x1024xi1>
    %70 = vector.broadcast %cst_22 : f32 to vector<64x1024xf32>
    %71 = arith.select %69, %67, %70 : vector<64x1024xi1>, vector<64x1024xf32>
    %72 = arith.truncf %71 : vector<64x1024xf32> to vector<64x1024xbf16>
    %c192 = arith.constant 192 : index
    %c0_23 = arith.constant 0 : index
    %73 = vector.load %arg10[%c192, %c0_23] : memref<576x1024xbf16, #tpu.memory_space<vmem>>, vector<64x1024xbf16>
    tpu.vector_store %arg10[%c192, %c0_23], %72 {strides = array<i32>} : memref<576x1024xbf16, #tpu.memory_space<vmem>>, vector<64x1024xbf16>,
    %74 = vector.extract_strided_slice %12 {offsets = [0, 4096], sizes = [64, 1024], strides = [1, 1]} : vector<64x9216xf32> to vector<64x1024xf32>
    %75 = vector.broadcast %13 : vector<64x1xf32> to vector<64x1024xf32>
    %76 = arith.addf %74, %75 : vector<64x1024xf32>
    %cst_24 = arith.constant 0.000000e+00 : f32
    %77 = vector.broadcast %cst_24 : f32 to vector<64x1024xf32>
    %78 = arith.cmpf ogt, %76, %77 : vector<64x1024xf32>
    %cst_25 = arith.constant 2.000000e-01 : f32
    %79 = vector.broadcast %cst_25 : f32 to vector<64x1024xf32>
    %80 = arith.mulf %79, %76 : vector<64x1024xf32>
    %81 = arith.select %78, %76, %80 : vector<64x1024xi1>, vector<64x1024xf32>
    %82 = arith.truncf %81 : vector<64x1024xf32> to vector<64x1024xbf16>
    %c256 = arith.constant 256 : index
    %c0_26 = arith.constant 0 : index
    %83 = vector.load %arg10[%c256, %c0_26] : memref<576x1024xbf16, #tpu.memory_space<vmem>>, vector<64x1024xbf16>
    tpu.vector_store %arg10[%c256, %c0_26], %82 {strides = array<i32>} : memref<576x1024xbf16, #tpu.memory_space<vmem>>, vector<64x1024xbf16>,
    %84 = vector.extract_strided_slice %12 {offsets = [0, 5120], sizes = [64, 1024], strides = [1, 1]} : vector<64x9216xf32> to vector<64x1024xf32>
    %85 = vector.broadcast %13 : vector<64x1xf32> to vector<64x1024xf32>
    %86 = arith.addf %84, %85 : vector<64x1024xf32>
    %cst_27 = arith.constant 0.000000e+00 : f32
    %87 = vector.broadcast %cst_27 : f32 to vector<64x1024xf32>
    %88 = arith.cmpf ogt, %86, %87 : vector<64x1024xf32>
    %cst_28 = arith.constant 2.000000e-01 : f32
    %89 = vector.broadcast %cst_28 : f32 to vector<64x1024xf32>
    %90 = arith.mulf %89, %86 : vector<64x1024xf32>
    %91 = arith.select %88, %86, %90 : vector<64x1024xi1>, vector<64x1024xf32>
    %92 = arith.truncf %91 : vector<64x1024xf32> to vector<64x1024xbf16>
    %c320 = arith.constant 320 : index
    %c0_29 = arith.constant 0 : index
    %93 = vector.load %arg10[%c320, %c0_29] : memref<576x1024xbf16, #tpu.memory_space<vmem>>, vector<64x1024xbf16>
    tpu.vector_store %arg10[%c320, %c0_29], %92 {strides = array<i32>} : memref<576x1024xbf16, #tpu.memory_space<vmem>>, vector<64x1024xbf16>,
    %94 = vector.extract_strided_slice %12 {offsets = [0, 6144], sizes = [64, 1024], strides = [1, 1]} : vector<64x9216xf32> to vector<64x1024xf32>
    %95 = vector.broadcast %13 : vector<64x1xf32> to vector<64x1024xf32>
    %96 = arith.addf %94, %95 : vector<64x1024xf32>
    %cst_30 = arith.constant 0.000000e+00 : f32
    %97 = vector.broadcast %cst_30 : f32 to vector<64x1024xf32>
    %98 = arith.cmpf ogt, %96, %97 : vector<64x1024xf32>
    %cst_31 = arith.constant 2.000000e-01 : f32
    %99 = vector.broadcast %cst_31 : f32 to vector<64x1024xf32>
    %100 = arith.mulf %99, %96 : vector<64x1024xf32>
    %101 = arith.select %98, %96, %100 : vector<64x1024xi1>, vector<64x1024xf32>
    %cst_32 = arith.constant 0.000000e+00 : f32
    %102 = vector.shape_cast %8 : vector<1x1024xi1> to vector<1x1024xi1>
    %103 = vector.broadcast %102 : vector<1x1024xi1> to vector<64x1024xi1>
    %104 = vector.broadcast %cst_32 : f32 to vector<64x1024xf32>
    %105 = arith.select %103, %101, %104 : vector<64x1024xi1>, vector<64x1024xf32>
    %106 = arith.truncf %105 : vector<64x1024xf32> to vector<64x1024xbf16>
    %c384 = arith.constant 384 : index
    %c0_33 = arith.constant 0 : index
    %107 = vector.load %arg10[%c384, %c0_33] : memref<576x1024xbf16, #tpu.memory_space<vmem>>, vector<64x1024xbf16>
    tpu.vector_store %arg10[%c384, %c0_33], %106 {strides = array<i32>} : memref<576x1024xbf16, #tpu.memory_space<vmem>>, vector<64x1024xbf16>,
    %108 = vector.extract_strided_slice %12 {offsets = [0, 7168], sizes = [64, 1024], strides = [1, 1]} : vector<64x9216xf32> to vector<64x1024xf32>
    %109 = vector.broadcast %13 : vector<64x1xf32> to vector<64x1024xf32>
    %110 = arith.addf %108, %109 : vector<64x1024xf32>
    %cst_34 = arith.constant 0.000000e+00 : f32
    %111 = vector.broadcast %cst_34 : f32 to vector<64x1024xf32>
    %112 = arith.cmpf ogt, %110, %111 : vector<64x1024xf32>
    %cst_35 = arith.constant 2.000000e-01 : f32
    %113 = vector.broadcast %cst_35 : f32 to vector<64x1024xf32>
    %114 = arith.mulf %113, %110 : vector<64x1024xf32>
    %115 = arith.select %112, %110, %114 : vector<64x1024xi1>, vector<64x1024xf32>
    %116 = arith.truncf %115 : vector<64x1024xf32> to vector<64x1024xbf16>
    %c448 = arith.constant 448 : index
    %c0_36 = arith.constant 0 : index
    %117 = vector.load %arg10[%c448, %c0_36] : memref<576x1024xbf16, #tpu.memory_space<vmem>>, vector<64x1024xbf16>
    tpu.vector_store %arg10[%c448, %c0_36], %116 {strides = array<i32>} : memref<576x1024xbf16, #tpu.memory_space<vmem>>, vector<64x1024xbf16>,
    %118 = vector.extract_strided_slice %12 {offsets = [0, 8192], sizes = [64, 1024], strides = [1, 1]} : vector<64x9216xf32> to vector<64x1024xf32>
    %119 = vector.broadcast %13 : vector<64x1xf32> to vector<64x1024xf32>
    %120 = arith.addf %118, %119 : vector<64x1024xf32>
    %cst_37 = arith.constant 0.000000e+00 : f32
    %121 = vector.broadcast %cst_37 : f32 to vector<64x1024xf32>
    %122 = arith.cmpf ogt, %120, %121 : vector<64x1024xf32>
    %cst_38 = arith.constant 2.000000e-01 : f32
    %123 = vector.broadcast %cst_38 : f32 to vector<64x1024xf32>
    %124 = arith.mulf %123, %120 : vector<64x1024xf32>
    %125 = arith.select %122, %120, %124 : vector<64x1024xi1>, vector<64x1024xf32>
    %126 = arith.truncf %125 : vector<64x1024xf32> to vector<64x1024xbf16>
    %c512 = arith.constant 512 : index
    %c0_39 = arith.constant 0 : index
    %127 = vector.load %arg10[%c512, %c0_39] : memref<576x1024xbf16, #tpu.memory_space<vmem>>, vector<64x1024xbf16>
    tpu.vector_store %arg10[%c512, %c0_39], %126 {strides = array<i32>} : memref<576x1024xbf16, #tpu.memory_space<vmem>>, vector<64x1024xbf16>,
    %c0_40 = arith.constant 0 : index
    %c0_41 = arith.constant 0 : index
    %128 = vector.load %arg4[%c0_40, %c0_41] : memref<64x576xbf16, #tpu.memory_space<vmem>>, vector<64x576xbf16>
    %c0_42 = arith.constant 0 : index
    %c0_43 = arith.constant 0 : index
    %129 = vector.load %arg10[%c0_42, %c0_43] : memref<576x1024xbf16, #tpu.memory_space<vmem>>, vector<576x1024xbf16>
    %cst_44 = arith.constant dense<0.000000e+00> : vector<64x1024xf32>
    %130 = tpu.matmul %128, %129, %cst_44 {dimension_numbers = #tpu.dot_dimension_numbers<[1], [0], [0], [1], [0, 0, 1, 1], [], []>} : vector<64x576xbf16>, vector<576x1024xbf16>, vector<64x1024xf32> -> vector<64x1024xf32>
    %c0_45 = arith.constant 0 : index
    %c0_46 = arith.constant 0 : index
    %131 = vector.load %arg5[%c0_45, %c0_46] : memref<64x1xf32, #tpu.memory_space<vmem>>, vector<64x1xf32>
    %c0_47 = arith.constant 0 : index
    %c0_48 = arith.constant 0 : index
    %132 = vector.load %arg6[%c0_47, %c0_48] : memref<64x1xf32, #tpu.memory_space<vmem>>, vector<64x1xf32>
    %c0_49 = arith.constant 0 : index
    %c0_50 = arith.constant 0 : index
    %133 = vector.load %arg7[%c0_49, %c0_50] : memref<64x256xf32, #tpu.memory_space<vmem>>, vector<64x256xf32>
    %134 = vector.extract_strided_slice %130 {offsets = [0, 0], sizes = [64, 256], strides = [1, 1]} : vector<64x1024xf32> to vector<64x256xf32>
    %135 = vector.broadcast %131 : vector<64x1xf32> to vector<64x256xf32>
    %136 = arith.mulf %134, %135 : vector<64x256xf32>
    %137 = vector.broadcast %132 : vector<64x1xf32> to vector<64x256xf32>
    %138 = arith.addf %136, %137 : vector<64x256xf32>
    %cst_51 = arith.constant 0.000000e+00 : f32
    %139 = vector.broadcast %cst_51 : f32 to vector<64x256xf32>
    %140 = arith.cmpf ogt, %138, %139 : vector<64x256xf32>
    %cst_52 = arith.constant 2.000000e-01 : f32
    %141 = vector.broadcast %cst_52 : f32 to vector<64x256xf32>
    %142 = arith.mulf %141, %138 : vector<64x256xf32>
    %143 = arith.select %140, %138, %142 : vector<64x256xi1>, vector<64x256xf32>
    %144 = arith.mulf %143, %133 : vector<64x256xf32>
    %cst_53 = arith.constant dense<0.000000e+00> : vector<64xf32>
    %145 = vector.multi_reduction <add>, %144, %cst_53 [1] : vector<64x256xf32> to vector<64xf32>
    %146 = vector.shape_cast %145 : vector<64xf32> to vector<64x1xf32>
    %cst_54 = arith.constant dense<0.000000e+00> : vector<1xf32>
    %147 = vector.multi_reduction <add>, %146, %cst_54 [0] : vector<64x1xf32> to vector<1xf32>
    %148 = vector.shape_cast %147 : vector<1xf32> to vector<1x1xf32>
    %c0_55 = arith.constant 0 : index
    %c0_56 = arith.constant 0 : index
    %149 = vector.load %arg8[%c0_55, %c0_56] : memref<1x1xf32, #tpu.memory_space<vmem>>, vector<1x1xf32>
    %150 = arith.addf %148, %149 : vector<1x1xf32>
    %cst_57 = arith.constant 0.000000e+00 : f32
    %151 = vector.broadcast %cst_57 : f32 to vector<1x1xf32>
    %152 = arith.subf %151, %150 : vector<1x1xf32>
    %153 = math.exp %152 : vector<1x1xf32>
    %cst_58 = arith.constant 1.000000e+00 : f32
    %154 = vector.broadcast %cst_58 : f32 to vector<1x1xf32>
    %155 = arith.addf %154, %153 : vector<1x1xf32>
    %cst_59 = arith.constant 1.000000e+00 : f32
    %156 = vector.broadcast %cst_59 : f32 to vector<1x1xf32>
    %157 = arith.divf %156, %155 : vector<1x1xf32>
    %158 = vector.shape_cast %157 : vector<1x1xf32> to vector<1x1xf32>
    %159 = vector.broadcast %158 : vector<1x1xf32> to vector<1x128xf32>
    %160 = vector.extract_strided_slice %130 {offsets = [0, 256], sizes = [64, 256], strides = [1, 1]} : vector<64x1024xf32> to vector<64x256xf32>
    %161 = vector.broadcast %131 : vector<64x1xf32> to vector<64x256xf32>
    %162 = arith.mulf %160, %161 : vector<64x256xf32>
    %163 = vector.broadcast %132 : vector<64x1xf32> to vector<64x256xf32>
    %164 = arith.addf %162, %163 : vector<64x256xf32>
    %cst_60 = arith.constant 0.000000e+00 : f32
    %165 = vector.broadcast %cst_60 : f32 to vector<64x256xf32>
    %166 = arith.cmpf ogt, %164, %165 : vector<64x256xf32>
    %cst_61 = arith.constant 2.000000e-01 : f32
    %167 = vector.broadcast %cst_61 : f32 to vector<64x256xf32>
    %168 = arith.mulf %167, %164 : vector<64x256xf32>
    %169 = arith.select %166, %164, %168 : vector<64x256xi1>, vector<64x256xf32>
    %170 = arith.mulf %169, %133 : vector<64x256xf32>
    %cst_62 = arith.constant dense<0.000000e+00> : vector<64xf32>
    %171 = vector.multi_reduction <add>, %170, %cst_62 [1] : vector<64x256xf32> to vector<64xf32>
    %172 = vector.shape_cast %171 : vector<64xf32> to vector<64x1xf32>
    %cst_63 = arith.constant dense<0.000000e+00> : vector<1xf32>
    %173 = vector.multi_reduction <add>, %172, %cst_63 [0] : vector<64x1xf32> to vector<1xf32>
    %174 = vector.shape_cast %173 : vector<1xf32> to vector<1x1xf32>
    %c0_64 = arith.constant 0 : index
    %c0_65 = arith.constant 0 : index
    %175 = vector.load %arg8[%c0_64, %c0_65] : memref<1x1xf32, #tpu.memory_space<vmem>>, vector<1x1xf32>
    %176 = arith.addf %174, %175 : vector<1x1xf32>
    %cst_66 = arith.constant 0.000000e+00 : f32
    %177 = vector.broadcast %cst_66 : f32 to vector<1x1xf32>
    %178 = arith.subf %177, %176 : vector<1x1xf32>
    %179 = math.exp %178 : vector<1x1xf32>
    %cst_67 = arith.constant 1.000000e+00 : f32
    %180 = vector.broadcast %cst_67 : f32 to vector<1x1xf32>
    %181 = arith.addf %180, %179 : vector<1x1xf32>
    %cst_68 = arith.constant 1.000000e+00 : f32
    %182 = vector.broadcast %cst_68 : f32 to vector<1x1xf32>
    %183 = arith.divf %182, %181 : vector<1x1xf32>
    %184 = vector.shape_cast %183 : vector<1x1xf32> to vector<1x1xf32>
    %185 = vector.broadcast %184 : vector<1x1xf32> to vector<1x128xf32>
    %186 = vector.extract_strided_slice %130 {offsets = [0, 512], sizes = [64, 256], strides = [1, 1]} : vector<64x1024xf32> to vector<64x256xf32>
    %187 = vector.broadcast %131 : vector<64x1xf32> to vector<64x256xf32>
    %188 = arith.mulf %186, %187 : vector<64x256xf32>
    %189 = vector.broadcast %132 : vector<64x1xf32> to vector<64x256xf32>
    %190 = arith.addf %188, %189 : vector<64x256xf32>
    %cst_69 = arith.constant 0.000000e+00 : f32
    %191 = vector.broadcast %cst_69 : f32 to vector<64x256xf32>
    %192 = arith.cmpf ogt, %190, %191 : vector<64x256xf32>
    %cst_70 = arith.constant 2.000000e-01 : f32
    %193 = vector.broadcast %cst_70 : f32 to vector<64x256xf32>
    %194 = arith.mulf %193, %190 : vector<64x256xf32>
    %195 = arith.select %192, %190, %194 : vector<64x256xi1>, vector<64x256xf32>
    %196 = arith.mulf %195, %133 : vector<64x256xf32>
    %cst_71 = arith.constant dense<0.000000e+00> : vector<64xf32>
    %197 = vector.multi_reduction <add>, %196, %cst_71 [1] : vector<64x256xf32> to vector<64xf32>
    %198 = vector.shape_cast %197 : vector<64xf32> to vector<64x1xf32>
    %cst_72 = arith.constant dense<0.000000e+00> : vector<1xf32>
    %199 = vector.multi_reduction <add>, %198, %cst_72 [0] : vector<64x1xf32> to vector<1xf32>
    %200 = vector.shape_cast %199 : vector<1xf32> to vector<1x1xf32>
    %c0_73 = arith.constant 0 : index
    %c0_74 = arith.constant 0 : index
    %201 = vector.load %arg8[%c0_73, %c0_74] : memref<1x1xf32, #tpu.memory_space<vmem>>, vector<1x1xf32>
    %202 = arith.addf %200, %201 : vector<1x1xf32>
    %cst_75 = arith.constant 0.000000e+00 : f32
    %203 = vector.broadcast %cst_75 : f32 to vector<1x1xf32>
    %204 = arith.subf %203, %202 : vector<1x1xf32>
    %205 = math.exp %204 : vector<1x1xf32>
    %cst_76 = arith.constant 1.000000e+00 : f32
    %206 = vector.broadcast %cst_76 : f32 to vector<1x1xf32>
    %207 = arith.addf %206, %205 : vector<1x1xf32>
    %cst_77 = arith.constant 1.000000e+00 : f32
    %208 = vector.broadcast %cst_77 : f32 to vector<1x1xf32>
    %209 = arith.divf %208, %207 : vector<1x1xf32>
    %210 = vector.shape_cast %209 : vector<1x1xf32> to vector<1x1xf32>
    %211 = vector.broadcast %210 : vector<1x1xf32> to vector<1x128xf32>
    %212 = vector.extract_strided_slice %130 {offsets = [0, 768], sizes = [64, 256], strides = [1, 1]} : vector<64x1024xf32> to vector<64x256xf32>
    %213 = vector.broadcast %131 : vector<64x1xf32> to vector<64x256xf32>
    %214 = arith.mulf %212, %213 : vector<64x256xf32>
    %215 = vector.broadcast %132 : vector<64x1xf32> to vector<64x256xf32>
    %216 = arith.addf %214, %215 : vector<64x256xf32>
    %cst_78 = arith.constant 0.000000e+00 : f32
    %217 = vector.broadcast %cst_78 : f32 to vector<64x256xf32>
    %218 = arith.cmpf ogt, %216, %217 : vector<64x256xf32>
    %cst_79 = arith.constant 2.000000e-01 : f32
    %219 = vector.broadcast %cst_79 : f32 to vector<64x256xf32>
    %220 = arith.mulf %219, %216 : vector<64x256xf32>
    %221 = arith.select %218, %216, %220 : vector<64x256xi1>, vector<64x256xf32>
    %222 = arith.mulf %221, %133 : vector<64x256xf32>
    %cst_80 = arith.constant dense<0.000000e+00> : vector<64xf32>
    %223 = vector.multi_reduction <add>, %222, %cst_80 [1] : vector<64x256xf32> to vector<64xf32>
    %224 = vector.shape_cast %223 : vector<64xf32> to vector<64x1xf32>
    %cst_81 = arith.constant dense<0.000000e+00> : vector<1xf32>
    %225 = vector.multi_reduction <add>, %224, %cst_81 [0] : vector<64x1xf32> to vector<1xf32>
    %226 = vector.shape_cast %225 : vector<1xf32> to vector<1x1xf32>
    %c0_82 = arith.constant 0 : index
    %c0_83 = arith.constant 0 : index
    %227 = vector.load %arg8[%c0_82, %c0_83] : memref<1x1xf32, #tpu.memory_space<vmem>>, vector<1x1xf32>
    %228 = arith.addf %226, %227 : vector<1x1xf32>
    %cst_84 = arith.constant 0.000000e+00 : f32
    %229 = vector.broadcast %cst_84 : f32 to vector<1x1xf32>
    %230 = arith.subf %229, %228 : vector<1x1xf32>
    %231 = math.exp %230 : vector<1x1xf32>
    %cst_85 = arith.constant 1.000000e+00 : f32
    %232 = vector.broadcast %cst_85 : f32 to vector<1x1xf32>
    %233 = arith.addf %232, %231 : vector<1x1xf32>
    %cst_86 = arith.constant 1.000000e+00 : f32
    %234 = vector.broadcast %cst_86 : f32 to vector<1x1xf32>
    %235 = arith.divf %234, %233 : vector<1x1xf32>
    %236 = vector.shape_cast %235 : vector<1x1xf32> to vector<1x1xf32>
    %237 = vector.broadcast %236 : vector<1x1xf32> to vector<1x128xf32>
    %238 = tpu.concatenate %159, %185, %211, %237 in 0 : vector<1x128xf32>, vector<1x128xf32>, vector<1x128xf32>, vector<1x128xf32> -> vector<4x128xf32>
    %c0_87 = arith.constant 0 : index
    %c0_88 = arith.constant 0 : index
    %c0_89 = arith.constant 0 : index
    %239 = vector.load %arg9[%c0_87, %c0_88, %c0_89] : memref<1x4x128xf32, #tpu.memory_space<vmem>>, vector<1x4x128xf32>
    %240 = vector.shape_cast %239 : vector<1x4x128xf32> to vector<4x128xf32>
    %241 = vector.shape_cast %238 : vector<4x128xf32> to vector<1x4x128xf32>
    tpu.vector_store %arg9[%c0_87, %c0_88, %c0_89], %241 {strides = array<i32>} : memref<1x4x128xf32, #tpu.memory_space<vmem>>, vector<1x4x128xf32>,
    return
  }
  func.func @transform_0(%arg0: i32) -> (i32, i32, i32) {
    %c0_i32 = arith.constant 0 : i32
    %c0_i32_0 = arith.constant 0 : i32
    %c0_i32_1 = arith.constant 0 : i32
    return %arg0, %c0_i32, %c0_i32_0 : i32, i32, i32
  }
  func.func @transform_1(%arg0: i32) -> (i32, i32) {
    %c0_i32 = arith.constant 0 : i32
    %c0_i32_0 = arith.constant 0 : i32
    %c0_i32_1 = arith.constant 0 : i32
    return %c0_i32, %c0_i32_0 : i32, i32
  }
  func.func @transform_2(%arg0: i32) -> (i32, i32) {
    %c0_i32 = arith.constant 0 : i32
    %c0_i32_0 = arith.constant 0 : i32
    %c0_i32_1 = arith.constant 0 : i32
    return %c0_i32, %c0_i32_0 : i32, i32
  }
  func.func @transform_3(%arg0: i32) -> (i32, i32) {
    %c0_i32 = arith.constant 0 : i32
    %c0_i32_0 = arith.constant 0 : i32
    %c0_i32_1 = arith.constant 0 : i32
    return %c0_i32, %c0_i32_0 : i32, i32
  }
  func.func @transform_4(%arg0: i32) -> (i32, i32) {
    %c0_i32 = arith.constant 0 : i32
    %c0_i32_0 = arith.constant 0 : i32
    %c0_i32_1 = arith.constant 0 : i32
    return %c0_i32, %c0_i32_0 : i32, i32
  }
  func.func @transform_5(%arg0: i32) -> (i32, i32) {
    %c0_i32 = arith.constant 0 : i32
    %c0_i32_0 = arith.constant 0 : i32
    %c0_i32_1 = arith.constant 0 : i32
    return %c0_i32, %c0_i32_0 : i32, i32
  }
  func.func @transform_6(%arg0: i32) -> (i32, i32) {
    %c0_i32 = arith.constant 0 : i32
    %c0_i32_0 = arith.constant 0 : i32
    %c0_i32_1 = arith.constant 0 : i32
    return %c0_i32, %c0_i32_0 : i32, i32
  }
  func.func @transform_7(%arg0: i32) -> (i32, i32) {
    %c0_i32 = arith.constant 0 : i32
    %c0_i32_0 = arith.constant 0 : i32
    %c0_i32_1 = arith.constant 0 : i32
    return %c0_i32, %c0_i32_0 : i32, i32
  }
  func.func @transform_8(%arg0: i32) -> (i32, i32, i32) {
    %c0_i32 = arith.constant 0 : i32
    %c0_i32_0 = arith.constant 0 : i32
    %c0_i32_1 = arith.constant 0 : i32
    return %arg0, %c0_i32, %c0_i32_0 : i32, i32, i32
  }
}

</mosaic_0001>

<bundles_post_ra>
// kernel: discriminator_forward.1
= control target key start
LH: loop header
LB: loop body
LE: loop exit
PB: predicated region body
PF: predicated region fallthrough
CT: control target
= control target key end

     0   :  { %s14233_s29 = smov 0   ;;  %s21790_s0 = inlined_call_operand.vmem [shape: bf16[2,32,9216], index: 0, kind: input, shape index: {}]   ;;  %s21791_s1 = inlined_call_operand.vmem [shape: bf16[64,32], index: 1, kind: input, shape index: {}]   ;;  %s21792_s2 = inlined_call_operand.vmem [shape: f32[64,1], index: 2, kind: input, shape index: {}]   ;;  %s21793_s3 = inlined_call_operand.vmem [shape: bf16[64,576], index: 3, kind: input, shape index: {}]   ;;  %s21794_s4 = inlined_call_operand.vmem [shape: f32[64,1], index: 4, kind: input, shape index: {}]   ;;  %s21795_s5 = inlined_call_operand.vmem [shape: f32[64,1], index: 5, kind: input, shape index: {}]   ;;  %s21796_s6 = inlined_call_operand.vmem [shape: f32[64,256], index: 6, kind: input, shape index: {}]   ;;  %s21797_s7 = inlined_call_operand.<no memory space> [shape: f32[1,1], index: 7, kind: input, shape index: {}]   ;;  %s21798_s8 = inlined_call_operand.vmem [shape: f32[2,4,128], index: 8, kind: output, shape index: {}]  }
   0x1   :  { %v13_v0 = vstv %s21797_s7 }
   0x2   :  { %14 = vst [vmem:[#allocation3] sm:$0x1] %v13_v0 }
   0x3 LB: > { %s12175_s30 = sadd.s32 4294967295, %s14182_s29   ;;  %p12179_p0 = scmp.ge.s32.totalorder %s14182_s29, 1  ;;  %s14182_s29 = sphi %s14233_s29, %s20_s29  }
   0x4   : > { %p264_p1 = scmp.lt.s32.totalorder %s14182_s29, 3 }
   0x6   : > { %p265_p2 = pnand %p12179_p0, %p264_p1 }
   0x8   : > { %268 = sbr.rel (%p265_p2) target bundleno = 1687 (0x697), region = 52 }
   0xd   : > { %p297_p3 = scmp.lt.s32.totalorder %s12175_s30, 1  ;;  %v21800_v1 = vmov 0   ;;  %v3887_v2 = vld [vmem:[%s21792_s2 + $0x30] sm:$0xff]  ;;  %v3885_v3 = vld [vmem:[%s21792_s2 + $0x20] sm:$0xff]  ;;  %v3888_v4 = vld [vmem:[%s21792_s2 + $0x38] sm:$0xff]  ;;  %vm1240_vm0 = vcmask 261120  }
   0xe   : > { %1285 = vmatprep.mubr.bf16.mxu0 %v21800_v1  ;;  %1358 = vmatprep.mubr.bf16.mxu1 %v21800_v1  ;;  %v3886_v5 = vld [vmem:[%s21792_s2 + $0x28] sm:$0xff]  ;;  %v3883_v25 = vld [vmem:[%s21792_s2 + $0x10] sm:$0xff]  ;;  %v3884_v26 = vld [vmem:[%s21792_s2 + $0x18] sm:$0xff] }
   0xf   : > { %s24096_s30 = smov (!%p297_p3, %s12175_s30), 1  ;;  %14058 = vset.pattern.permute.xlu0 %v21800_v1  ;;  %14059 = vset.pattern.permute.xlu1 %v21800_v1  ;;  %v14286_v30 = vld [vmem:[%s21791_s1] sm:$0xff]   ;;  %v3882_v44 = vld [vmem:[%s21792_s2 + $0x8] sm:$0xff]  ;;  %v14322_v50 = vld [vmem:[%s21791_s1 + $0x10] sm:$0xff]  }
  0x10   : > { %s14048_s7 = smul.u32 1152, %s24096_s30  ;;  %3921 = vperm.xlu0 %14058, %v3887_v2   ;;  %3911 = vperm.xlu1 %14059, %v3885_v3   ;;  %v3881_v35 = vld [vmem:[%s21792_s2] sm:$0xff]  ;;  %v14311_v45 = vld [vmem:[%s21791_s1 + $0x8] sm:$0xff]   ;;  %v14333_v51 = vld [vmem:[%s21791_s1 + $0x18] sm:$0xff]   ;;  %s12181_s27 = sshll.u32 %s24096_s30, 2 }
  0x11   : > { %s305_s9 = scalar_lea.vmem %s21798_s8, %s12181_s27 }
  0x12   : > { %s14257_s15 = scalar_lea.vmem %s21790_s0, %s14048_s7 }
  0x13   : > { %v428_v6 = vld [vmem:[%s14257_s15 + $0x240] sm:$0xff]  ;;  %v429_v8 = vld [vmem:[%s14257_s15 + $0x248] sm:$0xff]  ;;  %v430_v19 = vld [vmem:[%s14257_s15 + $0x250] sm:$0xff] }
  0x14   : > { %v464_v7 = vld [vmem:[%s14257_s15 + $0x360] sm:$0xff]  ;;  %v465_v10 = vld [vmem:[%s14257_s15 + $0x368] sm:$0xff]  ;;  %3926 = vperm.xlu0 %14058, %v3888_v4   ;;  %v466_v21 = vld [vmem:[%s14257_s15 + $0x370] sm:$0xff]  ;;  %3916 = vperm.xlu1 %14059, %v3886_v5  }
  0x15   : > { %v12259_v9 = vcombine.high %v428_v6, %v464_v7  ;;  %v12258_v11 = vcombine.low %v428_v6, %v464_v7  ;;  %v356_v12 = vld [vmem:[%s14257_s15] sm:$0xff]  ;;  %v12261_v14 = vcombine.high %v429_v8, %v465_v10  ;;  %v12260_v15 = vcombine.low %v429_v8, %v465_v10  ;;  %v357_v17 = vld [vmem:[%s14257_s15 + $0x8] sm:$0xff]  ;;  %v431_v22 = vld [vmem:[%s14257_s15 + $0x258] sm:$0xff] }
  0x16   : > { %v392_v13 = vld [vmem:[%s14257_s15 + $0x120] sm:$0xff]  ;;  %v393_v18 = vld [vmem:[%s14257_s15 + $0x128] sm:$0xff]  ;;  %v467_v23 = vld [vmem:[%s14257_s15 + $0x378] sm:$0xff]  ;;  %v12263_v28 = vcombine.high %v430_v19, %v466_v21  ;;  %v12262_v36 = vcombine.low %v430_v19, %v466_v21 }
  0x17   : > { %v12187_v16 = vcombine.high %v356_v12, %v392_v13  ;;  %1265 = vmatprep.subr.bf16.mxu0 %v12259_v9  ;;  %v12189_v20 = vcombine.high %v357_v17, %v393_v18  ;;  %1338 = vmatprep.subr.bf16.mxu1 %v12261_v14  ;;  %v12186_v24 = vcombine.low %v356_v12, %v392_v13  ;;  %v358_v31 = vld [vmem:[%s14257_s15 + $0x10] sm:$0xff]  ;;  %v359_v33 = vld [vmem:[%s14257_s15 + $0x18] sm:$0xff]  ;;  %v432_v40 = vld [vmem:[%s14257_s15 + $0x260] sm:$0xff] }
  0x18   : > { %1266 = vmatpush1.bf16.msra.mxu0 %v12258_v11  ;;  %1339 = vmatpush1.bf16.msra.mxu1 %v12260_v15  ;;  %v12188_v27 = vcombine.low %v357_v17, %v393_v18  ;;  %v12265_v29 = vcombine.high %v431_v22, %v467_v23  ;;  %v394_v32 = vld [vmem:[%s14257_s15 + $0x130] sm:$0xff]  ;;  %v395_v34 = vld [vmem:[%s14257_s15 + $0x138] sm:$0xff]  ;;  %v12264_v37 = vcombine.low %v431_v22, %v467_v23  ;;  %v468_v41 = vld [vmem:[%s14257_s15 + $0x380] sm:$0xff] }
  0x19   : > { %1267 = vmatprep.subr.bf16.mxu0 %v12187_v16  ;;  %1340 = vmatprep.subr.bf16.mxu1 %v12189_v20  ;;  %v12191_v38 = vcombine.high %v358_v31, %v394_v32  ;;  %v12193_v39 = vcombine.high %v359_v33, %v395_v34  ;;  %v433_v42 = vld [vmem:[%s14257_s15 + $0x268] sm:$0xff]  ;;  %v12190_v46 = vcombine.low %v358_v31, %v394_v32  ;;  %v360_v52 = vld [vmem:[%s14257_s15 + $0x20] sm:$0xff]  ;;  %v434_v60 = vld [vmem:[%s14257_s15 + $0x270] sm:$0xff] }
  0x1a   : > { %3901 = vperm.xlu0 %14058, %v3883_v25   ;;  %3906 = vperm.xlu1 %14059, %v3884_v26   ;;  %v469_v43 = vld [vmem:[%s14257_s15 + $0x388] sm:$0xff]  ;;  %v12192_v47 = vcombine.low %v359_v33, %v395_v34  ;;  %v12267_v48 = vcombine.high %v432_v40, %v468_v41  ;;  %v396_v53 = vld [vmem:[%s14257_s15 + $0x140] sm:$0xff]  ;;  %v12266_v56 = vcombine.low %v432_v40, %v468_v41  ;;  %v470_v61 = vld [vmem:[%s14257_s15 + $0x390] sm:$0xff] }
  0x1b   : > { %v12269_v49 = vcombine.high %v433_v42, %v469_v43  ;;  %v361_v54 = vld [vmem:[%s14257_s15 + $0x28] sm:$0xff]  ;;  %v12268_v57 = vcombine.low %v433_v42, %v469_v43  ;;  %v12195_v58 = vcombine.high %v360_v52, %v396_v53  ;;  %v435_v62 = vld [vmem:[%s14257_s15 + $0x278] sm:$0xff]  ;;  %v12194_v0 = vcombine.low %v360_v52, %v396_v53  ;;  %v362_v5 = vld [vmem:[%s14257_s15 + $0x30] sm:$0xff] }
  0x1c   : > { %1268 = vmatpush1.bf16.msra.mxu0 %v12186_v24  ;;  %1341 = vmatpush1.bf16.msra.mxu1 %v12188_v27  ;;  %v397_v55 = vld [vmem:[%s14257_s15 + $0x148] sm:$0xff]  ;;  %v471_v63 = vld [vmem:[%s14257_s15 + $0x398] sm:$0xff]  ;;  %v12271_v3 = vcombine.high %v434_v60, %v470_v61  ;;  %v398_v6 = vld [vmem:[%s14257_s15 + $0x150] sm:$0xff]  ;;  %v12270_v9 = vcombine.low %v434_v60, %v470_v61 }
  0x1d   : > { %1411 = vmatprep.subr.bf16.mxu0 %v12263_v28  ;;  %1484 = vmatprep.subr.bf16.mxu1 %v12265_v29  ;;  %v12197_v59 = vcombine.high %v361_v54, %v397_v55  ;;  %v12196_v2 = vcombine.low %v361_v54, %v397_v55  ;;  %v12273_v4 = vcombine.high %v435_v62, %v471_v63  ;;  %v363_v7 = vld [vmem:[%s14257_s15 + $0x38] sm:$0xff]  ;;  %v436_v13 = vld [vmem:[%s14257_s15 + $0x280] sm:$0xff]  ;;  %v437_v15 = vld [vmem:[%s14257_s15 + $0x288] sm:$0xff] }
  0x1e   : > { %3891 = vperm.xlu0 %14058, %v3881_v35   ;;  %3896 = vperm.xlu1 %14059, %v3882_v44   ;;  %v399_v8 = vld [vmem:[%s14257_s15 + $0x158] sm:$0xff]  ;;  %v12272_v10 = vcombine.low %v435_v62, %v471_v63  ;;  %v12199_v11 = vcombine.high %v362_v5, %v398_v6  ;;  %v472_v14 = vld [vmem:[%s14257_s15 + $0x3a0] sm:$0xff]  ;;  %v473_v16 = vld [vmem:[%s14257_s15 + $0x3a8] sm:$0xff]  ;;  %v12198_v17 = vcombine.low %v362_v5, %v398_v6 }
  0x1f   : > { %12330 = vmatmul.mubr.msk.bf16.vlgmr.msra.gmra.mxu0 %vm1240_vm0, %v14286_v30  ;;  %12334 = vmatmul.mubr.msk.bf16.vlgmr.msra.gmra.mxu1 %vm1240_vm0, %v14286_v30  ;;  %v12201_v12 = vcombine.high %v363_v7, %v399_v8  ;;  %v12200_v18 = vcombine.low %v363_v7, %v399_v8  ;;  %v12275_v19 = vcombine.high %v436_v13, %v472_v14  ;;  %v364_v21 = vld [vmem:[%s14257_s15 + $0x40] sm:$0xff]  ;;  %v365_v23 = vld [vmem:[%s14257_s15 + $0x48] sm:$0xff]  ;;  %v438_v29 = vld [vmem:[%s14257_s15 + $0x290] sm:$0xff] }
  0x20   : > { %1295 = vmatprep.mubr.bf16.mxu0 %v21800_v1  ;;  %1368 = vmatprep.mubr.bf16.mxu1 %v21800_v1  ;;  %v12277_v20 = vcombine.high %v437_v15, %v473_v16  ;;  %v400_v22 = vld [vmem:[%s14257_s15 + $0x160] sm:$0xff]  ;;  %v401_v24 = vld [vmem:[%s14257_s15 + $0x168] sm:$0xff]  ;;  %v12274_v25 = vcombine.low %v436_v13, %v472_v14  ;;  %v12276_v26 = vcombine.low %v437_v15, %v473_v16  ;;  %v474_v31 = vld [vmem:[%s14257_s15 + $0x3b0] sm:$0xff] }
  0x21   : > { %1412 = vmatpush1.bf16.msra.mxu0 %v12262_v36  ;;  %1485 = vmatpush1.bf16.msra.mxu1 %v12264_v37  ;;  %v12203_v27 = vcombine.high %v364_v21, %v400_v22  ;;  %v12205_v28 = vcombine.high %v365_v23, %v401_v24  ;;  %v439_v32 = vld [vmem:[%s14257_s15 + $0x298] sm:$0xff]  ;;  %v12202_v34 = vcombine.low %v364_v21, %v400_v22  ;;  %v477_v52 = vld [vmem:[%s14257_s15 + $0x3c8] sm:$0xff] }
  0x22   : > { %1413 = vmatprep.subr.bf16.mxu0 %v12191_v38  ;;  %1486 = vmatprep.subr.bf16.mxu1 %v12193_v39  ;;  %v475_v33 = vld [vmem:[%s14257_s15 + $0x3b8] sm:$0xff]  ;;  %v12204_v35 = vcombine.low %v365_v23, %v401_v24  ;;  %v12279_v36 = vcombine.high %v438_v29, %v474_v31  ;;  %v366_v38 = vld [vmem:[%s14257_s15 + $0x50] sm:$0xff]  ;;  %v12278_v42 = vcombine.low %v438_v29, %v474_v31  ;;  %v405_v60 = vld [vmem:[%s14257_s15 + $0x188] sm:$0xff] }
  0x23   : > { %v12281_v37 = vcombine.high %v439_v32, %v475_v33  ;;  %v402_v39 = vld [vmem:[%s14257_s15 + $0x170] sm:$0xff]  ;;  %v367_v40 = vld [vmem:[%s14257_s15 + $0x58] sm:$0xff]  ;;  %v12280_v43 = vcombine.low %v439_v32, %v475_v33  ;;  %v14544_v24 = vld [vmem:[%s14257_s15 + $0x2c0] sm:$0xff] }
  0x24   : > { %v403_v41 = vld [vmem:[%s14257_s15 + $0x178] sm:$0xff]  ;;  %v12207_v44 = vcombine.high %v366_v38, %v402_v39  ;;  %v12206_v53 = vcombine.low %v366_v38, %v402_v39  ;;  %v14564_v32 = vld [vmem:[%s14257_s15 + $0x80] sm:$0xff]  ;;  %v14582_v39 = vld [vmem:[%s14257_s15 + $0x1a8] sm:$0xff] }
  0x25   : > { %1414 = vmatpush1.bf16.msra.mxu0 %v12190_v46  ;;  %1487 = vmatpush1.bf16.msra.mxu1 %v12192_v47  ;;  %v12209_v46 = vcombine.high %v367_v40, %v403_v41  ;;  %v440_v47 = vld [vmem:[%s14257_s15 + $0x2a0] sm:$0xff]  ;;  %v12208_v54 = vcombine.low %v367_v40, %v403_v41  ;;  %v14488_v5 = vld [vmem:[%s14257_s15 + $0x3d8] sm:$0xff]  ;;  %v14585_v40 = vld [vmem:[%s14257_s15 + $0x2d0] sm:$0xff] }
  0x26   : > { %1557 = vmatprep.subr.bf16.mxu0 %v12267_v48  ;;  %1630 = vmatprep.subr.bf16.mxu1 %v12269_v49  ;;  %v476_v48 = vld [vmem:[%s14257_s15 + $0x3c0] sm:$0xff]  ;;  %v441_v49 = vld [vmem:[%s14257_s15 + $0x2a8] sm:$0xff]  ;;  %v14538_v22 = vld [vmem:[%s14257_s15 + $0x78] sm:$0xff] }
  0x27   : > { %12331 = vmatmul.mubr.msk.bf16.gmra.mxu0 %vm1240_vm0, %v14311_v45  ;;  %12335 = vmatmul.mubr.msk.bf16.gmra.mxu1 %vm1240_vm0, %v14311_v45  ;;  %v12283_v55 = vcombine.high %v440_v47, %v476_v48  ;;  %v12282_v61 = vcombine.low %v440_v47, %v476_v48  ;;  %v12284_v62 = vcombine.low %v441_v49, %v477_v52  ;;  %v14541_v23 = vld [vmem:[%s14257_s15 + $0x198] sm:$0xff]  ;;  %v14567_v33 = vld [vmem:[%s14257_s15 + $0x1a0] sm:$0xff]  ;;  %v14588_v41 = vld [vmem:[%s14257_s15 + $0x3f0] sm:$0xff] }
  0x28   : > { %1305 = vmatprep.mubr.bf16.mxu0 %v21800_v1  ;;  %1378 = vmatprep.mubr.bf16.mxu1 %v21800_v1 }
  0x2f   : > { %12332 = vmatmul.mubr.msk.bf16.gmra.mxu0 %vm1240_vm0, %v14322_v50  ;;  %12336 = vmatmul.mubr.msk.bf16.gmra.mxu1 %vm1240_vm0, %v14322_v50 }
  0x30   : > { %1315 = vmatprep.mubr.bf16.mxu0 %v21800_v1  ;;  %1388 = vmatprep.mubr.bf16.mxu1 %v21800_v1 }
  0x37   : > { %12333 = vmatmul.mubr.msk.bf16.gmra.mxu0 %vm1240_vm0, %v14333_v51  ;;  %12337 = vmatmul.mubr.msk.bf16.gmra.mxu1 %vm1240_vm0, %v14333_v51 }
  0x38   : > { %1431 = vmatprep.mubr.bf16.mxu0 %v21800_v1  ;;  %1504 = vmatprep.mubr.bf16.mxu1 %v21800_v1 }
  0x3f   : > { %12338 = vmatmul.mubr.msk.bf16.vlgmr.msra.gmra.mxu0 %vm1240_vm0, %v14286_v30  ;;  %12342 = vmatmul.mubr.msk.bf16.vlgmr.msra.gmra.mxu1 %vm1240_vm0, %v14286_v30 }
  0x40   : > { %1441 = vmatprep.mubr.bf16.mxu0 %v21800_v1  ;;  %1514 = vmatprep.mubr.bf16.mxu1 %v21800_v1 }
  0x41   : > { %1558 = vmatpush1.bf16.msra.mxu0 %v12266_v56  ;;  %1631 = vmatpush1.bf16.msra.mxu1 %v12268_v57  ;;  %v12285_v56 = vcombine.high %v441_v49, %v477_v52  ;;  %v368_v57 = vld [vmem:[%s14257_s15 + $0x60] sm:$0xff]  ;;  %v14606_v49 = vld [vmem:[%s14257_s15 + $0x2d8] sm:$0xff] }
  0x42   : > { %1559 = vmatprep.subr.bf16.mxu0 %v12195_v58  ;;  %1632 = vmatprep.subr.bf16.mxu1 %v12197_v59  ;;  %v404_v58 = vld [vmem:[%s14257_s15 + $0x180] sm:$0xff]  ;;  %v369_v59 = vld [vmem:[%s14257_s15 + $0x68] sm:$0xff]  ;;  %v14609_v52 = vld [vmem:[%s14257_s15 + $0x3f8] sm:$0xff] }
  0x43   : > { %v12211_v63 = vcombine.high %v368_v57, %v404_v58  ;;  %v12210_v6 = vcombine.low %v368_v57, %v404_v58  ;;  %v12212_v7 = vcombine.low %v369_v59, %v405_v60  ;;  %v14620_v57 = vld [vmem:[%s14257_s15 + $0x90] sm:$0xff] }
  0x44   : > { %v14623_v58 = vld [vmem:[%s14257_s15 + $0x1b0] sm:$0xff] }
  0x45   : > { %1560 = vmatpush1.bf16.msra.mxu0 %v12194_v0  ;;  %1633 = vmatpush1.bf16.msra.mxu1 %v12196_v2  ;;  %v12213_v0 = vcombine.high %v369_v59, %v405_v60  ;;  %v14476_v2 = vld [vmem:[%s14257_s15 + $0x2b0] sm:$0xff]  ;;  %v14669_v60 = vld [vmem:[%s14257_s15 + $0x400] sm:$0xff] }
  0x46   : > { %1703 = vmatprep.subr.bf16.mxu0 %v12271_v3  ;;  %1776 = vmatprep.subr.bf16.mxu1 %v12273_v4  ;;  %v14479_v3 = vld [vmem:[%s14257_s15 + $0x3d0] sm:$0xff]  ;;  %v14485_v4 = vld [vmem:[%s14257_s15 + $0x2b8] sm:$0xff] }
  0x47   : > { %12339 = vmatmul.mubr.msk.bf16.gmra.mxu0 %vm1240_vm0, %v14311_v45  ;;  %12343 = vmatmul.mubr.msk.bf16.gmra.mxu1 %vm1240_vm0, %v14311_v45  ;;  %v12287_v8 = vcombine.high %v14476_v2, %v14479_v3  ;;  %v12286_v31 = vcombine.low %v14476_v2, %v14479_v3 }
  0x48   : > { %1451 = vmatprep.mubr.bf16.mxu0 %v21800_v1  ;;  %1524 = vmatprep.mubr.bf16.mxu1 %v21800_v1 }
  0x4f   : > { %12340 = vmatmul.mubr.msk.bf16.gmra.mxu0 %vm1240_vm0, %v14322_v50  ;;  %12344 = vmatmul.mubr.msk.bf16.gmra.mxu1 %vm1240_vm0, %v14322_v50 }
  0x50   : > { %1461 = vmatprep.mubr.bf16.mxu0 %v21800_v1  ;;  %1534 = vmatprep.mubr.bf16.mxu1 %v21800_v1 }
  0x57   : > { %12341 = vmatmul.mubr.msk.bf16.gmra.mxu0 %vm1240_vm0, %v14333_v51  ;;  %12345 = vmatmul.mubr.msk.bf16.gmra.mxu1 %vm1240_vm0, %v14333_v51 }
  0x58   : > { %1577 = vmatprep.mubr.bf16.mxu0 %v21800_v1  ;;  %1650 = vmatprep.mubr.bf16.mxu1 %v21800_v1 }
  0x5f   : > { %12346 = vmatmul.mubr.msk.bf16.vlgmr.msra.gmra.mxu0 %vm1240_vm0, %v14286_v30  ;;  %12350 = vmatmul.mubr.msk.bf16.vlgmr.msra.gmra.mxu1 %vm1240_vm0, %v14286_v30 }
  0x60   : > { %1587 = vmatprep.mubr.bf16.mxu0 %v21800_v1  ;;  %1660 = vmatprep.mubr.bf16.mxu1 %v21800_v1 }
  0x61   : > { %1704 = vmatpush1.bf16.msra.mxu0 %v12270_v9  ;;  %1777 = vmatpush1.bf16.msra.mxu1 %v12272_v10  ;;  %v12289_v9 = vcombine.high %v14485_v4, %v14488_v5 }
  0x62   : > { %1705 = vmatprep.subr.bf16.mxu0 %v12199_v11  ;;  %1778 = vmatprep.subr.bf16.mxu1 %v12201_v12  ;;  %v21799_v12 = vlaneseq }
  0x64   : > { %v14514_v14 = vand.u32 127, %v21799_v12 }
  0x65   : > { %1706 = vmatpush1.bf16.msra.mxu0 %v12198_v17  ;;  %1779 = vmatpush1.bf16.msra.mxu1 %v12200_v18 }
  0x66   : > { %1849 = vmatprep.subr.bf16.mxu0 %v12275_v19  ;;  %1922 = vmatprep.subr.bf16.mxu1 %v12277_v20  ;;  %22339 = vst [vmem:[#allocation7_spill] sm:$0xff] %v14514_v14  ;;  %v14519_v16 = vadd.s32 256, %v14514_v14  ;;  %v316_v18 = vand.u32 255, %v14514_v14  ;;  %v14530_v19 = vld [vmem:[%s14257_s15 + $0x70] sm:$0xff]  ;;  %v14579_v38 = vadd.s32 512, %v14514_v14  ;;  %v14601_v47 = vadd.s32 768, %v14514_v14 }
  0x67   : > { %12347 = vmatmul.mubr.msk.bf16.gmra.mxu0 %vm1240_vm0, %v14311_v45  ;;  %12351 = vmatmul.mubr.msk.bf16.gmra.mxu1 %vm1240_vm0, %v14311_v45  ;;  %v14533_v20 = vld [vmem:[%s14257_s15 + $0x190] sm:$0xff] }
  0x68   : > { %1597 = vmatprep.mubr.bf16.mxu0 %v21800_v1  ;;  %1670 = vmatprep.mubr.bf16.mxu1 %v21800_v1  ;;  %22341 = vst [vmem:[#allocation9_spill] sm:$0xff] %v14519_v16  ;;  %v318_v21 = vand.u32 255, %v14519_v16  ;;  %vm14557_vm1 = vcmp.ge.s32.totalorder %v316_v18, 16  ;;  %22346 = vst [vmem:[#allocation12_spill] sm:$0xff] %v14579_v38 }
  0x69   : > { %22351 = vst [vmem:[#allocation15_spill] sm:$0xff] %v14601_v47 }
  0x6a   : > { %vm14592_vm2 = vcmp.ge.s32.totalorder %v318_v21, 16 }
  0x6f   : > { %12348 = vmatmul.mubr.msk.bf16.gmra.mxu0 %vm1240_vm0, %v14322_v50  ;;  %12352 = vmatmul.mubr.msk.bf16.gmra.mxu1 %vm1240_vm0, %v14322_v50 }
  0x70   : > { %1607 = vmatprep.mubr.bf16.mxu0 %v21800_v1  ;;  %1680 = vmatprep.mubr.bf16.mxu1 %v21800_v1 }
  0x77   : > { %12349 = vmatmul.mubr.msk.bf16.gmra.mxu0 %vm1240_vm0, %v14333_v51  ;;  %12353 = vmatmul.mubr.msk.bf16.gmra.mxu1 %vm1240_vm0, %v14333_v51 }
  0x78   : > { %1723 = vmatprep.mubr.bf16.mxu0 %v21800_v1  ;;  %1796 = vmatprep.mubr.bf16.mxu1 %v21800_v1 }
  0x7f   : > { %12354 = vmatmul.mubr.msk.bf16.vlgmr.msra.gmra.mxu0 %vm1240_vm0, %v14286_v30  ;;  %12358 = vmatmul.mubr.msk.bf16.vlgmr.msra.gmra.mxu1 %vm1240_vm0, %v14286_v30 }
  0x80   : > { %1733 = vmatprep.mubr.bf16.mxu0 %v21800_v1  ;;  %1806 = vmatprep.mubr.bf16.mxu1 %v21800_v1 }
  0x81   : > { %1850 = vmatpush1.bf16.msra.mxu0 %v12274_v25  ;;  %1923 = vmatpush1.bf16.msra.mxu1 %v12276_v26  ;;  %v14547_v25 = vld [vmem:[%s14257_s15 + $0x3e0] sm:$0xff]  ;;  %v14550_v26 = vld [vmem:[%s14257_s15 + $0x2c8] sm:$0xff] }
  0x82   : > { %1851 = vmatprep.subr.bf16.mxu0 %v12203_v27  ;;  %1924 = vmatprep.subr.bf16.mxu1 %v12205_v28  ;;  %v14553_v27 = vld [vmem:[%s14257_s15 + $0x3e8] sm:$0xff] }
  0x85   : > { %1852 = vmatpush1.bf16.msra.mxu0 %v12202_v34  ;;  %1925 = vmatpush1.bf16.msra.mxu1 %v12204_v35  ;;  %v14570_v34 = vld [vmem:[%s14257_s15 + $0x88] sm:$0xff]  ;;  %v12288_v35 = vcombine.low %v14485_v4, %v14488_v5 }
  0x86   : > { %1995 = vmatprep.subr.bf16.mxu0 %v12279_v36  ;;  %2068 = vmatprep.subr.bf16.mxu1 %v12281_v37  ;;  %v12214_v36 = vcombine.low %v14530_v19, %v14533_v20  ;;  %v12215_v37 = vcombine.high %v14530_v19, %v14533_v20 }
  0x87   : > { %12355 = vmatmul.mubr.msk.bf16.gmra.mxu0 %vm1240_vm0, %v14311_v45  ;;  %12359 = vmatmul.mubr.msk.bf16.gmra.mxu1 %vm1240_vm0, %v14311_v45 }
  0x88   : > { %1743 = vmatprep.mubr.bf16.mxu0 %v21800_v1  ;;  %1816 = vmatprep.mubr.bf16.mxu1 %v21800_v1 }
  0x8b   : > { %v14501_v10 = vpop.permute.xlu0 %3921  ;;  %v14505_v11 = vpop.permute.xlu1 %3911 }
  0x8c   : > { %22336 = vst [vmem:[#allocation4_spill] sm:$0xff] %v14501_v10  ;;  %22337 = vst [vmem:[#allocation5_spill] sm:$0xff] %v14505_v11 }
  0x8f   : > { %12356 = vmatmul.mubr.msk.bf16.gmra.mxu0 %vm1240_vm0, %v14322_v50  ;;  %12360 = vmatmul.mubr.msk.bf16.gmra.mxu1 %vm1240_vm0, %v14322_v50  ;;  %v14511_v13 = vpop.permute.xlu0 %3926  ;;  %v14516_v15 = vpop.permute.xlu1 %3916 }
  0x90   : > { %1753 = vmatprep.mubr.bf16.mxu0 %v21800_v1  ;;  %1826 = vmatprep.mubr.bf16.mxu1 %v21800_v1  ;;  %22338 = vst [vmem:[#allocation6_spill] sm:$0xff] %v14511_v13  ;;  %22340 = vst [vmem:[#allocation8_spill] sm:$0xff] %v14516_v15 }
  0x95   : > { %v14523_v17 = vpop.permute.xlu0 %3901  ;;  %v14555_v28 = vpop.permute.xlu1 %3906 }
  0x96   : > { %22342 = vst [vmem:[#allocation10_spill] sm:$0xff] %v14523_v17  ;;  %22343 = vst [vmem:[#allocation11_spill] sm:$0xff] %v14555_v28 }
  0x97   : > { %12357 = vmatmul.mubr.msk.bf16.gmra.mxu0 %vm1240_vm0, %v14333_v51  ;;  %12361 = vmatmul.mubr.msk.bf16.gmra.mxu1 %vm1240_vm0, %v14333_v51 }
  0x98   : > { %1869 = vmatprep.mubr.bf16.mxu0 %v21800_v1  ;;  %1942 = vmatprep.mubr.bf16.mxu1 %v21800_v1 }
  0x99   : > { %v14651_v18 = vpop.permute.xlu1 %3896 }
  0x9a   : > { %22352 = vst [vmem:[#allocation16_spill] sm:$0xff] %v14651_v18 }
  0x9f   : > { %12362 = vmatmul.mubr.msk.bf16.vlgmr.msra.gmra.mxu0 %vm1240_vm0, %v14286_v30  ;;  %12366 = vmatmul.mubr.msk.bf16.vlgmr.msra.gmra.mxu1 %vm1240_vm0, %v14286_v30 }
  0xa0   : > { %1879 = vmatprep.mubr.bf16.mxu0 %v21800_v1  ;;  %1952 = vmatprep.mubr.bf16.mxu1 %v21800_v1 }
  0xa1   : > { %1996 = vmatpush1.bf16.msra.mxu0 %v12278_v42  ;;  %2069 = vmatpush1.bf16.msra.mxu1 %v12280_v43  ;;  %v14590_v42 = vpop.permute.xlu0 %3891  ;;  %v22348_v43 = vmov 0 }
  0xa2   : > { %1997 = vmatprep.subr.bf16.mxu0 %v12207_v44  ;;  %2070 = vmatprep.subr.bf16.mxu1 %v12209_v46  ;;  %22347 = vst [vmem:[#allocation13_spill] sm:$0xff] %v14590_v42  ;;  %v22349_v43 = vsel %vm14592_vm2, 4294967295, %v22348_v43  ;;  %v12216_v44 = vcombine.low %v14538_v22, %v14541_v23  ;;  %v12217_v46 = vcombine.high %v14538_v22, %v14541_v23 }
  0xa3   : > { %22350 = vst [vmem:[#allocation14_spill] sm:$0xff] %v22349_v43 }
  0xa5   : > { %1998 = vmatpush1.bf16.msra.mxu0 %v12206_v53  ;;  %2071 = vmatpush1.bf16.msra.mxu1 %v12208_v54  ;;  %v12291_v53 = vcombine.high %v14544_v24, %v14547_v25 }
  0xa6   : > { %2141 = vmatprep.subr.bf16.mxu0 %v12283_v55  ;;  %2214 = vmatprep.subr.bf16.mxu1 %v12285_v56  ;;  %v12293_v55 = vcombine.high %v14550_v26, %v14553_v27 }
  0xa7   : > { %12363 = vmatmul.mubr.msk.bf16.gmra.mxu0 %vm1240_vm0, %v14311_v45  ;;  %12367 = vmatmul.mubr.msk.bf16.gmra.mxu1 %vm1240_vm0, %v14311_v45 }
  0xa8   : > { %1889 = vmatprep.mubr.bf16.mxu0 %v21800_v1  ;;  %1962 = vmatprep.mubr.bf16.mxu1 %v21800_v1 }
  0xaf   : > { %12364 = vmatmul.mubr.msk.bf16.gmra.mxu0 %vm1240_vm0, %v14322_v50  ;;  %12368 = vmatmul.mubr.msk.bf16.gmra.mxu1 %vm1240_vm0, %v14322_v50 }
  0xb0   : > { %1899 = vmatprep.mubr.bf16.mxu0 %v21800_v1  ;;  %1972 = vmatprep.mubr.bf16.mxu1 %v21800_v1 }
  0xb7   : > { %12365 = vmatmul.mubr.msk.bf16.gmra.mxu0 %vm1240_vm0, %v14333_v51  ;;  %12369 = vmatmul.mubr.msk.bf16.gmra.mxu1 %vm1240_vm0, %v14333_v51 }
  0xb8   : > { %2015 = vmatprep.mubr.bf16.mxu0 %v21800_v1  ;;  %2088 = vmatprep.mubr.bf16.mxu1 %v21800_v1 }
  0xbf   : > { %12370 = vmatmul.mubr.msk.bf16.vlgmr.msra.gmra.mxu0 %vm1240_vm0, %v14286_v30  ;;  %12374 = vmatmul.mubr.msk.bf16.vlgmr.msra.gmra.mxu1 %vm1240_vm0, %v14286_v30 }
  0xc0   : > { %2025 = vmatprep.mubr.bf16.mxu0 %v21800_v1  ;;  %2098 = vmatprep.mubr.bf16.mxu1 %v21800_v1 }
  0xc1   : > { %2142 = vmatpush1.bf16.msra.mxu0 %v12282_v61  ;;  %2215 = vmatpush1.bf16.msra.mxu1 %v12284_v62 }
  0xc2   : > { %2143 = vmatprep.subr.bf16.mxu0 %v12211_v63  ;;  %2216 = vmatprep.subr.bf16.mxu1 %v12213_v0 }
  0xc5   : > { %2144 = vmatpush1.bf16.msra.mxu0 %v12210_v6  ;;  %2217 = vmatpush1.bf16.msra.mxu1 %v12212_v7  ;;  %v14645_v6 = vld [vmem:[%s14257_s15 + $0x98] sm:$0xff] }
  0xc6   : > { %2287 = vmatprep.subr.bf16.mxu0 %v12287_v8  ;;  %2360 = vmatprep.subr.bf16.mxu1 %v12289_v9  ;;  %v14648_v7 = vld [vmem:[%s14257_s15 + $0x1b8] sm:$0xff] }
  0xc7   : > { %12371 = vmatmul.mubr.msk.bf16.gmra.mxu0 %vm1240_vm0, %v14311_v45  ;;  %12375 = vmatmul.mubr.msk.bf16.gmra.mxu1 %vm1240_vm0, %v14311_v45 }
  0xc8   : > { %2035 = vmatprep.mubr.bf16.mxu0 %v21800_v1  ;;  %2108 = vmatprep.mubr.bf16.mxu1 %v21800_v1 }
  0xcf   : > { %12372 = vmatmul.mubr.msk.bf16.gmra.mxu0 %vm1240_vm0, %v14322_v50  ;;  %12376 = vmatmul.mubr.msk.bf16.gmra.mxu1 %vm1240_vm0, %v14322_v50 }
  0xd0   : > { %2045 = vmatprep.mubr.bf16.mxu0 %v21800_v1  ;;  %2118 = vmatprep.mubr.bf16.mxu1 %v21800_v1 }
  0xd7   : > { %12373 = vmatmul.mubr.msk.bf16.gmra.mxu0 %vm1240_vm0, %v14333_v51  ;;  %12377 = vmatmul.mubr.msk.bf16.gmra.mxu1 %vm1240_vm0, %v14333_v51 }
  0xd8   : > { %2161 = vmatprep.mubr.bf16.mxu0 %v21800_v1  ;;  %2234 = vmatprep.mubr.bf16.mxu1 %v21800_v1 }
  0xdf   : > { %v1287_v59 = vpop.f32.mrf.mxu0  ;;  %12378 = vmatmul.mubr.msk.bf16.vlgmr.msra.gmra.mxu0 %vm1240_vm0, %v14286_v30  ;;  %v1360_v2 = vpop.f32.mrf.mxu1  ;;  %12382 = vmatmul.mubr.msk.bf16.vlgmr.msra.gmra.mxu1 %vm1240_vm0, %v14286_v30 }
  0xe0   : > { %v3929_v0 = vadd.f32 %v14590_v42, %v1287_v59  ;;  %2171 = vmatprep.mubr.bf16.mxu0 %v21800_v1  ;;  %v3931_v8 = vadd.f32 %v14590_v42, %v1360_v2  ;;  %2244 = vmatprep.mubr.bf16.mxu1 %v21800_v1  ;;  %v14666_v59 = vld [vmem:[%s14257_s15 + $0x2e0] sm:$0xff] }
  0xe1   : > { %v1289_v9 = vpop.f32.mrf.mxu0  ;;  %2288 = vmatpush1.bf16.msra.mxu0 %v12286_v31  ;;  %v1362_v63 = vpop.f32.mrf.mxu1  ;;  %2361 = vmatpush1.bf16.msra.mxu1 %v12288_v35 }
  0xe2   : > { %vm3993_vm3 = vcmp.gt.f32.partialorder %v3929_v0, 0.0  ;;  %v4057_v12 = vmul.f32 0.2, %v3929_v0  ;;  %v3930_v2 = vadd.f32 %v14590_v42, %v1289_v9  ;;  %2289 = vmatprep.subr.bf16.mxu0 %v12215_v37  ;;  %vm3995_vm4 = vcmp.gt.f32.partialorder %v3931_v8, 0.0  ;;  %2362 = vmatprep.subr.bf16.mxu1 %v12217_v46 }
  0xe3   : > { %v4059_v5 = vmul.f32 0.2, %v3931_v8  ;;  %v3932_v4 = vadd.f32 %v14590_v42, %v1362_v63  ;;  %v1291_v61 = vpop.f32.mrf.mxu0  ;;  %v1364_v30 = vpop.f32.mrf.mxu1 }
  0xe4   : > { %v4121_v9 = vsel %vm3993_vm3, %v3929_v0, %v4057_v12  ;;  %vm3994_vm5 = vcmp.gt.f32.partialorder %v3930_v2, 0.0  ;;  %v4058_v35 = vmul.f32 0.2, %v3930_v2  ;;  %v3937_v37 = vadd.f32 %v14651_v18, %v1291_v61 }
  0xe5   : > { %v4123_v31 = vsel %vm3995_vm4, %v3931_v8, %v4059_v5  ;;  %vm3996_vm6 = vcmp.gt.f32.partialorder %v3932_v4, 0.0  ;;  %v4060_v62 = vmul.f32 0.2, %v3932_v4  ;;  %v1293_v56 = vpop.f32.mrf.mxu0  ;;  %2290 = vmatpush1.bf16.msra.mxu0 %v12214_v36  ;;  %v4201_v63 = vsel %vm14557_vm1, %v4121_v9, 0.0  ;;  %v1366_v0 = vpop.f32.mrf.mxu1  ;;  %2363 = vmatpush1.bf16.msra.mxu1 %v12216_v44 }
  0xe6   : > { %vm4001_vm7 = vcmp.gt.f32.partialorder %v3937_v37, 0.0  ;;  %v4065_v12 = vmul.f32 0.2, %v3937_v37  ;;  %2433 = vmatprep.subr.bf16.mxu0 %v12291_v53  ;;  %v14685_v19 = vsel %vm3994_vm5, %v3930_v2, %v4058_v35  ;;  %v3939_v20 = vadd.f32 %v14651_v18, %v1364_v30  ;;  %2506 = vmatprep.subr.bf16.mxu1 %v12293_v55 }
  0xe7   : > { %22353 = vst [vmem:[#allocation17_spill] sm:$0xff] %v14685_v19  ;;  %v3938_v36 = vadd.f32 %v14651_v18, %v1293_v56  ;;  %v3940_v5 = vadd.f32 %v14651_v18, %v1366_v0  ;;  %v1297_v8 = vpop.f32.mrf.mxu0  ;;  %12379 = vmatmul.mubr.msk.bf16.gmra.mxu0 %vm1240_vm0, %v14311_v45  ;;  %v4203_v22 = vsel %vm14592_vm2, %v4123_v31, 0.0  ;;  %v14695_v23 = vsel %vm3996_vm6, %v3932_v4, %v4060_v62  ;;  %v1370_v2 = vpop.f32.mrf.mxu1 }
  0xe8   : > { %22354 = vst [vmem:[#allocation18_spill] sm:$0xff] %v14695_v23  ;;  %v4129_v44 = vsel %vm4001_vm7, %v3937_v37, %v4065_v12  ;;  %v3945_v53 = vadd.f32 %v14523_v17, %v1297_v8  ;;  %12383 = vmatmul.mubr.msk.bf16.gmra.mxu1 %vm1240_vm0, %v14311_v45  ;;  %2181 = vmatprep.mubr.bf16.mxu0 %v21800_v1  ;;  %vm4003_vm8 = vcmp.gt.f32.partialorder %v3939_v20, 0.0  ;;  %v4067_v30 = vmul.f32 0.2, %v3939_v20 }
  0xe9   : > { %v4209_v56 = vsel %vm14557_vm1, %v4129_v44, 0.0  ;;  %vm4002_vm9 = vcmp.gt.f32.partialorder %v3938_v36, 0.0  ;;  %v1299_v9 = vpop.f32.mrf.mxu0  ;;  %2254 = vmatprep.mubr.bf16.mxu1 %v21800_v1  ;;  %v4066_v4 = vmul.f32 0.2, %v3938_v36  ;;  %vm4004_vm10 = vcmp.gt.f32.partialorder %v3940_v5, 0.0  ;;  %v1372_v31 = vpop.f32.mrf.mxu1 }
  0xea   : > { %v14707_v62 = vpack.c.bf16 %v4209_v56, %v4201_v63  ;;  %v4068_v45 = vmul.f32 0.2, %v3940_v5  ;;  %v4131_v35 = vsel %vm4003_vm8, %v3939_v20, %v4067_v30  ;;  %vm4009_vm11 = vcmp.gt.f32.partialorder %v3945_v53, 0.0 }
  0xeb   : > { %v4073_v37 = vmul.f32 0.2, %v3945_v53  ;;  %v3947_v12 = vadd.f32 %v14523_v17, %v1370_v2  ;;  %v1301_v0 = vpop.f32.mrf.mxu0  ;;  %v4211_v8 = vsel %vm14592_vm2, %v4131_v35, 0.0  ;;  %v14712_v44 = vsel %vm4002_vm9, %v3938_v36, %v4066_v4  ;;  %v1374_v63 = vpop.f32.mrf.mxu1 }
  0xec   : > { %22355 = vst [vmem:[#allocation19_spill] sm:$0xff] %v14707_v62  ;;  %22356 = vst [vmem:[#allocation20_spill] sm:$0xff] %v14712_v44  ;;  %v14714_v61 = vsel %vm4004_vm10, %v3940_v5, %v4068_v45  ;;  %v3946_v55 = vadd.f32 %v14523_v17, %v1299_v9  ;;  %v14717_v56 = vpack.c.bf16 %v4211_v8, %v4203_v22 }
  0xed   : > { %22357 = vst [vmem:[#allocation21_spill] sm:$0xff] %v14714_v61  ;;  %v4137_v2 = vsel %vm4009_vm11, %v3945_v53, %v4073_v37  ;;  %v1303_v21 = vpop.f32.mrf.mxu0  ;;  %vm4011_vm12 = vcmp.gt.f32.partialorder %v3947_v12, 0.0  ;;  %v4075_v36 = vmul.f32 0.2, %v3947_v12  ;;  %v1376_v5 = vpop.f32.mrf.mxu1  ;;  %v3948_v9 = vadd.f32 %v14523_v17, %v1372_v31 }
  0xee   : > { %22358 = vst [vmem:[#allocation22_spill] sm:$0xff] %v14717_v56  ;;  %v4217_v35 = vsel %vm14557_vm1, %v4137_v2, 0.0  ;;  %vm4010_vm13 = vcmp.gt.f32.partialorder %v3946_v55, 0.0  ;;  %v4074_v4 = vmul.f32 0.2, %v3946_v55  ;;  %v3953_v22 = vadd.f32 %v14555_v28, %v1301_v0 }
  0xef   : > { %v3955_v45 = vadd.f32 %v14555_v28, %v1374_v63  ;;  %v1307_v8 = vpop.f32.mrf.mxu0  ;;  %12380 = vmatmul.mubr.msk.bf16.gmra.mxu0 %vm1240_vm0, %v14322_v50  ;;  %v4139_v53 = vsel %vm4011_vm12, %v3947_v12, %v4075_v36  ;;  %v3954_v37 = vadd.f32 %v14555_v28, %v1303_v21  ;;  %v3956_v2 = vadd.f32 %v14555_v28, %v1376_v5  ;;  %v1380_v20 = vpop.f32.mrf.mxu1 }
  0xf0   : > { %v3961_v30 = vadd.f32 %v14505_v11, %v1307_v8  ;;  %12384 = vmatmul.mubr.msk.bf16.gmra.mxu1 %vm1240_vm0, %v14322_v50  ;;  %v4219_v31 = vsel %vm14592_vm2, %v4139_v53, 0.0  ;;  %v14737_v0 = vsel %vm4010_vm13, %v3946_v55, %v4074_v4  ;;  %vm4012_vm14 = vcmp.gt.f32.partialorder %v3948_v9, 0.0  ;;  %2191 = vmatprep.mubr.bf16.mxu0 %v21800_v1 }
  0xf1   : > { %22359 = vst [vmem:[#allocation23_spill] sm:$0xff] %v14737_v0  ;;  %v4076_v63 = vmul.f32 0.2, %v3948_v9  ;;  %v1309_v46 = vpop.f32.mrf.mxu0  ;;  %2264 = vmatprep.mubr.bf16.mxu1 %v21800_v1  ;;  %vm4017_vm15 = vcmp.gt.f32.partialorder %v3953_v22, 0.0  ;;  %v4081_v21 = vmul.f32 0.2, %v3953_v22  ;;  %v1382_v36 = vpop.f32.mrf.mxu1  ;;  %v22386_v19 = vcombine.low %v14564_v32, %v14567_v33 }
  0xf2   : > { %vm4019_vm3 = vcmp.gt.f32.partialorder %v3955_v45, 0.0  ;;  %v4083_v12 = vmul.f32 0.2, %v3955_v45  ;;  %vm4018_vm4 = vcmp.gt.f32.partialorder %v3954_v37, 0.0  ;;  %v4082_v50 = vmul.f32 0.2, %v3954_v37 }
  0xf3   : > { %v14741_v5 = vsel %vm4012_vm14, %v3948_v9, %v4076_v63  ;;  %vm4020_vm5 = vcmp.gt.f32.partialorder %v3956_v2, 0.0  ;;  %v1311_v8 = vpop.f32.mrf.mxu0  ;;  %v4145_v55 = vsel %vm4017_vm15, %v3953_v22, %v4081_v21  ;;  %v4084_v53 = vmul.f32 0.2, %v3956_v2  ;;  %v1384_v54 = vpop.f32.mrf.mxu1 }
  0xf4   : > { %22360 = vst [vmem:[#allocation24_spill] sm:$0xff] %v14741_v5  ;;  %v4147_v4 = vsel %vm4019_vm3, %v3955_v45, %v4083_v12  ;;  %vm4025_vm6 = vcmp.gt.f32.partialorder %v3961_v30, 0.0  ;;  %v4225_v48 = vsel %vm14557_vm1, %v4145_v55, 0.0  ;;  %v14747_v1 = vsel %vm4018_vm4, %v3954_v37, %v4082_v50 }
  0xf5   : > { %v4227_v3 = vsel %vm14592_vm2, %v4147_v4, 0.0  ;;  %22361 = vst [vmem:[#allocation25_spill] sm:$0xff] %v14747_v1  ;;  %v4089_v56 = vmul.f32 0.2, %v3961_v30  ;;  %v1313_v9 = vpop.f32.mrf.mxu0  ;;  %v14749_v63 = vpack.c.bf16 %v4225_v48, %v4217_v35  ;;  %v14755_v45 = vsel %vm4020_vm5, %v3956_v2, %v4084_v53  ;;  %v1386_v21 = vpop.f32.mrf.mxu1 }
  0xf6   : > { %v14751_v23 = vpack.c.bf16 %v4227_v3, %v4219_v31  ;;  %22364 = vst [vmem:[#allocation28_spill] sm:$0xff] %v14755_v45  ;;  %v3963_v4 = vadd.f32 %v14505_v11, %v1380_v20  ;;  %v3962_v37 = vadd.f32 %v14505_v11, %v1309_v46  ;;  %v3964_v3 = vadd.f32 %v14505_v11, %v1382_v36 }
  0xf7   : > { %22362 = vst [vmem:[#allocation26_spill] sm:$0xff] %v14749_v63  ;;  %v4153_v55 = vsel %vm4025_vm6, %v3961_v30, %v4089_v56  ;;  %v1317_v50 = vpop.f32.mrf.mxu0  ;;  %12381 = vmatmul.mubr.msk.bf16.gmra.mxu0 %vm1240_vm0, %v14333_v51  ;;  %v3969_v35 = vadd.f32 %v14516_v15, %v1311_v8  ;;  %v3971_v2 = vadd.f32 %v14516_v15, %v1384_v54  ;;  %v1390_v31 = vpop.f32.mrf.mxu1  ;;  %v22365_v56 = vmov 0  }
  0xf8   : > { %22363 = vst [vmem:[#allocation27_spill] sm:$0xff] %v14751_v23  ;;  %v4233_v48 = vsel %vm14557_vm1, %v4153_v55, 0.0  ;;  %12385 = vmatmul.mubr.msk.bf16.gmra.mxu1 %vm1240_vm0, %v14333_v51  ;;  %2307 = vmatprep.mubr.bf16.mxu0 %v22365_v56  ;;  %vm4027_vm7 = vcmp.gt.f32.partialorder %v3963_v4, 0.0  ;;  %v4091_v46 = vmul.f32 0.2, %v3963_v4  ;;  %vm4026_vm8 = vcmp.gt.f32.partialorder %v3962_v37, 0.0 }
  0xf9   : > { %v4090_v20 = vmul.f32 0.2, %v3962_v37  ;;  %v1319_v30 = vpop.f32.mrf.mxu0  ;;  %2380 = vmatprep.mubr.bf16.mxu1 %v22365_v56  ;;  %vm4028_vm9 = vcmp.gt.f32.partialorder %v3964_v3, 0.0  ;;  %v4092_v53 = vmul.f32 0.2, %v3964_v3  ;;  %vm4033_vm10 = vcmp.gt.f32.partialorder %v3969_v35, 0.0  ;;  %v1392_v8 = vpop.f32.mrf.mxu1 }
  0xfa   : > { %v4097_v36 = vmul.f32 0.2, %v3969_v35  ;;  %v4155_v55 = vsel %vm4027_vm7, %v3963_v4, %v4091_v46  ;;  %vm4035_vm11 = vcmp.gt.f32.partialorder %v3971_v2, 0.0  ;;  %v4099_v12 = vmul.f32 0.2, %v3971_v2 }
  0xfb   : > { %v14772_v54 = vsel %vm4026_vm8, %v3962_v37, %v4090_v20  ;;  %v1321_v51 = vpop.f32.mrf.mxu0  ;;  %v4235_v22 = vsel %vm14592_vm2, %v4155_v55, 0.0  ;;  %v14776_v61 = vsel %vm4028_vm9, %v3964_v3, %v4092_v53  ;;  %v3970_v5 = vadd.f32 %v14516_v15, %v1313_v9  ;;  %v1394_v45 = vpop.f32.mrf.mxu1 }
  0xfc   : > { %22366 = vst [vmem:[#allocation29_spill] sm:$0xff] %v14772_v54  ;;  %22367 = vst [vmem:[#allocation30_spill] sm:$0xff] %v14776_v61  ;;  %v4161_v23 = vsel %vm4033_vm10, %v3969_v35, %v4097_v36  ;;  %v4163_v62 = vsel %vm4035_vm11, %v3971_v2, %v4099_v12  ;;  %v3972_v4 = vadd.f32 %v14516_v15, %v1386_v21  ;;  %v14792_v21 = vld [vmem:[%s21791_s1] sm:$0xff]  }
  0xfd   : > { %v4241_v16 = vsel %vm14557_vm1, %v4161_v23, 0.0  ;;  %v3977_v37 = vadd.f32 %v14501_v10, %v1317_v50  ;;  %v1323_v46 = vpop.f32.mrf.mxu0  ;;  %v4243_v55 = vsel %vm14592_vm2, %v4163_v62, 0.0  ;;  %vm4034_vm12 = vcmp.gt.f32.partialorder %v3970_v5, 0.0  ;;  %v1396_v35 = vpop.f32.mrf.mxu1 }
  0xfe   : > { %v14783_v20 = vpack.c.bf16 %v4241_v16, %v4233_v48  ;;  %v4098_v3 = vmul.f32 0.2, %v3970_v5  ;;  %v14787_v53 = vpack.c.bf16 %v4243_v55, %v4235_v22  ;;  %vm4036_vm13 = vcmp.gt.f32.partialorder %v3972_v4, 0.0 }
  0xff   : > { %v4100_v9 = vmul.f32 0.2, %v3972_v4  ;;  %vm4041_vm14 = vcmp.gt.f32.partialorder %v3977_v37, 0.0  ;;  %v1433_v23 = vpop.f32.mrf.mxu0  ;;  %12386 = vmatmul.mubr.msk.bf16.vlgmr.msra.gmra.mxu0 %vm1240_vm0, %v14792_v21  ;;  %v4105_v62 = vmul.f32 0.2, %v3977_v37  ;;  %v3979_v12 = vadd.f32 %v14501_v10, %v1390_v31  ;;  %v1506_v50 = vpop.f32.mrf.mxu1 }
 0x100   : > { %22368 = vst [vmem:[#allocation31_spill] sm:$0xff] %v14783_v20  ;;  %22369 = vst [vmem:[#allocation32_spill] sm:$0xff] %v14787_v53  ;;  %v14796_v16 = vsel %vm4034_vm12, %v3970_v5, %v4098_v3  ;;  %v3978_v22 = vadd.f32 %v14501_v10, %v1319_v30  ;;  %12390 = vmatmul.mubr.msk.bf16.vlgmr.msra.gmra.mxu1 %vm1240_vm0, %v14792_v21  ;;  %2317 = vmatprep.mubr.bf16.mxu0 %v22365_v56  ;;  %v22372_v55 = vand.u32 255, %v14579_v38  ;;  %v22373_v31 = vmov 0 }
 0x101   : > { %22370 = vst [vmem:[#allocation33_spill] sm:$0xff] %v14796_v16  ;;  %v14805_v2 = vsel %vm4036_vm13, %v3972_v4, %v4100_v9  ;;  %v3980_v36 = vadd.f32 %v14501_v10, %v1392_v8  ;;  %v3985_v5 = vadd.f32 %v14511_v13, %v1321_v51  ;;  %v1435_v30 = vpop.f32.mrf.mxu0  ;;  %2390 = vmatprep.mubr.bf16.mxu1 %v22365_v56  ;;  %vm4043_vm3 = vcmp.gt.f32.partialorder %v3979_v12, 0.0  ;;  %v14819_v9 = vpop.f32.mrf.mxu1 }
 0x102   : > { %22371 = vst [vmem:[#allocation34_spill] sm:$0xff] %v14805_v2  ;;  %vm14811_vm15 = vcmp.ge.s32.totalorder %v22372_v55, 16  ;;  %v4169_v48 = vsel %vm4041_vm14, %v3977_v37, %v4105_v62  ;;  %v4107_v4 = vmul.f32 0.2, %v3979_v12  ;;  %v22376_v8 = vcombine.low %v14544_v24, %v14547_v25 }
 0x103   : > { %v22374_v31 = vsel %vm14811_vm15, 4294967295, %v22373_v31  ;;  %v22377_v51 = vcombine.low %v14550_v26, %v14553_v27  ;;  %v4249_v55 = vsel %vm14557_vm1, %v4169_v48, 0.0  ;;  %vm4042_vm4 = vcmp.gt.f32.partialorder %v3978_v22, 0.0  ;;  %v1437_v3 = vpop.f32.mrf.mxu0 }
 0x104   : > { %22375 = vst [vmem:[#allocation35_spill] sm:$0xff] %v22374_v31  ;;  %2434 = vmatpush1.bf16.msra.mxu0 %v22376_v8  ;;  %v4106_v38 = vmul.f32 0.2, %v3978_v22  ;;  %vm4044_vm5 = vcmp.gt.f32.partialorder %v3980_v36, 0.0  ;;  %v22378_v37 = vcombine.high %v14564_v32, %v14567_v33  ;;  %v22379_v62 = vcombine.high %v14570_v34, %v14582_v39  ;;  %v1510_v8 = vpop.f32.mrf.mxu1 }
 0x105   : > { %2507 = vmatpush1.bf16.msra.mxu1 %v22377_v51  ;;  %v4171_v24 = vsel %vm4043_vm3, %v3979_v12, %v4107_v4  ;;  %v4108_v25 = vmul.f32 0.2, %v3980_v36  ;;  %vm4049_vm6 = vcmp.gt.f32.partialorder %v3985_v5, 0.0  ;;  %v4113_v26 = vmul.f32 0.2, %v3985_v5  ;;  %v1439_v12 = vpop.f32.mrf.mxu0 }
 0x106   : > { %2435 = vmatprep.subr.bf16.mxu0 %v22378_v37  ;;  %2508 = vmatprep.subr.bf16.mxu1 %v22379_v62  ;;  %v22380_v27 = vand.u32 255, %v14601_v47  ;;  %v22381_v48 = vmov 0  ;;  %v4251_v51 = vsel %vm14592_vm2, %v4171_v24, 0.0  ;;  %v14843_v53 = vsel %vm4042_vm4, %v3978_v22, %v4106_v38  ;;  %v1512_v2 = vpop.f32.mrf.mxu1  ;;  %v14859_v22 = vld [vmem:[%s21791_s1 + $0x8] sm:$0xff]  }
 0x107   : > { %22384 = vst [vmem:[#allocation37_spill] sm:$0xff] %v14843_v53  ;;  %v3987_v37 = vadd.f32 %v14511_v13, %v1394_v45  ;;  %v3986_v62 = vadd.f32 %v14511_v13, %v1323_v46  ;;  %v14847_v4 = vsel %vm4044_vm5, %v3980_v36, %v4108_v25  ;;  %v4177_v61 = vsel %vm4049_vm6, %v3985_v5, %v4113_v26  ;;  %v1443_v46 = vpop.f32.mrf.mxu0 }
 0x108   : > { %vm14837_vm7 = vcmp.ge.s32.totalorder %v22380_v27, 16  ;;  %22385 = vst [vmem:[#allocation38_spill] sm:$0xff] %v14847_v4  ;;  %v3988_v47 = vadd.f32 %v14511_v13, %v1396_v35  ;;  %v3933_v27 = vadd.f32 %v14590_v42, %v1433_v23  ;;  %2436 = vmatpush1.bf16.msra.mxu0 %v22386_v19  ;;  %v4257_v38 = vsel %vm14557_vm1, %v4177_v61, 0.0  ;;  %v14868_v19 = vpop.f32.mrf.mxu1  ;;  %12391 = vmatmul.mubr.msk.bf16.gmra.mxu1 %vm1240_vm0, %v14859_v22 }
 0x109   : > { %v22382_v48 = vsel %vm14837_vm7, 4294967295, %v22381_v48  ;;  %vm4051_vm8 = vcmp.gt.f32.partialorder %v3987_v37, 0.0  ;;  %v4115_v45 = vmul.f32 0.2, %v3987_v37  ;;  %vm4050_vm9 = vcmp.gt.f32.partialorder %v3986_v62, 0.0  ;;  %12387 = vmatmul.mubr.msk.bf16.gmra.mxu0 %vm1240_vm0, %v14859_v22  ;;  %v14874_v24 = vpop.f32.mrf.mxu0  ;;  %2400 = vmatprep.mubr.bf16.mxu1 %v22365_v56 }
 0x10a   : > { %22383 = vst [vmem:[#allocation36_spill] sm:$0xff] %v22382_v48  ;;  %v22387_v35 = vcombine.low %v14570_v34, %v14582_v39  ;;  %v14866_v32 = vpack.c.bf16 %v4257_v38, %v4249_v55  ;;  %v4114_v33 = vmul.f32 0.2, %v3986_v62  ;;  %vm4052_vm10 = vcmp.gt.f32.partialorder %v3988_v47, 0.0  ;;  %2327 = vmatprep.mubr.bf16.mxu0 %v22365_v56 }
 0x10b   : > { %v4116_v61 = vmul.f32 0.2, %v3988_v47  ;;  %v4179_v23 = vsel %vm4051_vm8, %v3987_v37, %v4115_v45  ;;  %vm3997_vm11 = vcmp.gt.f32.partialorder %v3933_v27, 0.0  ;;  %v4061_v36 = vmul.f32 0.2, %v3933_v27  ;;  %v14888_v37 = vpop.f32.mrf.mxu1 }
 0x10c   : > { %2509 = vmatpush1.bf16.msra.mxu1 %v22387_v35  ;;  %22388 = vst [vmem:[#allocation39_spill] sm:$0xff] %v14866_v32  ;;  %v3935_v5 = vadd.f32 %v14590_v42, %v1506_v50  ;;  %v22389_v34 = vcombine.high %v14585_v40, %v14588_v41  ;;  %v4259_v39 = vsel %vm14592_vm2, %v4179_v23, 0.0  ;;  %v14883_v55 = vsel %vm4050_vm9, %v3986_v62, %v4114_v33  ;;  %v1447_v33 = vpop.f32.mrf.mxu0 }
 0x10d   : > { %22390 = vst [vmem:[#allocation40_spill] sm:$0xff] %v14883_v55  ;;  %v14885_v25 = vsel %vm4052_vm10, %v3988_v47, %v4116_v61  ;;  %v3934_v26 = vadd.f32 %v14590_v42, %v1435_v30  ;;  %v22392_v50 = vcombine.high %v14606_v49, %v14609_v52  ;;  %v14893_v38 = vpack.c.bf16 %v4259_v39, %v4251_v51  ;;  %v1520_v61 = vpop.f32.mrf.mxu1 }
 0x10e   : > { %2579 = vmatprep.subr.bf16.mxu0 %v22389_v34  ;;  %22391 = vst [vmem:[#allocation41_spill] sm:$0xff] %v14885_v25  ;;  %v4125_v62 = vsel %vm3997_vm11, %v3933_v27, %v4061_v36  ;;  %vm3999_vm12 = vcmp.gt.f32.partialorder %v3935_v5, 0.0  ;;  %v4063_v30 = vmul.f32 0.2, %v3935_v5  ;;  %v3936_v51 = vadd.f32 %v14590_v42, %v14819_v9 }
 0x10f   : > { %2652 = vmatprep.subr.bf16.mxu1 %v22392_v50  ;;  %22393 = vst [vmem:[#allocation42_spill] sm:$0xff] %v14893_v38  ;;  %v4205_v47 = vsel %vm14811_vm15, %v4125_v62, 0.0  ;;  %vm3998_vm13 = vcmp.gt.f32.partialorder %v3934_v26, 0.0  ;;  %v4062_v23 = vmul.f32 0.2, %v3934_v26  ;;  %v3941_v34 = vadd.f32 %v14651_v18, %v1437_v3  ;;  %v14905_v50 = vpop.f32.mrf.mxu0  ;;  %v14910_v45 = vpop.f32.mrf.mxu1 }
 0x110   : > { %v3943_v39 = vadd.f32 %v14651_v18, %v1510_v8  ;;  %v4127_v35 = vsel %vm3999_vm12, %v3935_v5, %v4063_v30  ;;  %v3942_v27 = vadd.f32 %v14651_v18, %v1439_v12  ;;  %v3944_v36 = vadd.f32 %v14651_v18, %v1512_v2  ;;  %v14921_v8 = vld [vmem:[%s21791_s1 + $0x10] sm:$0xff]  }
 0x111   : > { %v3949_v62 = vadd.f32 %v14523_v17, %v1443_v46  ;;  %v4207_v38 = vsel %vm14837_vm7, %v4127_v35, 0.0  ;;  %v14914_v4 = vsel %vm3998_vm13, %v3934_v26, %v4062_v23  ;;  %vm4000_vm14 = vcmp.gt.f32.partialorder %v3936_v51, 0.0  ;;  %v14916_v9 = vpop.f32.mrf.mxu0  ;;  %12388 = vmatmul.mubr.msk.bf16.gmra.mxu0 %vm1240_vm0, %v14921_v8  ;;  %v14925_v46 = vpop.f32.mrf.mxu1  ;;  %12392 = vmatmul.mubr.msk.bf16.gmra.mxu1 %vm1240_vm0, %v14921_v8 }
 0x112   : > { %22394 = vst [vmem:[#allocation43_spill] sm:$0xff] %v14914_v4  ;;  %v4064_v3 = vmul.f32 0.2, %v3936_v51  ;;  %vm4005_vm3 = vcmp.gt.f32.partialorder %v3941_v34, 0.0  ;;  %v4069_v2 = vmul.f32 0.2, %v3941_v34  ;;  %2337 = vmatprep.mubr.bf16.mxu0 %v22365_v56  ;;  %2410 = vmatprep.mubr.bf16.mxu1 %v22365_v56 }
 0x113   : > { %vm4007_vm4 = vcmp.gt.f32.partialorder %v3943_v39, 0.0  ;;  %v4071_v12 = vmul.f32 0.2, %v3943_v39  ;;  %vm4006_vm5 = vcmp.gt.f32.partialorder %v3942_v27, 0.0  ;;  %v4070_v26 = vmul.f32 0.2, %v3942_v27  ;;  %v14932_v35 = vpop.f32.mrf.mxu0  ;;  %v14935_v43 = vpop.f32.mrf.mxu1 }
 0x114   : > { %v14930_v5 = vsel %vm4000_vm14, %v3936_v51, %v4064_v3  ;;  %vm4008_vm6 = vcmp.gt.f32.partialorder %v3944_v36, 0.0  ;;  %v4133_v30 = vsel %vm4005_vm3, %v3941_v34, %v4069_v2  ;;  %v4072_v25 = vmul.f32 0.2, %v3944_v36 }
 0x115   : > { %22395 = vst [vmem:[#allocation44_spill] sm:$0xff] %v14930_v5  ;;  %v4135_v23 = vsel %vm4007_vm4, %v3943_v39, %v4071_v12  ;;  %vm4013_vm8 = vcmp.gt.f32.partialorder %v3949_v62, 0.0  ;;  %v4213_v44 = vsel %vm14811_vm15, %v4133_v30, 0.0  ;;  %v14941_v3 = vsel %vm4006_vm5, %v3942_v27, %v4070_v26  ;;  %v14943_v0 = vpop.f32.mrf.mxu0  ;;  %v14954_v2 = vpop.f32.mrf.mxu1 }
 0x116   : > { %v4215_v51 = vsel %vm14837_vm7, %v4135_v23, 0.0  ;;  %22396 = vst [vmem:[#allocation45_spill] sm:$0xff] %v14941_v3  ;;  %v4077_v63 = vmul.f32 0.2, %v3949_v62  ;;  %v14945_v1 = vpack.c.bf16 %v4213_v44, %v4205_v47  ;;  %v14952_v39 = vsel %vm4008_vm6, %v3944_v36, %v4072_v25 }
 0x117   : > { %v14947_v20 = vpack.c.bf16 %v4215_v51, %v4207_v38  ;;  %22399 = vst [vmem:[#allocation48_spill] sm:$0xff] %v14952_v39  ;;  %v3951_v26 = vadd.f32 %v14523_v17, %v14868_v19  ;;  %v3950_v44 = vadd.f32 %v14523_v17, %v14874_v24  ;;  %v14962_v38 = vpop.f32.mrf.mxu0  ;;  %v3952_v25 = vadd.f32 %v14523_v17, %v14888_v37  ;;  %v14970_v23 = vpop.f32.mrf.mxu1  ;;  %v14977_v24 = vld [vmem:[%s21791_s1 + $0x18] sm:$0xff]  }
 0x118   : > { %22397 = vst [vmem:[#allocation46_spill] sm:$0xff] %v14945_v1  ;;  %v4141_v27 = vsel %vm4013_vm8, %v3949_v62, %v4077_v63  ;;  %v3957_v36 = vadd.f32 %v14555_v28, %v1447_v33  ;;  %v3959_v30 = vadd.f32 %v14555_v28, %v1520_v61  ;;  %v3958_v1 = vadd.f32 %v14555_v28, %v14905_v50 }
 0x119   : > { %22398 = vst [vmem:[#allocation47_spill] sm:$0xff] %v14947_v20  ;;  %v4221_v47 = vsel %vm14811_vm15, %v4141_v27, 0.0  ;;  %vm4015_vm9 = vcmp.gt.f32.partialorder %v3951_v26, 0.0  ;;  %v4079_v63 = vmul.f32 0.2, %v3951_v26  ;;  %vm4014_vm10 = vcmp.gt.f32.partialorder %v3950_v44, 0.0  ;;  %v14972_v62 = vpop.f32.mrf.mxu0  ;;  %12389 = vmatmul.mubr.msk.bf16.gmra.mxu0 %vm1240_vm0, %v14977_v24  ;;  %v14981_v61 = vpop.f32.mrf.mxu1  ;;  %12393 = vmatmul.mubr.msk.bf16.gmra.mxu1 %vm1240_vm0, %v14977_v24 }
 0x11a   : > { %v4078_v19 = vmul.f32 0.2, %v3950_v44  ;;  %vm4016_vm11 = vcmp.gt.f32.partialorder %v3952_v25, 0.0  ;;  %v4080_v37 = vmul.f32 0.2, %v3952_v25  ;;  %vm4021_vm12 = vcmp.gt.f32.partialorder %v3957_v36, 0.0  ;;  %2453 = vmatprep.mubr.bf16.mxu0 %v22365_v56  ;;  %2526 = vmatprep.mubr.bf16.mxu1 %v22365_v56 }
 0x11b   : > { %v4085_v33 = vmul.f32 0.2, %v3957_v36  ;;  %v4143_v51 = vsel %vm4015_vm9, %v3951_v26, %v4079_v63  ;;  %vm4023_vm13 = vcmp.gt.f32.partialorder %v3959_v30, 0.0  ;;  %v4087_v12 = vmul.f32 0.2, %v3959_v30  ;;  %v14988_v34 = vpop.f32.mrf.mxu0  ;;  %v14997_v4 = vpop.f32.mrf.mxu1 }
 0x11c   : > { %v14986_v27 = vsel %vm4014_vm10, %v3950_v44, %v4078_v19  ;;  %v4223_v20 = vsel %vm14837_vm7, %v4143_v51, 0.0  ;;  %v14993_v5 = vsel %vm4016_vm11, %v3952_v25, %v4080_v37  ;;  %v3960_v63 = vadd.f32 %v14555_v28, %v14910_v45 }
 0x11d   : > { %22400 = vst [vmem:[#allocation49_spill] sm:$0xff] %v14986_v27  ;;  %22401 = vst [vmem:[#allocation50_spill] sm:$0xff] %v14993_v5  ;;  %v4149_v39 = vsel %vm4021_vm12, %v3957_v36, %v4085_v33  ;;  %v4151_v44 = vsel %vm4023_vm13, %v3959_v30, %v4087_v12  ;;  %v3965_v19 = vadd.f32 %v14505_v11, %v14916_v9  ;;  %v15005_v3 = vpop.f32.mrf.mxu0  ;;  %vm4022_vm14 = vcmp.gt.f32.partialorder %v3958_v1, 0.0  ;;  %v15011_v37 = vpop.f32.mrf.mxu1 }
 0x11e   : > { %v4229_v26 = vsel %vm14811_vm15, %v4149_v39, 0.0  ;;  %v4231_v36 = vsel %vm14837_vm7, %v4151_v44, 0.0  ;;  %v4086_v50 = vmul.f32 0.2, %v3958_v1  ;;  %vm4024_vm3 = vcmp.gt.f32.partialorder %v3960_v63, 0.0 }
 0x11f   : > { %v15007_v25 = vpack.c.bf16 %v4229_v26, %v4221_v47  ;;  %v15013_v33 = vpack.c.bf16 %v4231_v36, %v4223_v20  ;;  %v4088_v39 = vmul.f32 0.2, %v3960_v63  ;;  %vm4029_vm4 = vcmp.gt.f32.partialorder %v3965_v19, 0.0  ;;  %v15015_v45 = vpop.f32.mrf.mxu0  ;;  %v15023_v51 = vpop.f32.mrf.mxu1 }
 0x120   : > { %v15017_v12 = vsel %vm4022_vm14, %v3958_v1, %v4086_v50  ;;  %v4093_v9 = vmul.f32 0.2, %v3965_v19  ;;  %v3967_v47 = vadd.f32 %v14505_v11, %v14925_v46  ;;  %v3966_v30 = vadd.f32 %v14505_v11, %v14932_v35 }
 0x121   : > { %22402 = vst [vmem:[#allocation51_spill] sm:$0xff] %v15007_v25  ;;  %22403 = vst [vmem:[#allocation52_spill] sm:$0xff] %v15013_v33  ;;  %v15027_v26 = vsel %vm4024_vm3, %v3960_v63, %v4088_v39  ;;  %v3968_v44 = vadd.f32 %v14505_v11, %v14935_v43  ;;  %v3973_v1 = vadd.f32 %v14516_v15, %v14943_v0  ;;  %v15033_v36 = vpop.f32.mrf.mxu0  ;;  %12394 = vmatmul.mubr.msk.bf16.vlgmr.msra.gmra.mxu0 %vm1240_vm0, %v14792_v21  ;;  %v15039_v20 = vpop.f32.mrf.mxu1 }
 0x122   : > { %22404 = vst [vmem:[#allocation53_spill] sm:$0xff] %v15017_v12  ;;  %22405 = vst [vmem:[#allocation54_spill] sm:$0xff] %v15027_v26  ;;  %v4157_v35 = vsel %vm4029_vm4, %v3965_v19, %v4093_v9  ;;  %vm4031_vm5 = vcmp.gt.f32.partialorder %v3967_v47, 0.0  ;;  %v4095_v50 = vmul.f32 0.2, %v3967_v47  ;;  %12398 = vmatmul.mubr.msk.bf16.vlgmr.msra.gmra.mxu1 %vm1240_vm0, %v14792_v21  ;;  %2463 = vmatprep.mubr.bf16.mxu0 %v22365_v56  ;;  %vm4030_vm6 = vcmp.gt.f32.partialorder %v3966_v30, 0.0 }
 0x123   : > { %v4237_v43 = vsel %vm14811_vm15, %v4157_v35, 0.0  ;;  %v4094_v0 = vmul.f32 0.2, %v3966_v30  ;;  %vm4032_vm8 = vcmp.gt.f32.partialorder %v3968_v44, 0.0  ;;  %v15046_v63 = vpop.f32.mrf.mxu0  ;;  %2536 = vmatprep.mubr.bf16.mxu1 %v22365_v56  ;;  %v22406_v19 = vcombine.low %v14585_v40, %v14588_v41  ;;  %v15052_v33 = vpop.f32.mrf.mxu1 }
 0x124   : > { %v4159_v39 = vsel %vm4031_vm5, %v3967_v47, %v4095_v50  ;;  %v4096_v9 = vmul.f32 0.2, %v3968_v44  ;;  %vm4037_vm9 = vcmp.gt.f32.partialorder %v3973_v1, 0.0  ;;  %v4101_v46 = vmul.f32 0.2, %v3973_v1  ;;  %22407 = vst [vmem:[#allocation55_spill] sm:$0xff] %v15052_v33 }
 0x125   : > { %2580 = vmatpush1.bf16.msra.mxu0 %v22406_v19  ;;  %v22408_v35 = vcombine.low %v14606_v49, %v14609_v52  ;;  %v22409_v5 = vcombine.high %v14620_v57, %v14623_v58  ;;  %v4239_v26 = vsel %vm14837_vm7, %v4159_v39, 0.0  ;;  %v15062_v25 = vsel %vm4030_vm6, %v3966_v30, %v4094_v0  ;;  %v15068_v47 = vpop.f32.mrf.mxu0 }
 0x126   : > { %22410 = vst [vmem:[#allocation56_spill] sm:$0xff] %v15062_v25  ;;  %v3975_v40 = vadd.f32 %v14516_v15, %v14954_v2  ;;  %v3974_v41 = vadd.f32 %v14516_v15, %v14962_v38  ;;  %v22411_v49 = vcombine.high %v14645_v6, %v14648_v7  ;;  %v15074_v52 = vsel %vm4032_vm8, %v3968_v44, %v4096_v9  ;;  %v15080_v2 = vpop.f32.mrf.mxu1 }
 0x127   : > { %2653 = vmatpush1.bf16.msra.mxu1 %v22408_v35  ;;  %2581 = vmatprep.subr.bf16.mxu0 %v22409_v5  ;;  %22412 = vst [vmem:[#allocation57_spill] sm:$0xff] %v15074_v52  ;;  %v4165_v5 = vsel %vm4037_vm9, %v3973_v1, %v4101_v46  ;;  %v3976_v30 = vadd.f32 %v14516_v15, %v14970_v23  ;;  %v15084_v19 = vpop.f32.mrf.mxu0 }
 0x128   : > { %2654 = vmatprep.subr.bf16.mxu1 %v22411_v49  ;;  %v3981_v50 = vadd.f32 %v14501_v10, %v14972_v62  ;;  %v4245_v38 = vsel %vm14811_vm15, %v4165_v5, 0.0  ;;  %vm4039_vm10 = vcmp.gt.f32.partialorder %v3975_v40, 0.0  ;;  %v4103_v0 = vmul.f32 0.2, %v3975_v40  ;;  %v15091_v62 = vpop.f32.mrf.mxu1 }
 0x129   : > { %vm4038_vm11 = vcmp.gt.f32.partialorder %v3974_v41, 0.0  ;;  %v22413_v44 = vcombine.low %v14620_v57, %v14623_v58  ;;  %v15089_v1 = vpack.c.bf16 %v4245_v38, %v4237_v43  ;;  %v4102_v23 = vmul.f32 0.2, %v3974_v41  ;;  %22415 = vst [vmem:[#allocation59_spill] sm:$0xff] %v15091_v62  ;;  %v15101_v58 = vpop.f32.mrf.mxu0  ;;  %12395 = vmatmul.mubr.msk.bf16.gmra.mxu0 %vm1240_vm0, %v14859_v22 }
 0x12a   : > { %vm4040_vm12 = vcmp.gt.f32.partialorder %v3976_v30, 0.0  ;;  %v4104_v46 = vmul.f32 0.2, %v3976_v30  ;;  %v22416_v39 = vcombine.low %v14645_v6, %v14648_v7  ;;  %v22417_v9 = vcombine.high %v14666_v59, %v14669_v60  ;;  %v15114_v5 = vpop.f32.mrf.mxu1  ;;  %12399 = vmatmul.mubr.msk.bf16.gmra.mxu1 %vm1240_vm0, %v14859_v22  ;;  %2473 = vmatprep.mubr.bf16.mxu0 %v22365_v56 }
 0x12b   : > { %2582 = vmatpush1.bf16.msra.mxu0 %v22413_v44  ;;  %22414 = vst [vmem:[#allocation58_spill] sm:$0xff] %v15089_v1  ;;  %v4167_v35 = vsel %vm4039_vm10, %v3975_v40, %v4103_v0  ;;  %vm4045_vm13 = vcmp.gt.f32.partialorder %v3981_v50, 0.0  ;;  %v4109_v49 = vmul.f32 0.2, %v3981_v50  ;;  %v3983_v57 = vadd.f32 %v14501_v10, %v14981_v61  ;;  %v15125_v0 = vpop.f32.mrf.mxu0  ;;  %2546 = vmatprep.mubr.bf16.mxu1 %v22365_v56 }
 0x12c   : > { %2655 = vmatpush1.bf16.msra.mxu1 %v22416_v39  ;;  %2725 = vmatprep.subr.bf16.mxu0 %v22417_v9  ;;  %v4247_v43 = vsel %vm14837_vm7, %v4167_v35, 0.0  ;;  %v15108_v6 = vsel %vm4038_vm11, %v3974_v41, %v4102_v23  ;;  %v15110_v7 = vsel %vm4040_vm12, %v3976_v30, %v4104_v46  ;;  %v3982_v40 = vadd.f32 %v14501_v10, %v14988_v34  ;;  %v15128_v44 = vpop.f32.mrf.mxu1 }
 0x12d   : > { %22418 = vst [vmem:[#allocation60_spill] sm:$0xff] %v15108_v6  ;;  %22419 = vst [vmem:[#allocation61_spill] sm:$0xff] %v15110_v7  ;;  %v15119_v61 = vpack.c.bf16 %v4247_v43, %v4239_v26  ;;  %v4173_v30 = vsel %vm4045_vm13, %v3981_v50, %v4109_v49  ;;  %vm4047_vm14 = vcmp.gt.f32.partialorder %v3983_v57, 0.0  ;;  %v4111_v34 = vmul.f32 0.2, %v3983_v57  ;;  %v15138_v39 = vpop.f32.mrf.mxu0 }
 0x12e   : > { %22421 = vst [vmem:[#allocation63_spill] sm:$0xff] %v15128_v44  ;;  %v4253_v23 = vsel %vm14811_vm15, %v4173_v30, 0.0  ;;  %v3984_v26 = vadd.f32 %v14501_v10, %v14997_v4  ;;  %v3989_v46 = vadd.f32 %v14511_v13, %v15005_v3  ;;  %v3991_v50 = vadd.f32 %v14511_v13, %v15011_v37  ;;  %v15144_v43 = vpop.f32.mrf.mxu1 }
 0x12f   : > { %22420 = vst [vmem:[#allocation62_spill] sm:$0xff] %v15119_v61  ;;  %v4175_v9 = vsel %vm4047_vm14, %v3983_v57, %v4111_v34  ;;  %vm4046_vm3 = vcmp.gt.f32.partialorder %v3982_v40, 0.0  ;;  %v3990_v35 = vadd.f32 %v14511_v13, %v15015_v45  ;;  %v3992_v49 = vadd.f32 %v14511_v13, %v15023_v51  ;;  %v15148_v41 = vpop.f32.mrf.mxu0 }
 0x130   : > { %v4110_v30 = vmul.f32 0.2, %v3982_v40  ;;  %vm4048_vm4 = vcmp.gt.f32.partialorder %v3984_v26, 0.0  ;;  %v4112_v4 = vmul.f32 0.2, %v3984_v26  ;;  %v4569_v3 = vadd.f32 %v14590_v42, %v15033_v36  ;;  %v15150_v34 = vpop.f32.mrf.mxu1 }
 0x131   : > { %vm4053_vm5 = vcmp.gt.f32.partialorder %v3989_v46, 0.0  ;;  %v4117_v37 = vmul.f32 0.2, %v3989_v46  ;;  %vm4055_vm6 = vcmp.gt.f32.partialorder %v3991_v50, 0.0  ;;  %v4119_v57 = vmul.f32 0.2, %v3991_v50  ;;  %v15154_v38 = vpop.f32.mrf.mxu0  ;;  %12396 = vmatmul.mubr.msk.bf16.gmra.mxu0 %vm1240_vm0, %v14921_v8 }
 0x132   : > { %22422 = vst [vmem:[#allocation64_spill] sm:$0xff] %v15150_v34  ;;  %v4255_v45 = vsel %vm14837_vm7, %v4175_v9, 0.0  ;;  %vm4054_vm8 = vcmp.gt.f32.partialorder %v3990_v35, 0.0  ;;  %v4118_v51 = vmul.f32 0.2, %v3990_v35  ;;  %vm4056_vm9 = vcmp.gt.f32.partialorder %v3992_v49, 0.0  ;;  %v15160_v27 = vpop.f32.mrf.mxu1  ;;  %12400 = vmatmul.mubr.msk.bf16.gmra.mxu1 %vm1240_vm0, %v14921_v8  ;;  %2483 = vmatprep.mubr.bf16.mxu0 %v22365_v56 }
 0x133   : > { %v15158_v36 = vsel %vm4048_vm4, %v3984_v26, %v4112_v4  ;;  %v4181_v61 = vsel %vm4053_vm5, %v3989_v46, %v4117_v37  ;;  %v4183_v52 = vsel %vm4055_vm6, %v3991_v50, %v4119_v57  ;;  %v4120_v7 = vmul.f32 0.2, %v3992_v49  ;;  %v15174_v46 = vpop.f32.mrf.mxu0  ;;  %2556 = vmatprep.mubr.bf16.mxu1 %v22365_v56  ;;  %v377_v34 = vld [vmem:[%s14257_s15 + $0xa8] sm:$0xff] }
 0x134   : > { %22423 = vst [vmem:[#allocation65_spill] sm:$0xff] %v15158_v36  ;;  %v15166_v9 = vsel %vm4046_vm3, %v3982_v40, %v4110_v30  ;;  %v4261_v12 = vsel %vm14811_vm15, %v4181_v61, 0.0  ;;  %v4263_v26 = vsel %vm14837_vm7, %v4183_v52, 0.0  ;;  %v15172_v4 = vsel %vm4054_vm8, %v3990_v35, %v4118_v51  ;;  %v15186_v61 = vpop.f32.mrf.mxu1 }
 0x135   : > { %22424 = vst [vmem:[#allocation66_spill] sm:$0xff] %v15166_v9  ;;  %22425 = vst [vmem:[#allocation67_spill] sm:$0xff] %v15172_v4  ;;  %v15177_v50 = vpack.c.bf16 %v4261_v12, %v4253_v23  ;;  %v15179_v37 = vpack.c.bf16 %v4263_v26, %v4255_v45  ;;  %v15184_v30 = vsel %vm4056_vm9, %v3992_v49, %v4120_v7  ;;  %v15192_v57 = vpop.f32.mrf.mxu0  ;;  %v4697_v12 = vmul.f32 0.2, %v4569_v3 }
 0x136   : > { %22428 = vst [vmem:[#allocation70_spill] sm:$0xff] %v15184_v30  ;;  %22429 = vst [vmem:[#allocation71_spill] sm:$0xff] %v15186_v61  ;;  %v4571_v35 = vadd.f32 %v14590_v42, %v15039_v20  ;;  %v4577_v23 = vadd.f32 %v14651_v18, %v15068_v47  ;;  %v4579_v45 = vadd.f32 %v14651_v18, %v15080_v2  ;;  %v15198_v51 = vpop.f32.mrf.mxu1  ;;  %vm4633_vm10 = vcmp.gt.f32.partialorder %v4569_v3, 0.0 }
 0x137   : > { %22426 = vst [vmem:[#allocation68_spill] sm:$0xff] %v15177_v50  ;;  %22427 = vst [vmem:[#allocation69_spill] sm:$0xff] %v15179_v37  ;;  %v15200_v49 = vpop.f32.mrf.mxu0  ;;  %v15210_v47 = vsel %vm4633_vm10, %v4569_v3, %v4697_v12  ;;  %v4585_v36 = vadd.f32 %v14523_v17, %v15101_v58  ;;  %v4587_v3 = vadd.f32 %v14523_v17, %v15114_v5 }
 0x138   : > { %vm4635_vm11 = vcmp.gt.f32.partialorder %v4571_v35, 0.0  ;;  %v4699_v7 = vmul.f32 0.2, %v4571_v35  ;;  %vm4641_vm12 = vcmp.gt.f32.partialorder %v4577_v23, 0.0  ;;  %v4705_v26 = vmul.f32 0.2, %v4577_v23  ;;  %v15202_v52 = vpop.f32.mrf.mxu1 }
 0x139   : > { %22430 = vst [vmem:[#allocation72_spill] sm:$0xff] %v15202_v52  ;;  %vm4643_vm13 = vcmp.gt.f32.partialorder %v4579_v45, 0.0  ;;  %v4707_v40 = vmul.f32 0.2, %v4579_v45  ;;  %v15206_v37 = vpop.f32.mrf.mxu0  ;;  %12397 = vmatmul.mubr.msk.bf16.gmra.mxu0 %vm1240_vm0, %v14977_v24  ;;  %22432 = vst [vmem:[#allocation74_spill] sm:$0xff] %v15210_v47  ;;  %vm4651_vm14 = vcmp.gt.f32.partialorder %v4587_v3, 0.0  ;;  %v4595_v5 = vadd.f32 %v14555_v28, %v15144_v43 }
 0x13a   : > { %v15204_v20 = vsel %vm4635_vm11, %v4571_v35, %v4699_v7  ;;  %v15212_v2 = vsel %vm4641_vm12, %v4577_v23, %v4705_v26  ;;  %v1682_v30 = vpop.f32.mrf.mxu1  ;;  %12401 = vmatmul.mubr.msk.bf16.gmra.mxu1 %vm1240_vm0, %v14977_v24  ;;  %2599 = vmatprep.mubr.bf16.mxu0 %v22365_v56  ;;  %v4715_v26 = vmul.f32 0.2, %v4587_v3  ;;  %v4713_v1 = vmul.f32 0.2, %v4585_v36 }
 0x13b   : > { %22431 = vst [vmem:[#allocation73_spill] sm:$0xff] %v15204_v20  ;;  %22433 = vst [vmem:[#allocation75_spill] sm:$0xff] %v15212_v2  ;;  %v15221_v7 = vsel %vm4643_vm13, %v4579_v45, %v4707_v40  ;;  %v15225_v12 = vpop.f32.mrf.mxu0  ;;  %2672 = vmatprep.mubr.bf16.mxu1 %v22365_v56  ;;  %v4593_v40 = vadd.f32 %v14555_v28, %v15138_v39  ;;  %vm4649_vm3 = vcmp.gt.f32.partialorder %v4585_v36, 0.0  ;;  %vm4659_vm5 = vcmp.gt.f32.partialorder %v4595_v5, 0.0 }
 0x13c   : > { %22434 = vst [vmem:[#allocation76_spill] sm:$0xff] %v15221_v7  ;;  %v15230_v23 = vpop.f32.mrf.mxu1  ;;  %v12298_v6 = vcombine.low %v14666_v59, %v14669_v60  ;;  %v15244_v50 = vsel %vm4651_vm14, %v4587_v3, %v4715_v26  ;;  %v4723_v9 = vmul.f32 0.2, %v4595_v5  ;;  %v15250_v39 = vsel %vm4649_vm3, %v4585_v36, %v4713_v1 }
 0x13d   : > { %22435 = vst [vmem:[#allocation77_spill] sm:$0xff] %v15230_v23  ;;  %v15232_v48 = vpop.f32.mrf.mxu0  ;;  %vm4657_vm4 = vcmp.gt.f32.partialorder %v4593_v40, 0.0  ;;  %v4721_v25 = vmul.f32 0.2, %v4593_v40  ;;  %22437 = vst [vmem:[#allocation79_spill] sm:$0xff] %v15244_v50  ;;  %v4601_v31 = vadd.f32 %v14505_v11, %v15154_v38  ;;  %v4603_v1 = vadd.f32 %v14505_v11, %v15160_v27 }
 0x13e   : > { %v1686_v45 = vpop.f32.mrf.mxu1  ;;  %22438 = vst [vmem:[#allocation80_spill] sm:$0xff] %v15250_v39  ;;  %v15261_v59 = vsel %vm4659_vm5, %v4595_v5, %v4723_v9  ;;  %v4609_v9 = vadd.f32 %v14516_v15, %v15192_v57  ;;  %v4611_v27 = vadd.f32 %v14516_v15, %v15198_v51  ;;  %v4619_v60 = vadd.f32 %v14501_v10, %v1682_v30 }
 0x13f   : > { %v15238_v35 = vpop.f32.mrf.mxu0  ;;  %v15252_v43 = vsel %vm4657_vm4, %v4593_v40, %v4721_v25  ;;  %22440 = vst [vmem:[#allocation82_spill] sm:$0xff] %v15261_v59  ;;  %v4729_v26 = vmul.f32 0.2, %v4601_v31  ;;  %vm4667_vm6 = vcmp.gt.f32.partialorder %v4603_v1, 0.0  ;;  %vm4665_vm8 = vcmp.gt.f32.partialorder %v4601_v31, 0.0 }
 0x140   : > { %v15240_v58 = vpop.f32.mrf.mxu1  ;;  %22439 = vst [vmem:[#allocation81_spill] sm:$0xff] %v15252_v43  ;;  %vm4673_vm9 = vcmp.gt.f32.partialorder %v4609_v9, 0.0  ;;  %v4737_v25 = vmul.f32 0.2, %v4609_v9  ;;  %vm4675_vm10 = vcmp.gt.f32.partialorder %v4611_v27, 0.0  ;;  %v4617_v57 = vadd.f32 %v14501_v10, %v15206_v37 }
 0x141   : > { %22436 = vst [vmem:[#allocation78_spill] sm:$0xff] %v15240_v58  ;;  %v15246_v4 = vpop.f32.mrf.mxu0  ;;  %12402 = vmatmul.mubr.msk.bf16.vlgmr.msra.gmra.mxu0 %vm1240_vm0, %v14792_v21  ;;  %v4739_v50 = vmul.f32 0.2, %v4611_v27  ;;  %v15289_v51 = vsel %vm4665_vm8, %v4601_v31, %v4729_v26  ;;  %vm4683_vm11 = vcmp.gt.f32.partialorder %v4619_v60, 0.0 }
 0x142   : > { %v1798_v20 = vpop.f32.mrf.mxu1  ;;  %12406 = vmatmul.mubr.msk.bf16.vlgmr.msra.gmra.mxu1 %vm1240_vm0, %v14792_v21  ;;  %2609 = vmatprep.mubr.bf16.mxu0 %v22365_v56  ;;  %v4731_v21 = vmul.f32 0.2, %v4603_v1  ;;  %22446 = vst [vmem:[#allocation88_spill] sm:$0xff] %v15289_v51  ;;  %v4745_v26 = vmul.f32 0.2, %v4617_v57  ;;  %vm4681_vm12 = vcmp.gt.f32.partialorder %v4617_v57, 0.0 }
 0x143   : > { %v15265_v36 = vpop.f32.mrf.mxu0  ;;  %2682 = vmatprep.mubr.bf16.mxu1 %v22365_v56  ;;  %2726 = vmatpush1.bf16.msra.mxu0 %v12298_v6 }
 0x144   : > { %22441 = vst [vmem:[#allocation83_spill] sm:$0xff] %v15265_v36  ;;  %v15270_v38 = vpop.f32.mrf.mxu1  ;;  %v15283_v7 = vsel %vm4667_vm6, %v4603_v1, %v4731_v21  ;;  %v15298_v1 = vsel %vm4675_vm10, %v4611_v27, %v4739_v50 }
 0x145   : > { %22442 = vst [vmem:[#allocation84_spill] sm:$0xff] %v15270_v38  ;;  %v15272_v3 = vpop.f32.mrf.mxu0  ;;  %22445 = vst [vmem:[#allocation87_spill] sm:$0xff] %v15283_v7 }
 0x146   : > { %v1802_v40 = vpop.f32.mrf.mxu1  ;;  %22448 = vst [vmem:[#allocation90_spill] sm:$0xff] %v15298_v1  ;;  %v15316_v1 = vsel %vm4681_vm12, %v4617_v57, %v4745_v26 }
 0x147   : > { %v15278_v5 = vpop.f32.mrf.mxu0  ;;  %22454 = vst [vmem:[#allocation96_spill] sm:$0xff] %v15316_v1 }
 0x148   : > { %22443 = vst [vmem:[#allocation85_spill] sm:$0xff] %v15278_v5  ;;  %v15281_v6 = vpop.f32.mrf.mxu1  ;;  %v15291_v5 = vsel %vm4673_vm9, %v4609_v9, %v4737_v25  ;;  %v4747_v25 = vmul.f32 0.2, %v4619_v60  ;;  %v4627_v9 = vadd.f32 %v14511_v13, %v1686_v45  ;;  %v4575_v45 = vadd.f32 %v14590_v42, %v1798_v20 }
 0x149   : > { %22444 = vst [vmem:[#allocation86_spill] sm:$0xff] %v15281_v6  ;;  %v1735_v59 = vpop.f32.mrf.mxu0  ;;  %12403 = vmatmul.mubr.msk.bf16.gmra.mxu0 %vm1240_vm0, %v14859_v22  ;;  %22447 = vst [vmem:[#allocation89_spill] sm:$0xff] %v15291_v5 }
 0x14a   : > { %v1808_v38 = vpop.f32.mrf.mxu1  ;;  %12407 = vmatmul.mubr.msk.bf16.gmra.mxu1 %vm1240_vm0, %v14859_v22  ;;  %2619 = vmatprep.mubr.bf16.mxu0 %v22365_v56  ;;  %v4625_v22 = vadd.f32 %v14511_v13, %v15232_v48  ;;  %vm4691_vm14 = vcmp.gt.f32.partialorder %v4627_v9, 0.0  ;;  %v15312_v6 = vsel %vm4683_vm11, %v4619_v60, %v4747_v25  ;;  %v4755_v31 = vmul.f32 0.2, %v4627_v9 }
 0x14b   : > { %v15300_v37 = vpop.f32.mrf.mxu0  ;;  %2692 = vmatprep.mubr.bf16.mxu1 %v22365_v56  ;;  %22452 = vst [vmem:[#allocation94_spill] sm:$0xff] %v15312_v6  ;;  %v4573_v48 = vadd.f32 %v14590_v42, %v15246_v4  ;;  %vm4639_vm3 = vcmp.gt.f32.partialorder %v4575_v45, 0.0  ;;  %v4703_v26 = vmul.f32 0.2, %v4575_v45 }
 0x14c   : > { %22449 = vst [vmem:[#allocation91_spill] sm:$0xff] %v15300_v37  ;;  %v15305_v21 = vpop.f32.mrf.mxu1  ;;  %vm4689_vm13 = vcmp.gt.f32.partialorder %v4625_v22, 0.0  ;;  %v4753_v27 = vmul.f32 0.2, %v4625_v22  ;;  %v15327_v25 = vsel %vm4691_vm14, %v4627_v9, %v4755_v31  ;;  %v4581_v31 = vadd.f32 %v14651_v18, %v15272_v3 }
 0x14d   : > { %22450 = vst [vmem:[#allocation92_spill] sm:$0xff] %v15305_v21  ;;  %v1739_v30 = vpop.f32.mrf.mxu0  ;;  %22456 = vst [vmem:[#allocation98_spill] sm:$0xff] %v15327_v25  ;;  %v4701_v57 = vmul.f32 0.2, %v4573_v48  ;;  %vm4637_vm4 = vcmp.gt.f32.partialorder %v4573_v48, 0.0  ;;  %v4589_v3 = vadd.f32 %v14523_v17, %v1735_v59 }
 0x14e   : > { %v1812_v50 = vpop.f32.mrf.mxu1  ;;  %v15318_v21 = vsel %vm4689_vm13, %v4625_v22, %v4753_v27  ;;  %v15342_v27 = vsel %vm4639_vm3, %v4575_v45, %v4703_v26  ;;  %vm4645_vm5 = vcmp.gt.f32.partialorder %v4581_v31, 0.0  ;;  %v4709_v4 = vmul.f32 0.2, %v4581_v31 }
 0x14f   : > { %v15310_v37 = vpop.f32.mrf.mxu0  ;;  %22455 = vst [vmem:[#allocation97_spill] sm:$0xff] %v15318_v21  ;;  %22459 = vst [vmem:[#allocation101_spill] sm:$0xff] %v15342_v27  ;;  %vm4653_vm9 = vcmp.gt.f32.partialorder %v4589_v3, 0.0 }
 0x150   : > { %22451 = vst [vmem:[#allocation93_spill] sm:$0xff] %v15310_v37  ;;  %v15314_v7 = vpop.f32.mrf.mxu1 }
 0x151   : > { %22453 = vst [vmem:[#allocation95_spill] sm:$0xff] %v15314_v7  ;;  %v1745_v36 = vpop.f32.mrf.mxu0  ;;  %12404 = vmatmul.mubr.msk.bf16.gmra.mxu0 %vm1240_vm0, %v14921_v8 }
 0x152   : > { %v1818_v37 = vpop.f32.mrf.mxu1  ;;  %12408 = vmatmul.mubr.msk.bf16.gmra.mxu1 %vm1240_vm0, %v14921_v8  ;;  %2629 = vmatprep.mubr.bf16.mxu0 %v22365_v56  ;;  %v4583_v8 = vadd.f32 %v14651_v18, %v1802_v40  ;;  %v4591_v40 = vadd.f32 %v14523_v17, %v1808_v38  ;;  %v4717_v38 = vmul.f32 0.2, %v4589_v3 }
 0x153   : > { %v15334_v20 = vpop.f32.mrf.mxu0  ;;  %2702 = vmatprep.mubr.bf16.mxu1 %v22365_v56  ;;  %v4607_v27 = vadd.f32 %v14505_v11, %v1818_v37 }
 0x154   : > { %22457 = vst [vmem:[#allocation99_spill] sm:$0xff] %v15334_v20  ;;  %v15337_v22 = vpop.f32.mrf.mxu1  ;;  %vm4647_vm6 = vcmp.gt.f32.partialorder %v4583_v8, 0.0  ;;  %v4711_v6 = vmul.f32 0.2, %v4583_v8  ;;  %v15346_v20 = vsel %vm4637_vm4, %v4573_v48, %v4701_v57  ;;  %vm4655_vm8 = vcmp.gt.f32.partialorder %v4591_v40, 0.0 }
 0x155   : > { %22458 = vst [vmem:[#allocation100_spill] sm:$0xff] %v15337_v22  ;;  %v1749_v9 = vpop.f32.mrf.mxu0  ;;  %22461 = vst [vmem:[#allocation103_spill] sm:$0xff] %v15346_v20  ;;  %v15350_v22 = vsel %vm4645_vm5, %v4581_v31, %v4709_v4  ;;  %v4597_v31 = vadd.f32 %v14555_v28, %v1739_v30  ;;  %v15380_v30 = vsel %vm4653_vm9, %v4589_v3, %v4717_v38  ;;  %vm4671_vm12 = vcmp.gt.f32.partialorder %v4607_v27, 0.0  ;;  %v485_v38 = vld [vmem:[%s14257_s15 + $0x408] sm:$0xff] }
 0x156   : > { %v1822_v60 = vpop.f32.mrf.mxu1  ;;  %22463 = vst [vmem:[#allocation105_spill] sm:$0xff] %v15350_v22  ;;  %v15352_v58 = vsel %vm4647_vm6, %v4583_v8, %v4711_v6  ;;  %v4719_v6 = vmul.f32 0.2, %v4591_v40  ;;  %v4599_v8 = vadd.f32 %v14555_v28, %v1812_v50  ;;  %22470 = vst [vmem:[#allocation112_spill] sm:$0xff] %v15380_v30 }
 0x157   : > { %v15344_v25 = vpop.f32.mrf.mxu0  ;;  %22464 = vst [vmem:[#allocation106_spill] sm:$0xff] %v15352_v58  ;;  %vm4661_vm10 = vcmp.gt.f32.partialorder %v4597_v31, 0.0  ;;  %v4725_v20 = vmul.f32 0.2, %v4597_v31 }
 0x158   : > { %22460 = vst [vmem:[#allocation102_spill] sm:$0xff] %v15344_v25  ;;  %v15348_v7 = vpop.f32.mrf.mxu1  ;;  %v15372_v26 = vsel %vm4655_vm8, %v4591_v40, %v4719_v6  ;;  %vm4663_vm11 = vcmp.gt.f32.partialorder %v4599_v8, 0.0  ;;  %v4727_v22 = vmul.f32 0.2, %v4599_v8 }
 0x159   : > { %22462 = vst [vmem:[#allocation104_spill] sm:$0xff] %v15348_v7  ;;  %v1755_v45 = vpop.f32.mrf.mxu0  ;;  %12405 = vmatmul.mubr.msk.bf16.gmra.mxu0 %vm1240_vm0, %v14977_v24  ;;  %22467 = vst [vmem:[#allocation109_spill] sm:$0xff] %v15372_v26  ;;  %v15382_v50 = vsel %vm4661_vm10, %v4597_v31, %v4725_v20  ;;  %v4615_v20 = vadd.f32 %v14516_v15, %v1822_v60 }
 0x15a   : > { %v1828_v57 = vpop.f32.mrf.mxu1  ;;  %12409 = vmatmul.mubr.msk.bf16.gmra.mxu1 %vm1240_vm0, %v14977_v24  ;;  %2745 = vmatprep.mubr.bf16.mxu0 %v22365_v56  ;;  %v4605_v24 = vadd.f32 %v14505_v11, %v1745_v36  ;;  %22471 = vst [vmem:[#allocation113_spill] sm:$0xff] %v15382_v50  ;;  %v15384_v40 = vsel %vm4663_vm11, %v4599_v8, %v4727_v22  ;;  %v449_v22 = vld [vmem:[%s14257_s15 + $0x2e8] sm:$0xff] }
 0x15b   : > { %v15364_v4 = vpop.f32.mrf.mxu0  ;;  %2818 = vmatprep.mubr.bf16.mxu1 %v22365_v56  ;;  %22472 = vst [vmem:[#allocation114_spill] sm:$0xff] %v15384_v40  ;;  %vm4679_vm3 = vcmp.gt.f32.partialorder %v4615_v20, 0.0  ;;  %v4743_v26 = vmul.f32 0.2, %v4615_v20  ;;  %v12300_v30 = vcombine.low %v449_v22, %v485_v38 }
 0x15c   : > { %22465 = vst [vmem:[#allocation107_spill] sm:$0xff] %v15364_v4  ;;  %v15368_v59 = vpop.f32.mrf.mxu1  ;;  %v4733_v25 = vmul.f32 0.2, %v4605_v24  ;;  %vm4669_vm13 = vcmp.gt.f32.partialorder %v4605_v24, 0.0 }
 0x15d   : > { %22466 = vst [vmem:[#allocation108_spill] sm:$0xff] %v15368_v59  ;;  %v1759_v48 = vpop.f32.mrf.mxu0  ;;  %v15408_v23 = vsel %vm4679_vm3, %v4615_v20, %v4743_v26 }
 0x15e   : > { %v1832_v58 = vpop.f32.mrf.mxu1  ;;  %22479 = vst [vmem:[#allocation121_spill] sm:$0xff] %v15408_v23 }
 0x15f   : > { %v15376_v4 = vpop.f32.mrf.mxu0 }
 0x160   : > { %22468 = vst [vmem:[#allocation110_spill] sm:$0xff] %v15376_v4  ;;  %v15378_v59 = vpop.f32.mrf.mxu1  ;;  %v4735_v4 = vmul.f32 0.2, %v4607_v27 }
 0x161   : > { %22469 = vst [vmem:[#allocation111_spill] sm:$0xff] %v15378_v59  ;;  %v15386_v36 = vpop.f32.mrf.mxu0  ;;  %v4613_v59 = vadd.f32 %v14516_v15, %v1749_v9  ;;  %v15402_v9 = vsel %vm4669_vm13, %v4605_v24, %v4733_v25  ;;  %v12301_v24 = vcombine.high %v449_v22, %v485_v38  ;;  %v4631_v25 = vadd.f32 %v14511_v13, %v1832_v58 }
 0x162   : > { %v1944_v7 = vpop.f32.mrf.mxu1  ;;  %v15400_v8 = vsel %vm4671_vm12, %v4607_v27, %v4735_v4  ;;  %22476 = vst [vmem:[#allocation118_spill] sm:$0xff] %v15402_v9  ;;  %v4621_v27 = vadd.f32 %v14501_v10, %v1755_v45  ;;  %v4623_v4 = vadd.f32 %v14501_v10, %v1828_v57  ;;  %v4629_v57 = vadd.f32 %v14511_v13, %v1759_v48 }
 0x163   : > { %v15393_v3 = vpop.f32.mrf.mxu0  ;;  %22475 = vst [vmem:[#allocation117_spill] sm:$0xff] %v15400_v8  ;;  %vm4677_vm14 = vcmp.gt.f32.partialorder %v4613_v59, 0.0  ;;  %v4741_v6 = vmul.f32 0.2, %v4613_v59  ;;  %2798 = vmatprep.subr.bf16.mxu1 %v12301_v24  ;;  %vm4695_vm8 = vcmp.gt.f32.partialorder %v4631_v25, 0.0 }
 0x164   : > { %22473 = vst [vmem:[#allocation115_spill] sm:$0xff] %v15393_v3  ;;  %v15398_v31 = vpop.f32.mrf.mxu1  ;;  %vm4687_vm4 = vcmp.gt.f32.partialorder %v4623_v4, 0.0  ;;  %v4751_v26 = vmul.f32 0.2, %v4623_v4  ;;  %v4749_v45 = vmul.f32 0.2, %v4621_v27  ;;  %2799 = vmatpush1.bf16.msra.mxu1 %v12300_v30 }
 0x165   : > { %22474 = vst [vmem:[#allocation116_spill] sm:$0xff] %v15398_v31  ;;  %v1875_v37 = vpop.f32.mrf.mxu0  ;;  %v15406_v60 = vsel %vm4677_vm14, %v4613_v59, %v4741_v6  ;;  %v376_v59 = vld [vmem:[%s14257_s15 + $0xa0] sm:$0xff]  ;;  %vm4685_vm5 = vcmp.gt.f32.partialorder %v4621_v27, 0.0  ;;  %vm4693_vm6 = vcmp.gt.f32.partialorder %v4629_v57, 0.0  ;;  %v4757_v52 = vmul.f32 0.2, %v4629_v57 }
 0x166   : > { %v1948_v40 = vpop.f32.mrf.mxu1  ;;  %22478 = vst [vmem:[#allocation120_spill] sm:$0xff] %v15406_v60  ;;  %v412_v6 = vld [vmem:[%s14257_s15 + $0x1c0] sm:$0xff]  ;;  %v15430_v38 = vsel %vm4687_vm4, %v4623_v4, %v4751_v26  ;;  %v4759_v24 = vmul.f32 0.2, %v4631_v25  ;;  %v15432_v62 = vsel %vm4685_vm5, %v4621_v27, %v4749_v45  ;;  %v5113_v26 = vadd.f32 %v14590_v42, %v15386_v36 }
 0x167   : > { %v15404_v50 = vpop.f32.mrf.mxu0  ;;  %22483 = vst [vmem:[#allocation125_spill] sm:$0xff] %v15430_v38  ;;  %v12226_v8 = vcombine.low %v376_v59, %v412_v6  ;;  %v12227_v9 = vcombine.high %v376_v59, %v412_v6  ;;  %22484 = vst [vmem:[#allocation126_spill] sm:$0xff] %v15432_v62  ;;  %v15434_v33 = vsel %vm4693_vm6, %v4629_v57, %v4757_v52 }
 0x168   : > { %22477 = vst [vmem:[#allocation119_spill] sm:$0xff] %v15404_v50  ;;  %v15412_v31 = vpop.f32.mrf.mxu1  ;;  %22485 = vst [vmem:[#allocation127_spill] sm:$0xff] %v15434_v33  ;;  %v15440_v4 = vsel %vm4695_vm8, %v4631_v25, %v4759_v24  ;;  %v5115_v59 = vadd.f32 %v14590_v42, %v1944_v7  ;;  %v5241_v36 = vmul.f32 0.2, %v5113_v26  ;;  %v15459_v7 = vld [vmem:[%s21791_s1] sm:$0xff]   ;;  %vm5177_vm10 = vcmp.gt.f32.partialorder %v5113_v26, 0.0 }
 0x169   : > { %22480 = vst [vmem:[#allocation122_spill] sm:$0xff] %v15412_v31  ;;  %v15418_v61 = vpop.f32.mrf.mxu0  ;;  %v413_v31 = vld [vmem:[%s14257_s15 + $0x1c8] sm:$0xff]  ;;  %22487 = vst [vmem:[#allocation129_spill] sm:$0xff] %v15440_v4  ;;  %2727 = vmatprep.subr.bf16.mxu0 %v12227_v9  ;;  %v5121_v9 = vadd.f32 %v14651_v18, %v1875_v37  ;;  %v450_v33 = vld [vmem:[%s14257_s15 + $0x2f0] sm:$0xff] }
 0x16a   : > { %v1954_v20 = vpop.f32.mrf.mxu1  ;;  %v12228_v48 = vcombine.low %v377_v34, %v413_v31  ;;  %v12229_v30 = vcombine.high %v377_v34, %v413_v31  ;;  %2728 = vmatpush1.bf16.msra.mxu0 %v12226_v8  ;;  %v5243_v27 = vmul.f32 0.2, %v5115_v59  ;;  %vm5179_vm9 = vcmp.gt.f32.partialorder %v5115_v59, 0.0 }
 0x16b   : > { %v15425_v44 = vpop.f32.mrf.mxu0  ;;  %v5123_v8 = vadd.f32 %v14651_v18, %v1948_v40  ;;  %vm5185_vm11 = vcmp.gt.f32.partialorder %v5121_v9, 0.0  ;;  %v5249_v57 = vmul.f32 0.2, %v5121_v9  ;;  %v15474_v40 = vsel %vm5177_vm10, %v5113_v26, %v5241_v36 }
 0x16c   : > { %22481 = vst [vmem:[#allocation123_spill] sm:$0xff] %v15425_v44  ;;  %v15428_v22 = vpop.f32.mrf.mxu1  ;;  %2800 = vmatprep.subr.bf16.mxu1 %v12229_v30  ;;  %22493 = vst [vmem:[#allocation135_spill] sm:$0xff] %v15474_v40  ;;  %v5129_v38 = vadd.f32 %v14523_v17, %v15418_v61  ;;  %v5131_v4 = vadd.f32 %v14523_v17, %v1954_v20  ;;  %v15496_v20 = vld [vmem:[%s21791_s1 + $0x8] sm:$0xff]   ;;  %v378_v44 = vld [vmem:[%s14257_s15 + $0xb0] sm:$0xff] }
 0x16d   : > { %22482 = vst [vmem:[#allocation124_spill] sm:$0xff] %v15428_v22  ;;  %v1885_v23 = vpop.f32.mrf.mxu0  ;;  %2801 = vmatpush1.bf16.msra.mxu1 %v12228_v48  ;;  %12410 = vmatmul.mubr.msk.bf16.vlgmr.msra.gmra.mxu0 %vm1240_vm0, %v15459_v7  ;;  %vm5187_vm12 = vcmp.gt.f32.partialorder %v5123_v8, 0.0  ;;  %v15470_v48 = vsel %vm5179_vm9, %v5115_v59, %v5243_v27  ;;  %v5251_v30 = vmul.f32 0.2, %v5123_v8  ;;  %v15476_v58 = vsel %vm5185_vm11, %v5121_v9, %v5249_v57 }
 0x16e   : > { %v1958_v60 = vpop.f32.mrf.mxu1  ;;  %2755 = vmatprep.mubr.bf16.mxu0 %v22365_v56  ;;  %22491 = vst [vmem:[#allocation133_spill] sm:$0xff] %v15470_v48  ;;  %22494 = vst [vmem:[#allocation136_spill] sm:$0xff] %v15476_v58  ;;  %vm5195_vm13 = vcmp.gt.f32.partialorder %v5131_v4, 0.0  ;;  %v5257_v9 = vmul.f32 0.2, %v5129_v38  ;;  %vm5193_vm14 = vcmp.gt.f32.partialorder %v5129_v38, 0.0 }
 0x16f   : > { %v15436_v50 = vpop.f32.mrf.mxu0  ;;  %v5259_v61 = vmul.f32 0.2, %v5131_v4  ;;  %v5139_v57 = vadd.f32 %v14555_v28, %v1958_v60  ;;  %v486_v48 = vld [vmem:[%s14257_s15 + $0x410] sm:$0xff] }
 0x170   : > { %22486 = vst [vmem:[#allocation128_spill] sm:$0xff] %v15436_v50  ;;  %v15445_v6 = vpop.f32.mrf.mxu1  ;;  %12414 = vmatmul.mubr.msk.bf16.vlgmr.msra.gmra.mxu1 %vm1240_vm0, %v15459_v7  ;;  %v15513_v60 = vsel %vm5193_vm14, %v5129_v38, %v5257_v9  ;;  %v12302_v22 = vcombine.low %v450_v33, %v486_v48  ;;  %v12303_v40 = vcombine.high %v450_v33, %v486_v48 }
 0x171   : > { %22488 = vst [vmem:[#allocation130_spill] sm:$0xff] %v15445_v6  ;;  %v15449_v34 = vpop.f32.mrf.mxu0  ;;  %2828 = vmatprep.mubr.bf16.mxu1 %v22365_v56  ;;  %v15504_v26 = vsel %vm5195_vm13, %v5131_v4, %v5259_v61  ;;  %vm5203_vm4 = vcmp.gt.f32.partialorder %v5139_v57, 0.0  ;;  %v5267_v6 = vmul.f32 0.2, %v5139_v57  ;;  %22500 = vst [vmem:[#allocation142_spill] sm:$0xff] %v15513_v60 }
 0x172   : > { %v15451_v31 = vpop.f32.mrf.mxu1  ;;  %22499 = vst [vmem:[#allocation141_spill] sm:$0xff] %v15504_v26  ;;  %v5145_v38 = vadd.f32 %v14505_v11, %v15449_v34  ;;  %2871 = vmatprep.subr.bf16.mxu0 %v12303_v40  ;;  %v15542_v34 = vld [vmem:[%s21791_s1 + $0x10] sm:$0xff]  }
 0x173   : > { %v15454_v25 = vpop.f32.mrf.mxu0  ;;  %v5147_v9 = vadd.f32 %v14505_v11, %v15451_v31  ;;  %2872 = vmatpush1.bf16.msra.mxu0 %v12302_v22 }
 0x174   : > { %22489 = vst [vmem:[#allocation131_spill] sm:$0xff] %v15454_v25  ;;  %v15464_v45 = vpop.f32.mrf.mxu1  ;;  %vm5209_vm6 = vcmp.gt.f32.partialorder %v5145_v38, 0.0 }
 0x175   : > { %22490 = vst [vmem:[#allocation132_spill] sm:$0xff] %v15464_v45  ;;  %v1895_v37 = vpop.f32.mrf.mxu0  ;;  %v15485_v45 = vsel %vm5187_vm12, %v5123_v8, %v5251_v30  ;;  %12411 = vmatmul.mubr.msk.bf16.gmra.mxu0 %vm1240_vm0, %v15496_v20  ;;  %v5137_v8 = vadd.f32 %v14555_v28, %v1885_v23  ;;  %vm5211_vm5 = vcmp.gt.f32.partialorder %v5147_v9, 0.0 }
 0x176   : > { %v1968_v24 = vpop.f32.mrf.mxu1  ;;  %22496 = vst [vmem:[#allocation138_spill] sm:$0xff] %v15485_v45  ;;  %2765 = vmatprep.mubr.bf16.mxu0 %v22365_v56 }
 0x177   : > { %v15472_v52 = vpop.f32.mrf.mxu0  ;;  %vm5201_vm3 = vcmp.gt.f32.partialorder %v5137_v8, 0.0  ;;  %v5155_v33 = vadd.f32 %v14516_v15, %v1968_v24 }
 0x178   : > { %22492 = vst [vmem:[#allocation134_spill] sm:$0xff] %v15472_v52  ;;  %v15481_v62 = vpop.f32.mrf.mxu1  ;;  %12415 = vmatmul.mubr.msk.bf16.gmra.mxu1 %vm1240_vm0, %v15496_v20 }
 0x179   : > { %22495 = vst [vmem:[#allocation137_spill] sm:$0xff] %v15481_v62  ;;  %v15487_v59 = vpop.f32.mrf.mxu0  ;;  %v5265_v62 = vmul.f32 0.2, %v5137_v8  ;;  %2838 = vmatprep.mubr.bf16.mxu1 %v22365_v56  ;;  %vm5219_vm9 = vcmp.gt.f32.partialorder %v5155_v33, 0.0  ;;  %v5283_v40 = vmul.f32 0.2, %v5155_v33 }
 0x17a   : > { %v1974_v27 = vpop.f32.mrf.mxu1 }
 0x17b   : > { %v15491_v36 = vpop.f32.mrf.mxu0  ;;  %v15517_v61 = vsel %vm5201_vm3, %v5137_v8, %v5265_v62  ;;  %v5273_v8 = vmul.f32 0.2, %v5145_v38 }
 0x17c   : > { %22497 = vst [vmem:[#allocation139_spill] sm:$0xff] %v15491_v36  ;;  %v15502_v30 = vpop.f32.mrf.mxu1  ;;  %22502 = vst [vmem:[#allocation144_spill] sm:$0xff] %v15517_v61  ;;  %v5161_v61 = vadd.f32 %v14501_v10, %v15487_v59 }
 0x17d   : > { %22498 = vst [vmem:[#allocation140_spill] sm:$0xff] %v15502_v30  ;;  %v1905_v45 = vpop.f32.mrf.mxu0  ;;  %v15519_v30 = vsel %vm5203_vm4, %v5139_v57, %v5267_v6  ;;  %v5153_v6 = vadd.f32 %v14516_v15, %v1895_v37  ;;  %v5275_v57 = vmul.f32 0.2, %v5147_v9  ;;  %12412 = vmatmul.mubr.msk.bf16.gmra.mxu0 %vm1240_vm0, %v15542_v34  ;;  %v15558_v26 = vsel %vm5209_vm6, %v5145_v38, %v5273_v8 }
 0x17e   : > { %v1978_v23 = vpop.f32.mrf.mxu1  ;;  %22503 = vst [vmem:[#allocation145_spill] sm:$0xff] %v15519_v30  ;;  %2775 = vmatprep.mubr.bf16.mxu0 %v22365_v56  ;;  %22508 = vst [vmem:[#allocation150_spill] sm:$0xff] %v15558_v26  ;;  %v5289_v26 = vmul.f32 0.2, %v5161_v61  ;;  %vm5225_vm11 = vcmp.gt.f32.partialorder %v5161_v61, 0.0 }
 0x17f   : > { %v15515_v4 = vpop.f32.mrf.mxu0  ;;  %vm5217_vm8 = vcmp.gt.f32.partialorder %v5153_v6, 0.0  ;;  %v5281_v22 = vmul.f32 0.2, %v5153_v6  ;;  %v15553_v24 = vsel %vm5211_vm5, %v5147_v9, %v5275_v57  ;;  %v15569_v57 = vsel %vm5219_vm9, %v5155_v33, %v5283_v40  ;;  %v414_v9 = vld [vmem:[%s14257_s15 + $0x1d0] sm:$0xff] }
 0x180   : > { %22501 = vst [vmem:[#allocation143_spill] sm:$0xff] %v15515_v4  ;;  %v15521_v58 = vpop.f32.mrf.mxu1  ;;  %12416 = vmatmul.mubr.msk.bf16.gmra.mxu1 %vm1240_vm0, %v15542_v34  ;;  %22507 = vst [vmem:[#allocation149_spill] sm:$0xff] %v15553_v24  ;;  %v5169_v40 = vadd.f32 %v14511_v13, %v1905_v45  ;;  %v5171_v59 = vadd.f32 %v14511_v13, %v1978_v23  ;;  %v12230_v23 = vcombine.low %v378_v44, %v414_v9 }
 0x181   : > { %22504 = vst [vmem:[#allocation146_spill] sm:$0xff] %v15521_v58  ;;  %v15531_v62 = vpop.f32.mrf.mxu0  ;;  %2848 = vmatprep.mubr.bf16.mxu1 %v22365_v56  ;;  %v15560_v30 = vsel %vm5217_vm8, %v5153_v6, %v5281_v22  ;;  %v487_v58 = vld [vmem:[%s14257_s15 + $0x418] sm:$0xff]  ;;  %22511 = vst [vmem:[#allocation153_spill] sm:$0xff] %v15569_v57  ;;  %v15610_v25 = vsel %vm5225_vm11, %v5161_v61, %v5289_v26 }
 0x182   : > { %v15535_v48 = vpop.f32.mrf.mxu1  ;;  %22509 = vst [vmem:[#allocation151_spill] sm:$0xff] %v15560_v30  ;;  %v15590_v6 = vld [vmem:[%s21791_s1 + $0x18] sm:$0xff]   ;;  %vm5233_vm12 = vcmp.gt.f32.partialorder %v5169_v40, 0.0  ;;  %vm5235_vm13 = vcmp.gt.f32.partialorder %v5171_v59, 0.0  ;;  %22517 = vst [vmem:[#allocation159_spill] sm:$0xff] %v15610_v25 }
 0x183   : > { %v15537_v50 = vpop.f32.mrf.mxu0  ;;  %v5119_v61 = vadd.f32 %v14590_v42, %v15535_v48 }
 0x184   : > { %22505 = vst [vmem:[#allocation147_spill] sm:$0xff] %v15537_v50  ;;  %v15546_v31 = vpop.f32.mrf.mxu1  ;;  %v451_v50 = vld [vmem:[%s14257_s15 + $0x2f8] sm:$0xff] }
 0x185   : > { %22506 = vst [vmem:[#allocation148_spill] sm:$0xff] %v15546_v31  ;;  %v15551_v37 = vpop.f32.mrf.mxu0  ;;  %v5163_v31 = vadd.f32 %v14501_v10, %v1974_v27  ;;  %v12304_v22 = vcombine.low %v451_v50, %v487_v58  ;;  %12413 = vmatmul.mubr.msk.bf16.gmra.mxu0 %vm1240_vm0, %v15590_v6  ;;  %vm5183_vm3 = vcmp.gt.f32.partialorder %v5119_v61, 0.0 }
 0x186   : > { %v15556_v3 = vpop.f32.mrf.mxu1  ;;  %2891 = vmatprep.mubr.bf16.mxu0 %v22365_v56 }
 0x187   : > { %v15565_v60 = vpop.f32.mrf.mxu0  ;;  %vm5227_vm10 = vcmp.gt.f32.partialorder %v5163_v31, 0.0  ;;  %v5291_v27 = vmul.f32 0.2, %v5163_v31 }
 0x188   : > { %22510 = vst [vmem:[#allocation152_spill] sm:$0xff] %v15565_v60  ;;  %v15573_v38 = vpop.f32.mrf.mxu1  ;;  %v12305_v60 = vcombine.high %v451_v50, %v487_v58  ;;  %v379_v50 = vld [vmem:[%s14257_s15 + $0xb8] sm:$0xff]  ;;  %12417 = vmatmul.mubr.msk.bf16.gmra.mxu1 %vm1240_vm0, %v15590_v6 }
 0x189   : > { %22512 = vst [vmem:[#allocation154_spill] sm:$0xff] %v15573_v38  ;;  %v15577_v8 = vpop.f32.mrf.mxu0  ;;  %v415_v58 = vld [vmem:[%s14257_s15 + $0x1d8] sm:$0xff]  ;;  %v15599_v45 = vsel %vm5227_vm10, %v5163_v31, %v5291_v27  ;;  %2964 = vmatprep.mubr.bf16.mxu1 %v22365_v56 }
 0x18a   : > { %v15581_v33 = vpop.f32.mrf.mxu1  ;;  %2944 = vmatprep.subr.bf16.mxu1 %v12305_v60  ;;  %22515 = vst [vmem:[#allocation157_spill] sm:$0xff] %v15599_v45  ;;  %v5299_v60 = vmul.f32 0.2, %v5171_v59  ;;  %v12232_v52 = vcombine.low %v379_v50, %v415_v58  ;;  %v12233_v31 = vcombine.high %v379_v50, %v415_v58 }
 0x18b   : > { %v15585_v38 = vpop.f32.mrf.mxu0  ;;  %2945 = vmatpush1.bf16.msra.mxu1 %v12304_v22  ;;  %v5117_v22 = vadd.f32 %v14590_v42, %v15531_v62  ;;  %v5125_v62 = vadd.f32 %v14651_v18, %v15551_v37 }
 0x18c   : > { %22513 = vst [vmem:[#allocation155_spill] sm:$0xff] %v15585_v38  ;;  %v15596_v24 = vpop.f32.mrf.mxu1  ;;  %v5297_v38 = vmul.f32 0.2, %v5169_v40  ;;  %v15614_v36 = vsel %vm5235_vm13, %v5171_v59, %v5299_v60  ;;  %2946 = vmatprep.subr.bf16.mxu1 %v12233_v31  ;;  %v5127_v59 = vadd.f32 %v14651_v18, %v15556_v3 }
 0x18d   : > { %22514 = vst [vmem:[#allocation156_spill] sm:$0xff] %v15596_v24  ;;  %v2031_v57 = vpop.f32.mrf.mxu0  ;;  %v12231_v24 = vcombine.high %v378_v44, %v414_v9  ;;  %22519 = vst [vmem:[#allocation161_spill] sm:$0xff] %v15614_v36  ;;  %vm5181_vm14 = vcmp.gt.f32.partialorder %v5117_v22, 0.0  ;;  %vm5189_vm4 = vcmp.gt.f32.partialorder %v5125_v62, 0.0  ;;  %v5253_v48 = vmul.f32 0.2, %v5125_v62 }
 0x18e   : > { %v15605_v30 = vpop.f32.mrf.mxu1  ;;  %v15612_v4 = vsel %vm5233_vm12, %v5169_v40, %v5297_v38  ;;  %v5245_v40 = vmul.f32 0.2, %v5117_v22  ;;  %vm5191_vm5 = vcmp.gt.f32.partialorder %v5127_v59, 0.0  ;;  %v5255_v58 = vmul.f32 0.2, %v5127_v59 }
 0x18f   : > { %v15607_v27 = vpop.f32.mrf.mxu0  ;;  %22518 = vst [vmem:[#allocation160_spill] sm:$0xff] %v15612_v4  ;;  %2873 = vmatprep.subr.bf16.mxu0 %v12231_v24  ;;  %2947 = vmatpush1.bf16.msra.mxu1 %v12232_v52  ;;  %v5247_v24 = vmul.f32 0.2, %v5119_v61  ;;  %v15648_v31 = vsel %vm5189_vm4, %v5125_v62, %v5253_v48  ;;  %v5141_v62 = vadd.f32 %v14555_v28, %v2031_v57 }
 0x190   : > { %22516 = vst [vmem:[#allocation158_spill] sm:$0xff] %v15607_v27  ;;  %v15618_v54 = vpop.f32.mrf.mxu1  ;;  %2874 = vmatpush1.bf16.msra.mxu0 %v12230_v23  ;;  %v15646_v60 = vsel %vm5181_vm14, %v5117_v22, %v5245_v40  ;;  %22526 = vst [vmem:[#allocation168_spill] sm:$0xff] %v15648_v31  ;;  %v15654_v45 = vsel %vm5191_vm5, %v5127_v59, %v5255_v58  ;;  %v452_v59 = vld [vmem:[%s14257_s15 + $0x300] sm:$0xff]  ;;  %v5143_v22 = vadd.f32 %v14555_v28, %v15605_v30 }
 0x191   : > { %22520 = vst [vmem:[#allocation162_spill] sm:$0xff] %v15618_v54  ;;  %v2037_v9 = vpop.f32.mrf.mxu0  ;;  %v15642_v3 = vsel %vm5183_vm3, %v5119_v61, %v5247_v24  ;;  %22525 = vst [vmem:[#allocation167_spill] sm:$0xff] %v15646_v60  ;;  %v5133_v61 = vadd.f32 %v14523_v17, %v15577_v8  ;;  %v5135_v24 = vadd.f32 %v14523_v17, %v15581_v33  ;;  %v488_v58 = vld [vmem:[%s14257_s15 + $0x420] sm:$0xff]  ;;  %vm5205_vm9 = vcmp.gt.f32.partialorder %v5141_v62, 0.0 }
 0x192   : > { %v15624_v26 = vpop.f32.mrf.mxu1  ;;  %12422 = vmatmul.mubr.msk.bf16.vlgmr.msra.gmra.mxu1 %vm1240_vm0, %v15459_v7  ;;  %22523 = vst [vmem:[#allocation165_spill] sm:$0xff] %v15642_v3  ;;  %22528 = vst [vmem:[#allocation170_spill] sm:$0xff] %v15654_v45  ;;  %v5269_v8 = vmul.f32 0.2, %v5141_v62  ;;  %v12306_v31 = vcombine.low %v452_v59, %v488_v58  ;;  %vm5207_vm10 = vcmp.gt.f32.partialorder %v5143_v22, 0.0 }
 0x193   : > { %v15630_v38 = vpop.f32.mrf.mxu0  ;;  %12418 = vmatmul.mubr.msk.bf16.vlgmr.msra.gmra.mxu0 %vm1240_vm0, %v15459_v7  ;;  %2974 = vmatprep.mubr.bf16.mxu1 %v22365_v56  ;;  %vm5197_vm6 = vcmp.gt.f32.partialorder %v5133_v61, 0.0  ;;  %v5261_v48 = vmul.f32 0.2, %v5133_v61  ;;  %v5263_v16 = vmul.f32 0.2, %v5135_v24  ;;  %vm5199_vm8 = vcmp.gt.f32.partialorder %v5135_v24, 0.0 }
 0x194   : > { %22521 = vst [vmem:[#allocation163_spill] sm:$0xff] %v15630_v38  ;;  %v15634_v50 = vpop.f32.mrf.mxu1  ;;  %2901 = vmatprep.mubr.bf16.mxu0 %v22365_v56  ;;  %v15681_v45 = vsel %vm5205_vm9, %v5141_v62, %v5269_v8  ;;  %v5271_v30 = vmul.f32 0.2, %v5143_v22 }
 0x195   : > { %22522 = vst [vmem:[#allocation164_spill] sm:$0xff] %v15634_v50  ;;  %v2041_v52 = vpop.f32.mrf.mxu0  ;;  %v15675_v33 = vsel %vm5197_vm6, %v5133_v61, %v5261_v48  ;;  %22532 = vst [vmem:[#allocation174_spill] sm:$0xff] %v15681_v45  ;;  %v15687_v50 = vsel %vm5199_vm8, %v5135_v24, %v5263_v16 }
 0x196   : > { %v2114_v37 = vpop.f32.mrf.mxu1  ;;  %22531 = vst [vmem:[#allocation173_spill] sm:$0xff] %v15675_v33  ;;  %22534 = vst [vmem:[#allocation176_spill] sm:$0xff] %v15687_v50  ;;  %v15695_v62 = vsel %vm5207_vm10, %v5143_v22, %v5271_v30 }
 0x197   : > { %v15644_v23 = vpop.f32.mrf.mxu0  ;;  %22536 = vst [vmem:[#allocation178_spill] sm:$0xff] %v15695_v62 }
 0x198   : > { %22524 = vst [vmem:[#allocation166_spill] sm:$0xff] %v15644_v23  ;;  %v15650_v44 = vpop.f32.mrf.mxu1 }
 0x199   : > { %22527 = vst [vmem:[#allocation169_spill] sm:$0xff] %v15650_v44  ;;  %v2047_v36 = vpop.f32.mrf.mxu0 }
 0x19a   : > { %v2120_v40 = vpop.f32.mrf.mxu1  ;;  %12423 = vmatmul.mubr.msk.bf16.gmra.mxu1 %vm1240_vm0, %v15496_v20  ;;  %v5165_v33 = vadd.f32 %v14501_v10, %v2047_v36  ;;  %v417_v36 = vld [vmem:[%s14257_s15 + $0x1e8] sm:$0xff] }
 0x19b   : > { %v15663_v44 = vpop.f32.mrf.mxu0  ;;  %12419 = vmatmul.mubr.msk.bf16.gmra.mxu0 %vm1240_vm0, %v15496_v20  ;;  %2984 = vmatprep.mubr.bf16.mxu1 %v22365_v56  ;;  %v5167_v45 = vadd.f32 %v14501_v10, %v2120_v40  ;;  %v380_v40 = vld [vmem:[%s14257_s15 + $0xc0] sm:$0xff] }
 0x19c   : > { %22529 = vst [vmem:[#allocation171_spill] sm:$0xff] %v15663_v44  ;;  %v15667_v60 = vpop.f32.mrf.mxu1  ;;  %2911 = vmatprep.mubr.bf16.mxu0 %v22365_v56  ;;  %v5149_v44 = vadd.f32 %v14505_v11, %v2037_v9  ;;  %v5151_v9 = vadd.f32 %v14505_v11, %v15624_v26  ;;  %v453_v26 = vld [vmem:[%s14257_s15 + $0x308] sm:$0xff]  ;;  %vm5229_vm4 = vcmp.gt.f32.partialorder %v5165_v33, 0.0 }
 0x19d   : > { %22530 = vst [vmem:[#allocation172_spill] sm:$0xff] %v15667_v60  ;;  %v15673_v57 = vpop.f32.mrf.mxu0  ;;  %v12307_v60 = vcombine.high %v452_v59, %v488_v58  ;;  %v5157_v58 = vadd.f32 %v14516_v15, %v2041_v52  ;;  %vm5231_vm3 = vcmp.gt.f32.partialorder %v5167_v45, 0.0 }
 0x19e   : > { %v2124_v3 = vpop.f32.mrf.mxu1  ;;  %v5277_v59 = vmul.f32 0.2, %v5149_v44  ;;  %vm5213_vm11 = vcmp.gt.f32.partialorder %v5149_v44, 0.0  ;;  %vm5215_vm12 = vcmp.gt.f32.partialorder %v5151_v9, 0.0  ;;  %v5279_v22 = vmul.f32 0.2, %v5151_v9 }
 0x19f   : > { %v15684_v23 = vpop.f32.mrf.mxu0  ;;  %3017 = vmatprep.subr.bf16.mxu0 %v12307_v60  ;;  %v5159_v60 = vadd.f32 %v14516_v15, %v2114_v37  ;;  %vm5221_vm13 = vcmp.gt.f32.partialorder %v5157_v58, 0.0  ;;  %v5285_v37 = vmul.f32 0.2, %v5157_v58 }
 0x1a0   : > { %22533 = vst [vmem:[#allocation175_spill] sm:$0xff] %v15684_v23  ;;  %v15691_v48 = vpop.f32.mrf.mxu1  ;;  %3018 = vmatpush1.bf16.msra.mxu0 %v12306_v31  ;;  %v489_v31 = vld [vmem:[%s14257_s15 + $0x428] sm:$0xff]  ;;  %v15717_v52 = vsel %vm5215_vm12, %v5151_v9, %v5279_v22  ;;  %v15724_v62 = vsel %vm5213_vm11, %v5149_v44, %v5277_v59  ;;  %v5175_v44 = vadd.f32 %v14511_v13, %v2124_v3 }
 0x1a1   : > { %22535 = vst [vmem:[#allocation177_spill] sm:$0xff] %v15691_v48  ;;  %v15693_v38 = vpop.f32.mrf.mxu0  ;;  %22537 = vst [vmem:[#allocation179_spill] sm:$0xff] %v15717_v52  ;;  %vm5223_vm14 = vcmp.gt.f32.partialorder %v5159_v60, 0.0  ;;  %v5287_v61 = vmul.f32 0.2, %v5159_v60  ;;  %v15730_v22 = vsel %vm5221_vm13, %v5157_v58, %v5285_v37  ;;  %v12308_v23 = vcombine.low %v453_v26, %v489_v31  ;;  %v416_v58 = vld [vmem:[%s14257_s15 + $0x1e0] sm:$0xff] }
 0x1a2   : > { %v15699_v16 = vpop.f32.mrf.mxu1  ;;  %12424 = vmatmul.mubr.msk.bf16.gmra.mxu1 %vm1240_vm0, %v15542_v34  ;;  %22538 = vst [vmem:[#allocation180_spill] sm:$0xff] %v15724_v62  ;;  %22539 = vst [vmem:[#allocation181_spill] sm:$0xff] %v15730_v22  ;;  %v12309_v54 = vcombine.high %v453_v26, %v489_v31  ;;  %v5293_v26 = vmul.f32 0.2, %v5165_v33  ;;  %v5173_v31 = vadd.f32 %v14511_v13, %v15673_v57  ;;  %v381_v62 = vld [vmem:[%s14257_s15 + $0xc8] sm:$0xff]  ;;  %vm5239_vm6 = vcmp.gt.f32.partialorder %v5175_v44, 0.0 }
 0x1a3   : > { %v15705_v8 = vpop.f32.mrf.mxu0  ;;  %12420 = vmatmul.mubr.msk.bf16.gmra.mxu0 %vm1240_vm0, %v15542_v34  ;;  %2994 = vmatprep.mubr.bf16.mxu1 %v22365_v56  ;;  %v15732_v48 = vsel %vm5223_vm14, %v5159_v60, %v5287_v61  ;;  %v5295_v61 = vmul.f32 0.2, %v5167_v45  ;;  %v5303_v22 = vmul.f32 0.2, %v5175_v44  ;;  %v12235_v25 = vcombine.high %v380_v40, %v416_v58 }
 0x1a4   : > { %v15707_v30 = vpop.f32.mrf.mxu1  ;;  %2921 = vmatprep.mubr.bf16.mxu0 %v22365_v56  ;;  %22540 = vst [vmem:[#allocation182_spill] sm:$0xff] %v15732_v48  ;;  %3090 = vmatprep.subr.bf16.mxu1 %v12309_v54  ;;  %v12234_v54 = vcombine.low %v380_v40, %v416_v58  ;;  %vm5237_vm5 = vcmp.gt.f32.partialorder %v5173_v31, 0.0  ;;  %v5301_v57 = vmul.f32 0.2, %v5173_v31  ;;  %v12236_v4 = vcombine.low %v381_v62, %v417_v36 }
 0x1a5   : > { %v15715_v24 = vpop.f32.mrf.mxu0  ;;  %3091 = vmatpush1.bf16.msra.mxu1 %v12308_v23  ;;  %v15761_v48 = vsel %vm5231_vm3, %v5167_v45, %v5295_v61  ;;  %v12237_v32 = vcombine.high %v381_v62, %v417_v36  ;;  %v15770_v55 = vsel %vm5229_vm4, %v5165_v33, %v5293_v26  ;;  %v5657_v61 = vadd.f32 %v14590_v42, %v15693_v38 }
 0x1a6   : > { %v15721_v50 = vpop.f32.mrf.mxu1  ;;  %22541 = vst [vmem:[#allocation183_spill] sm:$0xff] %v15761_v48  ;;  %22542 = vst [vmem:[#allocation184_spill] sm:$0xff] %v15770_v55  ;;  %v15772_v45 = vsel %vm5237_vm5, %v5173_v31, %v5301_v57  ;;  %v15780_v2 = vsel %vm5239_vm6, %v5175_v44, %v5303_v22  ;;  %3019 = vmatprep.subr.bf16.mxu0 %v12235_v25  ;;  %v5659_v62 = vadd.f32 %v14590_v42, %v15699_v16 }
 0x1a7   : > { %v15728_v9 = vpop.f32.mrf.mxu0  ;;  %22543 = vst [vmem:[#allocation185_spill] sm:$0xff] %v15772_v45  ;;  %22544 = vst [vmem:[#allocation186_spill] sm:$0xff] %v15780_v2  ;;  %3092 = vmatprep.subr.bf16.mxu1 %v12237_v32  ;;  %3020 = vmatpush1.bf16.msra.mxu0 %v12234_v54  ;;  %vm5721_vm8 = vcmp.gt.f32.partialorder %v5657_v61, 0.0  ;;  %v5785_v40 = vmul.f32 0.2, %v5657_v61  ;;  %v5658_v32 = vadd.f32 %v14590_v42, %v15705_v8 }
 0x1a8   : > { %v15734_v27 = vpop.f32.mrf.mxu1  ;;  %vm5723_vm9 = vcmp.gt.f32.partialorder %v5659_v62, 0.0  ;;  %v5787_v22 = vmul.f32 0.2, %v5659_v62  ;;  %v5660_v25 = vadd.f32 %v14590_v42, %v15707_v30  ;;  %v5665_v16 = vadd.f32 %v14651_v18, %v15715_v24  ;;  %v11406_v24 = vld [vmem:[%s21794_s4] sm:$0xff] }
 0x1a9   : > { %v15740_v59 = vpop.f32.mrf.mxu0  ;;  %3093 = vmatpush1.bf16.msra.mxu1 %v12236_v4  ;;  %v15800_v4 = vsel %vm5721_vm8, %v5657_v61, %v5785_v40  ;;  %v5667_v26 = vadd.f32 %v14651_v18, %v15721_v50  ;;  %v5666_v8 = vadd.f32 %v14651_v18, %v15728_v9  ;;  %vm5722_vm10 = vcmp.gt.f32.partialorder %v5658_v32, 0.0  ;;  %11440 = vperm.xlu0 %14058, %v11406_v24  }
 0x1aa   : > { %v15744_v37 = vpop.f32.mrf.mxu1  ;;  %12425 = vmatmul.mubr.msk.bf16.gmra.mxu1 %vm1240_vm0, %v15590_v6  ;;  %22545 = vst [vmem:[#allocation187_spill] sm:$0xff] %v15800_v4  ;;  %v15815_v31 = vsel %vm5723_vm9, %v5659_v62, %v5787_v22  ;;  %v5786_v54 = vmul.f32 0.2, %v5658_v32  ;;  %vm5724_vm11 = vcmp.gt.f32.partialorder %v5660_v25, 0.0  ;;  %v5788_v50 = vmul.f32 0.2, %v5660_v25 }
 0x1ab   : > { %v15746_v60 = vpop.f32.mrf.mxu0  ;;  %12421 = vmatmul.mubr.msk.bf16.gmra.mxu0 %vm1240_vm0, %v15590_v6  ;;  %3110 = vmatprep.mubr.bf16.mxu1 %v22365_v56  ;;  %22546 = vst [vmem:[#allocation188_spill] sm:$0xff] %v15815_v31  ;;  %vm5729_vm12 = vcmp.gt.f32.partialorder %v5665_v16, 0.0  ;;  %v5793_v9 = vmul.f32 0.2, %v5665_v16  ;;  %vm5731_vm13 = vcmp.gt.f32.partialorder %v5667_v26, 0.0  ;;  %vm5730_vm14 = vcmp.gt.f32.partialorder %v5666_v8, 0.0 }
 0x1ac   : > { %v15753_v52 = vpop.f32.mrf.mxu1  ;;  %3037 = vmatprep.mubr.bf16.mxu0 %v22365_v56  ;;  %v15823_v61 = vsel %vm5722_vm10, %v5658_v32, %v5786_v54  ;;  %v5795_v62 = vmul.f32 0.2, %v5667_v26  ;;  %v5794_v40 = vmul.f32 0.2, %v5666_v8  ;;  %v15827_v33 = vsel %vm5724_vm11, %v5660_v25, %v5788_v50  ;;  %v490_v31 = vld [vmem:[%s14257_s15 + $0x430] sm:$0xff] }
 0x1ad   : > { %v15759_v23 = vpop.f32.mrf.mxu0  ;;  %22547 = vst [vmem:[#allocation189_spill] sm:$0xff] %v15823_v61  ;;  %22548 = vst [vmem:[#allocation190_spill] sm:$0xff] %v15827_v33  ;;  %v15829_v47 = vsel %vm5729_vm12, %v5665_v16, %v5793_v9  ;;  %v5668_v48 = vadd.f32 %v14651_v18, %v15734_v27  ;;  %v5673_v2 = vadd.f32 %v14523_v17, %v15740_v59 }
 0x1ae   : > { %v15765_v3 = vpop.f32.mrf.mxu1  ;;  %22549 = vst [vmem:[#allocation191_spill] sm:$0xff] %v15829_v47  ;;  %v15839_v24 = vsel %vm5731_vm13, %v5667_v26, %v5795_v62  ;;  %v15841_v54 = vsel %vm5730_vm14, %v5666_v8, %v5794_v40  ;;  %v5675_v25 = vadd.f32 %v14523_v17, %v15744_v37  ;;  %v5674_v40 = vadd.f32 %v14523_v17, %v15746_v60 }
 0x1af   : > { %v15767_v53 = vpop.f32.mrf.mxu0  ;;  %22550 = vst [vmem:[#allocation192_spill] sm:$0xff] %v15839_v24  ;;  %22551 = vst [vmem:[#allocation193_spill] sm:$0xff] %v15841_v54  ;;  %vm5732_vm3 = vcmp.gt.f32.partialorder %v5668_v48, 0.0  ;;  %v5796_v50 = vmul.f32 0.2, %v5668_v48  ;;  %vm5737_vm4 = vcmp.gt.f32.partialorder %v5673_v2, 0.0  ;;  %v5676_v27 = vadd.f32 %v14523_v17, %v15753_v52 }
 0x1b0   : > { %v15776_v14 = vpop.f32.mrf.mxu1  ;;  %v5801_v26 = vmul.f32 0.2, %v5673_v2  ;;  %vm5739_vm5 = vcmp.gt.f32.partialorder %v5675_v25, 0.0  ;;  %v5803_v8 = vmul.f32 0.2, %v5675_v25  ;;  %vm5738_vm6 = vcmp.gt.f32.partialorder %v5674_v40, 0.0 }
 0x1b1   : > { %v15784_v36 = vpop.f32.mrf.mxu0  ;;  %v15855_v37 = vsel %vm5732_vm3, %v5668_v48, %v5796_v50  ;;  %v5681_v50 = vadd.f32 %v14555_v28, %v15759_v23  ;;  %v5802_v52 = vmul.f32 0.2, %v5674_v40  ;;  %vm5740_vm8 = vcmp.gt.f32.partialorder %v5676_v27, 0.0 }
 0x1b2   : > { %v15788_v38 = vpop.f32.mrf.mxu1  ;;  %12430 = vmatmul.mubr.msk.bf16.vlgmr.msra.gmra.mxu1 %vm1240_vm0, %v15459_v7  ;;  %22552 = vst [vmem:[#allocation194_spill] sm:$0xff] %v15855_v37  ;;  %v15869_v45 = vsel %vm5737_vm4, %v5673_v2, %v5801_v26  ;;  %v15871_v48 = vsel %vm5739_vm5, %v5675_v25, %v5803_v8  ;;  %v5804_v24 = vmul.f32 0.2, %v5676_v27  ;;  %v5683_v25 = vadd.f32 %v14555_v28, %v15765_v3 }
 0x1b3   : > { %v15790_v58 = vpop.f32.mrf.mxu0  ;;  %12426 = vmatmul.mubr.msk.bf16.vlgmr.msra.gmra.mxu0 %vm1240_vm0, %v15459_v7  ;;  %3120 = vmatprep.mubr.bf16.mxu1 %v22365_v56  ;;  %22553 = vst [vmem:[#allocation195_spill] sm:$0xff] %v15869_v45  ;;  %22554 = vst [vmem:[#allocation196_spill] sm:$0xff] %v15871_v48  ;;  %vm5745_vm9 = vcmp.gt.f32.partialorder %v5681_v50, 0.0  ;;  %v5809_v2 = vmul.f32 0.2, %v5681_v50  ;;  %v5682_v23 = vadd.f32 %v14555_v28, %v15767_v53 }
 0x1b4   : > { %v15798_v44 = vpop.f32.mrf.mxu1  ;;  %3047 = vmatprep.mubr.bf16.mxu0 %v22365_v56  ;;  %v15889_v8 = vsel %vm5738_vm6, %v5674_v40, %v5802_v52  ;;  %v15891_v33 = vsel %vm5740_vm8, %v5676_v27, %v5804_v24  ;;  %v5684_v37 = vadd.f32 %v14555_v28, %v15776_v14  ;;  %vm5747_vm10 = vcmp.gt.f32.partialorder %v5683_v25, 0.0 }
 0x1b5   : > { %v15810_v30 = vpop.f32.mrf.mxu0  ;;  %22555 = vst [vmem:[#allocation197_spill] sm:$0xff] %v15889_v8  ;;  %22556 = vst [vmem:[#allocation198_spill] sm:$0xff] %v15891_v33  ;;  %v15897_v61 = vsel %vm5745_vm9, %v5681_v50, %v5809_v2  ;;  %v5811_v54 = vmul.f32 0.2, %v5683_v25  ;;  %vm5746_vm11 = vcmp.gt.f32.partialorder %v5682_v23, 0.0  ;;  %v5689_v50 = vadd.f32 %v14505_v11, %v15784_v36  ;;  %v382_v8 = vld [vmem:[%s14257_s15 + $0xd0] sm:$0xff] }
 0x1b6   : > { %v15819_v7 = vpop.f32.mrf.mxu1  ;;  %22557 = vst [vmem:[#allocation199_spill] sm:$0xff] %v15897_v61  ;;  %v5810_v40 = vmul.f32 0.2, %v5682_v23  ;;  %vm5748_vm12 = vcmp.gt.f32.partialorder %v5684_v37, 0.0  ;;  %v5812_v24 = vmul.f32 0.2, %v5684_v37  ;;  %v5691_v2 = vadd.f32 %v14505_v11, %v15788_v38 }
 0x1b7   : > { %v15821_v57 = vpop.f32.mrf.mxu0  ;;  %v15905_v52 = vsel %vm5747_vm10, %v5683_v25, %v5811_v54  ;;  %vm5753_vm13 = vcmp.gt.f32.partialorder %v5689_v50, 0.0  ;;  %v5817_v54 = vmul.f32 0.2, %v5689_v50  ;;  %v5692_v25 = vadd.f32 %v14505_v11, %v15798_v44  ;;  %v11415_v61 = vld [vmem:[%s21795_s5 + $0x8] sm:$0xff] }
 0x1b8   : > { %v15825_v22 = vpop.f32.mrf.mxu1  ;;  %22558 = vst [vmem:[#allocation200_spill] sm:$0xff] %v15905_v52  ;;  %v15915_v53 = vsel %vm5746_vm11, %v5682_v23, %v5810_v40  ;;  %v15917_v45 = vsel %vm5748_vm12, %v5684_v37, %v5812_v24  ;;  %vm5755_vm14 = vcmp.gt.f32.partialorder %v5691_v2, 0.0  ;;  %v5697_v24 = vadd.f32 %v14516_v15, %v15810_v30  ;;  %v11408_v30 = vld [vmem:[%s21794_s4 + $0x10] sm:$0xff] }
 0x1b9   : > { %v15835_v55 = vpop.f32.mrf.mxu0  ;;  %22559 = vst [vmem:[#allocation201_spill] sm:$0xff] %v15915_v53  ;;  %22560 = vst [vmem:[#allocation202_spill] sm:$0xff] %v15917_v45  ;;  %v15939_v40 = vsel %vm5753_vm13, %v5689_v50, %v5817_v54  ;;  %vm5756_vm4 = vcmp.gt.f32.partialorder %v5692_v25, 0.0  ;;  %v11407_v50 = vld [vmem:[%s21794_s4 + $0x8] sm:$0xff]  ;;  %11450 = vperm.xlu0 %14058, %v11408_v30   ;;  %v5700_v45 = vadd.f32 %v14516_v15, %v15825_v22  ;;  %v418_v53 = vld [vmem:[%s14257_s15 + $0x1f0] sm:$0xff] }
 0x1ba   : > { %v15845_v16 = vpop.f32.mrf.mxu1  ;;  %12431 = vmatmul.mubr.msk.bf16.gmra.mxu1 %vm1240_vm0, %v15496_v20  ;;  %22561 = vst [vmem:[#allocation203_spill] sm:$0xff] %v15939_v40  ;;  %vm5761_vm5 = vcmp.gt.f32.partialorder %v5697_v24, 0.0  ;;  %11445 = vperm.xlu1 %14059, %v11407_v50   ;;  %v5705_v50 = vadd.f32 %v14501_v10, %v15835_v55  ;;  %v455_v55 = vld [vmem:[%s14257_s15 + $0x318] sm:$0xff] }
 0x1bb   : > { %v15851_v9 = vpop.f32.mrf.mxu0  ;;  %12427 = vmatmul.mubr.msk.bf16.gmra.mxu0 %vm1240_vm0, %v15496_v20  ;;  %v454_v20 = vld [vmem:[%s14257_s15 + $0x310] sm:$0xff]  ;;  %3130 = vmatprep.mubr.bf16.mxu1 %v22365_v56  ;;  %v5707_v22 = vadd.f32 %v14501_v10, %v15845_v16  ;;  %vm5764_vm9 = vcmp.gt.f32.partialorder %v5700_v45, 0.0  ;;  %v5828_v16 = vmul.f32 0.2, %v5700_v45 }
 0x1bc   : > { %v15853_v62 = vpop.f32.mrf.mxu1  ;;  %3057 = vmatprep.mubr.bf16.mxu0 %v22365_v56  ;;  %v12310_v4 = vcombine.low %v454_v20, %v490_v31  ;;  %v12311_v14 = vcombine.high %v454_v20, %v490_v31  ;;  %v5819_v20 = vmul.f32 0.2, %v5691_v2  ;;  %vm5769_vm10 = vcmp.gt.f32.partialorder %v5705_v50, 0.0 }
 0x1bd   : > { %v15865_v32 = vpop.f32.mrf.mxu0  ;;  %vm5771_vm11 = vcmp.gt.f32.partialorder %v5707_v22, 0.0  ;;  %v5835_v30 = vmul.f32 0.2, %v5707_v22  ;;  %11501 = vperm.xlu0 %14058, %v11415_v61  }
 0x1be   : > { %v15878_v60 = vpop.f32.mrf.mxu1  ;;  %3163 = vmatprep.subr.bf16.mxu0 %v12311_v14  ;;  %v5699_v14 = vadd.f32 %v14516_v15, %v15819_v7  ;;  %v5820_v7 = vmul.f32 0.2, %v5692_v25  ;;  %v5713_v61 = vadd.f32 %v14511_v13, %v15865_v32 }
 0x1bf   : > { %v15881_v59 = vpop.f32.mrf.mxu0  ;;  %3164 = vmatpush1.bf16.msra.mxu0 %v12310_v4  ;;  %v5698_v4 = vadd.f32 %v14516_v15, %v15821_v57  ;;  %v5825_v57 = vmul.f32 0.2, %v5697_v24 }
 0x1c0   : > { %v15887_v26 = vpop.f32.mrf.mxu1  ;;  %vm5763_vm6 = vcmp.gt.f32.partialorder %v5699_v14, 0.0  ;;  %v15966_v52 = vsel %vm5756_vm4, %v5692_v25, %v5820_v7  ;;  %v491_v7 = vld [vmem:[%s14257_s15 + $0x438] sm:$0xff] }
 0x1c1   : > { %v15895_v47 = vpop.f32.mrf.mxu0  ;;  %vm5762_vm8 = vcmp.gt.f32.partialorder %v5698_v4, 0.0  ;;  %v5826_v36 = vmul.f32 0.2, %v5698_v4  ;;  %22564 = vst [vmem:[#allocation206_spill] sm:$0xff] %v15966_v52  ;;  %v15968_v33 = vsel %vm5761_vm5, %v5697_v24, %v5825_v57  ;;  %v5841_v52 = vmul.f32 0.2, %v5713_v61 }
 0x1c2   : > { %v15899_v3 = vpop.f32.mrf.mxu1  ;;  %12432 = vmatmul.mubr.msk.bf16.gmra.mxu1 %vm1240_vm0, %v15542_v34  ;;  %22565 = vst [vmem:[#allocation207_spill] sm:$0xff] %v15968_v33  ;;  %v419_v33 = vld [vmem:[%s14257_s15 + $0x1f8] sm:$0xff] }
 0x1c3   : > { %v15903_v27 = vpop.f32.mrf.mxu0  ;;  %12428 = vmatmul.mubr.msk.bf16.gmra.mxu0 %vm1240_vm0, %v15542_v34  ;;  %v5690_v34 = vadd.f32 %v14505_v11, %v15790_v58  ;;  %3140 = vmatprep.mubr.bf16.mxu1 %v22365_v56  ;;  %v15949_v58 = vsel %vm5755_vm14, %v5691_v2, %v5819_v20  ;;  %v5827_v20 = vmul.f32 0.2, %v5699_v14  ;;  %v15984_v24 = vsel %vm5762_vm8, %v5698_v4, %v5826_v36 }
 0x1c4   : > { %v15911_v39 = vpop.f32.mrf.mxu1  ;;  %3067 = vmatprep.mubr.bf16.mxu0 %v22365_v56  ;;  %22562 = vst [vmem:[#allocation204_spill] sm:$0xff] %v15949_v58  ;;  %22567 = vst [vmem:[#allocation209_spill] sm:$0xff] %v15984_v24  ;;  %v16009_v36 = vsel %vm5764_vm9, %v5700_v45, %v5828_v16  ;;  %v12312_v58 = vcombine.low %v455_v55, %v491_v7  ;;  %v5708_v45 = vadd.f32 %v14501_v10, %v15853_v62  ;;  %v11416_v62 = vld [vmem:[%s21795_s5 + $0x10] sm:$0xff] }
 0x1c5   : > { %v15923_v31 = vpop.f32.mrf.mxu0  ;;  %vm5754_vm3 = vcmp.gt.f32.partialorder %v5690_v34, 0.0  ;;  %v5818_v44 = vmul.f32 0.2, %v5690_v34  ;;  %v15982_v25 = vsel %vm5763_vm6, %v5699_v14, %v5827_v20  ;;  %v5833_v20 = vmul.f32 0.2, %v5705_v50  ;;  %22568 = vst [vmem:[#allocation210_spill] sm:$0xff] %v16009_v36  ;;  %11506 = vperm.xlu0 %14058, %v11416_v62  }
 0x1c6   : > { %v15930_v37 = vpop.f32.mrf.mxu1  ;;  %22566 = vst [vmem:[#allocation208_spill] sm:$0xff] %v15982_v25  ;;  %v12313_v25 = vcombine.high %v455_v55, %v491_v7  ;;  %v383_v55 = vld [vmem:[%s14257_s15 + $0xd8] sm:$0xff]  ;;  %v5715_v16 = vadd.f32 %v14511_v13, %v15878_v60  ;;  %vm5772_vm13 = vcmp.gt.f32.partialorder %v5708_v45, 0.0  ;;  %vm5777_vm14 = vcmp.gt.f32.partialorder %v5713_v61, 0.0 }
 0x1c7   : > { %v15937_v23 = vpop.f32.mrf.mxu0  ;;  %v15961_v2 = vsel %vm5754_vm3, %v5690_v34, %v5818_v44  ;;  %v11414_v44 = vld [vmem:[%s21795_s5] sm:$0xff]  ;;  %v12241_v5 = vcombine.high %v383_v55, %v419_v33 }
 0x1c8   : > { %v15947_v43 = vpop.f32.mrf.mxu1  ;;  %22563 = vst [vmem:[#allocation205_spill] sm:$0xff] %v15961_v2  ;;  %11496 = vperm.xlu1 %14059, %v11414_v44   ;;  %v16020_v2 = vsel %vm5769_vm10, %v5705_v50, %v5833_v20  ;;  %v16022_v44 = vsel %vm5771_vm11, %v5707_v22, %v5835_v30  ;;  %3236 = vmatprep.subr.bf16.mxu1 %v12313_v25  ;;  %v11409_v30 = vld [vmem:[%s21794_s4 + $0x18] sm:$0xff]  ;;  %v5836_v25 = vmul.f32 0.2, %v5708_v45  ;;  %vm5779_vm3 = vcmp.gt.f32.partialorder %v5715_v16, 0.0 }
 0x1c9   : > { %v15951_v38 = vpop.f32.mrf.mxu0  ;;  %22569 = vst [vmem:[#allocation211_spill] sm:$0xff] %v16020_v2  ;;  %22570 = vst [vmem:[#allocation212_spill] sm:$0xff] %v16022_v44  ;;  %3237 = vmatpush1.bf16.msra.mxu1 %v12312_v58  ;;  %v12238_v22 = vcombine.low %v382_v8, %v418_v53  ;;  %v12239_v20 = vcombine.high %v382_v8, %v418_v53  ;;  %v5843_v51 = vmul.f32 0.2, %v5715_v16  ;;  %v11410_v8 = vld [vmem:[%s21794_s4 + $0x20] sm:$0xff] }
 0x1ca   : > { %v15959_v54 = vpop.f32.mrf.mxu1  ;;  %12433 = vmatmul.mubr.msk.bf16.gmra.mxu1 %vm1240_vm0, %v15590_v6  ;;  %v16048_v24 = vsel %vm5772_vm13, %v5708_v45, %v5836_v25  ;;  %v12240_v58 = vcombine.low %v383_v55, %v419_v33  ;;  %v16055_v53 = vsel %vm5777_vm14, %v5713_v61, %v5841_v52  ;;  %v5716_v45 = vadd.f32 %v14511_v13, %v15887_v26  ;;  %v11417_v33 = vld [vmem:[%s21795_s5 + $0x18] sm:$0xff]  ;;  %v11418_v44 = vld [vmem:[%s21795_s5 + $0x20] sm:$0xff] }
 0x1cb   : > { %v15963_v48 = vpop.f32.mrf.mxu0  ;;  %12429 = vmatmul.mubr.msk.bf16.gmra.mxu0 %vm1240_vm0, %v15590_v6  ;;  %3256 = vmatprep.mubr.bf16.mxu1 %v22365_v56  ;;  %v5706_v6 = vadd.f32 %v14501_v10, %v15851_v9  ;;  %22572 = vst [vmem:[#allocation214_spill] sm:$0xff] %v16048_v24  ;;  %22573 = vst [vmem:[#allocation215_spill] sm:$0xff] %v16055_v53  ;;  %v16071_v55 = vsel %vm5779_vm3, %v5715_v16, %v5843_v51 }
 0x1cc   : > { %v15974_v34 = vpop.f32.mrf.mxu1  ;;  %3183 = vmatprep.mubr.bf16.mxu0 %v22365_v56  ;;  %11455 = vperm.xlu1 %14059, %v11409_v30   ;;  %22574 = vst [vmem:[#allocation216_spill] sm:$0xff] %v16071_v55  ;;  %v5662_v26 = vadd.f32 %v14590_v42, %v15903_v27  ;;  %vm5780_vm5 = vcmp.gt.f32.partialorder %v5716_v45, 0.0  ;;  %v5844_v51 = vmul.f32 0.2, %v5716_v45  ;;  %v5671_v55 = vadd.f32 %v14651_v18, %v15930_v37  ;;  %v11412_v37 = vld [vmem:[%s21794_s4 + $0x30] sm:$0xff] }
 0x1cd   : > { %v15992_v57 = vpop.f32.mrf.mxu0  ;;  %vm5770_vm12 = vcmp.gt.f32.partialorder %v5706_v6, 0.0  ;;  %v5834_v9 = vmul.f32 0.2, %v5706_v6  ;;  %3165 = vmatprep.subr.bf16.mxu0 %v12239_v20  ;;  %3238 = vmatprep.subr.bf16.mxu1 %v12241_v5  ;;  %v5670_v61 = vadd.f32 %v14651_v18, %v15937_v23 }
 0x1ce   : > { %v16004_v4 = vpop.f32.mrf.mxu1  ;;  %3166 = vmatpush1.bf16.msra.mxu0 %v12238_v22  ;;  %3239 = vmatpush1.bf16.msra.mxu1 %v12240_v58  ;;  %vm5726_vm9 = vcmp.gt.f32.partialorder %v5662_v26, 0.0  ;;  %v5790_v20 = vmul.f32 0.2, %v5662_v26  ;;  %v16103_v52 = vsel %vm5780_vm5, %v5716_v45, %v5844_v51  ;;  %v5669_v51 = vadd.f32 %v14651_v18, %v15923_v31 }
 0x1cf   : > { %v16007_v14 = vpop.f32.mrf.mxu0  ;;  %v16044_v60 = vsel %vm5770_vm12, %v5706_v6, %v5834_v9  ;;  %v5714_v6 = vadd.f32 %v14511_v13, %v15881_v59  ;;  %v5661_v9 = vadd.f32 %v14590_v42, %v15895_v47  ;;  %v5663_v59 = vadd.f32 %v14590_v42, %v15899_v3  ;;  %v16086_v3 = vld [vmem:[%s21791_s1] sm:$0xff]   ;;  %11511 = vperm.xlu0 %14058, %v11417_v33  }
 0x1d0   : > { %v16015_v40 = vpop.f32.mrf.mxu1  ;;  %22571 = vst [vmem:[#allocation213_spill] sm:$0xff] %v16044_v60  ;;  %11460 = vperm.xlu1 %14059, %v11410_v8   ;;  %v11411_v8 = vld [vmem:[%s21794_s4 + $0x28] sm:$0xff]  ;;  %22576 = vst [vmem:[#allocation218_spill] sm:$0xff] %v16103_v52  ;;  %v5664_v33 = vadd.f32 %v14590_v42, %v15911_v39  ;;  %vm5733_vm11 = vcmp.gt.f32.partialorder %v5669_v51, 0.0  ;;  %v5672_v31 = vadd.f32 %v14651_v18, %v15947_v43  ;;  %vm5735_vm12 = vcmp.gt.f32.partialorder %v5671_v55, 0.0 }
 0x1d1   : > { %v16027_v7 = vpop.f32.mrf.mxu0  ;;  %vm5778_vm4 = vcmp.gt.f32.partialorder %v5714_v6, 0.0  ;;  %v5842_v62 = vmul.f32 0.2, %v5714_v6  ;;  %vm5725_vm6 = vcmp.gt.f32.partialorder %v5661_v9, 0.0  ;;  %v5789_v5 = vmul.f32 0.2, %v5661_v9 }
 0x1d2   : > { %v16034_v50 = vpop.f32.mrf.mxu1  ;;  %vm5727_vm8 = vcmp.gt.f32.partialorder %v5663_v59, 0.0  ;;  %v5791_v22 = vmul.f32 0.2, %v5663_v59  ;;  %12438 = vmatmul.mubr.msk.bf16.vlgmr.msra.gmra.mxu1 %vm1240_vm0, %v16086_v3  ;;  %vm5728_vm10 = vcmp.gt.f32.partialorder %v5664_v33, 0.0  ;;  %v5799_v23 = vmul.f32 0.2, %v5671_v55 }
 0x1d3   : > { %v16042_v32 = vpop.f32.mrf.mxu0  ;;  %12434 = vmatmul.mubr.msk.bf16.vlgmr.msra.gmra.mxu0 %vm1240_vm0, %v16086_v3  ;;  %v16092_v16 = vsel %vm5778_vm4, %v5714_v6, %v5842_v62  ;;  %v16106_v6 = vsel %vm5725_vm6, %v5661_v9, %v5789_v5  ;;  %v16122_v9 = vsel %vm5726_vm9, %v5662_v26, %v5790_v20  ;;  %3266 = vmatprep.mubr.bf16.mxu1 %v22365_v56  ;;  %v5792_v5 = vmul.f32 0.2, %v5664_v33 }
 0x1d4   : > { %v16046_v36 = vpop.f32.mrf.mxu1  ;;  %22575 = vst [vmem:[#allocation217_spill] sm:$0xff] %v16092_v16  ;;  %3193 = vmatprep.mubr.bf16.mxu0 %v22365_v56  ;;  %22577 = vst [vmem:[#allocation219_spill] sm:$0xff] %v16106_v6  ;;  %v16120_v45 = vsel %vm5727_vm8, %v5663_v59, %v5791_v22  ;;  %11465 = vperm.xlu1 %14059, %v11411_v8   ;;  %v5797_v59 = vmul.f32 0.2, %v5669_v51  ;;  %v5677_v26 = vadd.f32 %v14523_v17, %v15951_v38 }
 0x1d5   : > { %v16050_v1 = vpop.f32.mrf.mxu0  ;;  %22578 = vst [vmem:[#allocation220_spill] sm:$0xff] %v16120_v45  ;;  %22579 = vst [vmem:[#allocation221_spill] sm:$0xff] %v16122_v9  ;;  %11516 = vperm.xlu0 %14058, %v11418_v44   ;;  %v16144_v20 = vsel %vm5728_vm10, %v5664_v33, %v5792_v5  ;;  %vm5734_vm13 = vcmp.gt.f32.partialorder %v5670_v61, 0.0  ;;  %v5798_v52 = vmul.f32 0.2, %v5670_v61  ;;  %vm5736_vm14 = vcmp.gt.f32.partialorder %v5672_v31, 0.0 }
 0x1d6   : > { %v16063_v30 = vpop.f32.mrf.mxu1  ;;  %22580 = vst [vmem:[#allocation222_spill] sm:$0xff] %v16144_v20  ;;  %v16148_v8 = vsel %vm5733_vm11, %v5669_v51, %v5797_v59  ;;  %v5800_v43 = vmul.f32 0.2, %v5672_v31  ;;  %v16154_v53 = vsel %vm5735_vm12, %v5671_v55, %v5799_v23  ;;  %vm5741_vm3 = vcmp.gt.f32.partialorder %v5677_v26, 0.0  ;;  %v16159_v5 = vld [vmem:[%s21791_s1 + $0x8] sm:$0xff]   ;;  %v492_v20 = vld [vmem:[%s14257_s15 + $0x440] sm:$0xff] }
 0x1d7   : > { %v16077_v47 = vpop.f32.mrf.mxu0  ;;  %22581 = vst [vmem:[#allocation223_spill] sm:$0xff] %v16148_v8  ;;  %22582 = vst [vmem:[#allocation224_spill] sm:$0xff] %v16154_v53  ;;  %v5805_v33 = vmul.f32 0.2, %v5677_v26  ;;  %v11419_v59 = vld [vmem:[%s21795_s5 + $0x28] sm:$0xff]  ;;  %v16171_v23 = vsel %vm5734_vm13, %v5670_v61, %v5798_v52  ;;  %v5679_v6 = vadd.f32 %v14523_v17, %v15959_v54  ;;  %v5678_v54 = vadd.f32 %v14523_v17, %v15963_v48 }
 0x1d8   : > { %v16081_v25 = vpop.f32.mrf.mxu1  ;;  %11470 = vperm.xlu1 %14059, %v11412_v37   ;;  %22583 = vst [vmem:[#allocation225_spill] sm:$0xff] %v16171_v23  ;;  %v16173_v38 = vsel %vm5736_vm14, %v5672_v31, %v5800_v43  ;;  %v11413_v37 = vld [vmem:[%s21794_s4 + $0x38] sm:$0xff]  ;;  %v5680_v55 = vadd.f32 %v14523_v17, %v15974_v34  ;;  %v5685_v52 = vadd.f32 %v14555_v28, %v15992_v57  ;;  %v11420_v34 = vld [vmem:[%s21795_s5 + $0x30] sm:$0xff] }
 0x1d9   : > { %v16090_v27 = vpop.f32.mrf.mxu0  ;;  %22584 = vst [vmem:[#allocation226_spill] sm:$0xff] %v16173_v38  ;;  %v16188_v61 = vsel %vm5741_vm3, %v5677_v26, %v5805_v33  ;;  %vm5743_vm4 = vcmp.gt.f32.partialorder %v5679_v6, 0.0  ;;  %v5807_v43 = vmul.f32 0.2, %v5679_v6  ;;  %11521 = vperm.xlu0 %14058, %v11419_v59   ;;  %vm5742_vm5 = vcmp.gt.f32.partialorder %v5678_v54, 0.0  ;;  %v456_v59 = vld [vmem:[%s14257_s15 + $0x320] sm:$0xff] }
 0x1da   : > { %v16095_v58 = vpop.f32.mrf.mxu1  ;;  %22585 = vst [vmem:[#allocation227_spill] sm:$0xff] %v16188_v61  ;;  %12439 = vmatmul.mubr.msk.bf16.gmra.mxu1 %vm1240_vm0, %v16159_v5  ;;  %v5806_v33 = vmul.f32 0.2, %v5678_v54  ;;  %v5687_v48 = vadd.f32 %v14555_v28, %v16004_v4  ;;  %v5686_v60 = vadd.f32 %v14555_v28, %v16007_v14  ;;  %vm5744_vm6 = vcmp.gt.f32.partialorder %v5680_v55, 0.0 }
 0x1db   : > { %v16112_v62 = vpop.f32.mrf.mxu0  ;;  %12435 = vmatmul.mubr.msk.bf16.gmra.mxu0 %vm1240_vm0, %v16159_v5  ;;  %3276 = vmatprep.mubr.bf16.mxu1 %v22365_v56  ;;  %v16212_v57 = vsel %vm5743_vm4, %v5679_v6, %v5807_v43  ;;  %v5808_v53 = vmul.f32 0.2, %v5680_v55  ;;  %vm5749_vm8 = vcmp.gt.f32.partialorder %v5685_v52, 0.0  ;;  %v5813_v9 = vmul.f32 0.2, %v5685_v52 }
 0x1dc   : > { %v16127_v39 = vpop.f32.mrf.mxu1  ;;  %3203 = vmatprep.mubr.bf16.mxu0 %v22365_v56  ;;  %11475 = vperm.xlu1 %14059, %v11413_v37   ;;  %22587 = vst [vmem:[#allocation229_spill] sm:$0xff] %v16212_v57  ;;  %v16218_v4 = vsel %vm5742_vm5, %v5678_v54, %v5806_v33  ;;  %vm5751_vm9 = vcmp.gt.f32.partialorder %v5687_v48, 0.0  ;;  %v5815_v14 = vmul.f32 0.2, %v5687_v48  ;;  %v11421_v37 = vld [vmem:[%s21795_s5 + $0x38] sm:$0xff]  ;;  %vm5750_vm10 = vcmp.gt.f32.partialorder %v5686_v60, 0.0 }
 0x1dd   : > { %v16133_v24 = vpop.f32.mrf.mxu0  ;;  %22588 = vst [vmem:[#allocation230_spill] sm:$0xff] %v16218_v4  ;;  %v16225_v6 = vsel %vm5744_vm6, %v5680_v55, %v5808_v53  ;;  %v5814_v43 = vmul.f32 0.2, %v5686_v60  ;;  %11526 = vperm.xlu0 %14058, %v11420_v34   ;;  %v16232_v54 = vsel %vm5749_vm8, %v5685_v52, %v5813_v9  ;;  %v12315_v21 = vcombine.high %v456_v59, %v492_v20  ;;  %v16239_v53 = vld [vmem:[%s21791_s1 + $0x10] sm:$0xff]   ;;  %v493_v57 = vld [vmem:[%s14257_s15 + $0x448] sm:$0xff] }
 0x1de   : > { %v16139_v22 = vpop.f32.mrf.mxu1  ;;  %22590 = vst [vmem:[#allocation232_spill] sm:$0xff] %v16225_v6  ;;  %22592 = vst [vmem:[#allocation234_spill] sm:$0xff] %v16232_v54  ;;  %v16234_v33 = vsel %vm5751_vm9, %v5687_v48, %v5815_v14  ;;  %v5695_v14 = vadd.f32 %v14505_v11, %v16034_v50 }
 0x1df   : > { %v16146_v44 = vpop.f32.mrf.mxu0  ;;  %22593 = vst [vmem:[#allocation235_spill] sm:$0xff] %v16234_v33  ;;  %v16249_v52 = vsel %vm5750_vm10, %v5686_v60, %v5814_v43  ;;  %3309 = vmatprep.subr.bf16.mxu0 %v12315_v21  ;;  %v5696_v43 = vadd.f32 %v14505_v11, %v16046_v36  ;;  %v5701_v21 = vadd.f32 %v14516_v15, %v16050_v1 }
 0x1e0   : > { %v16150_v2 = vpop.f32.mrf.mxu1  ;;  %22594 = vst [vmem:[#allocation236_spill] sm:$0xff] %v16249_v52  ;;  %11531 = vperm.xlu1 %14059, %v11421_v37   ;;  %v5694_v37 = vadd.f32 %v14505_v11, %v16042_v32  ;;  %vm5759_vm13 = vcmp.gt.f32.partialorder %v5695_v14, 0.0  ;;  %v5823_v36 = vmul.f32 0.2, %v5695_v14 }
 0x1e1   : > { %v16163_v51 = vpop.f32.mrf.mxu0  ;;  %vm5760_vm3 = vcmp.gt.f32.partialorder %v5696_v43, 0.0  ;;  %vm5765_vm4 = vcmp.gt.f32.partialorder %v5701_v21, 0.0  ;;  %v5829_v4 = vmul.f32 0.2, %v5701_v21 }
 0x1e2   : > { %v16178_v8 = vpop.f32.mrf.mxu1  ;;  %12440 = vmatmul.mubr.msk.bf16.gmra.mxu1 %vm1240_vm0, %v16239_v53  ;;  %vm5758_vm14 = vcmp.gt.f32.partialorder %v5694_v37, 0.0  ;;  %v16290_v61 = vsel %vm5759_vm13, %v5695_v14, %v5823_v36  ;;  %v16305_v14 = vld [vmem:[%s21791_s1 + $0x18] sm:$0xff]   ;;  %v5709_v36 = vadd.f32 %v14501_v10, %v16090_v27 }
 0x1e3   : > { %v16194_v31 = vpop.f32.mrf.mxu0  ;;  %12436 = vmatmul.mubr.msk.bf16.gmra.mxu0 %vm1240_vm0, %v16239_v53  ;;  %3286 = vmatprep.mubr.bf16.mxu1 %v22365_v56  ;;  %22599 = vst [vmem:[#allocation241_spill] sm:$0xff] %v16290_v61 }
 0x1e4   : > { %v16201_v26 = vpop.f32.mrf.mxu1  ;;  %3213 = vmatprep.mubr.bf16.mxu0 %v22365_v56  ;;  %vm5773_vm9 = vcmp.gt.f32.partialorder %v5709_v36, 0.0 }
 0x1e5   : > { %22586 = vst [vmem:[#allocation228_spill] sm:$0xff] %v16201_v26  ;;  %v16207_v45 = vpop.f32.mrf.mxu0  ;;  %v5688_v26 = vadd.f32 %v14555_v28, %v16015_v40 }
 0x1e6   : > { %v16216_v38 = vpop.f32.mrf.mxu1 }
 0x1e7   : > { %v16220_v23 = vpop.f32.mrf.mxu0  ;;  %vm5752_vm11 = vcmp.gt.f32.partialorder %v5688_v26, 0.0  ;;  %v5816_v34 = vmul.f32 0.2, %v5688_v26 }
 0x1e8   : > { %22589 = vst [vmem:[#allocation231_spill] sm:$0xff] %v16220_v23  ;;  %v16229_v16 = vpop.f32.mrf.mxu1  ;;  %v12314_v23 = vcombine.low %v456_v59, %v492_v20  ;;  %v5693_v59 = vadd.f32 %v14505_v11, %v16027_v7  ;;  %v5703_v7 = vadd.f32 %v14516_v15, %v16063_v30  ;;  %v5822_v30 = vmul.f32 0.2, %v5694_v37 }
 0x1e9   : > { %22591 = vst [vmem:[#allocation233_spill] sm:$0xff] %v16229_v16  ;;  %v16243_v55 = vpop.f32.mrf.mxu0  ;;  %v16275_v50 = vsel %vm5752_vm11, %v5688_v26, %v5816_v34  ;;  %v5824_v26 = vmul.f32 0.2, %v5696_v43  ;;  %v457_v34 = vld [vmem:[%s14257_s15 + $0x328] sm:$0xff]  ;;  %v5712_v16 = vadd.f32 %v14501_v10, %v16127_v39 }
 0x1ea   : > { %v16252_v20 = vpop.f32.mrf.mxu1  ;;  %3310 = vmatpush1.bf16.msra.mxu0 %v12314_v23  ;;  %22596 = vst [vmem:[#allocation238_spill] sm:$0xff] %v16275_v50  ;;  %vm5757_vm12 = vcmp.gt.f32.partialorder %v5693_v59, 0.0  ;;  %v5821_v23 = vmul.f32 0.2, %v5693_v59  ;;  %v16292_v54 = vsel %vm5758_vm14, %v5694_v37, %v5822_v30  ;;  %vm5767_vm5 = vcmp.gt.f32.partialorder %v5703_v7, 0.0  ;;  %12441 = vmatmul.mubr.msk.bf16.gmra.mxu1 %vm1240_vm0, %v16305_v14 }
 0x1eb   : > { %v16262_v60 = vpop.f32.mrf.mxu0  ;;  %22600 = vst [vmem:[#allocation242_spill] sm:$0xff] %v16292_v54  ;;  %v16296_v6 = vsel %vm5760_vm3, %v5696_v43, %v5824_v26  ;;  %v5831_v50 = vmul.f32 0.2, %v5703_v7  ;;  %12437 = vmatmul.mubr.msk.bf16.gmra.mxu0 %vm1240_vm0, %v16305_v14  ;;  %v16312_v43 = vsel %vm5765_vm4, %v5701_v21, %v5829_v4  ;;  %3402 = vmatprep.mubr.bf16.mxu1 %v22365_v56  ;;  %vm5776_vm14 = vcmp.gt.f32.partialorder %v5712_v16, 0.0 }
 0x1ec   : > { %v16272_v9 = vpop.f32.mrf.mxu1  ;;  %v16284_v48 = vsel %vm5757_vm12, %v5693_v59, %v5821_v23  ;;  %22602 = vst [vmem:[#allocation244_spill] sm:$0xff] %v16296_v6  ;;  %v5702_v59 = vadd.f32 %v14516_v15, %v16077_v47  ;;  %v5704_v23 = vadd.f32 %v14516_v15, %v16081_v25  ;;  %22603 = vst [vmem:[#allocation245_spill] sm:$0xff] %v16312_v43  ;;  %3329 = vmatprep.mubr.bf16.mxu0 %v22365_v56 }
 0x1ed   : > { %22595 = vst [vmem:[#allocation237_spill] sm:$0xff] %v16272_v9  ;;  %v16278_v32 = vpop.f32.mrf.mxu0  ;;  %22597 = vst [vmem:[#allocation239_spill] sm:$0xff] %v16284_v48  ;;  %v5711_v47 = vadd.f32 %v14501_v10, %v16095_v58  ;;  %v12316_v25 = vcombine.low %v457_v34, %v493_v57  ;;  %v16324_v52 = vsel %vm5767_vm5, %v5703_v7, %v5831_v50  ;;  %v5837_v50 = vmul.f32 0.2, %v5709_v36  ;;  %v384_v9 = vld [vmem:[%s14257_s15 + $0xe0] sm:$0xff] }
 0x1ee   : > { %v16282_v40 = vpop.f32.mrf.mxu1  ;;  %22604 = vst [vmem:[#allocation246_spill] sm:$0xff] %v16324_v52  ;;  %vm5766_vm6 = vcmp.gt.f32.partialorder %v5702_v59, 0.0  ;;  %v5830_v4 = vmul.f32 0.2, %v5702_v59  ;;  %vm5768_vm8 = vcmp.gt.f32.partialorder %v5704_v23, 0.0  ;;  %v12317_v52 = vcombine.high %v457_v34, %v493_v57  ;;  %v385_v34 = vld [vmem:[%s14257_s15 + $0xe8] sm:$0xff] }
 0x1ef   : > { %v16288_v33 = vpop.f32.mrf.mxu0  ;;  %v5832_v21 = vmul.f32 0.2, %v5704_v23  ;;  %vm5775_vm10 = vcmp.gt.f32.partialorder %v5711_v47, 0.0  ;;  %v5839_v48 = vmul.f32 0.2, %v5711_v47  ;;  %v16356_v58 = vsel %vm5773_vm9, %v5709_v36, %v5837_v50 }
 0x1f0   : > { %22598 = vst [vmem:[#allocation240_spill] sm:$0xff] %v16288_v33  ;;  %v16294_v1 = vpop.f32.mrf.mxu1  ;;  %v16335_v7 = vsel %vm5766_vm6, %v5702_v59, %v5830_v4  ;;  %22609 = vst [vmem:[#allocation251_spill] sm:$0xff] %v16356_v58  ;;  %3382 = vmatprep.subr.bf16.mxu1 %v12317_v52  ;;  %v5717_v57 = vadd.f32 %v14511_v13, %v16133_v24  ;;  %v6227_v58 = vadd.f32 %v14555_v28, %v16282_v40 }
 0x1f1   : > { %22601 = vst [vmem:[#allocation243_spill] sm:$0xff] %v16294_v1  ;;  %v16309_v37 = vpop.f32.mrf.mxu0  ;;  %22606 = vst [vmem:[#allocation248_spill] sm:$0xff] %v16335_v7  ;;  %v16341_v61 = vsel %vm5768_vm8, %v5704_v23, %v5832_v21  ;;  %v5710_v1 = vadd.f32 %v14501_v10, %v16112_v62  ;;  %v5719_v62 = vadd.f32 %v14511_v13, %v16139_v22  ;;  %v421_v23 = vld [vmem:[%s14257_s15 + $0x208] sm:$0xff]  ;;  %3383 = vmatpush1.bf16.msra.mxu1 %v12316_v25 }
 0x1f2   : > { %v16319_v30 = vpop.f32.mrf.mxu1  ;;  %22607 = vst [vmem:[#allocation249_spill] sm:$0xff] %v16341_v61  ;;  %v16367_v4 = vsel %vm5775_vm10, %v5711_v47, %v5839_v48  ;;  %vm5781_vm12 = vcmp.gt.f32.partialorder %v5717_v57, 0.0  ;;  %v5845_v50 = vmul.f32 0.2, %v5717_v57  ;;  %v5840_v22 = vmul.f32 0.2, %v5712_v16 }
 0x1f3   : > { %v16328_v27 = vpop.f32.mrf.mxu0  ;;  %22611 = vst [vmem:[#allocation253_spill] sm:$0xff] %v16367_v4  ;;  %vm5774_vm11 = vcmp.gt.f32.partialorder %v5710_v1, 0.0  ;;  %v5838_v52 = vmul.f32 0.2, %v5710_v1  ;;  %vm5783_vm13 = vcmp.gt.f32.partialorder %v5719_v62, 0.0  ;;  %v12244_v54 = vcombine.low %v385_v34, %v421_v23 }
 0x1f4   : > { %v16333_v26 = vpop.f32.mrf.mxu1  ;;  %v5847_v61 = vmul.f32 0.2, %v5719_v62  ;;  %v12245_v7 = vcombine.high %v385_v34, %v421_v23  ;;  %v16375_v48 = vsel %vm5781_vm12, %v5717_v57, %v5845_v50  ;;  %v5720_v47 = vadd.f32 %v14511_v13, %v16150_v2 }
 0x1f5   : > { %22605 = vst [vmem:[#allocation247_spill] sm:$0xff] %v16333_v26  ;;  %v16337_v43 = vpop.f32.mrf.mxu0  ;;  %v420_v26 = vld [vmem:[%s14257_s15 + $0x200] sm:$0xff]  ;;  %22612 = vst [vmem:[#allocation254_spill] sm:$0xff] %v16375_v48  ;;  %v6201_v34 = vadd.f32 %v14590_v42, %v16163_v51  ;;  %v6203_v57 = vadd.f32 %v14590_v42, %v16178_v8  ;;  %v16405_v8 = vsel %vm5774_vm11, %v5710_v1, %v5838_v52 }
 0x1f6   : > { %v16347_v59 = vpop.f32.mrf.mxu1  ;;  %v12242_v39 = vcombine.low %v384_v9, %v420_v26  ;;  %v12243_v6 = vcombine.high %v384_v9, %v420_v26  ;;  %v5718_v9 = vadd.f32 %v14511_v13, %v16146_v44  ;;  %3384 = vmatprep.subr.bf16.mxu1 %v12245_v7  ;;  %vm5784_vm4 = vcmp.gt.f32.partialorder %v5720_v47, 0.0  ;;  %22616 = vst [vmem:[#allocation258_spill] sm:$0xff] %v16405_v8 }
 0x1f7   : > { %v16353_v33 = vpop.f32.mrf.mxu0  ;;  %3385 = vmatpush1.bf16.msra.mxu1 %v12244_v54  ;;  %v5848_v7 = vmul.f32 0.2, %v5720_v47  ;;  %vm6267_vm5 = vcmp.gt.f32.partialorder %v6203_v57, 0.0  ;;  %v6331_v54 = vmul.f32 0.2, %v6203_v57  ;;  %vm6265_vm6 = vcmp.gt.f32.partialorder %v6201_v34, 0.0 }
 0x1f8   : > { %22608 = vst [vmem:[#allocation250_spill] sm:$0xff] %v16353_v33  ;;  %v16364_v21 = vpop.f32.mrf.mxu1  ;;  %3311 = vmatprep.subr.bf16.mxu0 %v12243_v6  ;;  %v16385_v6 = vsel %vm5783_vm13, %v5719_v62, %v5847_v61  ;;  %vm5782_vm3 = vcmp.gt.f32.partialorder %v5718_v9, 0.0  ;;  %v5846_v2 = vmul.f32 0.2, %v5718_v9  ;;  %v16398_v61 = vsel %vm5776_vm14, %v5712_v16, %v5840_v22 }
 0x1f9   : > { %22610 = vst [vmem:[#allocation252_spill] sm:$0xff] %v16364_v21  ;;  %v16369_v36 = vpop.f32.mrf.mxu0  ;;  %3312 = vmatpush1.bf16.msra.mxu0 %v12242_v39  ;;  %22614 = vst [vmem:[#allocation256_spill] sm:$0xff] %v16385_v6  ;;  %v16414_v22 = vsel %vm5784_vm4, %v5720_v47, %v5848_v7  ;;  %v6329_v44 = vmul.f32 0.2, %v6201_v34  ;;  %v6209_v52 = vadd.f32 %v14651_v18, %v16207_v45  ;;  %vm6291_vm13 = vcmp.gt.f32.partialorder %v6227_v58, 0.0 }
 0x1fa   : > { %v16371_v24 = vpop.f32.mrf.mxu1  ;;  %22615 = vst [vmem:[#allocation257_spill] sm:$0xff] %v16398_v61  ;;  %v16407_v62 = vsel %vm5782_vm3, %v5718_v9, %v5846_v2  ;;  %22619 = vst [vmem:[#allocation261_spill] sm:$0xff] %v16414_v22  ;;  %12446 = vmatmul.mubr.msk.bf16.vlgmr.msra.gmra.mxu1 %vm1240_vm0, %v16086_v3  ;;  %v6211_v9 = vadd.f32 %v14651_v18, %v16216_v38  ;;  %v16429_v2 = vsel %vm6267_vm5, %v6203_v57, %v6331_v54 }
 0x1fb   : > { %v16373_v21 = vpop.f32.mrf.mxu0  ;;  %22617 = vst [vmem:[#allocation259_spill] sm:$0xff] %v16407_v62  ;;  %3412 = vmatprep.mubr.bf16.mxu1 %v22365_v56  ;;  %22620 = vst [vmem:[#allocation262_spill] sm:$0xff] %v16429_v2  ;;  %vm6273_vm8 = vcmp.gt.f32.partialorder %v6209_v52, 0.0  ;;  %v6337_v16 = vmul.f32 0.2, %v6209_v52  ;;  %v16435_v45 = vsel %vm6265_vm6, %v6201_v34, %v6329_v44  ;;  %v6217_v57 = vadd.f32 %v14523_v17, %v16243_v55  ;;  %v458_v55 = vld [vmem:[%s14257_s15 + $0x330] sm:$0xff] }
 0x1fc   : > { %v16381_v25 = vpop.f32.mrf.mxu1  ;;  %12442 = vmatmul.mubr.msk.bf16.vlgmr.msra.gmra.mxu0 %vm1240_vm0, %v16086_v3  ;;  %vm6275_vm9 = vcmp.gt.f32.partialorder %v6211_v9, 0.0  ;;  %v6339_v4 = vmul.f32 0.2, %v6211_v9  ;;  %22623 = vst [vmem:[#allocation265_spill] sm:$0xff] %v16435_v45  ;;  %v6219_v54 = vadd.f32 %v14523_v17, %v16252_v20  ;;  %v6225_v34 = vadd.f32 %v14555_v28, %v16278_v32 }
 0x1fd   : > { %22613 = vst [vmem:[#allocation255_spill] sm:$0xff] %v16381_v25  ;;  %v16391_v23 = vpop.f32.mrf.mxu0  ;;  %3339 = vmatprep.mubr.bf16.mxu0 %v22365_v56  ;;  %v16439_v38 = vsel %vm6273_vm8, %v6209_v52, %v6337_v16  ;;  %v494_v16 = vld [vmem:[%s14257_s15 + $0x450] sm:$0xff]  ;;  %v6345_v52 = vmul.f32 0.2, %v6217_v57  ;;  %vm6281_vm11 = vcmp.gt.f32.partialorder %v6217_v57, 0.0 }
 0x1fe   : > { %v16395_v39 = vpop.f32.mrf.mxu1  ;;  %22624 = vst [vmem:[#allocation266_spill] sm:$0xff] %v16439_v38  ;;  %v16441_v61 = vsel %vm6275_vm9, %v6211_v9, %v6339_v4  ;;  %vm6283_vm10 = vcmp.gt.f32.partialorder %v6219_v54, 0.0  ;;  %v6347_v4 = vmul.f32 0.2, %v6219_v54  ;;  %v12318_v62 = vcombine.low %v458_v55, %v494_v16  ;;  %v463_v38 = vld [vmem:[%s14257_s15 + $0x358] sm:$0xff] }
 0x1ff   : > { %v16402_v51 = vpop.f32.mrf.mxu0  ;;  %22625 = vst [vmem:[#allocation267_spill] sm:$0xff] %v16441_v61  ;;  %v12319_v2 = vcombine.high %v458_v55, %v494_v16  ;;  %vm6289_vm12 = vcmp.gt.f32.partialorder %v6225_v34, 0.0  ;;  %v16479_v32 = vsel %vm6281_vm11, %v6217_v57, %v6345_v52 }
 0x200   : > { %v16410_v50 = vpop.f32.mrf.mxu1  ;;  %v16473_v8 = vsel %vm6283_vm10, %v6219_v54, %v6347_v4  ;;  %22631 = vst [vmem:[#allocation273_spill] sm:$0xff] %v16479_v32  ;;  %v6233_v54 = vadd.f32 %v14505_v11, %v16309_v37  ;;  %v6235_v4 = vadd.f32 %v14505_v11, %v16319_v30  ;;  %v499_v32 = vld [vmem:[%s14257_s15 + $0x478] sm:$0xff] }
 0x201   : > { %22618 = vst [vmem:[#allocation260_spill] sm:$0xff] %v16410_v50  ;;  %v16418_v26 = vpop.f32.mrf.mxu0  ;;  %22628 = vst [vmem:[#allocation270_spill] sm:$0xff] %v16473_v8  ;;  %3455 = vmatprep.subr.bf16.mxu0 %v12319_v2  ;;  %v495_v8 = vld [vmem:[%s14257_s15 + $0x458] sm:$0xff] }
 0x202   : > { %v16427_v47 = vpop.f32.mrf.mxu1  ;;  %12447 = vmatmul.mubr.msk.bf16.gmra.mxu1 %vm1240_vm0, %v16159_v5  ;;  %3456 = vmatpush1.bf16.msra.mxu0 %v12318_v62  ;;  %vm6299_vm14 = vcmp.gt.f32.partialorder %v6235_v4, 0.0  ;;  %v6361_v62 = vmul.f32 0.2, %v6233_v54  ;;  %vm6297_vm3 = vcmp.gt.f32.partialorder %v6233_v54, 0.0 }
 0x203   : > { %v16431_v7 = vpop.f32.mrf.mxu0  ;;  %3422 = vmatprep.mubr.bf16.mxu1 %v22365_v56 }
 0x204   : > { %22621 = vst [vmem:[#allocation263_spill] sm:$0xff] %v16431_v7  ;;  %v16433_v1 = vpop.f32.mrf.mxu1  ;;  %12443 = vmatmul.mubr.msk.bf16.gmra.mxu0 %vm1240_vm0, %v16159_v5 }
 0x205   : > { %22622 = vst [vmem:[#allocation264_spill] sm:$0xff] %v16433_v1  ;;  %v16437_v6 = vpop.f32.mrf.mxu0  ;;  %3349 = vmatprep.mubr.bf16.mxu0 %v22365_v56  ;;  %v6355_v1 = vmul.f32 0.2, %v6227_v58 }
 0x206   : > { %v16447_v22 = vpop.f32.mrf.mxu1 }
 0x207   : > { %v16455_v44 = vpop.f32.mrf.mxu0  ;;  %v16485_v50 = vsel %vm6291_vm13, %v6227_v58, %v6355_v1  ;;  %v6363_v58 = vmul.f32 0.2, %v6235_v4  ;;  %v6241_v1 = vadd.f32 %v14516_v15, %v16337_v43  ;;  %v6249_v43 = vadd.f32 %v14501_v10, %v16369_v36  ;;  %v386_v36 = vld [vmem:[%s14257_s15 + $0xf0] sm:$0xff] }
 0x208   : > { %22626 = vst [vmem:[#allocation268_spill] sm:$0xff] %v16455_v44  ;;  %v16460_v20 = vpop.f32.mrf.mxu1  ;;  %22633 = vst [vmem:[#allocation275_spill] sm:$0xff] %v16485_v50 }
 0x209   : > { %22627 = vst [vmem:[#allocation269_spill] sm:$0xff] %v16460_v20  ;;  %v16464_v9 = vpop.f32.mrf.mxu0  ;;  %v6353_v20 = vmul.f32 0.2, %v6225_v34  ;;  %v16511_v16 = vsel %vm6299_vm14, %v6235_v4, %v6363_v58  ;;  %vm6305_vm4 = vcmp.gt.f32.partialorder %v6241_v1, 0.0  ;;  %v6369_v52 = vmul.f32 0.2, %v6241_v1 }
 0x20a   : > { %v16471_v48 = vpop.f32.mrf.mxu1  ;;  %12448 = vmatmul.mubr.msk.bf16.gmra.mxu1 %vm1240_vm0, %v16239_v53  ;;  %22636 = vst [vmem:[#allocation278_spill] sm:$0xff] %v16511_v16  ;;  %v16523_v4 = vsel %vm6297_vm3, %v6233_v54, %v6361_v62  ;;  %vm6313_vm8 = vcmp.gt.f32.partialorder %v6249_v43, 0.0 }
 0x20b   : > { %v16475_v61 = vpop.f32.mrf.mxu0  ;;  %v16483_v7 = vsel %vm6289_vm12, %v6225_v34, %v6353_v20  ;;  %v6243_v34 = vadd.f32 %v14516_v15, %v16347_v59  ;;  %3432 = vmatprep.mubr.bf16.mxu1 %v22365_v56  ;;  %v6251_v20 = vadd.f32 %v14501_v10, %v16371_v24  ;;  %v459_v59 = vld [vmem:[%s14257_s15 + $0x338] sm:$0xff]  ;;  %22637 = vst [vmem:[#allocation279_spill] sm:$0xff] %v16523_v4 }
 0x20c   : > { %22629 = vst [vmem:[#allocation271_spill] sm:$0xff] %v16475_v61  ;;  %v16477_v44 = vpop.f32.mrf.mxu1  ;;  %22632 = vst [vmem:[#allocation274_spill] sm:$0xff] %v16483_v7  ;;  %12444 = vmatmul.mubr.msk.bf16.gmra.mxu0 %vm1240_vm0, %v16239_v53  ;;  %v16525_v58 = vsel %vm6305_vm4, %v6241_v1, %v6369_v52  ;;  %v422_v61 = vld [vmem:[%s14257_s15 + $0x210] sm:$0xff]  ;;  %v12320_v54 = vcombine.low %v459_v59, %v495_v8  ;;  %v12321_v62 = vcombine.high %v459_v59, %v495_v8 }
 0x20d   : > { %22630 = vst [vmem:[#allocation272_spill] sm:$0xff] %v16477_v44  ;;  %v16481_v40 = vpop.f32.mrf.mxu0  ;;  %3359 = vmatprep.mubr.bf16.mxu0 %v22365_v56  ;;  %vm6307_vm5 = vcmp.gt.f32.partialorder %v6243_v34, 0.0  ;;  %v6371_v2 = vmul.f32 0.2, %v6243_v34  ;;  %22638 = vst [vmem:[#allocation280_spill] sm:$0xff] %v16525_v58  ;;  %vm6315_vm6 = vcmp.gt.f32.partialorder %v6251_v20, 0.0  ;;  %v6259_v52 = vadd.f32 %v14511_v13, %v16395_v39 }
 0x20e   : > { %v16491_v55 = vpop.f32.mrf.mxu1  ;;  %v6379_v44 = vmul.f32 0.2, %v6251_v20  ;;  %v6377_v1 = vmul.f32 0.2, %v6249_v43  ;;  %3528 = vmatprep.subr.bf16.mxu1 %v12321_v62  ;;  %v12246_v8 = vcombine.low %v386_v36, %v422_v61  ;;  %v12247_v59 = vcombine.high %v386_v36, %v422_v61 }
 0x20f   : > { %v16500_v37 = vpop.f32.mrf.mxu0  ;;  %v16527_v24 = vsel %vm6307_vm5, %v6243_v34, %v6371_v2  ;;  %v6257_v34 = vadd.f32 %v14511_v13, %v16391_v23  ;;  %3529 = vmatpush1.bf16.msra.mxu1 %v12320_v54  ;;  %vm6323_vm10 = vcmp.gt.f32.partialorder %v6259_v52, 0.0  ;;  %v6387_v23 = vmul.f32 0.2, %v6259_v52 }
 0x210   : > { %22634 = vst [vmem:[#allocation276_spill] sm:$0xff] %v16500_v37  ;;  %v16504_v30 = vpop.f32.mrf.mxu1  ;;  %22639 = vst [vmem:[#allocation281_spill] sm:$0xff] %v16527_v24  ;;  %v387_v37 = vld [vmem:[%s14257_s15 + $0xf8] sm:$0xff]  ;;  %v16552_v24 = vsel %vm6315_vm6, %v6251_v20, %v6379_v44  ;;  %3457 = vmatprep.subr.bf16.mxu0 %v12247_v59  ;;  %v6205_v61 = vadd.f32 %v14590_v42, %v16418_v26 }
 0x211   : > { %22635 = vst [vmem:[#allocation277_spill] sm:$0xff] %v16504_v30  ;;  %v16515_v57 = vpop.f32.mrf.mxu0  ;;  %v423_v30 = vld [vmem:[%s14257_s15 + $0x218] sm:$0xff]  ;;  %22642 = vst [vmem:[#allocation284_spill] sm:$0xff] %v16552_v24  ;;  %vm6321_vm9 = vcmp.gt.f32.partialorder %v6257_v34, 0.0  ;;  %3458 = vmatpush1.bf16.msra.mxu0 %v12246_v8  ;;  %v16566_v36 = vsel %vm6323_vm10, %v6259_v52, %v6387_v23 }
 0x212   : > { %v16521_v50 = vpop.f32.mrf.mxu1  ;;  %12449 = vmatmul.mubr.msk.bf16.gmra.mxu1 %vm1240_vm0, %v16305_v14  ;;  %v12248_v39 = vcombine.low %v387_v37, %v423_v30  ;;  %v12249_v25 = vcombine.high %v387_v37, %v423_v30  ;;  %22645 = vst [vmem:[#allocation287_spill] sm:$0xff] %v16566_v36  ;;  %v6207_v37 = vadd.f32 %v14590_v42, %v16427_v47  ;;  %vm6269_vm12 = vcmp.gt.f32.partialorder %v6205_v61, 0.0 }
 0x213   : > { %v16538_v2 = vpop.f32.mrf.mxu0  ;;  %3548 = vmatprep.mubr.bf16.mxu1 %v22365_v56  ;;  %v6215_v47 = vadd.f32 %v14651_v18, %v16447_v22  ;;  %v6221_v22 = vadd.f32 %v14523_v17, %v16464_v9 }
 0x214   : > { %12445 = vmatmul.mubr.msk.bf16.gmra.mxu0 %vm1240_vm0, %v16305_v14  ;;  %22640 = vst [vmem:[#allocation282_spill] sm:$0xff] %v16538_v2  ;;  %v16548_v16 = vpop.f32.mrf.mxu1  ;;  %v6385_v2 = vmul.f32 0.2, %v6257_v34  ;;  %3530 = vmatprep.subr.bf16.mxu1 %v12249_v25  ;;  %vm6271_vm11 = vcmp.gt.f32.partialorder %v6207_v37, 0.0  ;;  %v6335_v54 = vmul.f32 0.2, %v6207_v37  ;;  %v6213_v25 = vadd.f32 %v14651_v18, %v16437_v6 }
 0x215   : > { %3475 = vmatprep.mubr.bf16.mxu0 %v22365_v56  ;;  %22641 = vst [vmem:[#allocation283_spill] sm:$0xff] %v16548_v16  ;;  %v16554_v45 = vpop.f32.mrf.mxu0  ;;  %v16556_v16 = vsel %vm6313_vm8, %v6249_v43, %v6377_v1  ;;  %3531 = vmatpush1.bf16.msra.mxu1 %v12248_v39  ;;  %v6333_v43 = vmul.f32 0.2, %v6205_v61  ;;  %vm6279_vm14 = vcmp.gt.f32.partialorder %v6215_v47, 0.0  ;;  %v6343_v52 = vmul.f32 0.2, %v6215_v47 }
 0x216   : > { %22643 = vst [vmem:[#allocation285_spill] sm:$0xff] %v16556_v16  ;;  %v16558_v62 = vsel %vm6321_vm9, %v6257_v34, %v6385_v2  ;;  %v16562_v44 = vpop.f32.mrf.mxu1  ;;  %v16585_v1 = vsel %vm6271_vm11, %v6207_v37, %v6335_v54  ;;  %vm6277_vm13 = vcmp.gt.f32.partialorder %v6213_v25, 0.0  ;;  %v6341_v34 = vmul.f32 0.2, %v6213_v25 }
 0x217   : > { %22644 = vst [vmem:[#allocation286_spill] sm:$0xff] %v16558_v62  ;;  %v16574_v26 = vpop.f32.mrf.mxu0  ;;  %22648 = vst [vmem:[#allocation290_spill] sm:$0xff] %v16585_v1  ;;  %v16590_v59 = vsel %vm6269_vm12, %v6205_v61, %v6333_v43  ;;  %v16594_v6 = vsel %vm6279_vm14, %v6215_v47, %v6343_v52  ;;  %v6223_v39 = vadd.f32 %v14523_v17, %v16471_v48  ;;  %v460_v43 = vld [vmem:[%s14257_s15 + $0x340] sm:$0xff]  ;;  %vm6285_vm4 = vcmp.gt.f32.partialorder %v6221_v22, 0.0  ;;  %v391_v62 = vld [vmem:[%s14257_s15 + $0x118] sm:$0xff] }
 0x218   : > { %22646 = vst [vmem:[#allocation288_spill] sm:$0xff] %v16574_v26  ;;  %v16577_v2 = vpop.f32.mrf.mxu1  ;;  %22649 = vst [vmem:[#allocation291_spill] sm:$0xff] %v16590_v59  ;;  %v16592_v23 = vsel %vm6277_vm13, %v6213_v25, %v6341_v34  ;;  %v496_v25 = vld [vmem:[%s14257_s15 + $0x460] sm:$0xff]  ;;  %v6349_v34 = vmul.f32 0.2, %v6221_v22  ;;  %v6229_v48 = vadd.f32 %v14555_v28, %v16481_v40  ;;  %v6231_v52 = vadd.f32 %v14555_v28, %v16491_v55 }
 0x219   : > { %22647 = vst [vmem:[#allocation289_spill] sm:$0xff] %v16577_v2  ;;  %v16588_v8 = vpop.f32.mrf.mxu0  ;;  %22650 = vst [vmem:[#allocation292_spill] sm:$0xff] %v16592_v23  ;;  %vm6287_vm3 = vcmp.gt.f32.partialorder %v6223_v39, 0.0  ;;  %v6351_v61 = vmul.f32 0.2, %v6223_v39  ;;  %v12322_v37 = vcombine.low %v460_v43, %v496_v25  ;;  %v12323_v30 = vcombine.high %v460_v43, %v496_v25 }
 0x21a   : > { %12454 = vmatmul.mubr.msk.bf16.vlgmr.msra.gmra.mxu1 %vm1240_vm0, %v16086_v3  ;;  %22651 = vst [vmem:[#allocation293_spill] sm:$0xff] %v16594_v6  ;;  %vm6293_vm5 = vcmp.gt.f32.partialorder %v6229_v48, 0.0  ;;  %v6357_v20 = vmul.f32 0.2, %v6229_v48  ;;  %vm6295_vm6 = vcmp.gt.f32.partialorder %v6231_v52, 0.0  ;;  %v16622_v59 = vsel %vm6285_vm4, %v6221_v22, %v6349_v34  ;;  %v461_v22 = vld [vmem:[%s14257_s15 + $0x348] sm:$0xff] }
 0x21b   : > { %3558 = vmatprep.mubr.bf16.mxu1 %v22365_v56  ;;  %v16608_v47 = vpop.f32.mrf.mxu0  ;;  %v16619_v54 = vsel %vm6287_vm3, %v6223_v39, %v6351_v61  ;;  %v6359_v1 = vmul.f32 0.2, %v6231_v52  ;;  %22655 = vst [vmem:[#allocation297_spill] sm:$0xff] %v16622_v59  ;;  %3601 = vmatprep.subr.bf16.mxu0 %v12323_v30  ;;  %v6237_v55 = vadd.f32 %v14505_v11, %v16515_v57 }
 0x21c   : > { %12450 = vmatmul.mubr.msk.bf16.vlgmr.msra.gmra.mxu0 %vm1240_vm0, %v16086_v3  ;;  %v2704_v3 = vpop.f32.mrf.mxu1  ;;  %22652 = vst [vmem:[#allocation294_spill] sm:$0xff] %v16608_v47  ;;  %22654 = vst [vmem:[#allocation296_spill] sm:$0xff] %v16619_v54  ;;  %v16624_v24 = vsel %vm6293_vm5, %v6229_v48, %v6357_v20  ;;  %v6239_v39 = vadd.f32 %v14505_v11, %v16521_v50  ;;  %v388_v54 = vld [vmem:[%s14257_s15 + $0x100] sm:$0xff]  ;;  %v16851_v26 = vadd.f32 %v14523_v17, %v16262_v60 }
 0x21d   : > { %3485 = vmatprep.mubr.bf16.mxu0 %v22365_v56  ;;  %v2635_v6 = vpop.f32.mrf.mxu0  ;;  %22656 = vst [vmem:[#allocation298_spill] sm:$0xff] %v16624_v24  ;;  %v16626_v40 = vsel %vm6295_vm6, %v6231_v52, %v6359_v1  ;;  %3602 = vmatpush1.bf16.msra.mxu0 %v12322_v37  ;;  %v6365_v50 = vmul.f32 0.2, %v6237_v55  ;;  %v6245_v1 = vadd.f32 %v14516_v15, %v16554_v45  ;;  %vm6301_vm9 = vcmp.gt.f32.partialorder %v6237_v55, 0.0  ;;  %v497_v45 = vld [vmem:[%s14257_s15 + $0x468] sm:$0xff] }
 0x21e   : > { %v16611_v9 = vpop.f32.mrf.mxu1  ;;  %22657 = vst [vmem:[#allocation299_spill] sm:$0xff] %v16626_v40  ;;  %vm6303_vm8 = vcmp.gt.f32.partialorder %v6239_v39, 0.0  ;;  %v6367_v30 = vmul.f32 0.2, %v6239_v39  ;;  %v6247_v37 = vadd.f32 %v14516_v15, %v16562_v44  ;;  %v6255_v25 = vadd.f32 %v14501_v10, %v2704_v3  ;;  %v424_v40 = vld [vmem:[%s14257_s15 + $0x220] sm:$0xff]  ;;  %22681 = vst [vmem:[#allocation323_spill] sm:$0xff] %v16851_v26 }
 0x21f   : > { %22653 = vst [vmem:[#allocation295_spill] sm:$0xff] %v16611_v9  ;;  %v16638_v20 = vpop.f32.mrf.mxu0  ;;  %vm6309_vm10 = vcmp.gt.f32.partialorder %v6245_v1, 0.0  ;;  %v6373_v34 = vmul.f32 0.2, %v6245_v1  ;;  %v16657_v44 = vsel %vm6301_vm9, %v6237_v55, %v6365_v50  ;;  %v6253_v3 = vadd.f32 %v14501_v10, %v16588_v8  ;;  %v427_v26 = vld [vmem:[%s14257_s15 + $0x238] sm:$0xff] }
 0x220   : > { %v2708_v23 = vpop.f32.mrf.mxu1  ;;  %22658 = vst [vmem:[#allocation300_spill] sm:$0xff] %v16638_v20  ;;  %v16649_v43 = vsel %vm6303_vm8, %v6239_v39, %v6367_v30  ;;  %vm6311_vm11 = vcmp.gt.f32.partialorder %v6247_v37, 0.0  ;;  %v6375_v48 = vmul.f32 0.2, %v6247_v37  ;;  %22661 = vst [vmem:[#allocation303_spill] sm:$0xff] %v16657_v44  ;;  %vm6319_vm12 = vcmp.gt.f32.partialorder %v6255_v25, 0.0 }
 0x221   : > { %22660 = vst [vmem:[#allocation302_spill] sm:$0xff] %v16649_v43  ;;  %v16659_v39 = vsel %vm6309_vm10, %v6245_v1, %v6373_v34  ;;  %v6383_v55 = vmul.f32 0.2, %v6255_v25  ;;  %v12324_v8 = vcombine.low %v461_v22, %v497_v45  ;;  %v12325_v1 = vcombine.high %v461_v22, %v497_v45  ;;  %v425_v34 = vld [vmem:[%s14257_s15 + $0x228] sm:$0xff]  ;;  %v498_v22 = vld [vmem:[%s14257_s15 + $0x470] sm:$0xff] }
 0x222   : > { %12455 = vmatmul.mubr.msk.bf16.gmra.mxu1 %vm1240_vm0, %v16159_v5  ;;  %v16641_v57 = vpop.f32.mrf.mxu1  ;;  %22662 = vst [vmem:[#allocation304_spill] sm:$0xff] %v16659_v39  ;;  %v16661_v30 = vsel %vm6311_vm11, %v6247_v37, %v6375_v48  ;;  %v389_v37 = vld [vmem:[%s14257_s15 + $0x108] sm:$0xff]  ;;  %v12251_v24 = vcombine.high %v388_v54, %v424_v40  ;;  %v6381_v43 = vmul.f32 0.2, %v6253_v3  ;;  %v6263_v44 = vadd.f32 %v14511_v13, %v2708_v23  ;;  %v462_v39 = vld [vmem:[%s14257_s15 + $0x350] sm:$0xff] }
 0x223   : > { %3568 = vmatprep.mubr.bf16.mxu1 %v22365_v56  ;;  %22659 = vst [vmem:[#allocation301_spill] sm:$0xff] %v16641_v57  ;;  %22663 = vst [vmem:[#allocation305_spill] sm:$0xff] %v16661_v30  ;;  %v12250_v57 = vcombine.low %v388_v54, %v424_v40  ;;  %3674 = vmatprep.subr.bf16.mxu1 %v12325_v1  ;;  %v6261_v30 = vadd.f32 %v14511_v13, %v2635_v6  ;;  %vm6317_vm13 = vcmp.gt.f32.partialorder %v6253_v3, 0.0 }
 0x224   : > { %12451 = vmatmul.mubr.msk.bf16.gmra.mxu0 %vm1240_vm0, %v16159_v5  ;;  %3675 = vmatpush1.bf16.msra.mxu1 %v12324_v8  ;;  %v12252_v54 = vcombine.low %v389_v37, %v425_v34  ;;  %v12253_v40 = vcombine.high %v389_v37, %v425_v34  ;;  %vm6327_vm3 = vcmp.gt.f32.partialorder %v6263_v44, 0.0  ;;  %v6391_v6 = vmul.f32 0.2, %v6263_v44 }
 0x225   : > { %3495 = vmatprep.mubr.bf16.mxu0 %v22365_v56  ;;  %3603 = vmatprep.subr.bf16.mxu0 %v12251_v24  ;;  %vm6325_vm14 = vcmp.gt.f32.partialorder %v6261_v30, 0.0  ;;  %v6389_v1 = vmul.f32 0.2, %v6261_v30  ;;  %v4626_v24 = vadd.f32 %v14511_v13, %v15238_v35  ;;  %v12327_v8 = vcombine.high %v462_v39, %v498_v22 }
 0x226   : > { %3604 = vmatpush1.bf16.msra.mxu0 %v12250_v57  ;;  %3676 = vmatprep.subr.bf16.mxu1 %v12253_v40  ;;  %v16703_v34 = vsel %vm6317_vm13, %v6253_v3, %v6381_v43  ;;  %v12329_v16 = vcombine.high %v463_v38, %v499_v32 }
 0x227   : > { %22667 = vst [vmem:[#allocation309_spill] sm:$0xff] %v16703_v34  ;;  %v16705_v57 = vsel %vm6325_vm14, %v6261_v30, %v6389_v1  ;;  %3747 = vmatprep.subr.bf16.mxu0 %v12327_v8  ;;  %v4754_v3 = vmul.f32 0.2, %v4626_v24  ;;  %vm4690_vm5 = vcmp.gt.f32.partialorder %v4626_v24, 0.0 }
 0x228   : > { %22668 = vst [vmem:[#allocation310_spill] sm:$0xff] %v16705_v57  ;;  %3677 = vmatpush1.bf16.msra.mxu1 %v12252_v54 }
 0x229   : > { %3820 = vmatprep.subr.bf16.mxu1 %v12329_v16  ;;  %v12256_v16 = vcombine.low %v391_v62, %v427_v26 }
 0x22a   : > { %12456 = vmatmul.mubr.msk.bf16.gmra.mxu1 %vm1240_vm0, %v16239_v53 }
 0x22b   : > { %3578 = vmatprep.mubr.bf16.mxu1 %v22365_v56 }
 0x22c   : > { %12452 = vmatmul.mubr.msk.bf16.gmra.mxu0 %vm1240_vm0, %v16239_v53 }
 0x22d   : > { %3505 = vmatprep.mubr.bf16.mxu0 %v22365_v56  ;;  %v16653_v52 = vpop.f32.mrf.mxu0 }
 0x22f   : > { %v16667_v59 = vpop.f32.mrf.mxu0 }
 0x230   : > { %v2820_v61 = vpop.f32.mrf.mxu1 }
 0x231   : > { %v16679_v48 = vpop.f32.mrf.mxu0  ;;  %v6683_v9 = vadd.f32 %v14590_v42, %v2820_v61 }
 0x232   : > { %v16673_v50 = vpop.f32.mrf.mxu1  ;;  %12457 = vmatmul.mubr.msk.bf16.gmra.mxu1 %vm1240_vm0, %v16305_v14 }
 0x233   : > { %22664 = vst [vmem:[#allocation306_spill] sm:$0xff] %v16673_v50  ;;  %v16688_v45 = vpop.f32.mrf.mxu0  ;;  %v16691_v50 = vsel %vm6319_vm12, %v6255_v25, %v6383_v55  ;;  %3694 = vmatprep.mubr.bf16.mxu1 %v22365_v56  ;;  %v4618_v25 = vadd.f32 %v14501_v10, %v15225_v12  ;;  %v12326_v55 = vcombine.low %v462_v39, %v498_v22  ;;  %v390_v39 = vld [vmem:[%s14257_s15 + $0x110] sm:$0xff]  ;;  %v6811_v40 = vmul.f32 0.2, %v6683_v9 }
 0x234   : > { %12453 = vmatmul.mubr.msk.bf16.gmra.mxu0 %vm1240_vm0, %v16305_v14  ;;  %v2824_v36 = vpop.f32.mrf.mxu1  ;;  %22665 = vst [vmem:[#allocation307_spill] sm:$0xff] %v16691_v50  ;;  %v426_v22 = vld [vmem:[%s14257_s15 + $0x230] sm:$0xff]  ;;  %vm6747_vm6 = vcmp.gt.f32.partialorder %v6683_v9, 0.0 }
 0x235   : > { %3621 = vmatprep.mubr.bf16.mxu0 %v22365_v56  ;;  %v16696_v23 = vpop.f32.mrf.mxu0  ;;  %vm4682_vm4 = vcmp.gt.f32.partialorder %v4618_v25, 0.0  ;;  %v4746_v30 = vmul.f32 0.2, %v4618_v25  ;;  %v12254_v1 = vcombine.low %v390_v39, %v426_v22  ;;  %v16741_v57 = vsel %vm6747_vm6, %v6683_v9, %v6811_v40 }
 0x236   : > { %v16693_v20 = vpop.f32.mrf.mxu1  ;;  %22672 = vst [vmem:[#allocation314_spill] sm:$0xff] %v16741_v57  ;;  %v16772_v40 = vadd.f32 %v14651_v18, %v15084_v19  ;;  %v16792_v19 = vadd.f32 %v14516_v15, %v15200_v49 }
 0x237   : > { %22666 = vst [vmem:[#allocation308_spill] sm:$0xff] %v16693_v20  ;;  %v16707_v20 = vsel %vm6327_vm3, %v6263_v44, %v6391_v6  ;;  %v16710_v47 = vpop.f32.mrf.mxu0  ;;  %v16723_v44 = vld [vmem:[%s21791_s1] sm:$0xff]   ;;  %v12255_v6 = vcombine.high %v390_v39, %v426_v22  ;;  %v4810_v50 = vsel %vm4682_vm4, %v4618_v25, %v4746_v30 }
 0x238   : > { %v2830_v37 = vpop.f32.mrf.mxu1  ;;  %22669 = vst [vmem:[#allocation311_spill] sm:$0xff] %v16707_v20  ;;  %v4818_v20 = vsel %vm4690_vm5, %v4626_v24, %v4754_v3  ;;  %v16768_v3 = vadd.f32 %v14590_v42, %v15046_v63  ;;  %vm4674_vm14 = vcmp.gt.f32.partialorder %v16792_v19, 0.0 }
 0x239   : > { %v16727_v61 = vpop.f32.mrf.mxu0  ;;  %v13433_v22 = vpack.c.bf16 %v4818_v20, %v4810_v50 }
 0x23a   : > { %v16718_v43 = vpop.f32.mrf.mxu1  ;;  %12462 = vmatmul.mubr.msk.bf16.vlgmr.msra.gmra.mxu1 %vm1240_vm0, %v16723_v44 }
 0x23b   : > { %22670 = vst [vmem:[#allocation312_spill] sm:$0xff] %v16718_v43  ;;  %v16732_v8 = vpop.f32.mrf.mxu0  ;;  %3704 = vmatprep.mubr.bf16.mxu1 %v22365_v56 }
 0x23c   : > { %12458 = vmatmul.mubr.msk.bf16.vlgmr.msra.gmra.mxu0 %vm1240_vm0, %v16723_v44  ;;  %v2834_v54 = vpop.f32.mrf.mxu1 }
 0x23d   : > { %3748 = vmatpush1.bf16.msra.mxu0 %v12326_v55  ;;  %3631 = vmatprep.mubr.bf16.mxu0 %v22365_v56  ;;  %v6691_v55 = vadd.f32 %v14651_v18, %v2824_v36  ;;  %v16738_v12 = vpop.f32.mrf.mxu0  ;;  %v6699_v36 = vadd.f32 %v14523_v17, %v2830_v37 }
 0x23e   : > { %v16735_v35 = vpop.f32.mrf.mxu1  ;;  %3749 = vmatprep.subr.bf16.mxu0 %v12255_v6  ;;  %v16777_v6 = vadd.f32 %v14523_v17, %v15125_v0 }
 0x23f   : > { %22671 = vst [vmem:[#allocation313_spill] sm:$0xff] %v16735_v35  ;;  %vm6755_vm8 = vcmp.gt.f32.partialorder %v6691_v55, 0.0  ;;  %v6819_v39 = vmul.f32 0.2, %v6691_v55  ;;  %v16743_v43 = vpop.f32.mrf.mxu0  ;;  %v6827_v24 = vmul.f32 0.2, %v6699_v36 }
 0x240   : > { %v2840_v34 = vpop.f32.mrf.mxu1  ;;  %vm6763_vm9 = vcmp.gt.f32.partialorder %v6699_v36, 0.0  ;;  %vm4650_vm4 = vcmp.gt.f32.partialorder %v16777_v6, 0.0 }
 0x241   : > { %3750 = vmatpush1.bf16.msra.mxu0 %v12254_v1  ;;  %v16747_v35 = vsel %vm6755_vm8, %v6691_v55, %v6819_v39  ;;  %v16752_v25 = vpop.f32.mrf.mxu0  ;;  %v16781_v55 = vadd.f32 %v14555_v28, %v15148_v41  ;;  %v16785_v39 = vadd.f32 %v14505_v11, %v15174_v46  ;;  %v6715_v63 = vadd.f32 %v14505_v11, %v2840_v34  ;;  %vm16979_vm8 = vmpackc.low %vm14557_vm1, %vm14557_vm1 }
 0x242   : > { %v16745_v2 = vpop.f32.mrf.mxu1  ;;  %22674 = vst [vmem:[#allocation316_spill] sm:$0xff] %v16747_v35  ;;  %10530 = vmatprep.subr.bf16.mxu0 %v13433_v22  ;;  %12463 = vmatmul.mubr.msk.bf16.gmra.mxu1 %vm1240_vm0, %v16159_v5  ;;  %v16803_v46 = vmul.f32 0.2, %v16768_v3  ;;  %v16806_v34 = vmul.f32 0.2, %v16772_v40 }
 0x243   : > { %22673 = vst [vmem:[#allocation315_spill] sm:$0xff] %v16745_v2  ;;  %v16759_v50 = vpop.f32.mrf.mxu0  ;;  %3714 = vmatprep.mubr.bf16.mxu1 %v22365_v56  ;;  %v16831_v2 = vadd.f32 %v14590_v42, %v16653_v52  ;;  %vm6779_vm11 = vcmp.gt.f32.partialorder %v6715_v63, 0.0  ;;  %vm4666_vm13 = vcmp.gt.f32.partialorder %v16785_v39, 0.0  ;;  %vm4658_vm5 = vcmp.gt.f32.partialorder %v16781_v55, 0.0 }
 0x244   : > { %12459 = vmatmul.mubr.msk.bf16.gmra.mxu0 %vm1240_vm0, %v16159_v5  ;;  %v2844_v20 = vpop.f32.mrf.mxu1  ;;  %v6707_v5 = vadd.f32 %v14555_v28, %v2834_v54  ;;  %v16794_v54 = vsel %vm6763_vm9, %v6699_v36, %v6827_v24  ;;  %v16812_v36 = vmul.f32 0.2, %v16777_v6  ;;  %v16815_v24 = vmul.f32 0.2, %v16781_v55 }
 0x245   : > { %3641 = vmatprep.mubr.bf16.mxu0 %v22365_v56  ;;  %v16764_v30 = vpop.f32.mrf.mxu0  ;;  %22676 = vst [vmem:[#allocation318_spill] sm:$0xff] %v16794_v54  ;;  %v16842_v54 = vadd.f32 %v14590_v42, %v16667_v59  ;;  %v6723_v52 = vadd.f32 %v14516_v15, %v2844_v20  ;;  %v16868_v20 = vadd.f32 %v14511_v13, %v16402_v51 }
 0x246   : > { %v16762_v37 = vpop.f32.mrf.mxu1  ;;  %vm6771_vm10 = vcmp.gt.f32.partialorder %v6707_v5, 0.0  ;;  %v6835_v0 = vmul.f32 0.2, %v6707_v5  ;;  %v16884_v51 = vadd.f32 %v14523_v17, %v16710_v47  ;;  %v12328_v47 = vcombine.low %v463_v38, %v499_v32 }
 0x247   : > { %22675 = vst [vmem:[#allocation317_spill] sm:$0xff] %v16762_v37  ;;  %v16788_v22 = vpop.f32.mrf.mxu0  ;;  %vm6787_vm12 = vcmp.gt.f32.partialorder %v6723_v52, 0.0  ;;  %v16895_v58 = vmul.f32 0.2, %v16842_v54  ;;  %v16956_v33 = vadd.f32 %v14501_v10, %v16764_v30 }
 0x248   : > { %v2850_v1 = vpop.f32.mrf.mxu1  ;;  %v16808_v57 = vsel %vm6771_vm10, %v6707_v5, %v6835_v0  ;;  %v16824_v5 = vmul.f32 0.2, %v16785_v39  ;;  %v16827_v0 = vmul.f32 0.2, %v16792_v19  ;;  %3821 = vmatpush1.bf16.msra.mxu1 %v12328_v47  ;;  %v16973_v30 = vadd.f32 %v14501_v10, %v16788_v22 }
 0x249   : > { %v16800_v41 = vpop.f32.mrf.mxu0  ;;  %22678 = vst [vmem:[#allocation320_spill] sm:$0xff] %v16808_v57  ;;  %v16846_v57 = vadd.f32 %v14651_v18, %v16679_v48  ;;  %v6731_v59 = vadd.f32 %v14501_v10, %v2850_v1  ;;  %v16880_v1 = vadd.f32 %v14523_v17, %v16696_v23  ;;  %22687 = vst [vmem:[#allocation329_spill] sm:$0xff] %v16895_v58 }
 0x24a   : > { %v16796_v9 = vpop.f32.mrf.mxu1  ;;  %12464 = vmatmul.mubr.msk.bf16.gmra.mxu1 %vm1240_vm0, %v16239_v53  ;;  %vm6794_vm10 = vcmp.gt.f32.partialorder %v16973_v30, 0.0 }
 0x24b   : > { %22677 = vst [vmem:[#allocation319_spill] sm:$0xff] %v16796_v9  ;;  %v6843_v9 = vmul.f32 0.2, %v6715_v63  ;;  %v16821_v37 = vpop.f32.mrf.mxu0  ;;  %3724 = vmatprep.mubr.bf16.mxu1 %v22365_v56  ;;  %vm6795_vm3 = vcmp.gt.f32.partialorder %v6731_v59, 0.0  ;;  %v16929_v32 = vmul.f32 0.2, %v16880_v1 }
 0x24c   : > { %12460 = vmatmul.mubr.msk.bf16.gmra.mxu0 %vm1240_vm0, %v16239_v53  ;;  %v2854_v49 = vpop.f32.mrf.mxu1  ;;  %v16838_v53 = vadd.f32 %v14590_v42, %v16194_v31  ;;  %v16859_v31 = vadd.f32 %v14501_v10, %v16373_v21  ;;  %v16876_v21 = vmul.f32 0.2, %v16831_v2 }
 0x24d   : > { %3651 = vmatprep.mubr.bf16.mxu0 %v22365_v56  ;;  %v16871_v60 = vsel %vm6779_vm11, %v6715_v63, %v6843_v9  ;;  %v16888_v9 = vadd.f32 %v14555_v28, %v16727_v61  ;;  %v16906_v61 = vadd.f32 %v14651_v18, %v16688_v45  ;;  %v16921_v45 = vadd.f32 %v14505_v11, %v16743_v43 }
 0x24e   : > { %v16834_v35 = vpop.f32.mrf.mxu1  ;;  %22680 = vst [vmem:[#allocation322_spill] sm:$0xff] %v16838_v53  ;;  %22683 = vst [vmem:[#allocation325_spill] sm:$0xff] %v16871_v60  ;;  %v16898_v53 = vmul.f32 0.2, %v16846_v57  ;;  %v6739_v38 = vadd.f32 %v14511_v13, %v2854_v49  ;;  %v16939_v43 = vadd.f32 %v14516_v15, %v16752_v25  ;;  %v16948_v60 = vadd.f32 %v14505_v11, %v16738_v12 }
 0x24f   : > { %22679 = vst [vmem:[#allocation321_spill] sm:$0xff] %v16834_v35  ;;  %v16855_v35 = vadd.f32 %v14505_v11, %v16328_v27  ;;  %v6851_v27 = vmul.f32 0.2, %v6723_v52  ;;  %22684 = vst [vmem:[#allocation326_spill] sm:$0xff] %v16876_v21 }
 0x250   : > { %vm6803_vm6 = vcmp.gt.f32.partialorder %v6739_v38, 0.0 }
 0x251   : > { %22682 = vst [vmem:[#allocation324_spill] sm:$0xff] %v16855_v35  ;;  %v16900_v23 = vsel %vm6787_vm12, %v6723_v52, %v6851_v27  ;;  %v16917_v27 = vadd.f32 %v14555_v28, %v16732_v8  ;;  %v16932_v8 = vmul.f32 0.2, %v16884_v51 }
 0x252   : > { %v2966_v7 = vpop.f32.mrf.mxu1  ;;  %22688 = vst [vmem:[#allocation330_spill] sm:$0xff] %v16900_v23  ;;  %12465 = vmatmul.mubr.msk.bf16.gmra.mxu1 %vm1240_vm0, %v16305_v14  ;;  %v16952_v23 = vadd.f32 %v14516_v15, %v16759_v50  ;;  %v16969_v50 = vmul.f32 0.2, %v16921_v45 }
 0x253   : > { %v16864_v48 = vpop.f32.mrf.mxu0  ;;  %3840 = vmatprep.mubr.bf16.mxu1 %v22365_v56  ;;  %v16966_v21 = vmul.f32 0.2, %v16917_v27 }
 0x254   : > { %v16892_v4 = vpop.f32.mrf.mxu1  ;;  %12461 = vmatmul.mubr.msk.bf16.gmra.mxu0 %vm1240_vm0, %v16305_v14  ;;  %v17000_v10 = vmul.f32 0.2, %v16952_v23 }
 0x255   : > { %v16890_v63 = vpop.f32.mrf.mxu0  ;;  %22686 = vst [vmem:[#allocation328_spill] sm:$0xff] %v16892_v4  ;;  %v6859_v4 = vmul.f32 0.2, %v6731_v59  ;;  %3767 = vmatprep.mubr.bf16.mxu0 %v22365_v56 }
 0x256   : > { %22685 = vst [vmem:[#allocation327_spill] sm:$0xff] %v16890_v63  ;;  %v16913_v52 = vpop.f32.mrf.mxu1  ;;  %v16935_v63 = vmul.f32 0.2, %v16888_v9 }
 0x257   : > { %v2897_v35 = vpop.f32.mrf.mxu0  ;;  %v16959_v25 = vsel %vm6795_vm3, %v6731_v59, %v6859_v4  ;;  %v6687_v4 = vadd.f32 %v14590_v42, %v2966_v7  ;;  %v6737_v59 = vadd.f32 %v14511_v13, %v16800_v41  ;;  %v6685_v7 = vadd.f32 %v14590_v42, %v16864_v48 }
 0x258   : > { %v16944_v49 = vpop.f32.mrf.mxu1  ;;  %22691 = vst [vmem:[#allocation333_spill] sm:$0xff] %v16959_v25  ;;  %vm6793_vm3 = vcmp.gt.f32.partialorder %v16956_v33, 0.0  ;;  %v6857_v48 = vmul.f32 0.2, %v16956_v33  ;;  %v6858_v25 = vmul.f32 0.2, %v16973_v30  ;;  %v6695_v42 = vadd.f32 %v14651_v18, %v16913_v52 }
 0x259   : > { %v16942_v14 = vpop.f32.mrf.mxu0  ;;  %22690 = vst [vmem:[#allocation332_spill] sm:$0xff] %v16944_v49  ;;  %v12257_v49 = vcombine.high %v391_v62, %v427_v26  ;;  %v16985_v26 = vmul.f32 0.2, %v16939_v43  ;;  %vm6801_vm11 = vcmp.gt.f32.partialorder %v6737_v59, 0.0 }
 0x25a   : > { %22689 = vst [vmem:[#allocation331_spill] sm:$0xff] %v16942_v14  ;;  %v6867_v14 = vmul.f32 0.2, %v6739_v38  ;;  %v16963_v12 = vpop.f32.mrf.mxu1  ;;  %vm6759_vm1 = vcmp.gt.f32.partialorder %v6695_v42, 0.0 }
 0x25b   : > { %v16961_v58 = vpop.f32.mrf.mxu0  ;;  %3822 = vmatprep.subr.bf16.mxu1 %v12257_v49  ;;  %v22697_v49 = vld [vmem:[#allocation97_spill] sm:$0xff] }
 0x25c   : > { %v16989_v47 = vsel %vm6803_vm6, %v6739_v38, %v6867_v14  ;;  %v16995_v22 = vpop.f32.mrf.mxu1  ;;  %3823 = vmatpush1.bf16.msra.mxu1 %v12256_v16  ;;  %v6738_v38 = vadd.f32 %v14511_v13, %v16821_v37  ;;  %12466 = vmatmul.mubr.msk.bf16.vlgmr.msra.gmra.mxu0 %vm1240_vm0, %v16723_v44  ;;  %vm6751_vm6 = vcmp.gt.f32.partialorder %v6687_v4, 0.0  ;;  %v6815_v14 = vmul.f32 0.2, %v6687_v4 }
 0x25d   : > { %22694 = vst [vmem:[#allocation334_spill] sm:$0xff] %v16989_v47  ;;  %v16993_v29 = vpop.f32.mrf.mxu0  ;;  %22696 = vst [vmem:[#allocation336_spill] sm:$0xff] %v16995_v22  ;;  %v22698_v22 = vld [vmem:[#allocation96_spill] sm:$0xff]  ;;  %3777 = vmatprep.mubr.bf16.mxu0 %v22365_v56  ;;  %v4794_v47 = vsel %vm4666_vm13, %v16785_v39, %v16824_v5  ;;  %v6865_v5 = vmul.f32 0.2, %v6737_v59  ;;  %vm6749_vm13 = vcmp.gt.f32.partialorder %v6685_v7, 0.0 }
 0x25e   : > { %22695 = vst [vmem:[#allocation335_spill] sm:$0xff] %v16993_v29  ;;  %v22699_v41 = vpack.c.bf16 %v22697_v49, %v22698_v22  ;;  %v17020_v16 = vpop.f32.mrf.mxu1  ;;  %v4802_v22 = vsel %vm4674_vm14, %v16792_v19, %v16827_v0  ;;  %v6813_v49 = vmul.f32 0.2, %v6685_v7  ;;  %v6866_v15 = vmul.f32 0.2, %v6738_v38 }
 0x25f   : > { %v17018_v37 = vpop.f32.mrf.mxu0  ;;  %12470 = vmatmul.mubr.msk.bf16.vlgmr.msra.gmra.mxu1 %vm1240_vm0, %v16723_v44  ;;  %v13425_v29 = vpack.c.bf16 %v4802_v22, %v4794_v47  ;;  %vm6762_vm14 = vcmp.gt.f32.partialorder %v16884_v51, 0.0  ;;  %v6823_v19 = vmul.f32 0.2, %v6695_v42  ;;  %vm6802_vm9 = vcmp.gt.f32.partialorder %v6738_v38, 0.0  ;;  %v22703_v47 = vld [vmem:[#allocation89_spill] sm:$0xff]  ;;  %v22704_v22 = vld [vmem:[#allocation88_spill] sm:$0xff] }
 0x260   : > { %13666 = vmatpush1.bf16.msk.msra.mxu0 %vm16979_vm8, %v22699_v41  ;;  %v6693_v41 = vadd.f32 %v14651_v18, %v2897_v35  ;;  %v17039_v39 = vpop.f32.mrf.mxu1  ;;  %v17042_v35 = vsel %vm6751_vm6, %v6687_v4, %v6815_v14  ;;  %3850 = vmatprep.mubr.bf16.mxu1 %v22365_v56  ;;  %v22705_v4 = vpack.c.bf16 %v22703_v47, %v22704_v22  ;;  %vm6761_vm6 = vcmp.gt.f32.partialorder %v16880_v1, 0.0 }
 0x261   : > { %v17037_v13 = vpop.f32.mrf.mxu0  ;;  %22701 = vst [vmem:[#allocation96_spill] sm:$0xff] %v17039_v39  ;;  %22702 = vst [vmem:[#allocation337_spill] sm:$0xff] %v17042_v35  ;;  %10532 = vmatprep.subr.bf16.mxu0 %v13425_v29  ;;  %v4778_v29 = vsel %vm4650_vm4, %v16777_v6, %v16812_v36  ;;  %v4786_v14 = vsel %vm4658_vm5, %v16781_v55, %v16815_v24  ;;  %v17066_v39 = vsel %vm6749_vm13, %v6685_v7, %v6813_v49 }
 0x262   : > { %22700 = vst [vmem:[#allocation97_spill] sm:$0xff] %v17037_v13  ;;  %vm6757_vm12 = vcmp.gt.f32.partialorder %v6693_v41, 0.0  ;;  %v6821_v44 = vmul.f32 0.2, %v6693_v41  ;;  %v17048_v52 = vpop.f32.mrf.mxu1  ;;  %22706 = vst [vmem:[#allocation89_spill] sm:$0xff] %v17066_v39  ;;  %v17070_v47 = vsel %vm6759_vm1, %v6695_v42, %v6823_v19  ;;  %v13417_v22 = vpack.c.bf16 %v4786_v14, %v4778_v29  ;;  %v14121_v42 = vld [vmem:[%s21791_s1 + $0x8] sm:$0xff]  }
 0x263   : > { %v17046_v0 = vpop.f32.mrf.mxu0  ;;  %22708 = vst [vmem:[#allocation338_spill] sm:$0xff] %v17070_v47  ;;  %v6921_v6 = vsel %vm6793_vm3, %v16956_v33, %v6857_v48  ;;  %v6929_v55 = vsel %vm6801_vm11, %v6737_v59, %v6865_v5  ;;  %v6841_v7 = vmul.f32 0.2, %v16948_v60  ;;  %v6922_v33 = vsel %vm6794_vm10, %v16973_v30, %v6858_v25  ;;  %v22711_v19 = vld [vmem:[#allocation81_spill] sm:$0xff]  ;;  %v22712_v29 = vld [vmem:[#allocation80_spill] sm:$0xff] }
 0x264   : > { %13669 = vmatpush1.bf16.msk.msra.mxu0 %vm16979_vm8, %v22705_v4  ;;  %v17068_v13 = vsel %vm6757_vm12, %v6693_v41, %v6821_v44  ;;  %v17074_v18 = vpop.f32.mrf.mxu1  ;;  %v6930_v59 = vsel %vm6802_vm9, %v6738_v38, %v6866_v15  ;;  %v6701_v48 = vadd.f32 %v14523_v17, %v16961_v58  ;;  %vm6753_vm4 = vcmp.gt.f32.partialorder %v16846_v57, 0.0  ;;  %v22811_v39 = vld [vmem:[#allocation201_spill] sm:$0xff] }
 0x265   : > { %22707 = vst [vmem:[#allocation88_spill] sm:$0xff] %v17068_v13  ;;  %v17072_v4 = vpop.f32.mrf.mxu0  ;;  %22710 = vst [vmem:[#allocation340_spill] sm:$0xff] %v17074_v18  ;;  %12467 = vmatmul.mubr.msk.bf16.gmra.mxu0 %vm1240_vm0, %v14121_v42  ;;  %10534 = vmatprep.subr.bf16.mxu0 %v13417_v22  ;;  %v13561_v5 = vpack.c.bf16 %v6930_v59, %v6922_v33  ;;  %v6703_v44 = vadd.f32 %v14523_v17, %v16963_v12  ;;  %vm22714_vm5 = vcmp.gt.f32.partialorder %v16921_v45, 0.0 }
 0x266   : > { %22709 = vst [vmem:[#allocation339_spill] sm:$0xff] %v17072_v4  ;;  %3787 = vmatprep.mubr.bf16.mxu0 %v22365_v56  ;;  %v17098_v49 = vpop.f32.mrf.mxu1  ;;  %v22713_v25 = vpack.c.bf16 %v22711_v19, %v22712_v29  ;;  %v6906_v15 = vsel %vm22714_vm5, %v16921_v45, %v16969_v50  ;;  %vm22715_vm9 = vcmp.gt.f32.partialorder %v16952_v23, 0.0  ;;  %vm6745_vm1 = vcmp.gt.f32.partialorder %v16831_v2, 0.0 }
 0x267   : > { %v17096_v41 = vpop.f32.mrf.mxu0  ;;  %v6914_v58 = vsel %vm22715_vm9, %v16952_v23, %v17000_v10  ;;  %vm6746_vm10 = vcmp.gt.f32.partialorder %v16842_v54, 0.0  ;;  %vm6777_vm11 = vcmp.gt.f32.partialorder %v16948_v60, 0.0  ;;  %vm22716_vm12 = vcmp.gt.f32.partialorder %v16939_v43, 0.0  ;;  %12471 = vmatmul.mubr.msk.bf16.gmra.mxu1 %vm1240_vm0, %v14121_v42  ;;  %10603 = vmatprep.subr.bf16.mxu1 %v13561_v5 }
 0x268   : > { %13672 = vmatpush1.bf16.msk.msra.mxu0 %vm16979_vm8, %v22713_v25  ;;  %v6913_v12 = vsel %vm22716_vm12, %v16939_v43, %v16985_v26  ;;  %v13560_v30 = vpack.c.bf16 %v6929_v55, %v6921_v6  ;;  %v13553_v45 = vpack.c.bf16 %v6914_v58, %v6906_v15  ;;  %v17126_v38 = vpop.f32.mrf.mxu1  ;;  %vm6767_vm3 = vcmp.gt.f32.partialorder %v6703_v44, 0.0  ;;  %3860 = vmatprep.mubr.bf16.mxu1 %v22365_v56  ;;  %v22730_v25 = vld [vmem:[#allocation7_spill] sm:$0xff]  ;;  %v14122_v58 = vld [vmem:[%s21791_s1 + $0x10] sm:$0xff]  }
 0x269   : > { %v17124_v50 = vpop.f32.mrf.mxu0  ;;  %22718 = vst [vmem:[#allocation80_spill] sm:$0xff] %v17126_v38  ;;  %v6831_v10 = vmul.f32 0.2, %v6703_v44  ;;  %vm22719_vm13 = vcmp.gt.f32.partialorder %v16768_v3, 0.0  ;;  %vm22720_vm5 = vcmp.gt.f32.partialorder %v16772_v40, 0.0  ;;  %vm6770_vm9 = vcmp.gt.f32.partialorder %v16917_v27, 0.0 }
 0x26a   : > { %22717 = vst [vmem:[#allocation81_spill] sm:$0xff] %v17124_v50  ;;  %v4762_v23 = vsel %vm22719_vm13, %v16768_v3, %v16803_v46  ;;  %v4770_v43 = vsel %vm22720_vm5, %v16772_v40, %v16806_v34  ;;  %10604 = vmatpush1.bf16.msra.mxu1 %v13560_v30  ;;  %v6829_v26 = vmul.f32 0.2, %v6701_v48  ;;  %v6709_v22 = vadd.f32 %v14555_v28, %v17018_v37  ;;  %v17142_v55 = vpop.f32.mrf.mxu1 }
 0x26b   : > { %v13409_v14 = vpack.c.bf16 %v4770_v43, %v4762_v23  ;;  %v17140_v6 = vpop.f32.mrf.mxu0  ;;  %vm22721_vm12 = vcmp.gt.f32.partialorder %v16888_v9, 0.0  ;;  %v6905_v40 = vsel %vm6777_vm11, %v16948_v60, %v6841_v7  ;;  %vm6765_vm13 = vcmp.gt.f32.partialorder %v6701_v48, 0.0  ;;  %10605 = vmatprep.subr.bf16.mxu1 %v13553_v45  ;;  %v22726_v60 = vld [vmem:[#allocation74_spill] sm:$0xff]  ;;  %v22767_v45 = vld [vmem:[#allocation285_spill] sm:$0xff] }
 0x26c   : > { %v6897_v3 = vsel %vm22721_vm12, %v16888_v9, %v16935_v63  ;;  %v6711_v46 = vadd.f32 %v14555_v28, %v17020_v16  ;;  %v13552_v34 = vpack.c.bf16 %v6913_v12, %v6905_v40  ;;  %v17154_v37 = vsel %vm6767_vm3, %v6703_v44, %v6831_v10  ;;  %v17158_v59 = vpop.f32.mrf.mxu1  ;;  %v22725_v63 = vld [vmem:[#allocation75_spill] sm:$0xff] }
 0x26d   : > { %22722 = vst [vmem:[#allocation341_spill] sm:$0xff] %v17154_v37  ;;  %10536 = vmatprep.subr.bf16.mxu0 %v13409_v14  ;;  %vm6773_vm5 = vcmp.gt.f32.partialorder %v6709_v22, 0.0  ;;  %v6837_v42 = vmul.f32 0.2, %v6709_v22  ;;  %v17156_v33 = vpop.f32.mrf.mxu0  ;;  %22724 = vst [vmem:[#allocation343_spill] sm:$0xff] %v17158_v59  ;;  %v22727_v7 = vpack.c.bf16 %v22725_v63, %v22726_v60  ;;  %v6890_v16 = vsel %vm6762_vm14, %v16884_v51, %v16932_v8  ;;  %v22739_v63 = vld [vmem:[#allocation37_spill] sm:$0xff] }
 0x26e   : > { %22723 = vst [vmem:[#allocation342_spill] sm:$0xff] %v17156_v33  ;;  %vm6775_vm12 = vcmp.gt.f32.partialorder %v6711_v46, 0.0  ;;  %v6839_v9 = vmul.f32 0.2, %v6711_v46  ;;  %v6898_v5 = vsel %vm6770_vm9, %v16917_v27, %v16966_v21  ;;  %v17173_v44 = vsel %vm6765_vm13, %v6701_v48, %v6829_v26  ;;  %10606 = vmatpush1.bf16.msra.mxu1 %v13552_v34  ;;  %12468 = vmatmul.mubr.msk.bf16.gmra.mxu0 %vm1240_vm0, %v14122_v58  ;;  %v17184_v8 = vpop.f32.mrf.mxu1  ;;  %v22772_v37 = vld [vmem:[#allocation322_spill] sm:$0xff] }
 0x26f   : > { %13675 = vmatpush1.bf16.msk.msra.mxu0 %vm16979_vm8, %v22727_v7  ;;  %22728 = vst [vmem:[#allocation75_spill] sm:$0xff] %v17173_v44  ;;  %v17175_v19 = vsel %vm6773_vm5, %v6709_v22, %v6837_v42  ;;  %v13545_v29 = vpack.c.bf16 %v6898_v5, %v6890_v16  ;;  %v309_v15 = vadd.s32 128, %v22730_v25  ;;  %v17182_v51 = vpop.f32.mrf.mxu0  ;;  %v6818_v21 = vmul.f32 0.2, %v16906_v61  ;;  %3797 = vmatprep.mubr.bf16.mxu0 %v22365_v56 }
 0x270   : > { %22729 = vst [vmem:[#allocation74_spill] sm:$0xff] %v17175_v19  ;;  %v6889_v27 = vsel %vm6761_vm6, %v16880_v1, %v16929_v32  ;;  %v17194_v12 = vsel %vm6775_vm12, %v6711_v46, %v6839_v9  ;;  %vm6754_vm14 = vcmp.gt.f32.partialorder %v16906_v61, 0.0  ;;  %12472 = vmatmul.mubr.msk.bf16.gmra.mxu1 %vm1240_vm0, %v14122_v58  ;;  %v17203_v1 = vpop.f32.mrf.mxu1  ;;  %vm6314_vm6 = vcmp.gt.f32.partialorder %v16859_v31, 0.0  ;;  %v22734_v46 = vld [vmem:[#allocation326_spill] sm:$0xff]  ;;  %v22738_v9 = vld [vmem:[#allocation40_spill] sm:$0xff]  ;;  %v22824_v19 = vld [vmem:[#allocation123_spill] sm:$0xff] }
 0x271   : > { %22731 = vst [vmem:[#allocation344_spill] sm:$0xff] %v17194_v12  ;;  %v13544_v30 = vpack.c.bf16 %v6897_v3, %v6889_v27  ;;  %10607 = vmatprep.subr.bf16.mxu1 %v13545_v29  ;;  %v333_v10 = vand.u32 15, %v309_v15  ;;  %v17201_v23 = vpop.f32.mrf.mxu0  ;;  %22733 = vst [vmem:[#allocation346_spill] sm:$0xff] %v17203_v1  ;;  %v6378_v32 = vmul.f32 0.2, %v16859_v31  ;;  %vm6322_vm11 = vcmp.gt.f32.partialorder %v16868_v20, 0.0  ;;  %3870 = vmatprep.mubr.bf16.mxu1 %v22365_v56 }
 0x272   : > { %22732 = vst [vmem:[#allocation345_spill] sm:$0xff] %v17201_v23  ;;  %v6717_v43 = vadd.f32 %v14505_v11, %v17046_v0  ;;  %v6881_v26 = vsel %vm6753_vm4, %v16846_v57, %v16898_v53  ;;  %v6719_v14 = vadd.f32 %v14505_v11, %v17048_v52  ;;  %v332_v22 = vand.u32 15, %v22730_v25  ;;  %v17220_v40 = vpop.f32.mrf.mxu1  ;;  %v22737_v53 = vld [vmem:[#allocation329_spill] sm:$0xff]  ;;  %v22742_v29 = vld [vmem:[#allocation240_spill] sm:$0xff]  ;;  %v22743_v15 = vld [vmem:[#allocation250_spill] sm:$0xff] }
 0x273   : > { %vm341_vm3 = vcmp.ne.s32.totalorder %v333_v10, 0  ;;  %10608 = vmatpush1.bf16.msra.mxu1 %v13544_v30  ;;  %v17218_v3 = vpop.f32.mrf.mxu0  ;;  %v6386_v0 = vmul.f32 0.2, %v16868_v20  ;;  %v6873_v34 = vsel %vm6745_vm1, %v16831_v2, %v22734_v46  ;;  %v6874_v52 = vsel %vm6746_vm10, %v16842_v54, %v22737_v53  ;;  %v22748_v10 = vld [vmem:[#allocation324_spill] sm:$0xff]  ;;  %v22807_v1 = vld [vmem:[#allocation203_spill] sm:$0xff]  ;;  %v22919_v25 = vld [vmem:[#allocation85_spill] sm:$0xff] }
 0x274   : > { %vm17227_vm9 = vmpackc.low %vm341_vm3, %vm341_vm3  ;;  %v6882_v42 = vsel %vm6754_vm14, %v16906_v61, %v6818_v21  ;;  %v22740_v60 = vpack.c.bf16 %v22738_v9, %v22739_v63  ;;  %vm6783_vm4 = vcmp.gt.f32.partialorder %v6719_v14, 0.0  ;;  %v6847_v2 = vmul.f32 0.2, %v6719_v14  ;;  %v17245_v5 = vpop.f32.mrf.mxu1  ;;  %v22744_v61 = vld [vmem:[#allocation8_spill] sm:$0xff]  ;;  %v22751_v9 = vld [vmem:[#allocation33_spill] sm:$0xff] }
 0x275   : > { %vm340_vm1 = vcmp.ne.s32.totalorder %v332_v22, 0  ;;  %v13537_v7 = vpack.c.bf16 %v6882_v42, %v6874_v52  ;;  %v17243_v16 = vpop.f32.mrf.mxu0  ;;  %22741 = vst [vmem:[#allocation326_spill] sm:$0xff] %v17245_v5  ;;  %v17249_v54 = vadd.f32 %v14555_v28, %v22742_v29  ;;  %v6242_v58 = vadd.f32 %v22744_v61, %v22743_v15  ;;  %v22749_v22 = vld [vmem:[#allocation39_spill] sm:$0xff]  ;;  %v22752_v63 = vld [vmem:[#allocation29_spill] sm:$0xff] }
 0x276   : > { %13678 = vmatprep.subr.msk.bf16.mxu0 %vm17227_vm9, %v22740_v60  ;;  %v13536_v21 = vpack.c.bf16 %v6881_v26, %v6873_v34  ;;  %v6845_v27 = vmul.f32 0.2, %v6717_v43  ;;  %vm17253_vm10 = vmpackc.low %vm340_vm1, %vm340_vm1  ;;  %v22745_v30 = vmov 0  ;;  %vm6298_vm13 = vcmp.gt.f32.partialorder %v22748_v10, 0.0  ;;  %v17267_v34 = vpop.f32.mrf.mxu1  ;;  %v22914_v23 = vld [vmem:[#allocation83_spill] sm:$0xff] }
 0x277   : > { %v22746_v30 = vsel %vm17253_vm10, 4294967295, %v22745_v30  ;;  %vm6781_vm5 = vcmp.gt.f32.partialorder %v6717_v43, 0.0  ;;  %13681 = vmatpush1.bf16.msk.msra.mxu0 %vm17253_vm10, %v22749_v22  ;;  %10609 = vmatprep.subr.bf16.mxu1 %v13537_v7  ;;  %v6725_v46 = vadd.f32 %v22744_v61, %v17096_v41  ;;  %v6727_v53 = vadd.f32 %v22744_v61, %v17098_v49  ;;  %v17265_v26 = vpop.f32.mrf.mxu0  ;;  %v22758_v22 = vld [vmem:[#allocation31_spill] sm:$0xff] }
 0x278   : > { %22747 = vst [vmem:[#allocation329_spill] sm:$0xff] %v22746_v30  ;;  %v6362_v52 = vmul.f32 0.2, %v22748_v10  ;;  %v17271_v42 = vsel %vm6783_vm4, %v6719_v14, %v6847_v2  ;;  %v22753_v60 = vpack.c.bf16 %v22751_v9, %v22752_v63  ;;  %10610 = vmatpush1.bf16.msra.mxu1 %v13536_v21  ;;  %v6442_v41 = vsel %vm6314_vm6, %v16859_v31, %v6378_v32  ;;  %v14123_v2 = vld [vmem:[%s21791_s1 + $0x18] sm:$0xff]   ;;  %v17291_v15 = vpop.f32.mrf.mxu1  ;;  %v22759_v9 = vld [vmem:[#allocation4_spill] sm:$0xff] }
 0x279   : > { %22750 = vst [vmem:[#allocation40_spill] sm:$0xff] %v17271_v42  ;;  %v6450_v49 = vsel %vm6322_vm11, %v16868_v20, %v6386_v0  ;;  %vm6789_vm12 = vcmp.gt.f32.partialorder %v6725_v46, 0.0  ;;  %v6853_v7 = vmul.f32 0.2, %v6725_v46  ;;  %vm6791_vm14 = vcmp.gt.f32.partialorder %v6727_v53, 0.0  ;;  %12469 = vmatmul.mubr.msk.bf16.gmra.mxu0 %vm1240_vm0, %v14123_v2  ;;  %12473 = vmatmul.mubr.msk.bf16.gmra.mxu1 %vm1240_vm0, %v14123_v2  ;;  %v17289_v29 = vpop.f32.mrf.mxu0  ;;  %22754 = vst [vmem:[#allocation37_spill] sm:$0xff] %v17291_v15 }
 0x27a   : > { %13684 = vmatprep.subr.msk.bf16.mxu0 %vm17227_vm9, %v22753_v60  ;;  %v6855_v14 = vmul.f32 0.2, %v6727_v53  ;;  %vm6306_vm6 = vcmp.gt.f32.partialorder %v6242_v58, 0.0  ;;  %v6370_v31 = vmul.f32 0.2, %v6242_v58  ;;  %v17294_v20 = vsel %vm6781_vm5, %v6717_v43, %v6845_v27  ;;  %v17309_v24 = vpop.f32.mrf.mxu1  ;;  %v22760_v43 = vld [vmem:[#allocation231_spill] sm:$0xff] }
 0x27b   : > { %22755 = vst [vmem:[#allocation240_spill] sm:$0xff] %v17294_v20  ;;  %v13529_v32 = vpack.c.bf16 %v6450_v49, %v6442_v41  ;;  %v17296_v0 = vsel %vm6789_vm12, %v6725_v46, %v6853_v7  ;;  %13687 = vmatpush1.bf16.msk.msra.mxu0 %vm17253_vm10, %v22758_v22  ;;  %v6733_v63 = vadd.f32 %v22759_v9, %v17140_v6  ;;  %v17307_v2 = vpop.f32.mrf.mxu0  ;;  %v22761_v27 = vld [vmem:[#allocation16_spill] sm:$0xff]  ;;  %v22762_v41 = vld [vmem:[#allocation323_spill] sm:$0xff]  ;;  %v22763_v6 = vld [vmem:[#allocation25_spill] sm:$0xff]  ;;  %v6354_v22 = vmul.f32 0.2, %v17249_v54 }
 0x27c   : > { %22756 = vst [vmem:[#allocation250_spill] sm:$0xff] %v17296_v0  ;;  %v17298_v21 = vsel %vm6791_vm14, %v6727_v53, %v6855_v14  ;;  %v6735_v60 = vadd.f32 %v22759_v9, %v17142_v55  ;;  %v6210_v46 = vadd.f32 %v22761_v27, %v22760_v43  ;;  %vm6282_vm0 = vcmp.gt.f32.partialorder %v22762_v41, 0.0  ;;  %v22764_v7 = vld [vmem:[#allocation23_spill] sm:$0xff]  ;;  %v22766_v43 = vld [vmem:[#allocation286_spill] sm:$0xff]  ;;  %v17330_v35 = vpop.f32.mrf.mxu1 }
 0x27d   : > { %22757 = vst [vmem:[#allocation8_spill] sm:$0xff] %v17298_v21  ;;  %10611 = vmatprep.subr.bf16.mxu1 %v13529_v32  ;;  %v22765_v14 = vpack.c.bf16 %v22763_v6, %v22764_v7  ;;  %v6346_v55 = vmul.f32 0.2, %v22762_v41  ;;  %v22768_v36 = vpack.c.bf16 %v22766_v43, %v22767_v45  ;;  %v6861_v48 = vmul.f32 0.2, %v6733_v63  ;;  %v17328_v53 = vpop.f32.mrf.mxu0  ;;  %22769 = vst [vmem:[#allocation324_spill] sm:$0xff] %v17330_v35 }
 0x27e   : > { %vm6797_vm11 = vcmp.gt.f32.partialorder %v6733_v63, 0.0  ;;  %v6863_v32 = vmul.f32 0.2, %v6735_v60  ;;  %v6426_v6 = vsel %vm6298_vm13, %v22748_v10, %v6362_v52  ;;  %v6434_v7 = vsel %vm6306_vm6, %v6242_v58, %v6370_v31  ;;  %v22771_v45 = vld [vmem:[#allocation6_spill] sm:$0xff]  ;;  %v17344_v47 = vpop.f32.mrf.mxu1  ;;  %v22773_v52 = vld [vmem:[#allocation20_spill] sm:$0xff]  ;;  %v22774_v31 = vld [vmem:[#allocation17_spill] sm:$0xff] }
 0x27f   : > { %13690 = vmatprep.subr.msk.bf16.mxu0 %vm17227_vm9, %v22765_v14  ;;  %10612 = vmatpush1.bf16.msra.mxu1 %v22768_v36  ;;  %vm6290_vm3 = vcmp.gt.f32.partialorder %v17249_v54, 0.0  ;;  %vm6799_vm4 = vcmp.gt.f32.partialorder %v6735_v60, 0.0  ;;  %v22770_v14 = vld [vmem:[#allocation26_spill] sm:$0xff]  ;;  %v13521_v36 = vpack.c.bf16 %v6434_v7, %v6426_v6  ;;  %v6741_v43 = vadd.f32 %v22771_v45, %v17182_v51  ;;  %v17342_v49 = vpop.f32.mrf.mxu0  ;;  %v22825_v20 = vld [vmem:[#allocation191_spill] sm:$0xff] }
 0x280   : > { %13693 = vmatpush1.bf16.msk.msra.mxu0 %vm17253_vm10, %v22770_v14  ;;  %vm6266_vm1 = vcmp.gt.f32.partialorder %v22772_v37, 0.0  ;;  %v6330_v10 = vmul.f32 0.2, %v22772_v37  ;;  %vm6274_vm13 = vcmp.gt.f32.partialorder %v6210_v46, 0.0  ;;  %v6338_v58 = vmul.f32 0.2, %v6210_v46  ;;  %v17360_v42 = vpop.f32.mrf.mxu1 }
 0x281   : > { %v22775_v12 = vpack.c.bf16 %v22773_v52, %v22774_v31  ;;  %v17354_v6 = vsel %vm6797_vm11, %v6733_v63, %v6861_v48  ;;  %10613 = vmatprep.subr.bf16.mxu1 %v13521_v36  ;;  %vm6805_vm5 = vcmp.gt.f32.partialorder %v6741_v43, 0.0  ;;  %v6869_v51 = vmul.f32 0.2, %v6741_v43  ;;  %v17358_v14 = vpop.f32.mrf.mxu0  ;;  %22777 = vst [vmem:[#allocation33_spill] sm:$0xff] %v17360_v42  ;;  %v22779_v52 = vld [vmem:[#allocation280_spill] sm:$0xff]  ;;  %v22780_v31 = vld [vmem:[#allocation279_spill] sm:$0xff] }
 0x282   : > { %22776 = vst [vmem:[#allocation39_spill] sm:$0xff] %v17354_v6  ;;  %v6743_v7 = vadd.f32 %v22771_v45, %v17184_v8  ;;  %v17363_v21 = vsel %vm6799_vm4, %v6735_v60, %v6863_v32  ;;  %v22781_v38 = vpack.c.bf16 %v22779_v52, %v22780_v31  ;;  %v6410_v48 = vsel %vm6282_vm0, %v22762_v41, %v6346_v55  ;;  %v22782_v8 = vld [vmem:[#allocation13_spill] sm:$0xff]  ;;  %v22784_v32 = vld [vmem:[#allocation19_spill] sm:$0xff]  ;;  %v17383_v31 = vpop.f32.mrf.mxu1 }
 0x283   : > { %13696 = vmatprep.subr.msk.bf16.mxu0 %vm17227_vm9, %v22775_v12  ;;  %22778 = vst [vmem:[#allocation29_spill] sm:$0xff] %v17363_v21  ;;  %v6418_v12 = vsel %vm6290_vm3, %v17249_v54, %v6354_v22  ;;  %v7161_v63 = vadd.f32 %v22782_v8, %v17218_v3  ;;  %v17376_v36 = vsel %vm6805_vm5, %v6741_v43, %v6869_v51  ;;  %v17381_v52 = vpop.f32.mrf.mxu0  ;;  %v22785_v54 = vld [vmem:[#allocation217_spill] sm:$0xff]  ;;  %v22826_v0 = vld [vmem:[#allocation187_spill] sm:$0xff] }
 0x284   : > { %10614 = vmatpush1.bf16.msra.mxu1 %v22781_v38  ;;  %22783 = vst [vmem:[#allocation31_spill] sm:$0xff] %v17376_v36  ;;  %vm6807_vm12 = vcmp.gt.f32.partialorder %v6743_v7, 0.0  ;;  %v6871_v60 = vmul.f32 0.2, %v6743_v7  ;;  %13699 = vmatpush1.bf16.msk.msra.mxu0 %vm17253_vm10, %v22784_v32  ;;  %v13513_v38 = vpack.c.bf16 %v6418_v12, %v6410_v48  ;;  %v22786_v55 = vld [vmem:[#allocation213_spill] sm:$0xff]  ;;  %v17396_v51 = vpop.f32.mrf.mxu1  ;;  %v22790_v12 = vld [vmem:[#allocation274_spill] sm:$0xff]  ;;  %v22827_v6 = vpack.c.bf16 %v22825_v20, %v22826_v0 }
 0x285   : > { %v22787_v22 = vpack.c.bf16 %v22785_v54, %v22786_v55  ;;  %v17394_v43 = vpop.f32.mrf.mxu0  ;;  %22789 = vst [vmem:[#allocation323_spill] sm:$0xff] %v17396_v51  ;;  %v22791_v32 = vld [vmem:[#allocation273_spill] sm:$0xff]  ;;  %v7163_v54 = vadd.f32 %v22782_v8, %v17220_v40  ;;  %v22793_v55 = vld [vmem:[#allocation215_spill] sm:$0xff]  ;;  %vm7225_vm6 = vcmp.gt.f32.partialorder %v7161_v63, 0.0  ;;  %v22832_v20 = vld [vmem:[#allocation128_spill] sm:$0xff] }
 0x286   : > { %v17392_v3 = vsel %vm6807_vm12, %v6743_v7, %v6871_v60  ;;  %10615 = vmatprep.subr.bf16.mxu1 %v13513_v38  ;;  %v22792_v18 = vpack.c.bf16 %v22790_v12, %v22791_v32  ;;  %v6394_v7 = vsel %vm6266_vm1, %v22772_v37, %v6330_v10  ;;  %v6402_v60 = vsel %vm6274_vm13, %v6210_v46, %v6338_v58  ;;  %v22796_v12 = vld [vmem:[#allocation209_spill] sm:$0xff]  ;;  %v22905_v51 = vld [vmem:[#allocation72_spill] sm:$0xff] }
 0x287   : > { %13702 = vmatprep.subr.msk.bf16.mxu0 %vm17227_vm9, %v22787_v22  ;;  %22788 = vst [vmem:[#allocation231_spill] sm:$0xff] %v17392_v3  ;;  %v7289_v38 = vmul.f32 0.2, %v7161_v63  ;;  %v22794_v22 = vld [vmem:[#allocation211_spill] sm:$0xff]  ;;  %v13505_v48 = vpack.c.bf16 %v6402_v60, %v6394_v7  ;;  %v17414_v21 = vpop.f32.mrf.mxu0  ;;  %vm7227_vm14 = vcmp.gt.f32.partialorder %v7163_v54, 0.0  ;;  %v22797_v32 = vld [vmem:[#allocation205_spill] sm:$0xff]  ;;  %v7169_v37 = vadd.f32 %v22761_v27, %v17265_v26 }
 0x288   : > { %10616 = vmatpush1.bf16.msra.mxu1 %v22792_v18  ;;  %v22795_v41 = vpack.c.bf16 %v22793_v55, %v22794_v22  ;;  %v17416_v18 = vpop.f32.mrf.mxu1  ;;  %v7291_v40 = vmul.f32 0.2, %v7163_v54  ;;  %v22798_v3 = vpack.c.bf16 %v22796_v12, %v22797_v32  ;;  %v7171_v46 = vadd.f32 %v22761_v27, %v17267_v34  ;;  %v22801_v7 = vld [vmem:[#allocation265_spill] sm:$0xff]  ;;  %v22804_v26 = vld [vmem:[#allocation143_spill] sm:$0xff] }
 0x289   : > { %10617 = vmatprep.subr.bf16.mxu1 %v13505_v48  ;;  %v17427_v10 = vpop.f32.mrf.mxu0  ;;  %vm7233_vm0 = vcmp.gt.f32.partialorder %v7169_v37, 0.0  ;;  %v7297_v55 = vmul.f32 0.2, %v7169_v37  ;;  %v5170_v12 = vadd.f32 %v22771_v45, %v22804_v26  ;;  %v22806_v32 = vld [vmem:[#allocation207_spill] sm:$0xff]  ;;  %v5138_v0 = vadd.f32 %v14555_v28, %v22832_v20 }
 0x28a   : > { %13705 = vmatpush2.bf16.msk.msra.mxu0 %vm17253_vm10, %v22795_v41  ;;  %v17429_v58 = vpop.f32.mrf.mxu1  ;;  %v22800_v41 = vld [vmem:[#allocation266_spill] sm:$0xff]  ;;  %vm7235_vm11 = vcmp.gt.f32.partialorder %v7171_v46, 0.0  ;;  %v17438_v34 = vsel %vm7227_vm14, %v7163_v54, %v7291_v40  ;;  %v7299_v48 = vmul.f32 0.2, %v7171_v46  ;;  %v22808_v59 = vpack.c.bf16 %v22806_v32, %v22807_v1 }
 0x28b   : > { %13708 = vmatprep.subr.msk.bf16.mxu0 %vm17227_vm9, %v22798_v3  ;;  %22799 = vst [vmem:[#allocation25_spill] sm:$0xff] %v17429_v58  ;;  %v22802_v60 = vpack.c.bf16 %v22800_v41, %v22801_v7  ;;  %v22803_v3 = vld [vmem:[#allocation139_spill] sm:$0xff]  ;;  %22805 = vst [vmem:[#allocation23_spill] sm:$0xff] %v17438_v34  ;;  %v17445_v41 = vpop.f32.mrf.mxu0  ;;  %v17447_v7 = vsel %vm7225_vm6, %v7161_v63, %v7289_v38  ;;  %v7177_v54 = vadd.f32 %v14523_v17, %v17307_v2  ;;  %v22823_v34 = vld [vmem:[#allocation134_spill] sm:$0xff] }
 0x28c   : > { %v5162_v22 = vadd.f32 %v22759_v9, %v22803_v3  ;;  %22809 = vst [vmem:[#allocation286_spill] sm:$0xff] %v17447_v7  ;;  %v22812_v3 = vld [vmem:[#allocation197_spill] sm:$0xff]  ;;  %v7179_v1 = vadd.f32 %v14523_v17, %v17309_v24  ;;  %v17460_v40 = vpop.f32.mrf.mxu1  ;;  %v17464_v63 = vsel %vm7235_vm11, %v7171_v46, %v7299_v48  ;;  %v22816_v2 = vld [vmem:[#allocation199_spill] sm:$0xff]  ;;  %v5298_v32 = vmul.f32 0.2, %v5170_v12 }
 0x28d   : > { %10618 = vmatpush1.bf16.msra.mxu1 %v22802_v60  ;;  %v17449_v60 = vsel %vm7233_vm0, %v7169_v37, %v7297_v55  ;;  %v22813_v13 = vpack.c.bf16 %v22811_v39, %v22812_v3  ;;  %22814 = vst [vmem:[#allocation26_spill] sm:$0xff] %v17464_v63  ;;  %v17466_v38 = vpop.f32.mrf.mxu0  ;;  %v22817_v55 = vld [vmem:[#allocation195_spill] sm:$0xff]  ;;  %v7305_v46 = vmul.f32 0.2, %v7177_v54  ;;  %v22819_v3 = vld [vmem:[#allocation193_spill] sm:$0xff]  ;;  %vm5234_vm4 = vcmp.gt.f32.partialorder %v5170_v12, 0.0 }
 0x28e   : > { %13711 = vmatpush2.bf16.msk.msra.mxu0 %vm17253_vm10, %v22808_v59  ;;  %22810 = vst [vmem:[#allocation285_spill] sm:$0xff] %v17449_v60  ;;  %v17470_v37 = vpop.f32.mrf.mxu1  ;;  %vm5226_vm3 = vcmp.gt.f32.partialorder %v5162_v22, 0.0  ;;  %v22818_v26 = vpack.c.bf16 %v22816_v2, %v22817_v55  ;;  %v7307_v48 = vmul.f32 0.2, %v7179_v1  ;;  %v22820_v59 = vld [vmem:[#allocation189_spill] sm:$0xff]  ;;  %vm7241_vm1 = vcmp.gt.f32.partialorder %v7177_v54, 0.0 }
 0x28f   : > { %13714 = vmatprep.subr.msk.bf16.mxu0 %vm17227_vm9, %v22813_v13  ;;  %22815 = vst [vmem:[#allocation322_spill] sm:$0xff] %v17470_v37  ;;  %v5290_v13 = vmul.f32 0.2, %v5162_v22  ;;  %v17477_v24 = vpop.f32.mrf.mxu0  ;;  %v22821_v44 = vpack.c.bf16 %v22819_v3, %v22820_v59  ;;  %vm7243_vm13 = vcmp.gt.f32.partialorder %v7179_v1, 0.0  ;;  %v7185_v2 = vadd.f32 %v14555_v28, %v17342_v49 }
 0x290   : > { %v17486_v55 = vpop.f32.mrf.mxu1  ;;  %v5154_v63 = vadd.f32 %v22744_v61, %v22823_v34  ;;  %v5130_v59 = vadd.f32 %v14523_v17, %v22824_v19  ;;  %v17505_v36 = vsel %vm7243_vm13, %v7179_v1, %v7307_v48  ;;  %v5362_v19 = vsel %vm5234_vm4, %v5170_v12, %v5298_v32  ;;  %v22835_v48 = vld [vmem:[#allocation159_spill] sm:$0xff] }
 0x291   : > { %vm7249_vm5 = vcmp.gt.f32.partialorder %v7185_v2, 0.0  ;;  %v7313_v3 = vmul.f32 0.2, %v7185_v2  ;;  %v17501_v49 = vpop.f32.mrf.mxu0  ;;  %22829 = vst [vmem:[#allocation17_spill] sm:$0xff] %v17505_v36  ;;  %v5354_v34 = vsel %vm5226_vm3, %v5162_v22, %v5290_v13  ;;  %v7195_v12 = vadd.f32 %v14505_v11, %v17383_v31 }
 0x292   : > { %13717 = vmatpush2.bf16.msk.msra.mxu0 %vm17253_vm10, %v22818_v26  ;;  %v22822_v26 = vld [vmem:[#allocation131_spill] sm:$0xff]  ;;  %v13465_v42 = vpack.c.bf16 %v5362_v19, %v5354_v34  ;;  %v17511_v37 = vpop.f32.mrf.mxu1  ;;  %v5282_v58 = vmul.f32 0.2, %v5154_v63  ;;  %vm5218_vm6 = vcmp.gt.f32.partialorder %v5154_v63, 0.0  ;;  %v7193_v32 = vadd.f32 %v14505_v11, %v17381_v52 }
 0x293   : > { %13720 = vmatprep.subr.msk.bf16.mxu0 %vm17227_vm9, %v22821_v44  ;;  %v5146_v39 = vadd.f32 %v14505_v11, %v22822_v26  ;;  %v7187_v44 = vadd.f32 %v14555_v28, %v17344_v47  ;;  %v17503_v26 = vsel %vm7241_vm1, %v7177_v54, %v7305_v46  ;;  %v17509_v15 = vsel %vm7249_vm5, %v7185_v2, %v7313_v3  ;;  %v17521_v1 = vpop.f32.mrf.mxu0  ;;  %v22834_v46 = vld [vmem:[#allocation160_spill] sm:$0xff]  ;;  %v22837_v3 = vld [vmem:[#allocation115_spill] sm:$0xff] }
 0x294   : > { %22828 = vst [vmem:[#allocation20_spill] sm:$0xff] %v17503_v26  ;;  %22830 = vst [vmem:[#allocation280_spill] sm:$0xff] %v17509_v15  ;;  %v22836_v2 = vpack.c.bf16 %v22834_v46, %v22835_v48  ;;  %v14066_v34 = vld [vmem:[%s21793_s3 + $0xc] ss:$20 sps:$4 sm:$0xff]   ;;  %v5258_v19 = vmul.f32 0.2, %v5130_v59  ;;  %v5346_v20 = vsel %vm5218_vm6, %v5154_v63, %v5282_v58  ;;  %v7201_v36 = vadd.f32 %v22744_v61, %v17414_v21 }
 0x295   : > { %vm7251_vm12 = vcmp.gt.f32.partialorder %v7187_v44, 0.0  ;;  %v7315_v47 = vmul.f32 0.2, %v7187_v44  ;;  %22831 = vst [vmem:[#allocation279_spill] sm:$0xff] %v17511_v37  ;;  %vm5210_vm14 = vcmp.gt.f32.partialorder %v5146_v39, 0.0  ;;  %v17536_v31 = vpop.f32.mrf.mxu0  ;;  %vm5194_vm0 = vcmp.gt.f32.partialorder %v5130_v59, 0.0  ;;  %10635 = vmatprep.mubr.bf16.mxu1 %v14066_v34 }
 0x296   : > { %13723 = vmatpush2.bf16.msk.msra.mxu0 %vm17253_vm10, %v22827_v6  ;;  %v5274_v6 = vmul.f32 0.2, %v5146_v39  ;;  %22838 = vst [vmem:[#allocation217_spill] sm:$0xff] %v17536_v31  ;;  %vm5202_vm11 = vcmp.gt.f32.partialorder %v5138_v0, 0.0  ;;  %v7323_v46 = vmul.f32 0.2, %v7195_v12  ;;  %v7203_v58 = vadd.f32 %v22744_v61, %v17416_v18 }
 0x297   : > { %v17517_v22 = vsel %vm7251_vm12, %v7187_v44, %v7315_v47  ;;  %10554 = vmatprep.subr.bf16.mxu0 %v13465_v42  ;;  %v5114_v42 = vadd.f32 %v22782_v8, %v22837_v3  ;;  %v17534_v44 = vpop.f32.mrf.mxu1  ;;  %v5266_v47 = vmul.f32 0.2, %v5138_v0  ;;  %v17543_v13 = vpop.f32.mrf.mxu0  ;;  %v22840_v3 = vld [vmem:[#allocation119_spill] sm:$0xff]  ;;  %v7321_v31 = vmul.f32 0.2, %v7193_v32 }
 0x298   : > { %22833 = vst [vmem:[#allocation19_spill] sm:$0xff] %v17517_v22  ;;  %v5338_v52 = vsel %vm5210_vm14, %v5146_v39, %v5274_v6  ;;  %v5122_v54 = vadd.f32 %v22761_v27, %v22840_v3  ;;  %vm7259_vm3 = vcmp.gt.f32.partialorder %v7195_v12, 0.0  ;;  %vm7257_vm4 = vcmp.gt.f32.partialorder %v7193_v32, 0.0  ;;  %v22842_v34 = vld [vmem:[#allocation151_spill] sm:$0xff] }
 0x299   : > { %v13457_v48 = vpack.c.bf16 %v5346_v20, %v5338_v52  ;;  %v17553_v39 = vpop.f32.mrf.mxu0  ;;  %vm7265_vm1 = vcmp.gt.f32.partialorder %v7201_v36, 0.0  ;;  %v7329_v6 = vmul.f32 0.2, %v7201_v36  ;;  %v22843_v52 = vld [vmem:[#allocation150_spill] sm:$0xff]  ;;  %v5322_v3 = vsel %vm5194_vm0, %v5130_v59, %v5258_v19  ;;  %v22939_v26 = vld [vmem:[#allocation99_spill] sm:$0xff] }
 0x29a   : > { %13726 = vmatpush2.bf16.msk.msra.mxu0 %vm16979_vm8, %v22836_v2  ;;  %v17541_v2 = vpop.f32.mrf.mxu1  ;;  %22841 = vst [vmem:[#allocation274_spill] sm:$0xff] %v17553_v39  ;;  %v22844_v20 = vpack.c.bf16 %v22842_v34, %v22843_v52  ;;  %v5330_v21 = vsel %vm5202_vm11, %v5138_v0, %v5266_v47  ;;  %vm7267_vm13 = vcmp.gt.f32.partialorder %v7203_v58, 0.0  ;;  %v7331_v18 = vmul.f32 0.2, %v7203_v58 }
 0x29b   : > { %22839 = vst [vmem:[#allocation213_spill] sm:$0xff] %v17541_v2  ;;  %10556 = vmatprep.subr.bf16.mxu0 %v13457_v48  ;;  %v17562_v48 = vsel %vm7259_vm3, %v7195_v12, %v7323_v46  ;;  %v13449_v2 = vpack.c.bf16 %v5330_v21, %v5322_v3  ;;  %v17566_v39 = vpop.f32.mrf.mxu0  ;;  %v5242_v37 = vmul.f32 0.2, %v5114_v42  ;;  %v5250_v35 = vmul.f32 0.2, %v5122_v54 }
 0x29c   : > { %v17551_v63 = vpop.f32.mrf.mxu1  ;;  %22845 = vst [vmem:[#allocation273_spill] sm:$0xff] %v17562_v48  ;;  %v17569_v34 = vsel %vm7257_vm4, %v7193_v32, %v7321_v31  ;;  %v17571_v52 = vsel %vm7265_vm1, %v7201_v36, %v7329_v6  ;;  %vm5178_vm5 = vcmp.gt.f32.partialorder %v5114_v42, 0.0  ;;  %vm5186_vm12 = vcmp.gt.f32.partialorder %v5122_v54, 0.0  ;;  %v22851_v36 = vld [vmem:[#allocation144_spill] sm:$0xff]  ;;  %v22852_v31 = vld [vmem:[#allocation142_spill] sm:$0xff] }
 0x29d   : > { %22847 = vst [vmem:[#allocation211_spill] sm:$0xff] %v17569_v34  ;;  %22848 = vst [vmem:[#allocation209_spill] sm:$0xff] %v17571_v52  ;;  %v17575_v0 = vsel %vm7267_vm13, %v7203_v58, %v7331_v18  ;;  %v17579_v19 = vpop.f32.mrf.mxu0  ;;  %v7211_v32 = vadd.f32 %v22759_v9, %v17460_v40  ;;  %v22853_v46 = vpack.c.bf16 %v22851_v36, %v22852_v31 }
 0x29e   : > { %13729 = vmatpush2.bf16.msk.msra.mxu0 %vm16979_vm8, %v22844_v20  ;;  %v17564_v22 = vpop.f32.mrf.mxu1  ;;  %22849 = vst [vmem:[#allocation205_spill] sm:$0xff] %v17575_v0  ;;  %22850 = vst [vmem:[#allocation266_spill] sm:$0xff] %v17579_v19  ;;  %v7209_v58 = vadd.f32 %v22759_v9, %v17445_v41  ;;  %v5306_v20 = vsel %vm5178_vm5, %v5114_v42, %v5242_v37  ;;  %v5314_v3 = vsel %vm5186_vm12, %v5122_v54, %v5250_v35  ;;  %v22857_v35 = vld [vmem:[#allocation136_spill] sm:$0xff]  ;;  %v22858_v37 = vld [vmem:[#allocation135_spill] sm:$0xff] }
 0x29f   : > { %22846 = vst [vmem:[#allocation215_spill] sm:$0xff] %v17564_v22  ;;  %10558 = vmatprep.subr.bf16.mxu0 %v13449_v2  ;;  %v17594_v6 = vpop.f32.mrf.mxu0  ;;  %v13441_v21 = vpack.c.bf16 %v5314_v3, %v5306_v20  ;;  %v7339_v40 = vmul.f32 0.2, %v7211_v32  ;;  %vm7275_vm14 = vcmp.gt.f32.partialorder %v7211_v32, 0.0  ;;  %v7217_v36 = vadd.f32 %v22771_v45, %v17477_v24 }
 0x2a0   : > { %v17577_v12 = vpop.f32.mrf.mxu1  ;;  %v7337_v59 = vmul.f32 0.2, %v7209_v58  ;;  %v7219_v41 = vadd.f32 %v22771_v45, %v17486_v55  ;;  %vm7273_vm6 = vcmp.gt.f32.partialorder %v7209_v58, 0.0  ;;  %v22859_v54 = vpack.c.bf16 %v22857_v35, %v22858_v37 }
 0x2a1   : > { %v17598_v47 = vpop.f32.mrf.mxu0  ;;  %vm7281_vm0 = vcmp.gt.f32.partialorder %v7217_v36, 0.0  ;;  %v7345_v42 = vmul.f32 0.2, %v7217_v36  ;;  %v17617_v24 = vsel %vm7275_vm14, %v7211_v32, %v7339_v40  ;;  %v7165_v62 = vadd.f32 %v22782_v8, %v17521_v1  ;;  %v14067_v1 = vld [vmem:[%s21793_s3] ss:$20 sps:$4 sm:$0xff]  }
 0x2a2   : > { %13732 = vmatpush2.bf16.msk.msra.mxu0 %vm16979_vm8, %v22853_v46  ;;  %v17592_v2 = vpop.f32.mrf.mxu1  ;;  %22855 = vst [vmem:[#allocation139_spill] sm:$0xff] %v17598_v47  ;;  %22861 = vst [vmem:[#allocation203_spill] sm:$0xff] %v17617_v24  ;;  %vm7283_vm11 = vcmp.gt.f32.partialorder %v7219_v41, 0.0  ;;  %v7347_v55 = vmul.f32 0.2, %v7219_v41  ;;  %v17621_v22 = vsel %vm7273_vm6, %v7209_v58, %v7337_v59  ;;  %v22889_v24 = vld [vmem:[#allocation55_spill] sm:$0xff] }
 0x2a3   : > { %22854 = vst [vmem:[#allocation265_spill] sm:$0xff] %v17592_v2  ;;  %10560 = vmatprep.subr.bf16.mxu0 %v13441_v21  ;;  %v17606_v46 = vpop.f32.mrf.mxu0  ;;  %v7167_v21 = vadd.f32 %v22782_v8, %v17534_v44  ;;  %22862 = vst [vmem:[#allocation201_spill] sm:$0xff] %v17621_v22  ;;  %v14069_v58 = vld [vmem:[%s21793_s3 + $0x4] ss:$20 sps:$4 sm:$0xff]   ;;  %vm7229_vm3 = vcmp.gt.f32.partialorder %v7165_v62, 0.0 }
 0x2a4   : > { %v17596_v18 = vpop.f32.mrf.mxu1  ;;  %v17633_v40 = vsel %vm7283_vm11, %v7219_v41, %v7347_v55  ;;  %v7173_v41 = vadd.f32 %v22761_v27, %v17543_v13  ;;  %v7175_v55 = vadd.f32 %v22761_v27, %v17551_v63  ;;  %10562 = vmatprep.mubr.bf16.mxu0 %v14069_v58 }
 0x2a5   : > { %v17615_v3 = vpop.f32.mrf.mxu0  ;;  %22865 = vst [vmem:[#allocation195_spill] sm:$0xff] %v17633_v40 }
 0x2a6   : > { %v17604_v31 = vpop.f32.mrf.mxu1  ;;  %13735 = vmatpush2.bf16.msk.msra.mxu0 %vm16979_vm8, %v22859_v54  ;;  %22860 = vst [vmem:[#allocation207_spill] sm:$0xff] %v17615_v3  ;;  %vm7231_vm8 = vcmp.gt.f32.partialorder %v7167_v21, 0.0  ;;  %vm7237_vm4 = vcmp.gt.f32.partialorder %v7173_v41, 0.0  ;;  %vm7239_vm1 = vcmp.gt.f32.partialorder %v7175_v55, 0.0  ;;  %v7303_v13 = vmul.f32 0.2, %v7175_v55 }
 0x2a7   : > { %22856 = vst [vmem:[#allocation143_spill] sm:$0xff] %v17604_v31  ;;  %v17623_v31 = vsel %vm7281_vm0, %v7217_v36, %v7345_v42  ;;  %v17629_v37 = vpop.f32.mrf.mxu0  ;;  %v7295_v36 = vmul.f32 0.2, %v7167_v21  ;;  %v7293_v42 = vmul.f32 0.2, %v7165_v62 }
 0x2a8   : > { %v17613_v20 = vpop.f32.mrf.mxu1  ;;  %22863 = vst [vmem:[#allocation197_spill] sm:$0xff] %v17623_v31 }
 0x2a9   : > { %v17639_v59 = vpop.f32.mrf.mxu0  ;;  %10563 = vmatmul.mubr.bf16.vlgmr.msra.gmra.mxu0 %v14067_v1  ;;  %v17659_v47 = vsel %vm7231_vm8, %v7167_v21, %v7295_v36  ;;  %v17661_v3 = vsel %vm7229_vm3, %v7165_v62, %v7293_v42  ;;  %v14070_v1 = vld [vmem:[%s21793_s3 + $0x2c] ss:$20 sps:$4 sm:$0xff]   ;;  %v7181_v21 = vadd.f32 %v14523_v17, %v17566_v39  ;;  %v7183_v62 = vadd.f32 %v14523_v17, %v17577_v12 }
 0x2aa   : > { %v17627_v35 = vpop.f32.mrf.mxu1  ;;  %22866 = vst [vmem:[#allocation193_spill] sm:$0xff] %v17639_v59  ;;  %22869 = vst [vmem:[#allocation134_spill] sm:$0xff] %v17659_v47  ;;  %v17672_v59 = vsel %vm7239_vm1, %v7175_v55, %v7303_v13  ;;  %10572 = vmatprep.mubr.bf16.mxu0 %v14070_v1  ;;  %v7189_v39 = vadd.f32 %v14555_v28, %v17594_v6  ;;  %v7191_v12 = vadd.f32 %v14555_v28, %v17596_v18 }
 0x2ab   : > { %22864 = vst [vmem:[#allocation199_spill] sm:$0xff] %v17627_v35  ;;  %v17653_v32 = vpop.f32.mrf.mxu0  ;;  %v7301_v35 = vmul.f32 0.2, %v7173_v41  ;;  %22870 = vst [vmem:[#allocation123_spill] sm:$0xff] %v17661_v3  ;;  %v7309_v55 = vmul.f32 0.2, %v7181_v21  ;;  %v7197_v18 = vadd.f32 %v14505_v11, %v17606_v46 }
 0x2ac   : > { %v17637_v44 = vpop.f32.mrf.mxu1  ;;  %22873 = vst [vmem:[#allocation128_spill] sm:$0xff] %v17672_v59  ;;  %vm7247_vm13 = vcmp.gt.f32.partialorder %v7183_v62, 0.0  ;;  %vm7245_vm5 = vcmp.gt.f32.partialorder %v7181_v21, 0.0  ;;  %vm7253_vm12 = vcmp.gt.f32.partialorder %v7189_v39, 0.0  ;;  %v7317_v36 = vmul.f32 0.2, %v7189_v39 }
 0x2ad   : > { %v17657_v19 = vpop.f32.mrf.mxu0  ;;  %v17663_v63 = vsel %vm7237_vm4, %v7173_v41, %v7301_v35  ;;  %v14072_v35 = vld [vmem:[%s21793_s3 + $0x28] ss:$20 sps:$4 sm:$0xff]   ;;  %v7311_v41 = vmul.f32 0.2, %v7183_v62  ;;  %vm7255_vm14 = vcmp.gt.f32.partialorder %v7191_v12, 0.0  ;;  %v17700_v6 = vsel %vm7245_vm5, %v7181_v21, %v7309_v55 }
 0x2ae   : > { %v17651_v54 = vpop.f32.mrf.mxu1  ;;  %22868 = vst [vmem:[#allocation131_spill] sm:$0xff] %v17657_v19  ;;  %22871 = vst [vmem:[#allocation191_spill] sm:$0xff] %v17663_v63  ;;  %v7319_v1 = vmul.f32 0.2, %v7191_v12  ;;  %v17702_v3 = vsel %vm7253_vm12, %v7189_v39, %v7317_v36  ;;  %v7325_v55 = vmul.f32 0.2, %v7197_v18 }
 0x2af   : > { %22867 = vst [vmem:[#allocation189_spill] sm:$0xff] %v17651_v54  ;;  %v17683_v42 = vpop.f32.mrf.mxu0  ;;  %v17693_v47 = vsel %vm7247_vm13, %v7183_v62, %v7311_v41  ;;  %22877 = vst [vmem:[#allocation119_spill] sm:$0xff] %v17700_v6  ;;  %vm7261_vm6 = vcmp.gt.f32.partialorder %v7197_v18, 0.0 }
 0x2b0   : > { %v17655_v2 = vpop.f32.mrf.mxu1  ;;  %22875 = vst [vmem:[#allocation159_spill] sm:$0xff] %v17693_v47  ;;  %22878 = vst [vmem:[#allocation151_spill] sm:$0xff] %v17702_v3  ;;  %v17711_v41 = vsel %vm7255_vm14, %v7191_v12, %v7319_v1  ;;  %v7205_v12 = vadd.f32 %v22744_v61, %v17629_v37  ;;  %v14081_v37 = vld [vmem:[%s21793_s3 + $0x78] ss:$20 sps:$4 sm:$0xff]  }
 0x2b1   : > { %10573 = vmatmul.mubr.bf16.gmra.mxu0 %v14072_v35  ;;  %v17691_v13 = vpop.f32.mrf.mxu0  ;;  %v14075_v35 = vld [vmem:[%s21793_s3 + $0x50] ss:$20 sps:$4 sm:$0xff]   ;;  %22879 = vst [vmem:[#allocation150_spill] sm:$0xff] %v17711_v41  ;;  %v17734_v41 = vsel %vm7261_vm6, %v7197_v18, %v7325_v55  ;;  %v7213_v55 = vadd.f32 %v22759_v9, %v17653_v32 }
 0x2b2   : > { %v17665_v54 = vpop.f32.mrf.mxu1  ;;  %22874 = vst [vmem:[#allocation160_spill] sm:$0xff] %v17691_v13  ;;  %vm7269_vm11 = vcmp.gt.f32.partialorder %v7205_v12, 0.0  ;;  %22881 = vst [vmem:[#allocation142_spill] sm:$0xff] %v17734_v41 }
 0x2b3   : > { %22872 = vst [vmem:[#allocation187_spill] sm:$0xff] %v17665_v54  ;;  %v14073_v54 = vld [vmem:[%s21793_s3 + $0x54] ss:$20 sps:$4 sm:$0xff]   ;;  %v7341_v32 = vmul.f32 0.2, %v7213_v55  ;;  %vm7277_vm4 = vcmp.gt.f32.partialorder %v7213_v55, 0.0 }
 0x2b4   : > { %v17685_v58 = vpop.f32.mrf.mxu1  ;;  %10582 = vmatprep.mubr.bf16.mxu0 %v14073_v54  ;;  %v7207_v54 = vadd.f32 %v22744_v61, %v17637_v44 }
 0x2b6   : > { %v17695_v59 = vpop.f32.mrf.mxu1  ;;  %vm7271_vm8 = vcmp.gt.f32.partialorder %v7207_v54, 0.0  ;;  %v7335_v19 = vmul.f32 0.2, %v7207_v54 }
 0x2b7   : > { %22876 = vst [vmem:[#allocation115_spill] sm:$0xff] %v17695_v59  ;;  %v7199_v59 = vadd.f32 %v14505_v11, %v17613_v20  ;;  %v7333_v20 = vmul.f32 0.2, %v7205_v12 }
 0x2b8   : > { %v17749_v18 = vsel %vm7271_vm8, %v7207_v54, %v7335_v19  ;;  %v7223_v54 = vadd.f32 %v22771_v45, %v17685_v58  ;;  %v22891_v58 = vld [vmem:[#allocation59_spill] sm:$0xff] }
 0x2b9   : > { %10583 = vmatmul.mubr.bf16.gmra.mxu0 %v14075_v35  ;;  %v7327_v39 = vmul.f32 0.2, %v7199_v59  ;;  %vm7263_vm0 = vcmp.gt.f32.partialorder %v7199_v59, 0.0  ;;  %v14079_v35 = vld [vmem:[%s21793_s3 + $0x7c] ss:$20 sps:$4 sm:$0xff]   ;;  %v17741_v3 = vsel %vm7269_vm11, %v7205_v12, %v7333_v20  ;;  %22885 = vst [vmem:[#allocation348_spill] sm:$0xff] %v17749_v18  ;;  %v17786_v40 = vadd.f32 %v22761_v27, %v22891_v58 }
 0x2ba   : > { %v3404_v36 = vpop.f32.mrf.mxu1  ;;  %22883 = vst [vmem:[#allocation135_spill] sm:$0xff] %v17741_v3  ;;  %10592 = vmatprep.mubr.bf16.mxu0 %v14079_v35  ;;  %vm7287_vm13 = vcmp.gt.f32.partialorder %v7223_v54, 0.0  ;;  %v17825_v58 = vadd.f32 %v22744_v61, %v22905_v51 }
 0x2bb   : > { %v17739_v6 = vsel %vm7263_vm0, %v7199_v59, %v7327_v39  ;;  %v7215_v59 = vadd.f32 %v22759_v9, %v17655_v2  ;;  %v7221_v2 = vadd.f32 %v22771_v45, %v17683_v42  ;;  %v17782_v42 = vadd.f32 %v22782_v8, %v22889_v24  ;;  %22892 = vst [vmem:[#allocation59_spill] sm:$0xff] %v17786_v40  ;;  %v22898_v24 = vld [vmem:[#allocation64_spill] sm:$0xff] }
 0x2bc   : > { %v17715_v63 = vpop.f32.mrf.mxu0  ;;  %v17723_v1 = vpop.f32.mrf.mxu1  ;;  %22882 = vst [vmem:[#allocation136_spill] sm:$0xff] %v17739_v6  ;;  %v7351_v6 = vmul.f32 0.2, %v7223_v54  ;;  %22906 = vst [vmem:[#allocation72_spill] sm:$0xff] %v17825_v58 }
 0x2bd   : > { %22880 = vst [vmem:[#allocation144_spill] sm:$0xff] %v17723_v1  ;;  %vm7279_vm3 = vcmp.gt.f32.partialorder %v7215_v59, 0.0  ;;  %v7343_v19 = vmul.f32 0.2, %v7215_v59  ;;  %vm7285_vm1 = vcmp.gt.f32.partialorder %v7221_v2, 0.0  ;;  %22890 = vst [vmem:[#allocation55_spill] sm:$0xff] %v17782_v42  ;;  %v17804_v1 = vadd.f32 %v14555_v28, %v22898_v24 }
 0x2be   : > { %v17719_v46 = vpop.f32.mrf.mxu0  ;;  %v3408_v21 = vpop.f32.mrf.mxu1  ;;  %v7349_v20 = vmul.f32 0.2, %v7221_v2  ;;  %v17821_v24 = vmul.f32 0.2, %v17782_v42  ;;  %v17879_v42 = vmul.f32 0.2, %v17825_v58 }
 0x2bf   : > { %22899 = vst [vmem:[#allocation64_spill] sm:$0xff] %v17804_v1 }
 0x2c0   : > { %v17725_v62 = vpop.f32.mrf.mxu0  ;;  %v17743_v44 = vpop.f32.mrf.mxu1  ;;  %22904 = vst [vmem:[#allocation356_spill] sm:$0xff] %v17821_v24  ;;  %v22921_v24 = vld [vmem:[#allocation86_spill] sm:$0xff]  ;;  %22927 = vst [vmem:[#allocation363_spill] sm:$0xff] %v17879_v42 }
 0x2c1   : > { %22884 = vst [vmem:[#allocation347_spill] sm:$0xff] %v17743_v44  ;;  %10593 = vmatmul.mubr.bf16.gmra.mxu0 %v14081_v37  ;;  %v17774_v37 = vsel %vm7279_vm3, %v7215_v59, %v7343_v19  ;;  %v17792_v19 = vsel %vm7277_vm4, %v7213_v55, %v7341_v32  ;;  %v17796_v44 = vsel %vm7287_vm13, %v7223_v54, %v7351_v6 }
 0x2c2   : > { %v17729_v47 = vpop.f32.mrf.mxu0  ;;  %v17755_v39 = vpop.f32.mrf.mxu1  ;;  %10708 = vmatprep.mubr.bf16.mxu0 %v22365_v56  ;;  %22887 = vst [vmem:[#allocation350_spill] sm:$0xff] %v17774_v37  ;;  %v22893_v56 = vld [vmem:[#allocation63_spill] sm:$0xff]  ;;  %22895 = vst [vmem:[#allocation352_spill] sm:$0xff] %v17792_v19  ;;  %v7707_v55 = vadd.f32 %v22782_v8, %v3404_v36  ;;  %v22907_v37 = vld [vmem:[#allocation77_spill] sm:$0xff]  ;;  %v7715_v19 = vadd.f32 %v22761_v27, %v3408_v21  ;;  %v17866_v54 = vadd.f32 %v22761_v27, %v22921_v24 }
 0x2c3   : > { %v17790_v59 = vadd.f32 %v14523_v17, %v22893_v56  ;;  %22897 = vst [vmem:[#allocation354_spill] sm:$0xff] %v17796_v44  ;;  %v17829_v36 = vadd.f32 %v22759_v9, %v22907_v37  ;;  %v17847_v37 = vmul.f32 0.2, %v17804_v1  ;;  %v22917_v21 = vld [vmem:[#allocation84_spill] sm:$0xff] }
 0x2c4   : > { %v17745_v13 = vpop.f32.mrf.mxu0  ;;  %v17761_v35 = vpop.f32.mrf.mxu1  ;;  %v7835_v56 = vmul.f32 0.2, %v7707_v55  ;;  %vm7771_vm5 = vcmp.gt.f32.partialorder %v7707_v55, 0.0  ;;  %v17858_v4 = vadd.f32 %v22782_v8, %v22917_v21  ;;  %22922 = vst [vmem:[#allocation86_spill] sm:$0xff] %v17866_v54  ;;  %vm7779_vm12 = vcmp.gt.f32.partialorder %v7715_v19, 0.0 }
 0x2c5   : > { %22886 = vst [vmem:[#allocation349_spill] sm:$0xff] %v17761_v35  ;;  %22894 = vst [vmem:[#allocation63_spill] sm:$0xff] %v17790_v59  ;;  %v17794_v35 = vsel %vm7285_vm1, %v7221_v2, %v7349_v20  ;;  %v22900_v20 = vld [vmem:[#allocation71_spill] sm:$0xff]  ;;  %v17844_v51 = vmul.f32 0.2, %v17790_v59 }
 0x2c6   : > { %v17757_v12 = vpop.f32.mrf.mxu0  ;;  %v17770_v41 = vpop.f32.mrf.mxu1  ;;  %22896 = vst [vmem:[#allocation353_spill] sm:$0xff] %v17794_v35  ;;  %v17813_v6 = vadd.f32 %v14505_v11, %v22900_v20  ;;  %22908 = vst [vmem:[#allocation77_spill] sm:$0xff] %v17829_v36  ;;  %v22909_v20 = vld [vmem:[#allocation78_spill] sm:$0xff]  ;;  %v7843_v21 = vmul.f32 0.2, %v7715_v19 }
 0x2c7   : > { %v17833_v44 = vadd.f32 %v22771_v45, %v22909_v20  ;;  %22912 = vst [vmem:[#allocation358_spill] sm:$0xff] %v17844_v51  ;;  %22913 = vst [vmem:[#allocation359_spill] sm:$0xff] %v17847_v37  ;;  %v17851_v20 = vadd.f32 %v22782_v8, %v22914_v23  ;;  %v22924_v23 = vld [vmem:[#allocation91_spill] sm:$0xff] }
 0x2c8   : > { %v17763_v48 = vpop.f32.mrf.mxu0  ;;  %v17776_v18 = vpop.f32.mrf.mxu1  ;;  %22901 = vst [vmem:[#allocation71_spill] sm:$0xff] %v17813_v6  ;;  %v17854_v33 = vmul.f32 0.2, %v17813_v6  ;;  %22918 = vst [vmem:[#allocation84_spill] sm:$0xff] %v17858_v4  ;;  %v17902_v1 = vsel %vm7779_vm12, %v7715_v19, %v7843_v21  ;;  %v17927_v21 = vmul.f32 0.2, %v17866_v54 }
 0x2c9   : > { %22888 = vst [vmem:[#allocation351_spill] sm:$0xff] %v17776_v18  ;;  %22910 = vst [vmem:[#allocation78_spill] sm:$0xff] %v17833_v44  ;;  %v17885_v24 = vmul.f32 0.2, %v17833_v44  ;;  %v22952_v54 = vld [vmem:[#allocation107_spill] sm:$0xff] }
 0x2ca   : > { %v17772_v3 = vpop.f32.mrf.mxu0  ;;  %v17798_v18 = vpop.f32.mrf.mxu1  ;;  %22915 = vst [vmem:[#allocation83_spill] sm:$0xff] %v17851_v20  ;;  %22916 = vst [vmem:[#allocation360_spill] sm:$0xff] %v17854_v33  ;;  %v17876_v33 = vsel %vm7771_vm5, %v7707_v55, %v7835_v56  ;;  %v17896_v56 = vmul.f32 0.2, %v17851_v20  ;;  %v22933_v55 = vld [vmem:[#allocation93_spill] sm:$0xff]  ;;  %v17915_v20 = vadd.f32 %v14505_v11, %v22939_v26 }
 0x2cb   : > { %22926 = vst [vmem:[#allocation362_spill] sm:$0xff] %v17876_v33  ;;  %22929 = vst [vmem:[#allocation365_spill] sm:$0xff] %v17885_v24  ;;  %v17900_v42 = vadd.f32 %v14555_v28, %v22933_v55  ;;  %v7723_v24 = vadd.f32 %v14523_v17, %v17755_v39  ;;  %v22948_v55 = vld [vmem:[#allocation102_spill] sm:$0xff] }
 0x2cc   : > { %v17778_v0 = vpop.f32.mrf.mxu0  ;;  %v17815_v32 = vpop.f32.mrf.mxu1  ;;  %22932 = vst [vmem:[#allocation366_spill] sm:$0xff] %v17896_v56  ;;  %22935 = vst [vmem:[#allocation367_spill] sm:$0xff] %v17902_v1  ;;  %v17941_v33 = vadd.f32 %v22744_v61, %v22948_v55  ;;  %v22950_v1 = vld [vmem:[#allocation104_spill] sm:$0xff] }
 0x2cd   : > { %22902 = vst [vmem:[#allocation355_spill] sm:$0xff] %v17815_v32  ;;  %v17841_v32 = vmul.f32 0.2, %v17786_v40  ;;  %v17874_v40 = vadd.f32 %v14523_v17, %v22924_v23  ;;  %22934 = vst [vmem:[#allocation93_spill] sm:$0xff] %v17900_v42  ;;  %v7851_v55 = vmul.f32 0.2, %v7723_v24 }
 0x2ce   : > { %v17800_v5 = vpop.f32.mrf.mxu0  ;;  %v17836_v50 = vpop.f32.mrf.mxu1  ;;  %22940 = vst [vmem:[#allocation99_spill] sm:$0xff] %v17915_v20  ;;  %22943 = vst [vmem:[#allocation371_spill] sm:$0xff] %v17927_v21  ;;  %v17949_v21 = vadd.f32 %v22759_v9, %v22952_v54  ;;  %v17968_v54 = vmul.f32 0.2, %v17915_v20  ;;  %vm7787_vm14 = vcmp.gt.f32.partialorder %v7723_v24, 0.0 }
 0x2cf   : > { %22911 = vst [vmem:[#allocation357_spill] sm:$0xff] %v17841_v32  ;;  %v17862_v32 = vadd.f32 %v22761_v27, %v22919_v25  ;;  %22925 = vst [vmem:[#allocation91_spill] sm:$0xff] %v17874_v40  ;;  %v17882_v25 = vmul.f32 0.2, %v17829_v36 }
 0x2d0   : > { %v17817_v2 = vpop.f32.mrf.mxu0  ;;  %v17868_v37 = vpop.f32.mrf.mxu1  ;;  %22949 = vst [vmem:[#allocation102_spill] sm:$0xff] %v17941_v33  ;;  %22953 = vst [vmem:[#allocation107_spill] sm:$0xff] %v17949_v21 }
 0x2d1   : > { %22920 = vst [vmem:[#allocation85_spill] sm:$0xff] %v17862_v32  ;;  %22923 = vst [vmem:[#allocation361_spill] sm:$0xff] %v17868_v37  ;;  %v22930_v37 = vld [vmem:[#allocation92_spill] sm:$0xff]  ;;  %v17924_v39 = vmul.f32 0.2, %v17862_v32 }
 0x2d2   : > { %v17838_v35 = vpop.f32.mrf.mxu0  ;;  %22928 = vst [vmem:[#allocation364_spill] sm:$0xff] %v17882_v25  ;;  %v17889_v7 = vadd.f32 %v14523_v17, %v22930_v37  ;;  %v17891_v60 = vpop.f32.mrf.mxu1  ;;  %v17907_v25 = vmul.f32 0.2, %v17858_v4  ;;  %v22937_v37 = vld [vmem:[#allocation95_spill] sm:$0xff]  ;;  %22958 = vst [vmem:[#allocation376_spill] sm:$0xff] %v17968_v54 }
 0x2d3   : > { %v17911_v59 = vadd.f32 %v14555_v28, %v22937_v37  ;;  %22942 = vst [vmem:[#allocation370_spill] sm:$0xff] %v17924_v39  ;;  %v17930_v37 = vmul.f32 0.2, %v17874_v40  ;;  %v17945_v39 = vadd.f32 %v22744_v61, %v22950_v1  ;;  %v7731_v1 = vadd.f32 %v14555_v28, %v17770_v41 }
 0x2d4   : > { %v17870_v51 = vpop.f32.mrf.mxu0  ;;  %22931 = vst [vmem:[#allocation92_spill] sm:$0xff] %v17889_v7  ;;  %22936 = vst [vmem:[#allocation368_spill] sm:$0xff] %v17907_v25  ;;  %v17919_v56 = vpop.f32.mrf.mxu1  ;;  %v22945_v25 = vld [vmem:[#allocation100_spill] sm:$0xff]  ;;  %v17937_v4 = vmul.f32 0.2, %v17889_v7 }
 0x2d5   : > { %22938 = vst [vmem:[#allocation95_spill] sm:$0xff] %v17911_v59  ;;  %22941 = vst [vmem:[#allocation369_spill] sm:$0xff] %v17919_v56  ;;  %v17934_v26 = vadd.f32 %v14505_v11, %v22945_v25  ;;  %v17956_v25 = vmul.f32 0.2, %v17900_v42  ;;  %v17965_v40 = vmul.f32 0.2, %v17911_v59  ;;  %v7218_v42 = vadd.f32 %v22771_v45, %v17501_v49 }
 0x2d6   : > { %v17893_v23 = vpop.f32.mrf.mxu0  ;;  %22944 = vst [vmem:[#allocation372_spill] sm:$0xff] %v17930_v37  ;;  %22947 = vst [vmem:[#allocation373_spill] sm:$0xff] %v17937_v4  ;;  %v17951_v37 = vpop.f32.mrf.mxu1  ;;  %v22955_v4 = vld [vmem:[#allocation108_spill] sm:$0xff]  ;;  %v22959_v56 = vld [vmem:[#allocation110_spill] sm:$0xff]  ;;  %vm7795_vm6 = vcmp.gt.f32.partialorder %v7731_v1, 0.0  ;;  %v17999_v49 = vsel %vm7787_vm14, %v7723_v24, %v7851_v55  ;;  %v18018_v24 = vadd.f32 %v22782_v8, %v17243_v16  ;;  %v18038_v16 = vadd.f32 %v22761_v27, %v17289_v29 }
 0x2d7   : > { %22946 = vst [vmem:[#allocation100_spill] sm:$0xff] %v17934_v26  ;;  %22951 = vst [vmem:[#allocation104_spill] sm:$0xff] %v17945_v39  ;;  %v17960_v7 = vadd.f32 %v22759_v9, %v22955_v4  ;;  %v17972_v15 = vadd.f32 %v22771_v45, %v22959_v56  ;;  %v17977_v4 = vmul.f32 0.2, %v17934_v26  ;;  %v7859_v41 = vmul.f32 0.2, %v7731_v1 }
 0x2d8   : > { %v17921_v19 = vpop.f32.mrf.mxu0  ;;  %22954 = vst [vmem:[#allocation374_spill] sm:$0xff] %v17956_v25  ;;  %22957 = vst [vmem:[#allocation375_spill] sm:$0xff] %v17965_v40  ;;  %v17974_v25 = vpop.f32.mrf.mxu1  ;;  %v17984_v40 = vmul.f32 0.2, %v17941_v33  ;;  %v17987_v54 = vmul.f32 0.2, %v17945_v39  ;;  %v17994_v26 = vadd.f32 %v14523_v17, %v17328_v53  ;;  %v18057_v29 = vadd.f32 %v22761_v27, %v17725_v62 }
 0x2d9   : > { %22956 = vst [vmem:[#allocation108_spill] sm:$0xff] %v17960_v7  ;;  %22960 = vst [vmem:[#allocation110_spill] sm:$0xff] %v17972_v15  ;;  %v17990_v56 = vmul.f32 0.2, %v17949_v21  ;;  %v18001_v20 = vsel %vm7795_vm6, %v7731_v1, %v7859_v41  ;;  %v22972_v39 = vld [vmem:[#allocation111_spill] sm:$0xff]  ;;  %v18028_v1 = vadd.f32 %v22759_v9, %v17466_v38  ;;  %vm7282_vm0 = vcmp.gt.f32.partialorder %v7218_v42, 0.0 }
 0x2da   : > { %v17953_v32 = vpop.f32.mrf.mxu0  ;;  %22961 = vst [vmem:[#allocation377_spill] sm:$0xff] %v17974_v25  ;;  %22962 = vst [vmem:[#allocation378_spill] sm:$0xff] %v17977_v4  ;;  %v17997_v4 = vmul.f32 0.2, %v17960_v7  ;;  %v18005_v33 = vpop.f32.mrf.mxu1  ;;  %v18014_v53 = vadd.f32 %v22771_v45, %v22972_v39  ;;  %v7346_v41 = vmul.f32 0.2, %v7218_v42  ;;  %v7747_v39 = vadd.f32 %v22744_v61, %v17836_v50 }
 0x2db   : > { %22963 = vst [vmem:[#allocation379_spill] sm:$0xff] %v17984_v40  ;;  %22964 = vst [vmem:[#allocation380_spill] sm:$0xff] %v17987_v54  ;;  %v7739_v40 = vadd.f32 %v14505_v11, %v17798_v18  ;;  %v18024_v18 = vadd.f32 %v14505_v11, %v17394_v43  ;;  %v18041_v55 = vmul.f32 0.2, %v17994_v26  ;;  %v18045_v38 = vadd.f32 %v14555_v28, %v17358_v14 }
 0x2dc   : > { %v17981_v59 = vpop.f32.mrf.mxu0  ;;  %22965 = vst [vmem:[#allocation381_spill] sm:$0xff] %v17990_v56  ;;  %22966 = vst [vmem:[#allocation382_spill] sm:$0xff] %v17994_v26  ;;  %v18010_v56 = vmul.f32 0.2, %v17972_v15  ;;  %v18049_v50 = vadd.f32 %v22782_v8, %v17719_v46  ;;  %vm7811_vm8 = vcmp.gt.f32.partialorder %v7747_v39, 0.0  ;;  %v18065_v14 = vadd.f32 %v14523_v17, %v17757_v12 }
 0x2dd   : > { %22967 = vst [vmem:[#allocation383_spill] sm:$0xff] %v17997_v4  ;;  %22968 = vst [vmem:[#allocation384_spill] sm:$0xff] %v17999_v49  ;;  %v7867_v43 = vmul.f32 0.2, %v7739_v40  ;;  %vm7803_vm11 = vcmp.gt.f32.partialorder %v7739_v40, 0.0  ;;  %v18072_v7 = vadd.f32 %v22744_v61, %v17427_v10  ;;  %v18077_v62 = vsel %vm7282_vm0, %v7218_v42, %v7346_v41 }
 0x2de   : > { %22969 = vst [vmem:[#allocation385_spill] sm:$0xff] %v18001_v20  ;;  %v18007_v54 = vpop.f32.mrf.mxu0  ;;  %22971 = vst [vmem:[#allocation387_spill] sm:$0xff] %v18010_v56  ;;  %v18061_v20 = vadd.f32 %v22761_v27, %v17729_v47  ;;  %v7875_v46 = vmul.f32 0.2, %v7747_v39  ;;  %v18068_v56 = vmul.f32 0.2, %v18024_v18  ;;  %v18085_v12 = vadd.f32 %v14555_v28, %v17763_v48 }
 0x2df   : > { %22970 = vst [vmem:[#allocation386_spill] sm:$0xff] %v18007_v54  ;;  %22973 = vst [vmem:[#allocation111_spill] sm:$0xff] %v18014_v53  ;;  %v18032_v54 = vpop.f32.mrf.mxu1  ;;  %v18087_v21 = vsel %vm7803_vm11, %v7739_v40, %v7867_v43  ;;  %v7755_v10 = vadd.f32 %v22759_v9, %v17891_v60  ;;  %v18095_v53 = vadd.f32 %v22782_v8, %v17715_v63  ;;  %v18098_v42 = vmul.f32 0.2, %v18049_v50 }
 0x2e0   : > { %22974 = vst [vmem:[#allocation388_spill] sm:$0xff] %v18018_v24  ;;  %22975 = vst [vmem:[#allocation389_spill] sm:$0xff] %v18032_v54  ;;  %v18034_v4 = vpop.f32.mrf.mxu0  ;;  %v18089_v25 = vsel %vm7811_vm8, %v7747_v39, %v7875_v46  ;;  %v18102_v41 = vadd.f32 %v14505_v11, %v17778_v0  ;;  %v18111_v60 = vmul.f32 0.2, %v18057_v29  ;;  %v18114_v63 = vmul.f32 0.2, %v18061_v20 }
 0x2e1   : > { %22976 = vst [vmem:[#allocation390_spill] sm:$0xff] %v18038_v16  ;;  %22977 = vst [vmem:[#allocation391_spill] sm:$0xff] %v18041_v55  ;;  %v18051_v54 = vpop.f32.mrf.mxu1  ;;  %v18118_v43 = vadd.f32 %v14523_v17, %v17745_v13  ;;  %v18121_v0 = vmul.f32 0.2, %v18065_v14  ;;  %v18125_v46 = vadd.f32 %v14555_v28, %v17772_v3  ;;  %v18129_v48 = vadd.f32 %v14505_v11, %v17800_v5 }
 0x2e2   : > { %v18053_v49 = vpop.f32.mrf.mxu0  ;;  %22980 = vst [vmem:[#allocation394_spill] sm:$0xff] %v18087_v21  ;;  %22981 = vst [vmem:[#allocation395_spill] sm:$0xff] %v18089_v25  ;;  %v18144_v25 = vmul.f32 0.2, %v18085_v12  ;;  %v18148_v3 = vadd.f32 %v22759_v9, %v17870_v51  ;;  %v7883_v5 = vmul.f32 0.2, %v7755_v10  ;;  %v7762_v6 = vadd.f32 %v22771_v45, %v17953_v32 }
 0x2e3   : > { %22978 = vst [vmem:[#allocation392_spill] sm:$0xff] %v18053_v49  ;;  %v18075_v49 = vmul.f32 0.2, %v18028_v1  ;;  %v18079_v15 = vpop.f32.mrf.mxu1  ;;  %v18153_v34 = vmul.f32 0.2, %v18102_v41  ;;  %vm7819_vm3 = vcmp.gt.f32.partialorder %v7755_v10, 0.0  ;;  %v7711_v30 = vadd.f32 %v22782_v8, %v18005_v33 }
 0x2e4   : > { %22979 = vst [vmem:[#allocation393_spill] sm:$0xff] %v18079_v15  ;;  %v18081_v47 = vpop.f32.mrf.mxu0  ;;  %v18133_v15 = vadd.f32 %v22744_v61, %v17817_v2  ;;  %v7763_v2 = vadd.f32 %v22771_v45, %v17951_v37  ;;  %v7709_v37 = vadd.f32 %v22782_v8, %v17981_v59  ;;  %v18169_v55 = vmul.f32 0.2, %v18129_v48 }
 0x2e5   : > { %v18106_v40 = vpop.f32.mrf.mxu1  ;;  %v7881_v32 = vmul.f32 0.2, %v18148_v3  ;;  %vm7826_vm11 = vcmp.gt.f32.partialorder %v7762_v6, 0.0  ;;  %v7839_v24 = vmul.f32 0.2, %v7711_v30  ;;  %vm7817_vm5 = vcmp.gt.f32.partialorder %v18148_v3, 0.0 }
 0x2e6   : > { %v18108_v39 = vpop.f32.mrf.mxu0  ;;  %vm7827_vm4 = vcmp.gt.f32.partialorder %v7763_v2, 0.0  ;;  %v7891_v51 = vmul.f32 0.2, %v7763_v2  ;;  %vm7809_vm13 = vcmp.gt.f32.partialorder %v18133_v15, 0.0  ;;  %vm7773_vm8 = vcmp.gt.f32.partialorder %v7709_v37, 0.0 }
 0x2e7   : > { %22982 = vst [vmem:[#allocation396_spill] sm:$0xff] %v18108_v39  ;;  %v18137_v39 = vadd.f32 %v22744_v61, %v17838_v35  ;;  %v18139_v13 = vpop.f32.mrf.mxu1  ;;  %v7754_v35 = vadd.f32 %v22759_v9, %v17893_v23  ;;  %v7873_v23 = vmul.f32 0.2, %v18133_v15  ;;  %vm7777_vm0 = vcmp.gt.f32.partialorder %v18057_v29, 0.0 }
 0x2e8   : > { %22983 = vst [vmem:[#allocation397_spill] sm:$0xff] %v18139_v13  ;;  %v18141_v21 = vpop.f32.mrf.mxu0  ;;  %v7761_v13 = vadd.f32 %v22771_v45, %v17921_v19  ;;  %v18180_v45 = vsel %vm7819_vm3, %v7755_v10, %v7883_v5  ;;  %v18182_v59 = vsel %vm7827_vm4, %v7763_v2, %v7891_v51  ;;  %v7890_v10 = vmul.f32 0.2, %v7762_v6 }
 0x2e9   : > { %v18159_v52 = vpop.f32.mrf.mxu1  ;;  %22986 = vst [vmem:[#allocation400_spill] sm:$0xff] %v18180_v45  ;;  %22987 = vst [vmem:[#allocation401_spill] sm:$0xff] %v18182_v59  ;;  %vm7818_vm14 = vcmp.gt.f32.partialorder %v7754_v35, 0.0  ;;  %v7837_v5 = vmul.f32 0.2, %v7709_v37  ;;  %v7719_v2 = vadd.f32 %v22761_v27, %v18051_v54  ;;  %vm7775_vm3 = vcmp.gt.f32.partialorder %v7711_v30, 0.0 }
 0x2ea   : > { %v18161_v58 = vpop.f32.mrf.mxu0  ;;  %v7889_v22 = vmul.f32 0.2, %v7761_v13  ;;  %vm7825_vm6 = vcmp.gt.f32.partialorder %v7761_v13, 0.0  ;;  %v7882_v33 = vmul.f32 0.2, %v7754_v35  ;;  %v7954_v36 = vsel %vm7826_vm11, %v7762_v6, %v7890_v10 }
 0x2eb   : > { %22984 = vst [vmem:[#allocation398_spill] sm:$0xff] %v18161_v58  ;;  %v18174_v19 = vpop.f32.mrf.mxu1  ;;  %vm7783_vm12 = vcmp.gt.f32.partialorder %v7719_v2, 0.0  ;;  %v7847_v45 = vmul.f32 0.2, %v7719_v2  ;;  %v7725_v26 = vadd.f32 %v14523_v17, %v18081_v47  ;;  %vm7770_vm1 = vcmp.gt.f32.partialorder %v18049_v50, 0.0 }
 0x2ec   : > { %22985 = vst [vmem:[#allocation399_spill] sm:$0xff] %v18174_v19  ;;  %v18176_v58 = vpop.f32.mrf.mxu0  ;;  %v7717_v19 = vadd.f32 %v22761_v27, %v18034_v4  ;;  %v7953_v54 = vsel %vm7825_vm6, %v7761_v13, %v7889_v22  ;;  %v18206_v27 = vsel %vm7773_vm8, %v7709_v37, %v7837_v5  ;;  %vm7778_vm6 = vcmp.gt.f32.partialorder %v18061_v20, 0.0 }
 0x2ed   : > { %v18195_v51 = vpop.f32.mrf.mxu1  ;;  %22990 = vst [vmem:[#allocation404_spill] sm:$0xff] %v18206_v27  ;;  %v18218_v22 = vsel %vm7775_vm3, %v7711_v30, %v7839_v24  ;;  %v18223_v37 = vsel %vm7783_vm12, %v7719_v2, %v7847_v45  ;;  %v7946_v6 = vsel %vm7818_vm14, %v7754_v35, %v7882_v33  ;;  %vm7801_vm8 = vcmp.gt.f32.partialorder %v18102_v41, 0.0 }
 0x2ee   : > { %v18191_v16 = vpop.f32.mrf.mxu0  ;;  %vm7781_vm4 = vcmp.gt.f32.partialorder %v7717_v19, 0.0  ;;  %v7845_v4 = vmul.f32 0.2, %v7717_v19  ;;  %22993 = vst [vmem:[#allocation407_spill] sm:$0xff] %v18218_v22  ;;  %22994 = vst [vmem:[#allocation408_spill] sm:$0xff] %v18223_v37  ;;  %v7945_v47 = vsel %vm7817_vm5, %v18148_v3, %v7881_v32  ;;  %v13625_v24 = vpack.c.bf16 %v7954_v36, %v7946_v6  ;;  %v23055_v37 = vld [vmem:[#allocation146_spill] sm:$0xff] }
 0x2ef   : > { %22988 = vst [vmem:[#allocation402_spill] sm:$0xff] %v18191_v16  ;;  %v7874_v16 = vmul.f32 0.2, %v18137_v39  ;;  %v18213_v8 = vpop.f32.mrf.mxu1  ;;  %vm7794_vm12 = vcmp.gt.f32.partialorder %v18125_v46, 0.0  ;;  %v7937_v45 = vsel %vm7809_vm13, %v18133_v15, %v7873_v23  ;;  %v13624_v35 = vpack.c.bf16 %v7953_v54, %v7945_v47 }
 0x2f0   : > { %v18198_v31 = vpop.f32.mrf.mxu0  ;;  %v18208_v44 = vsel %vm7781_vm4, %v7717_v19, %v7845_v4  ;;  %22992 = vst [vmem:[#allocation406_spill] sm:$0xff] %v18213_v8  ;;  %v7727_v10 = vadd.f32 %v14523_v17, %v18106_v40  ;;  %v7858_v3 = vmul.f32 0.2, %v18125_v46  ;;  %10619 = vmatprep.subr.bf16.mxu1 %v13625_v24  ;;  %v7853_v32 = vmul.f32 0.2, %v7725_v26 }
 0x2f1   : > { %22991 = vst [vmem:[#allocation405_spill] sm:$0xff] %v18208_v44  ;;  %vm22996_vm5 = vcmp.gt.f32.partialorder %v18129_v48, 0.0  ;;  %vm22997_vm14 = vcmp.gt.f32.partialorder %v18137_v39, 0.0  ;;  %v3574_v15 = vpop.f32.mrf.mxu1  ;;  %v7929_v40 = vsel %vm7801_vm8, %v18102_v41, %v18153_v34  ;;  %10620 = vmatpush2.bf16.msra.mxu1 %v13624_v35  ;;  %vm7789_vm13 = vcmp.gt.f32.partialorder %v7725_v26, 0.0  ;;  %v23071_v44 = vld [vmem:[#allocation156_spill] sm:$0xff] }
 0x2f2   : > { %v18203_v59 = vpop.f32.mrf.mxu0  ;;  %v7930_v36 = vsel %vm22996_vm5, %v18129_v48, %v18169_v55  ;;  %v7938_v2 = vsel %vm22997_vm14, %v18137_v39, %v7874_v16  ;;  %v7733_v33 = vadd.f32 %v14555_v28, %v18141_v21  ;;  %vm7785_vm4 = vcmp.gt.f32.partialorder %v18118_v43, 0.0 }
 0x2f3   : > { %22989 = vst [vmem:[#allocation403_spill] sm:$0xff] %v18203_v59  ;;  %v13617_v23 = vpack.c.bf16 %v7938_v2, %v7930_v36  ;;  %v7849_v55 = vmul.f32 0.2, %v18118_v43  ;;  %vm22998_vm5 = vcmp.gt.f32.partialorder %v18085_v12, 0.0  ;;  %v13616_v48 = vpack.c.bf16 %v7937_v45, %v7929_v40  ;;  %v18280_v6 = vpop.f32.mrf.mxu1  ;;  %v23083_v59 = vld [vmem:[#allocation163_spill] sm:$0xff] }
 0x2f4   : > { %v18226_v19 = vpop.f32.mrf.mxu0  ;;  %v7921_v16 = vsel %vm22998_vm5, %v18085_v12, %v18144_v25  ;;  %vm7258_vm8 = vcmp.gt.f32.partialorder %v18024_v18, 0.0  ;;  %v7855_v34 = vmul.f32 0.2, %v7727_v10  ;;  %vm7797_vm14 = vcmp.gt.f32.partialorder %v7733_v33, 0.0  ;;  %23002 = vst [vmem:[#allocation412_spill] sm:$0xff] %v18280_v6  ;;  %v23067_v6 = vld [vmem:[#allocation364_spill] sm:$0xff] }
 0x2f5   : > { %10621 = vmatprep.subr.bf16.mxu1 %v13617_v23  ;;  %v7861_v41 = vmul.f32 0.2, %v7733_v33  ;;  %v7735_v21 = vadd.f32 %v14555_v28, %v18159_v52  ;;  %v18271_v54 = vsel %vm7789_vm13, %v7725_v26, %v7853_v32  ;;  %vm7791_vm3 = vcmp.gt.f32.partialorder %v7727_v10, 0.0 }
 0x2f6   : > { %v18242_v5 = vpop.f32.mrf.mxu0  ;;  %23000 = vst [vmem:[#allocation411_spill] sm:$0xff] %v18271_v54  ;;  %vm23001_vm11 = vcmp.gt.f32.partialorder %v18065_v14, 0.0  ;;  %v7922_v12 = vsel %vm7794_vm12, %v18125_v46, %v7858_v3  ;;  %10622 = vmatpush2.bf16.msra.mxu1 %v13616_v48  ;;  %v7833_v45 = vmul.f32 0.2, %v18095_v53  ;;  %v7741_v46 = vadd.f32 %v14505_v11, %v18176_v58 }
 0x2f7   : > { %22995 = vst [vmem:[#allocation409_spill] sm:$0xff] %v18242_v5  ;;  %v7914_v25 = vsel %vm23001_vm11, %v18065_v14, %v18121_v0  ;;  %v18282_v47 = vsel %vm7797_vm14, %v7733_v33, %v7861_v41  ;;  %vm7799_vm5 = vcmp.gt.f32.partialorder %v7735_v21, 0.0  ;;  %v7863_v52 = vmul.f32 0.2, %v7735_v21 }
 0x2f8   : > { %v18258_v4 = vpop.f32.mrf.mxu0  ;;  %23003 = vst [vmem:[#allocation413_spill] sm:$0xff] %v18282_v47  ;;  %v13609_v24 = vpack.c.bf16 %v7922_v12, %v7914_v25  ;;  %v7913_v14 = vsel %vm7785_vm4, %v18118_v43, %v7849_v55  ;;  %v7905_v35 = vsel %vm7777_vm0, %v18057_v29, %v18111_v60  ;;  %v18299_v32 = vsel %vm7791_vm3, %v7727_v10, %v7855_v34  ;;  %v3580_v10 = vpop.f32.mrf.mxu1  ;;  %v23029_v43 = vld [vmem:[#allocation71_spill] sm:$0xff]  ;;  %v23073_v47 = vld [vmem:[#allocation158_spill] sm:$0xff] }
 0x2f9   : > { %v13608_v3 = vpack.c.bf16 %v7921_v16, %v7913_v14  ;;  %23004 = vst [vmem:[#allocation414_spill] sm:$0xff] %v18299_v32  ;;  %v18301_v36 = vsel %vm7799_vm5, %v7735_v21, %v7863_v52  ;;  %v7743_v58 = vadd.f32 %v14505_v11, %v18195_v51  ;;  %v7898_v29 = vsel %vm7770_vm1, %v18049_v50, %v18098_v42  ;;  %v23014_v14 = vld [vmem:[#allocation13_spill] sm:$0xff]  ;;  %v23036_v52 = vld [vmem:[#allocation132_spill] sm:$0xff] }
 0x2fa   : > { %v18269_v39 = vpop.f32.mrf.mxu0  ;;  %23005 = vst [vmem:[#allocation415_spill] sm:$0xff] %v18301_v36  ;;  %10623 = vmatprep.subr.bf16.mxu1 %v13609_v24  ;;  %v7906_v60 = vsel %vm7778_vm6, %v18061_v20, %v18114_v63  ;;  %vm7266_vm0 = vcmp.gt.f32.partialorder %v18072_v7, 0.0  ;;  %v7330_v40 = vmul.f32 0.2, %v18072_v7  ;;  %vm23006_vm11 = vcmp.gt.f32.partialorder %v18028_v1, 0.0  ;;  %v18334_v34 = vpop.f32.mrf.mxu1  ;;  %v23056_v36 = vld [vmem:[#allocation147_spill] sm:$0xff] }
 0x2fb   : > { %22999 = vst [vmem:[#allocation410_spill] sm:$0xff] %v18269_v39  ;;  %v7402_v51 = vsel %vm23006_vm11, %v18028_v1, %v18075_v49  ;;  %10624 = vmatpush2.bf16.msra.mxu1 %v13608_v3  ;;  %v13601_v23 = vpack.c.bf16 %v7906_v60, %v7898_v29  ;;  %vm23007_vm1 = vcmp.gt.f32.partialorder %v18095_v53, 0.0  ;;  %v7869_v42 = vmul.f32 0.2, %v7741_v46  ;;  %23008 = vst [vmem:[#allocation416_spill] sm:$0xff] %v18334_v34  ;;  %v23016_v29 = vld [vmem:[#allocation77_spill] sm:$0xff] }
 0x2fc   : > { %v18284_v26 = vpop.f32.mrf.mxu0  ;;  %v7897_v50 = vsel %vm23007_vm1, %v18095_v53, %v7833_v45  ;;  %v7749_v20 = vadd.f32 %v22744_v61, %v18198_v31  ;;  %v7751_v63 = vadd.f32 %v22744_v61, %v3574_v15  ;;  %v13737_v55 = vpack.c.bf16 %v18077_v62, %v7402_v51  ;;  %v23013_v45 = vld [vmem:[#allocation116_spill] sm:$0xff]  ;;  %v23017_v60 = vld [vmem:[#allocation78_spill] sm:$0xff]  ;;  %v23069_v34 = vld [vmem:[#allocation155_spill] sm:$0xff] }
 0x2fd   : > { %v13600_v16 = vpack.c.bf16 %v7905_v35, %v7897_v50  ;;  %vm7805_vm6 = vcmp.gt.f32.partialorder %v7741_v46, 0.0  ;;  %v7871_v48 = vmul.f32 0.2, %v7743_v58  ;;  %10625 = vmatprep.subr.bf16.mxu1 %v13601_v23  ;;  %vm7807_vm3 = vcmp.gt.f32.partialorder %v7743_v58, 0.0  ;;  %v23015_v35 = vld [vmem:[#allocation382_spill] sm:$0xff]  ;;  %v23019_v51 = vld [vmem:[#allocation16_spill] sm:$0xff] }
 0x2fe   : > { %v18303_v2 = vpop.f32.mrf.mxu0  ;;  %vm7813_vm12 = vcmp.gt.f32.partialorder %v7749_v20, 0.0  ;;  %v7877_v1 = vmul.f32 0.2, %v7749_v20  ;;  %vm7815_vm13 = vcmp.gt.f32.partialorder %v7751_v63, 0.0  ;;  %vm7250_vm4 = vcmp.gt.f32.partialorder %v18045_v38, 0.0  ;;  %v23021_v23 = vld [vmem:[#allocation388_spill] sm:$0xff] }
 0x2ff   : > { %v7314_v31 = vmul.f32 0.2, %v18045_v38  ;;  %v7394_v53 = vsel %vm7266_vm0, %v18072_v7, %v7330_v40  ;;  %10626 = vmatpush2.bf16.msra.mxu1 %v13600_v16  ;;  %v7879_v62 = vmul.f32 0.2, %v7751_v63  ;;  %v7386_v41 = vsel %vm7258_vm8, %v18024_v18, %v18068_v56  ;;  %v23018_v40 = vld [vmem:[#allocation122_spill] sm:$0xff] }
 0x300   : > { %v18323_v33 = vpop.f32.mrf.mxu0  ;;  %v18348_v21 = vsel %vm7805_vm6, %v7741_v46, %v7869_v42  ;;  %v18350_v25 = vsel %vm7813_vm12, %v7749_v20, %v7877_v1  ;;  %13738 = vmatprep.subr.msk.bf16.mxu1 %vm17227_vm9, %v13737_v55  ;;  %v7757_v7 = vadd.f32 %v22759_v9, %v18226_v19  ;;  %v18357_v12 = vsel %vm7807_vm3, %v7743_v58, %v7871_v48  ;;  %v3584_v58 = vpop.f32.mrf.mxu1  ;;  %v23022_v50 = vld [vmem:[#allocation390_spill] sm:$0xff]  ;;  %v23024_v55 = vld [vmem:[#allocation201_spill] sm:$0xff]  ;;  %v23093_v48 = vld [vmem:[#allocation164_spill] sm:$0xff] }
 0x301   : > { %23009 = vst [vmem:[#allocation417_spill] sm:$0xff] %v18348_v21  ;;  %23010 = vst [vmem:[#allocation418_spill] sm:$0xff] %v18350_v25  ;;  %v18361_v24 = vsel %vm7815_vm13, %v7751_v63, %v7879_v62  ;;  %v7759_v56 = vadd.f32 %v22759_v9, %v3580_v10  ;;  %v18368_v46 = vadd.f32 %v23014_v14, %v23013_v45  ;;  %vm7242_vm8 = vcmp.gt.f32.partialorder %v23015_v35, 0.0  ;;  %v23023_v63 = vld [vmem:[#allocation197_spill] sm:$0xff]  ;;  %v23076_v21 = vld [vmem:[#allocation286_spill] sm:$0xff] }
 0x302   : > { %v18332_v49 = vpop.f32.mrf.mxu0  ;;  %23011 = vst [vmem:[#allocation419_spill] sm:$0xff] %v18357_v12  ;;  %23012 = vst [vmem:[#allocation420_spill] sm:$0xff] %v18361_v24  ;;  %v13743_v3 = vpack.c.bf16 %v7394_v53, %v7386_v41  ;;  %vm4684_vm14 = vcmp.gt.f32.partialorder %v23016_v29, 0.0  ;;  %vm4692_vm5 = vcmp.gt.f32.partialorder %v23017_v60, 0.0  ;;  %v18377_v10 = vadd.f32 %v23019_v51, %v23018_v40  ;;  %v23027_v41 = vld [vmem:[#allocation6_spill] sm:$0xff]  ;;  %v23060_v24 = vld [vmem:[#allocation148_spill] sm:$0xff] }
 0x303   : > { %vm7226_vm0 = vcmp.gt.f32.partialorder %v23021_v23, 0.0  ;;  %v7298_v42 = vmul.f32 0.2, %v23022_v50  ;;  %v7378_v20 = vsel %vm7250_vm4, %v18045_v38, %v7314_v31  ;;  %v23025_v16 = vpack.c.bf16 %v23023_v63, %v23024_v55  ;;  %v23028_v38 = vld [vmem:[#allocation391_spill] sm:$0xff] }
 0x304   : > { %v18341_v15 = vpop.f32.mrf.mxu0  ;;  %23020 = vst [vmem:[#allocation116_spill] sm:$0xff] %v18377_v10  ;;  %v7290_v53 = vmul.f32 0.2, %v23021_v23  ;;  %vm7234_vm11 = vcmp.gt.f32.partialorder %v23022_v50, 0.0  ;;  %v7885_v62 = vmul.f32 0.2, %v7757_v7  ;;  %v7765_v45 = vadd.f32 %v23027_v41, %v18258_v4 }
 0x305   : > { %13741 = vmatpush2.bf16.msk.msra.mxu1 %vm17253_vm10, %v23025_v16  ;;  %v7370_v31 = vsel %vm7242_vm8, %v23015_v35, %v23028_v38  ;;  %vm7821_vm1 = vcmp.gt.f32.partialorder %v7757_v7, 0.0  ;;  %v7887_v40 = vmul.f32 0.2, %v7759_v56  ;;  %v7767_v63 = vadd.f32 %v23027_v41, %v3584_v58  ;;  %v23031_v4 = vld [vmem:[#allocation124_spill] sm:$0xff]  ;;  %v23032_v38 = vld [vmem:[#allocation209_spill] sm:$0xff]  ;;  %v23033_v58 = vld [vmem:[#allocation211_spill] sm:$0xff] }
 0x306   : > { %v18364_v18 = vpop.f32.mrf.mxu0  ;;  %13744 = vmatprep.subr.msk.bf16.mxu1 %vm17227_vm9, %v13743_v3  ;;  %v13749_v16 = vpack.c.bf16 %v7378_v20, %v7370_v31  ;;  %vm7823_vm6 = vcmp.gt.f32.partialorder %v7759_v56, 0.0  ;;  %vm7829_vm3 = vcmp.gt.f32.partialorder %v7765_v45, 0.0  ;;  %v7893_v30 = vmul.f32 0.2, %v7765_v45  ;;  %v23030_v3 = vld [vmem:[#allocation72_spill] sm:$0xff]  ;;  %v23035_v31 = vld [vmem:[#allocation130_spill] sm:$0xff] }
 0x307   : > { %vm4668_vm12 = vcmp.gt.f32.partialorder %v23029_v43, 0.0  ;;  %vm4676_vm13 = vcmp.gt.f32.partialorder %v23030_v3, 0.0  ;;  %v18408_v19 = vadd.f32 %v14523_v17, %v23031_v4  ;;  %v7362_v35 = vsel %vm7234_vm11, %v23022_v50, %v7298_v42  ;;  %v18433_v42 = vpop.f32.mrf.mxu1 }
 0x308   : > { %v18389_v1 = vpop.f32.mrf.mxu0  ;;  %v23034_v13 = vpack.c.bf16 %v23032_v38, %v23033_v58  ;;  %vm7831_vm4 = vcmp.gt.f32.partialorder %v7767_v63, 0.0  ;;  %v7895_v20 = vmul.f32 0.2, %v7767_v63  ;;  %v18420_v0 = vadd.f32 %v14555_v28, %v23035_v31  ;;  %23039 = vst [vmem:[#allocation78_spill] sm:$0xff] %v18433_v42  ;;  %v23068_v42 = vld [vmem:[#allocation365_spill] sm:$0xff] }
 0x309   : > { %v18424_v4 = vadd.f32 %v14505_v11, %v23036_v52  ;;  %v18427_v22 = vsel %vm7821_vm1, %v7757_v7, %v7885_v62  ;;  %v18429_v50 = vsel %vm7829_vm3, %v7765_v45, %v7893_v30  ;;  %v7354_v38 = vsel %vm7226_vm0, %v23021_v23, %v7290_v53  ;;  %v23042_v30 = vld [vmem:[#allocation137_spill] sm:$0xff]  ;;  %v23043_v45 = vld [vmem:[#allocation140_spill] sm:$0xff]  ;;  %v23044_v53 = vld [vmem:[#allocation111_spill] sm:$0xff] }
 0x30a   : > { %v18402_v55 = vpop.f32.mrf.mxu0  ;;  %13747 = vmatpush2.bf16.msk.msra.mxu1 %vm17253_vm10, %v23034_v13  ;;  %23037 = vst [vmem:[#allocation382_spill] sm:$0xff] %v18427_v22  ;;  %23038 = vst [vmem:[#allocation77_spill] sm:$0xff] %v18429_v50  ;;  %v18441_v58 = vsel %vm7823_vm6, %v7759_v56, %v7887_v40  ;;  %v18445_v52 = vsel %vm7831_vm4, %v7767_v63, %v7895_v20  ;;  %v18449_v62 = vadd.f32 %v22744_v61, %v23042_v30  ;;  %v23048_v20 = vld [vmem:[#allocation280_spill] sm:$0xff]  ;;  %v23079_v22 = vld [vmem:[#allocation59_spill] sm:$0xff] }
 0x30b   : > { %13750 = vmatprep.subr.msk.bf16.mxu1 %vm17227_vm9, %v13749_v16  ;;  %23040 = vst [vmem:[#allocation122_spill] sm:$0xff] %v18441_v58  ;;  %23041 = vst [vmem:[#allocation388_spill] sm:$0xff] %v18445_v52  ;;  %v18453_v16 = vadd.f32 %v22759_v9, %v23043_v45  ;;  %v13755_v31 = vpack.c.bf16 %v7362_v35, %v7354_v38  ;;  %v18458_v56 = vmul.f32 0.2, %v23044_v53  ;;  %v18461_v40 = vmul.f32 0.2, %v18368_v46 }
 0x30c   : > { %v18435_v13 = vpop.f32.mrf.mxu0  ;;  %v18464_v63 = vmul.f32 0.2, %v18377_v10  ;;  %v23049_v30 = vld [vmem:[#allocation20_spill] sm:$0xff]  ;;  %v23051_v45 = vld [vmem:[#allocation63_spill] sm:$0xff]  ;;  %v18474_v38 = vmul.f32 0.2, %v18408_v19  ;;  %v18481_v32 = vadd.f32 %v23027_v41, %v23055_v37  ;;  %v18498_v58 = vadd.f32 %v23014_v14, %v23060_v24 }
 0x30d   : > { %23045 = vst [vmem:[#allocation390_spill] sm:$0xff] %v18458_v56  ;;  %23046 = vst [vmem:[#allocation197_spill] sm:$0xff] %v18461_v40  ;;  %v23050_v7 = vpack.c.bf16 %v23048_v20, %v23049_v30  ;;  %vm4652_vm8 = vcmp.gt.f32.partialorder %v23051_v45, 0.0  ;;  %v23052_v35 = vld [vmem:[#allocation64_spill] sm:$0xff]  ;;  %v18477_v23 = vmul.f32 0.2, %v18420_v0  ;;  %v18485_v20 = vadd.f32 %v23014_v14, %v23056_v36  ;;  %v18487_v30 = vpop.f32.mrf.mxu1 }
 0x30e   : > { %23047 = vst [vmem:[#allocation201_spill] sm:$0xff] %v18464_v63  ;;  %vm4660_vm0 = vcmp.gt.f32.partialorder %v23052_v35, 0.0  ;;  %23053 = vst [vmem:[#allocation329_spill] sm:$0xff] %v18474_v38  ;;  %v18494_v12 = vmul.f32 0.2, %v18424_v4  ;;  %v23062_v37 = vld [vmem:[#allocation152_spill] sm:$0xff]  ;;  %v4812_v24 = vsel %vm4684_vm14, %v23016_v29, %v23067_v6  ;;  %v18527_v27 = vadd.f32 %v14523_v17, %v23069_v34 }
 0x30f   : > { %13753 = vmatpush2.bf16.msk.msra.mxu1 %vm17253_vm10, %v23050_v7  ;;  %23054 = vst [vmem:[#allocation391_spill] sm:$0xff] %v18477_v23  ;;  %23057 = vst [vmem:[#allocation71_spill] sm:$0xff] %v18485_v20  ;;  %v18491_v7 = vpop.f32.mrf.mxu0  ;;  %v18502_v52 = vadd.f32 %v23019_v51, %v23062_v37  ;;  %v23064_v36 = vld [vmem:[#allocation154_spill] sm:$0xff]  ;;  %v18509_v57 = vmul.f32 0.2, %v18449_v62  ;;  %v4820_v37 = vsel %vm4692_vm5, %v23017_v60, %v23068_v42  ;;  %v23075_v29 = vld [vmem:[#allocation285_spill] sm:$0xff] }
 0x310   : > { %23058 = vst [vmem:[#allocation72_spill] sm:$0xff] %v18487_v30  ;;  %13756 = vmatprep.subr.msk.bf16.mxu1 %vm17227_vm9, %v13755_v31  ;;  %23059 = vst [vmem:[#allocation124_spill] sm:$0xff] %v18494_v12  ;;  %v18506_v8 = vadd.f32 %v23019_v51, %v23064_v36  ;;  %v18512_v31 = vmul.f32 0.2, %v18453_v16  ;;  %v14064_v36 = vld [vmem:[%s21793_s3 + $0x8] ss:$20 sps:$4 sm:$0xff]   ;;  %v18531_v54 = vadd.f32 %v14523_v17, %v23071_v44 }
 0x311   : > { %23061 = vst [vmem:[#allocation209_spill] sm:$0xff] %v18498_v58  ;;  %23063 = vst [vmem:[#allocation211_spill] sm:$0xff] %v18502_v52  ;;  %v18535_v6 = vadd.f32 %v14555_v28, %v23073_v47  ;;  %v23077_v25 = vpack.c.bf16 %v23075_v29, %v23076_v21  ;;  %v13435_v60 = vpack.c.bf16 %v4820_v37, %v4812_v24  ;;  %v23078_v42 = vld [vmem:[#allocation55_spill] sm:$0xff]  ;;  %vm4644_vm14 = vcmp.gt.f32.partialorder %v23079_v22, 0.0  ;;  %v23081_v50 = vld [vmem:[#allocation162_spill] sm:$0xff]  ;;  %v18567_v37 = vpop.f32.mrf.mxu0 }
 0x312   : > { %23065 = vst [vmem:[#allocation130_spill] sm:$0xff] %v18506_v8  ;;  %23066 = vst [vmem:[#allocation132_spill] sm:$0xff] %v18509_v57  ;;  %vm4636_vm9 = vcmp.gt.f32.partialorder %v23078_v42, 0.0  ;;  %v18545_v34 = vmul.f32 0.2, %v18481_v32  ;;  %v18552_v47 = vadd.f32 %v14555_v28, %v23081_v50  ;;  %v18556_v21 = vadd.f32 %v14505_v11, %v23083_v59  ;;  %v23186_v38 = vld [vmem:[#allocation294_spill] sm:$0xff] }
 0x313   : > { %23070 = vst [vmem:[#allocation137_spill] sm:$0xff] %v18527_v27  ;;  %23072 = vst [vmem:[#allocation140_spill] sm:$0xff] %v18531_v54  ;;  %13759 = vmatpush2.bf16.msk.msra.mxu1 %vm17253_vm10, %v23077_v25  ;;  %v18548_v44 = vmul.f32 0.2, %v18485_v20  ;;  %v18558_v25 = vpop.f32.mrf.mxu1  ;;  %v23087_v24 = vmov 0  ;;  %v18583_v39 = vadd.f32 %v14505_v11, %v23093_v48  ;;  %v23097_v20 = vld [vmem:[#allocation169_spill] sm:$0xff] }
 0x314   : > { %23074 = vst [vmem:[#allocation280_spill] sm:$0xff] %v18535_v6  ;;  %23082 = vst [vmem:[#allocation63_spill] sm:$0xff] %v18552_v47  ;;  %v14076_v50 = vld [vmem:[%s21793_s3 + $0x34] ss:$20 sps:$4 sm:$0xff]   ;;  %v18573_v29 = vmul.f32 0.2, %v18498_v58  ;;  %10749 = vmatprep.subr.bf16.mxu1 %v13435_v60  ;;  %v18591_v53 = vadd.f32 %v22744_v61, %v23097_v20 }
 0x315   : > { %23080 = vst [vmem:[#allocation20_spill] sm:$0xff] %v18548_v44  ;;  %23084 = vst [vmem:[#allocation64_spill] sm:$0xff] %v18556_v21  ;;  %v18576_v59 = vmul.f32 0.2, %v18502_v52  ;;  %v18579_v5 = vmul.f32 0.2, %v18506_v8 }
 0x316   : > { %23085 = vst [vmem:[#allocation146_spill] sm:$0xff] %v18558_v25  ;;  %vm18563_vm10 = vmpackc.low %vm14592_vm2, %vm14592_vm2  ;;  %v23095_v44 = vld [vmem:[#allocation166_spill] sm:$0xff]  ;;  %10636 = vmatmul.mubr.bf16.vlgmr.msra.gmra.mxu1 %v14064_v36  ;;  %v18602_v60 = vmul.f32 0.2, %v18527_v27  ;;  %v18608_v20 = vmul.f32 0.2, %v18535_v6 }
 0x317   : > { %v23088_v24 = vsel %vm18563_vm10, 4294967295, %v23087_v24  ;;  %23090 = vst [vmem:[#allocation148_spill] sm:$0xff] %v18573_v29  ;;  %23091 = vst [vmem:[#allocation152_spill] sm:$0xff] %v18576_v59  ;;  %v18587_v56 = vadd.f32 %v22744_v61, %v23095_v44  ;;  %v23099_v29 = vld [vmem:[#allocation360_spill] sm:$0xff]  ;;  %v18605_v44 = vmul.f32 0.2, %v18531_v54  ;;  %v18629_v54 = vpop.f32.mrf.mxu1  ;;  %10645 = vmatprep.mubr.bf16.mxu1 %v14076_v50 }
 0x318   : > { %23089 = vst [vmem:[#allocation147_spill] sm:$0xff] %v23088_v24  ;;  %23092 = vst [vmem:[#allocation154_spill] sm:$0xff] %v18579_v5  ;;  %v4796_v59 = vsel %vm4668_vm12, %v23029_v43, %v23099_v29  ;;  %v23100_v5 = vld [vmem:[#allocation363_spill] sm:$0xff]  ;;  %v23104_v36 = vld [vmem:[#allocation98_spill] sm:$0xff]  ;;  %v18616_v29 = vmul.f32 0.2, %v18552_v47 }
 0x319   : > { %23094 = vst [vmem:[#allocation364_spill] sm:$0xff] %v18583_v39  ;;  %23096 = vst [vmem:[#allocation365_spill] sm:$0xff] %v18587_v56  ;;  %v4804_v48 = vsel %vm4676_vm13, %v23030_v3, %v23100_v5  ;;  %v23105_v8 = vld [vmem:[#allocation94_spill] sm:$0xff]  ;;  %v18619_v5 = vmul.f32 0.2, %v18556_v21  ;;  %v23109_v3 = vld [vmem:[#allocation171_spill] sm:$0xff] }
 0x31a   : > { %23098 = vst [vmem:[#allocation155_spill] sm:$0xff] %v18591_v53  ;;  %23101 = vst [vmem:[#allocation156_spill] sm:$0xff] %v18602_v60  ;;  %v23106_v58 = vpack.c.bf16 %v23104_v36, %v23105_v8  ;;  %v13427_v43 = vpack.c.bf16 %v4804_v48, %v4796_v59  ;;  %v18623_v60 = vadd.f32 %v22759_v9, %v23109_v3  ;;  %v18631_v8 = vpop.f32.mrf.mxu0  ;;  %v23114_v59 = vld [vmem:[#allocation175_spill] sm:$0xff]  ;;  %v23116_v36 = vld [vmem:[#allocation177_spill] sm:$0xff]  ;;  %v18652_v50 = vmul.f32 0.2, %v18591_v53 }
 0x31b   : > { %23102 = vst [vmem:[#allocation158_spill] sm:$0xff] %v18605_v44  ;;  %23103 = vst [vmem:[#allocation285_spill] sm:$0xff] %v18608_v20  ;;  %v23111_v44 = vld [vmem:[#allocation172_spill] sm:$0xff]  ;;  %v18638_v48 = vadd.f32 %v23027_v41, %v23114_v59  ;;  %v18642_v3 = vadd.f32 %v23027_v41, %v23116_v36  ;;  %v23124_v59 = vld [vmem:[#allocation237_spill] sm:$0xff] }
 0x31c   : > { %13762 = vmatpush1.bf16.msk.msra.mxu1 %vm18563_vm10, %v23106_v58  ;;  %23107 = vst [vmem:[#allocation286_spill] sm:$0xff] %v18616_v29  ;;  %23108 = vst [vmem:[#allocation55_spill] sm:$0xff] %v18619_v5  ;;  %v18627_v20 = vadd.f32 %v22759_v9, %v23111_v44  ;;  %v18634_v58 = vmul.f32 0.2, %v18583_v39  ;;  %v23118_v29 = vld [vmem:[#allocation228_spill] sm:$0xff]  ;;  %v18660_v39 = vadd.f32 %v14523_v17, %v23124_v59  ;;  %v23126_v36 = vld [vmem:[#allocation243_spill] sm:$0xff]  ;;  %v18701_v21 = vpop.f32.mrf.mxu0 }
 0x31d   : > { %23110 = vst [vmem:[#allocation59_spill] sm:$0xff] %v18623_v60  ;;  %23115 = vst [vmem:[#allocation14_spill] sm:$0xff] %v18638_v48  ;;  %v18646_v44 = vadd.f32 %v23014_v14, %v23118_v29  ;;  %10751 = vmatprep.subr.bf16.mxu1 %v13427_v43  ;;  %v18649_v5 = vmul.f32 0.2, %v18587_v56  ;;  %v14078_v29 = vld [vmem:[%s21793_s3 + $0x30] ss:$20 sps:$4 sm:$0xff]   ;;  %v18667_v43 = vadd.f32 %v14555_v28, %v23126_v36 }
 0x31e   : > { %23112 = vst [vmem:[#allocation162_spill] sm:$0xff] %v18627_v20  ;;  %23113 = vst [vmem:[#allocation163_spill] sm:$0xff] %v18634_v58  ;;  %v23122_v58 = vld [vmem:[#allocation233_spill] sm:$0xff]  ;;  %v23131_v52 = vld [vmem:[#allocation87_spill] sm:$0xff]  ;;  %v18690_v56 = vmul.f32 0.2, %v18623_v60  ;;  %10646 = vmatmul.mubr.bf16.gmra.mxu1 %v14078_v29 }
 0x31f   : > { %23117 = vst [vmem:[#allocation164_spill] sm:$0xff] %v18642_v3  ;;  %23119 = vst [vmem:[#allocation166_spill] sm:$0xff] %v18646_v44  ;;  %v18656_v47 = vadd.f32 %v23019_v51, %v23122_v58  ;;  %v23133_v59 = vld [vmem:[#allocation358_spill] sm:$0xff]  ;;  %v23134_v27 = vld [vmem:[#allocation359_spill] sm:$0xff] }
 0x320   : > { %23120 = vst [vmem:[#allocation169_spill] sm:$0xff] %v18649_v5  ;;  %23121 = vst [vmem:[#allocation360_spill] sm:$0xff] %v18652_v50  ;;  %v23128_v5 = vld [vmem:[#allocation247_spill] sm:$0xff]  ;;  %v23130_v50 = vld [vmem:[#allocation90_spill] sm:$0xff]  ;;  %v4780_v6 = vsel %vm4652_vm8, %v23051_v45, %v23133_v59  ;;  %v4788_v36 = vsel %vm4660_vm0, %v23052_v35, %v23134_v27  ;;  %v18699_v45 = vpop.f32.mrf.mxu1 }
 0x321   : > { %23123 = vst [vmem:[#allocation363_spill] sm:$0xff] %v18656_v47  ;;  %23125 = vst [vmem:[#allocation98_spill] sm:$0xff] %v18660_v39  ;;  %v18671_v53 = vadd.f32 %v14505_v11, %v23128_v5  ;;  %v23132_v58 = vpack.c.bf16 %v23130_v50, %v23131_v52  ;;  %v14082_v5 = vld [vmem:[%s21793_s3 + $0x5c] ss:$20 sps:$4 sm:$0xff]   ;;  %v18693_v52 = vmul.f32 0.2, %v18627_v20  ;;  %v13419_v59 = vpack.c.bf16 %v4788_v36, %v4780_v6 }
 0x322   : > { %23127 = vst [vmem:[#allocation94_spill] sm:$0xff] %v18667_v43  ;;  %23135 = vst [vmem:[#allocation172_spill] sm:$0xff] %v18690_v56  ;;  %v23137_v50 = vld [vmem:[#allocation252_spill] sm:$0xff]  ;;  %v23139_v27 = vld [vmem:[#allocation9_spill] sm:$0xff]  ;;  %v18710_v56 = vmul.f32 0.2, %v18638_v48  ;;  %10655 = vmatprep.mubr.bf16.mxu1 %v14082_v5 }
 0x323   : > { %23129 = vst [vmem:[#allocation171_spill] sm:$0xff] %v18671_v53  ;;  %13765 = vmatpush1.bf16.msk.msra.mxu1 %vm18563_vm10, %v23132_v58  ;;  %23136 = vst [vmem:[#allocation175_spill] sm:$0xff] %v18693_v52  ;;  %v18697_v58 = vadd.f32 %v22744_v61, %v23137_v50  ;;  %v23140_v35 = vand.u32 15, %v23139_v27  ;;  %v18713_v52 = vmul.f32 0.2, %v18642_v3  ;;  %v23146_v20 = vld [vmem:[#allocation255_spill] sm:$0xff] }
 0x324   : > { %23143 = vst [vmem:[#allocation228_spill] sm:$0xff] %v18710_v56  ;;  %v18716_v50 = vmul.f32 0.2, %v18646_v44  ;;  %v18720_v6 = vadd.f32 %v22759_v9, %v23146_v20  ;;  %v18723_v36 = vmul.f32 0.2, %v18656_v47  ;;  %v23152_v56 = vld [vmem:[#allocation263_spill] sm:$0xff]  ;;  %10753 = vmatprep.subr.bf16.mxu1 %v13419_v59 }
 0x325   : > { %23138 = vst [vmem:[#allocation177_spill] sm:$0xff] %v18697_v58  ;;  %vm18705_vm2 = vcmp.ne.s32.totalorder %v23140_v35, 0  ;;  %23144 = vst [vmem:[#allocation233_spill] sm:$0xff] %v18713_v52  ;;  %v18726_v27 = vmul.f32 0.2, %v18660_v39  ;;  %v23150_v35 = vld [vmem:[#allocation260_spill] sm:$0xff]  ;;  %v18734_v52 = vadd.f32 %v23014_v14, %v23152_v56 }
 0x326   : > { %23145 = vst [vmem:[#allocation237_spill] sm:$0xff] %v18716_v50  ;;  %23147 = vst [vmem:[#allocation243_spill] sm:$0xff] %v18720_v6  ;;  %v18730_v48 = vadd.f32 %v23027_v41, %v23150_v35  ;;  %v18737_v3 = vmul.f32 0.2, %v18667_v43  ;;  %v18740_v20 = vmul.f32 0.2, %v18671_v53 }
 0x327   : > { %23148 = vst [vmem:[#allocation247_spill] sm:$0xff] %v18723_v36  ;;  %23149 = vst [vmem:[#allocation90_spill] sm:$0xff] %v18726_v27  ;;  %v23156_v60 = vld [vmem:[#allocation82_spill] sm:$0xff]  ;;  %v23157_v36 = vld [vmem:[#allocation79_spill] sm:$0xff]  ;;  %v18756_v59 = vmul.f32 0.2, %v18697_v58 }
 0x328   : > { %23151 = vst [vmem:[#allocation87_spill] sm:$0xff] %v18730_v48  ;;  %23153 = vst [vmem:[#allocation358_spill] sm:$0xff] %v18734_v52  ;;  %v23158_v50 = vpack.c.bf16 %v23156_v60, %v23157_v36  ;;  %v23159_v35 = vld [vmem:[#allocation356_spill] sm:$0xff]  ;;  %v23160_v27 = vld [vmem:[#allocation357_spill] sm:$0xff]  ;;  %v18771_v40 = vmul.f32 0.2, %v18720_v6 }
 0x329   : > { %23154 = vst [vmem:[#allocation359_spill] sm:$0xff] %v18737_v3  ;;  %23155 = vst [vmem:[#allocation252_spill] sm:$0xff] %v18740_v20  ;;  %v4764_v56 = vsel %vm4636_vm9, %v23078_v42, %v23159_v35  ;;  %v4772_v29 = vsel %vm4644_vm14, %v23079_v22, %v23160_v27  ;;  %v23162_v3 = vld [vmem:[#allocation268_spill] sm:$0xff]  ;;  %v23164_v36 = vld [vmem:[#allocation271_spill] sm:$0xff]  ;;  %v18766_v20 = vpop.f32.mrf.mxu1  ;;  %v18768_v35 = vpop.f32.mrf.mxu0  ;;  %v18786_v47 = vmul.f32 0.2, %v18730_v48 }
 0x32a   : > { %13768 = vmatpush1.bf16.msk.msra.mxu1 %vm18563_vm10, %v23158_v50  ;;  %23161 = vst [vmem:[#allocation9_spill] sm:$0xff] %v18756_v59  ;;  %v18760_v60 = vadd.f32 %v23019_v51, %v23162_v3  ;;  %v18764_v50 = vadd.f32 %v14523_v17, %v23164_v36  ;;  %23166 = vst [vmem:[#allocation263_spill] sm:$0xff] %v18766_v20  ;;  %v13411_v42 = vpack.c.bf16 %v4772_v29, %v4764_v56  ;;  %v23168_v22 = vld [vmem:[#allocation272_spill] sm:$0xff]  ;;  %v23172_v59 = vld [vmem:[#allocation277_spill] sm:$0xff] }
 0x32b   : > { %23167 = vst [vmem:[#allocation82_spill] sm:$0xff] %v18771_v40  ;;  %v18775_v5 = vadd.f32 %v14523_v17, %v23168_v22  ;;  %v23170_v27 = vld [vmem:[#allocation276_spill] sm:$0xff]  ;;  %v18783_v36 = vadd.f32 %v14555_v28, %v23172_v59  ;;  %23174 = vst [vmem:[#allocation268_spill] sm:$0xff] %v18786_v47  ;;  %v18789_v56 = vmul.f32 0.2, %v18734_v52  ;;  %v23176_v29 = vld [vmem:[#allocation282_spill] sm:$0xff]  ;;  %v18836_v58 = vpop.f32.mrf.mxu1  ;;  %v3657_v57 = vpop.f32.mrf.mxu0 }
 0x32c   : > { %23163 = vst [vmem:[#allocation255_spill] sm:$0xff] %v18760_v60  ;;  %23165 = vst [vmem:[#allocation260_spill] sm:$0xff] %v18764_v50  ;;  %v18779_v3 = vadd.f32 %v14555_v28, %v23170_v27  ;;  %v18793_v40 = vadd.f32 %v14505_v11, %v23176_v29  ;;  %v23178_v22 = vld [vmem:[#allocation283_spill] sm:$0xff]  ;;  %10755 = vmatprep.subr.bf16.mxu1 %v13411_v42  ;;  %v23180_v27 = vld [vmem:[#allocation264_spill] sm:$0xff] }
 0x32d   : > { %23169 = vst [vmem:[#allocation79_spill] sm:$0xff] %v18775_v5  ;;  %23173 = vst [vmem:[#allocation357_spill] sm:$0xff] %v18783_v36  ;;  %v18797_v44 = vadd.f32 %v14505_v11, %v23178_v22  ;;  %v14084_v59 = vld [vmem:[%s21793_s3 + $0x58] ss:$20 sps:$4 sm:$0xff]   ;;  %v18804_v23 = vadd.f32 %v23014_v14, %v23180_v27  ;;  %v23182_v47 = vld [vmem:[#allocation288_spill] sm:$0xff]  ;;  %v18816_v22 = vadd.f32 %v22759_v9, %v23186_v38  ;;  %v3659_v63 = vpop.f32.mrf.mxu0 }
 0x32e   : > { %23171 = vst [vmem:[#allocation356_spill] sm:$0xff] %v18779_v3  ;;  %23175 = vst [vmem:[#allocation271_spill] sm:$0xff] %v18789_v56  ;;  %v18808_v56 = vadd.f32 %v22744_v61, %v23182_v47  ;;  %v23184_v52 = vld [vmem:[#allocation289_spill] sm:$0xff]  ;;  %v23188_v42 = vld [vmem:[#allocation76_spill] sm:$0xff]  ;;  %v18827_v47 = vmul.f32 0.2, %v18760_v60  ;;  %10656 = vmatmul.mubr.bf16.gmra.mxu1 %v14084_v59 }
 0x32f   : > { %23177 = vst [vmem:[#allocation272_spill] sm:$0xff] %v18793_v40  ;;  %23179 = vst [vmem:[#allocation276_spill] sm:$0xff] %v18797_v44  ;;  %v18812_v29 = vadd.f32 %v22744_v61, %v23184_v52  ;;  %v23189_v43 = vld [vmem:[#allocation73_spill] sm:$0xff]  ;;  %v14086_v27 = vld [vmem:[%s21793_s3 + $0x84] ss:$20 sps:$4 sm:$0xff]  }
 0x330   : > { %23181 = vst [vmem:[#allocation277_spill] sm:$0xff] %v18804_v23  ;;  %23183 = vst [vmem:[#allocation282_spill] sm:$0xff] %v18808_v56  ;;  %v23190_v39 = vpack.c.bf16 %v23188_v42, %v23189_v43  ;;  %v23192_v23 = vld [vmem:[#allocation269_spill] sm:$0xff]  ;;  %v18834_v38 = vmul.f32 0.2, %v18764_v50  ;;  %v23196_v43 = vld [vmem:[#allocation7_spill] sm:$0xff]  ;;  %10665 = vmatprep.mubr.bf16.mxu1 %v14086_v27  ;;  %v18894_v27 = vpop.f32.mrf.mxu1 }
 0x331   : > { %23185 = vst [vmem:[#allocation283_spill] sm:$0xff] %v18812_v29  ;;  %23187 = vst [vmem:[#allocation264_spill] sm:$0xff] %v18816_v22  ;;  %v18831_v52 = vadd.f32 %v23019_v51, %v23192_v23  ;;  %v311_v42 = vadd.s32 384, %v23196_v43  ;;  %v18843_v53 = vmul.f32 0.2, %v18779_v3  ;;  %v23200_v60 = vld [vmem:[#allocation295_spill] sm:$0xff] }
 0x332   : > { %13771 = vmatpush1.bf16.msk.msra.mxu1 %vm18563_vm10, %v23190_v39  ;;  %23191 = vst [vmem:[#allocation288_spill] sm:$0xff] %v18827_v47  ;;  %23194 = vst [vmem:[#allocation294_spill] sm:$0xff] %v18834_v38  ;;  %v18840_v39 = vmul.f32 0.2, %v18775_v5  ;;  %v18846_v47 = vmul.f32 0.2, %v18783_v36  ;;  %v18850_v23 = vadd.f32 %v22759_v9, %v23200_v60 }
 0x333   : > { %23193 = vst [vmem:[#allocation289_spill] sm:$0xff] %v18831_v52  ;;  %23195 = vst [vmem:[#allocation76_spill] sm:$0xff] %v18836_v58  ;;  %v18853_v52 = vmul.f32 0.2, %v18793_v40  ;;  %v18856_v38 = vmul.f32 0.2, %v18797_v44 }
 0x334   : > { %23197 = vst [vmem:[#allocation73_spill] sm:$0xff] %v18840_v39  ;;  %23198 = vst [vmem:[#allocation269_spill] sm:$0xff] %v18843_v53  ;;  %v23204_v43 = vld [vmem:[#allocation300_spill] sm:$0xff]  ;;  %v335_v39 = vand.u32 15, %v311_v42  ;;  %v18863_v53 = vmul.f32 0.2, %v18808_v56 }
 0x335   : > { %23199 = vst [vmem:[#allocation421_spill] sm:$0xff] %v18846_v47  ;;  %23201 = vst [vmem:[#allocation295_spill] sm:$0xff] %v18850_v23  ;;  %v18860_v5 = vadd.f32 %v23027_v41, %v23204_v43  ;;  %v18866_v47 = vmul.f32 0.2, %v18812_v29  ;;  %v18869_v60 = vmul.f32 0.2, %v18816_v22 }
 0x336   : > { %23202 = vst [vmem:[#allocation422_spill] sm:$0xff] %v18853_v52  ;;  %23203 = vst [vmem:[#allocation423_spill] sm:$0xff] %v18856_v38  ;;  %v23209_v36 = vld [vmem:[#allocation301_spill] sm:$0xff]  ;;  %v23211_v43 = vmov 0  ;;  %v23214_v59 = vld [vmem:[#allocation306_spill] sm:$0xff]  ;;  %vm343_vm11 = vcmp.ne.s32.totalorder %v335_v39, 0 }
 0x337   : > { %23205 = vst [vmem:[#allocation300_spill] sm:$0xff] %v18860_v5  ;;  %23206 = vst [vmem:[#allocation424_spill] sm:$0xff] %v18863_v53  ;;  %v18873_v52 = vadd.f32 %v23027_v41, %v23209_v36  ;;  %v18884_v42 = vadd.f32 %v23014_v14, %v23214_v59  ;;  %v23218_v29 = vld [vmem:[#allocation312_spill] sm:$0xff]  ;;  %v18897_v44 = vmul.f32 0.2, %v18850_v23  ;;  %v23221_v53 = vld [vmem:[#allocation313_spill] sm:$0xff] }
 0x338   : > { %23207 = vst [vmem:[#allocation425_spill] sm:$0xff] %v18866_v47  ;;  %23208 = vst [vmem:[#allocation426_spill] sm:$0xff] %v18869_v60  ;;  %v23216_v47 = vld [vmem:[#allocation308_spill] sm:$0xff]  ;;  %v18892_v36 = vadd.f32 %v14523_v17, %v23218_v29  ;;  %v18901_v60 = vadd.f32 %v14555_v28, %v23221_v53  ;;  %v23222_v59 = vld [vmem:[#allocation315_spill] sm:$0xff]  ;;  %v23224_v29 = vmov 0 }
 0x339   : > { %23210 = vst [vmem:[#allocation301_spill] sm:$0xff] %v18873_v52  ;;  %vm18878_vm5 = vmpackc.low %vm18705_vm2, %vm18705_vm2  ;;  %v18888_v38 = vadd.f32 %v23019_v51, %v23216_v47  ;;  %v18905_v3 = vadd.f32 %v14505_v11, %v23222_v59  ;;  %v23223_v47 = vld [vmem:[#allocation317_spill] sm:$0xff]  ;;  %v18916_v39 = vmul.f32 0.2, %v18860_v5  ;;  %v23230_v59 = vld [vmem:[#allocation327_spill] sm:$0xff] }
 0x33a   : > { %v23212_v43 = vsel %vm18878_vm5, 4294967295, %v23211_v43  ;;  %23215 = vst [vmem:[#allocation306_spill] sm:$0xff] %v18884_v42  ;;  %23219 = vst [vmem:[#allocation312_spill] sm:$0xff] %v18894_v27  ;;  %v18909_v50 = vadd.f32 %v22744_v61, %v23223_v47  ;;  %v23229_v53 = vld [vmem:[#allocation321_spill] sm:$0xff]  ;;  %v18928_v40 = vadd.f32 %v23014_v14, %v23230_v59  ;;  %v23233_v22 = vld [vmem:[#allocation38_spill] sm:$0xff] }
 0x33b   : > { %23213 = vst [vmem:[#allocation427_spill] sm:$0xff] %v23212_v43  ;;  %23217 = vst [vmem:[#allocation308_spill] sm:$0xff] %v18888_v38  ;;  %v18924_v56 = vadd.f32 %v23027_v41, %v23229_v53  ;;  %v23232_v47 = vld [vmem:[#allocation41_spill] sm:$0xff]  ;;  %v23236_v5 = vld [vmem:[#allocation331_spill] sm:$0xff] }
 0x33c   : > { %23220 = vst [vmem:[#allocation428_spill] sm:$0xff] %v18897_v44  ;;  %vm18911_vm1 = vmpackc.low %vm343_vm11, %vm343_vm11  ;;  %v23228_v44 = vld [vmem:[#allocation319_spill] sm:$0xff]  ;;  %v23234_v24 = vpack.c.bf16 %v23232_v47, %v23233_v22  ;;  %v18943_v53 = vadd.f32 %v23019_v51, %v23236_v5  ;;  %v23240_v48 = vld [vmem:[#allocation42_spill] sm:$0xff]  ;;  %v18954_v22 = vmul.f32 0.2, %v18884_v42  ;;  %v18962_v5 = vpop.f32.mrf.mxu1 }
 0x33d   : > { %v23225_v29 = vsel %vm18911_vm1, 4294967295, %v23224_v29  ;;  %23227 = vst [vmem:[#allocation315_spill] sm:$0xff] %v18916_v39  ;;  %v18920_v23 = vadd.f32 %v22759_v9, %v23228_v44  ;;  %23231 = vst [vmem:[#allocation317_spill] sm:$0xff] %v18928_v40  ;;  %v14088_v39 = vld [vmem:[%s21793_s3 + $0x80] ss:$20 sps:$4 sm:$0xff]   ;;  %v23263_v25 = vld [vmem:[#allocation21_spill] sm:$0xff] }
 0x33e   : > { %23226 = vst [vmem:[#allocation313_spill] sm:$0xff] %v23225_v29  ;;  %13774 = vmatprep.subr.msk.bf16.mxu1 %vm18911_vm1, %v23234_v24  ;;  %v18939_v44 = vmul.f32 0.2, %v18873_v52  ;;  %23237 = vst [vmem:[#allocation321_spill] sm:$0xff] %v18943_v53  ;;  %v23238_v20 = vld [vmem:[#allocation335_spill] sm:$0xff]  ;;  %v8242_v24 = vadd.f32 %v23027_v41, %v3659_v63  ;;  %v23245_v52 = vld [vmem:[#allocation34_spill] sm:$0xff]  ;;  %10666 = vmatmul.mubr.bf16.gmra.mxu1 %v14088_v39  ;;  %v8226_v39 = vadd.f32 %v22744_v61, %v18631_v8 }
 0x33f   : > { %v18947_v59 = vadd.f32 %v14523_v17, %v23238_v20  ;;  %13777 = vmatpush1.bf16.msk.msra.mxu1 %vm18878_vm5, %v23240_v48  ;;  %23241 = vst [vmem:[#allocation41_spill] sm:$0xff] %v18954_v22  ;;  %v18957_v47 = vmul.f32 0.2, %v18888_v38  ;;  %23244 = vst [vmem:[#allocation335_spill] sm:$0xff] %v18962_v5  ;;  %v23246_v20 = vld [vmem:[#allocation30_spill] sm:$0xff]  ;;  %v8241_v48 = vadd.f32 %v23027_v41, %v3657_v57  ;;  %v23331_v43 = vld [vmem:[#allocation76_spill] sm:$0xff] }
 0x340   : > { %23235 = vst [vmem:[#allocation319_spill] sm:$0xff] %v18939_v44  ;;  %v18960_v44 = vmul.f32 0.2, %v18892_v36  ;;  %v23247_v6 = vpack.c.bf16 %v23245_v52, %v23246_v20  ;;  %v18971_v63 = vmul.f32 0.2, %v18901_v60  ;;  %vm8306_vm6 = vcmp.gt.f32.partialorder %v8242_v24, 0.0 }
 0x341   : > { %23239 = vst [vmem:[#allocation327_spill] sm:$0xff] %v18947_v59  ;;  %23242 = vst [vmem:[#allocation38_spill] sm:$0xff] %v18957_v47  ;;  %v18974_v22 = vmul.f32 0.2, %v18905_v3  ;;  %v18977_v47 = vmul.f32 0.2, %v18909_v50 }
 0x342   : > { %23243 = vst [vmem:[#allocation331_spill] sm:$0xff] %v18960_v44  ;;  %13780 = vmatprep.subr.msk.bf16.mxu1 %vm18911_vm1, %v23247_v6  ;;  %23248 = vst [vmem:[#allocation42_spill] sm:$0xff] %v18971_v63  ;;  %v8234_v44 = vadd.f32 %v22759_v9, %v18768_v35  ;;  %v18982_v5 = vmul.f32 0.2, %v18920_v23  ;;  %v18985_v52 = vmul.f32 0.2, %v18924_v56  ;;  %v8233_v6 = vadd.f32 %v22759_v9, %v18701_v21 }
 0x343   : > { %23249 = vst [vmem:[#allocation34_spill] sm:$0xff] %v18974_v22  ;;  %23250 = vst [vmem:[#allocation30_spill] sm:$0xff] %v18977_v47  ;;  %v18988_v57 = vmul.f32 0.2, %v18928_v40  ;;  %v18993_v20 = vmul.f32 0.2, %v18943_v53  ;;  %v8218_v35 = vadd.f32 %v14505_v11, %v18491_v7  ;;  %v19003_v40 = vpop.f32.mrf.mxu1  ;;  %v8225_v21 = vadd.f32 %v22744_v61, %v18567_v37 }
 0x344   : > { %v18996_v63 = vmul.f32 0.2, %v18947_v59  ;;  %v23254_v47 = vld [vmem:[#allocation32_spill] sm:$0xff]  ;;  %v8370_v22 = vmul.f32 0.2, %v8242_v24  ;;  %v19023_v37 = vadd.f32 %v23019_v51, %v18323_v33  ;;  %vm8305_vm3 = vcmp.gt.f32.partialorder %v8241_v48, 0.0 }
 0x345   : > { %23251 = vst [vmem:[#allocation429_spill] sm:$0xff] %v18988_v57  ;;  %23252 = vst [vmem:[#allocation430_spill] sm:$0xff] %v18993_v20  ;;  %13783 = vmatpush1.bf16.msk.msra.mxu1 %vm18878_vm5, %v23254_v47  ;;  %v8369_v57 = vmul.f32 0.2, %v8241_v48  ;;  %v23256_v20 = vld [vmem:[#allocation28_spill] sm:$0xff]  ;;  %v23259_v47 = vld [vmem:[#allocation97_spill] sm:$0xff]  ;;  %v19036_v27 = vpop.f32.mrf.mxu1 }
 0x346   : > { %23253 = vst [vmem:[#allocation431_spill] sm:$0xff] %v18996_v63  ;;  %23255 = vst [vmem:[#allocation32_spill] sm:$0xff] %v19003_v40  ;;  %v23257_v53 = vld [vmem:[#allocation24_spill] sm:$0xff]  ;;  %v19019_v59 = vadd.f32 %v14555_v28, %v23259_v47  ;;  %v8362_v8 = vmul.f32 0.2, %v8234_v44  ;;  %vm8298_vm12 = vcmp.gt.f32.partialorder %v8234_v44, 0.0  ;;  %v8210_v47 = vadd.f32 %v14555_v28, %v18402_v55 }
 0x347   : > { %v23258_v63 = vpack.c.bf16 %v23256_v20, %v23257_v53  ;;  %v14124_v7 = vld [vmem:[%s21793_s3 + $0x4] ss:$20 sps:$4 sm:$0xff]   ;;  %v8202_v53 = vadd.f32 %v14523_v17, %v18364_v18  ;;  %v8361_v20 = vmul.f32 0.2, %v8233_v6  ;;  %vm8297_vm13 = vcmp.gt.f32.partialorder %v8233_v6, 0.0  ;;  %23262 = vst [vmem:[#allocation24_spill] sm:$0xff] %v19036_v27 }
 0x348   : > { %10781 = vmatprep.mubr.bf16.mxu1 %v14124_v7  ;;  %23260 = vst [vmem:[#allocation28_spill] sm:$0xff] %v19019_v59  ;;  %v8209_v7 = vadd.f32 %v14555_v28, %v18389_v1  ;;  %v23261_v40 = vld [vmem:[#allocation27_spill] sm:$0xff]  ;;  %v8434_v33 = vsel %vm8306_vm6, %v8242_v24, %v8370_v22  ;;  %v8346_v12 = vmul.f32 0.2, %v8218_v35  ;;  %v8353_v18 = vmul.f32 0.2, %v8225_v21 }
 0x349   : > { %13786 = vmatprep.subr.msk.bf16.mxu1 %vm18911_vm1, %v23258_v63  ;;  %v8217_v63 = vadd.f32 %v14505_v11, %v18435_v13  ;;  %v8354_v58 = vmul.f32 0.2, %v8226_v39  ;;  %v8433_v13 = vsel %vm8305_vm3, %v8241_v48, %v8369_v57  ;;  %v23264_v38 = vld [vmem:[#allocation18_spill] sm:$0xff]  ;;  %vm8282_vm4 = vcmp.gt.f32.partialorder %v8218_v35, 0.0  ;;  %v23335_v29 = vld [vmem:[#allocation243_spill] sm:$0xff] }
 0x34a   : > { %13789 = vmatpush1.bf16.msk.msra.mxu1 %vm18878_vm5, %v23261_v40  ;;  %v23265_v42 = vpack.c.bf16 %v23263_v25, %v23264_v38  ;;  %vm8289_vm8 = vcmp.gt.f32.partialorder %v8225_v21, 0.0  ;;  %vm8290_vm0 = vcmp.gt.f32.partialorder %v8226_v39, 0.0  ;;  %v8426_v1 = vsel %vm8298_vm12, %v8234_v44, %v8362_v8  ;;  %v23266_v57 = vld [vmem:[#allocation22_spill] sm:$0xff] }
 0x34b   : > { %v8201_v55 = vadd.f32 %v14523_v17, %v18341_v15  ;;  %v8345_v40 = vmul.f32 0.2, %v8217_v63  ;;  %v8425_v24 = vsel %vm8297_vm13, %v8233_v6, %v8361_v20  ;;  %v13657_v22 = vpack.c.bf16 %v8434_v33, %v8426_v1  ;;  %v23267_v30 = vld [vmem:[#allocation218_spill] sm:$0xff] }
 0x34c   : > { %13792 = vmatprep.subr.msk.bf16.mxu1 %vm18911_vm1, %v23265_v42  ;;  %v8330_v27 = vmul.f32 0.2, %v8202_v53  ;;  %v8337_v10 = vmul.f32 0.2, %v8209_v7  ;;  %vm8281_vm9 = vcmp.gt.f32.partialorder %v8217_v63, 0.0  ;;  %v13656_v48 = vpack.c.bf16 %v8433_v13, %v8425_v24  ;;  %v19048_v42 = vpop.f32.mrf.mxu1  ;;  %v23268_v44 = vld [vmem:[#allocation214_spill] sm:$0xff] }
 0x34d   : > { %v8338_v25 = vmul.f32 0.2, %v8210_v47  ;;  %v8417_v38 = vsel %vm8289_vm8, %v8225_v21, %v8353_v18  ;;  %v23269_v8 = vpack.c.bf16 %v23267_v30, %v23268_v44  ;;  %10684 = vmatprep.subr.bf16.mxu0 %v13657_v22  ;;  %v8410_v15 = vsel %vm8282_vm4, %v8218_v35, %v8346_v12  ;;  %v23270_v12 = vld [vmem:[#allocation339_spill] sm:$0xff]  ;;  %v23272_v35 = vld [vmem:[#allocation216_spill] sm:$0xff]  ;;  %v23275_v13 = vld [vmem:[#allocation342_spill] sm:$0xff] }
 0x34e   : > { %13795 = vmatpush1.bf16.msk.msra.mxu1 %vm18878_vm5, %v23266_v57  ;;  %v8418_v6 = vsel %vm8290_vm0, %v8226_v39, %v8354_v58  ;;  %vm8266_vm14 = vcmp.gt.f32.partialorder %v8202_v53, 0.0  ;;  %vm8273_vm2 = vcmp.gt.f32.partialorder %v8209_v7, 0.0  ;;  %vm8274_vm11 = vcmp.gt.f32.partialorder %v8210_v47, 0.0  ;;  %10685 = vmatpush1.bf16.msra.mxu0 %v13656_v48  ;;  %v23273_v39 = vld [vmem:[#allocation212_spill] sm:$0xff]  ;;  %v19082_v24 = vpop.f32.mrf.mxu1  ;;  %v23276_v22 = vld [vmem:[#allocation210_spill] sm:$0xff]  ;;  %v23279_v44 = vld [vmem:[#allocation345_spill] sm:$0xff] }
 0x34f   : > { %13798 = vmatprep.subr.msk.bf16.mxu1 %vm18911_vm1, %v23269_v8  ;;  %v13649_v20 = vpack.c.bf16 %v8418_v6, %v8410_v15  ;;  %v8186_v21 = vadd.f32 %v23014_v14, %v18303_v2  ;;  %v8194_v33 = vadd.f32 %v23019_v51, %v18332_v49  ;;  %v8329_v30 = vmul.f32 0.2, %v8201_v55  ;;  %v23277_v48 = vld [vmem:[#allocation206_spill] sm:$0xff]  ;;  %v23280_v15 = vld [vmem:[#allocation323_spill] sm:$0xff] }
 0x350   : > { %v8409_v18 = vsel %vm8281_vm9, %v8217_v63, %v8345_v40  ;;  %vm5228_vm6 = vcmp.gt.f32.partialorder %v18453_v16, 0.0  ;;  %vm5236_vm3 = vcmp.gt.f32.partialorder %v18481_v32, 0.0  ;;  %vm6796_vm12 = vcmp.gt.f32.partialorder %v18920_v23, 0.0 }
 0x351   : > { %vm6804_vm13 = vcmp.gt.f32.partialorder %v18924_v56, 0.0  ;;  %v19068_v58 = vadd.f32 %v14505_v11, %v23270_v12  ;;  %v8185_v2 = vadd.f32 %v23014_v14, %v18284_v26  ;;  %vm8265_vm4 = vcmp.gt.f32.partialorder %v8201_v55, 0.0  ;;  %10686 = vmatprep.subr.bf16.mxu0 %v13649_v20  ;;  %v23283_v12 = vld [vmem:[#allocation204_spill] sm:$0xff] }
 0x352   : > { %v13648_v49 = vpack.c.bf16 %v8417_v38, %v8409_v18  ;;  %v23274_v63 = vpack.c.bf16 %v23272_v35, %v23273_v39  ;;  %v19079_v1 = vadd.f32 %v22759_v9, %v23275_v13  ;;  %v8401_v40 = vsel %vm8273_vm2, %v8209_v7, %v8337_v10  ;;  %v23289_v13 = vld [vmem:[#allocation202_spill] sm:$0xff] }
 0x353   : > { %23271 = vst [vmem:[#allocation97_spill] sm:$0xff] %v19068_v58  ;;  %v23278_v26 = vpack.c.bf16 %v23276_v22, %v23277_v48  ;;  %v8394_v57 = vsel %vm8266_vm14, %v8202_v53, %v8330_v27  ;;  %v8402_v38 = vsel %vm8274_vm11, %v8210_v47, %v8338_v25  ;;  %v19093_v8 = vadd.f32 %v23027_v41, %v23279_v44  ;;  %v23282_v25 = vld [vmem:[#allocation208_spill] sm:$0xff] }
 0x354   : > { %13801 = vmatpush2.bf16.msk.msra.mxu1 %vm18878_vm5, %v23274_v63  ;;  %v19097_v6 = vadd.f32 %v14505_v11, %v23280_v15  ;;  %v8321_v10 = vmul.f32 0.2, %v19023_v37  ;;  %10687 = vmatpush1.bf16.msra.mxu0 %v13648_v49  ;;  %v13641_v7 = vpack.c.bf16 %v8402_v38, %v8394_v57  ;;  %v8314_v20 = vmul.f32 0.2, %v8186_v21  ;;  %v19118_v63 = vpop.f32.mrf.mxu1  ;;  %v23293_v57 = vld [vmem:[#allocation144_spill] sm:$0xff]  ;;  %v23294_v15 = vld [vmem:[#allocation326_spill] sm:$0xff] }
 0x355   : > { %13804 = vmatprep.subr.msk.bf16.mxu1 %vm18911_vm1, %v23278_v26  ;;  %vm8257_vm8 = vcmp.gt.f32.partialorder %v19023_v37, 0.0  ;;  %v8322_v18 = vmul.f32 0.2, %v8194_v33  ;;  %v8393_v27 = vsel %vm8265_vm4, %v8201_v55, %v8329_v30  ;;  %v8313_v53 = vmul.f32 0.2, %v8185_v2  ;;  %v23287_v55 = vld [vmem:[#allocation81_spill] sm:$0xff] }
 0x356   : > { %23281 = vst [vmem:[#allocation27_spill] sm:$0xff] %v19097_v6  ;;  %vm8250_vm9 = vcmp.gt.f32.partialorder %v8186_v21, 0.0  ;;  %vm8258_vm14 = vcmp.gt.f32.partialorder %v8194_v33, 0.0  ;;  %v13640_v47 = vpack.c.bf16 %v8401_v40, %v8393_v27  ;;  %v23284_v35 = vpack.c.bf16 %v23282_v25, %v23283_v12  ;;  %10688 = vmatprep.subr.bf16.mxu0 %v13641_v7  ;;  %v23290_v40 = vld [vmem:[#allocation198_spill] sm:$0xff]  ;;  %v23296_v27 = vld [vmem:[#allocation324_spill] sm:$0xff] }
 0x357   : > { %v19109_v49 = vmul.f32 0.2, %v19019_v59  ;;  %v19112_v39 = vmul.f32 0.2, %v19068_v58  ;;  %v19116_v30 = vadd.f32 %v22744_v61, %v23287_v55  ;;  %vm8249_vm2 = vcmp.gt.f32.partialorder %v8185_v2, 0.0  ;;  %v23346_v59 = vld [vmem:[#allocation171_spill] sm:$0xff] }
 0x358   : > { %13807 = vmatpush2.bf16.msk.msra.mxu1 %vm18878_vm5, %v23284_v35  ;;  %v23291_v22 = vpack.c.bf16 %v23289_v13, %v23290_v40  ;;  %vm5220_vm11 = vcmp.gt.f32.partialorder %v18449_v62, 0.0  ;;  %vm6780_vm4 = vcmp.gt.f32.partialorder %v18905_v3, 0.0  ;;  %vm6788_vm0 = vcmp.gt.f32.partialorder %v18909_v50, 0.0  ;;  %10689 = vmatpush1.bf16.msra.mxu0 %v13640_v47  ;;  %v23299_v13 = vld [vmem:[#allocation25_spill] sm:$0xff]  ;;  %v23302_v47 = vld [vmem:[#allocation196_spill] sm:$0xff] }
 0x359   : > { %23285 = vst [vmem:[#allocation21_spill] sm:$0xff] %v19109_v49  ;;  %23286 = vst [vmem:[#allocation18_spill] sm:$0xff] %v19112_v39  ;;  %v19129_v48 = vmul.f32 0.2, %v19079_v1  ;;  %v19132_v26 = vmul.f32 0.2, %v19093_v8  ;;  %v19136_v38 = vadd.f32 %v23014_v14, %v23293_v57  ;;  %v8385_v44 = vsel %vm8257_vm8, %v19023_v37, %v8321_v10 }
 0x35a   : > { %23288 = vst [vmem:[#allocation22_spill] sm:$0xff] %v19116_v30  ;;  %13810 = vmatprep.subr.msk.bf16.mxu1 %vm18911_vm1, %v23291_v22  ;;  %v19143_v7 = vadd.f32 %v23014_v14, %v23294_v15  ;;  %v19147_v25 = vadd.f32 %v14523_v17, %v23296_v27  ;;  %v8378_v12 = vsel %vm8250_vm9, %v8186_v21, %v8314_v20  ;;  %v19152_v55 = vmul.f32 0.2, %v19097_v6  ;;  %v23301_v10 = vld [vmem:[#allocation200_spill] sm:$0xff]  ;;  %v23304_v21 = vld [vmem:[#allocation322_spill] sm:$0xff]  ;;  %v23306_v20 = vld [vmem:[#allocation347_spill] sm:$0xff]  ;;  %v19178_v27 = vpop.f32.mrf.mxu1 }
 0x35b   : > { %23292 = vst [vmem:[#allocation218_spill] sm:$0xff] %v19129_v48  ;;  %v8386_v35 = vsel %vm8258_vm14, %v8194_v33, %v8322_v18  ;;  %v19156_v40 = vadd.f32 %v22744_v61, %v23299_v13  ;;  %v8377_v37 = vsel %vm8249_vm2, %v8185_v2, %v8313_v53  ;;  %v23303_v22 = vpack.c.bf16 %v23301_v10, %v23302_v47  ;;  %v23308_v2 = vld [vmem:[#allocation349_spill] sm:$0xff]  ;;  %v23313_v10 = vld [vmem:[#allocation279_spill] sm:$0xff]  ;;  %v23332_v39 = vld [vmem:[#allocation312_spill] sm:$0xff] }
 0x35c   : > { %23295 = vst [vmem:[#allocation214_spill] sm:$0xff] %v19143_v7  ;;  %23297 = vst [vmem:[#allocation339_spill] sm:$0xff] %v19147_v25  ;;  %v13633_v57 = vpack.c.bf16 %v8386_v35, %v8378_v12  ;;  %vm5196_vm8 = vcmp.gt.f32.partialorder %v18408_v19, 0.0  ;;  %vm5204_vm9 = vcmp.gt.f32.partialorder %v18420_v0, 0.0  ;;  %v19168_v33 = vadd.f32 %v22759_v9, %v23304_v21  ;;  %v23310_v12 = vld [vmem:[#allocation194_spill] sm:$0xff]  ;;  %v23316_v21 = vld [vmem:[#allocation369_spill] sm:$0xff] }
 0x35d   : > { %23298 = vst [vmem:[#allocation216_spill] sm:$0xff] %v19152_v55  ;;  %23300 = vst [vmem:[#allocation212_spill] sm:$0xff] %v19156_v40  ;;  %13813 = vmatpush2.bf16.msk.msra.mxu1 %vm18878_vm5, %v23303_v22  ;;  %v19172_v18 = vadd.f32 %v23019_v51, %v23306_v20  ;;  %v19176_v53 = vadd.f32 %v14523_v17, %v23308_v2  ;;  %v13632_v15 = vpack.c.bf16 %v8385_v44, %v8377_v37  ;;  %v23311_v35 = vld [vmem:[#allocation190_spill] sm:$0xff]  ;;  %v23317_v44 = vld [vmem:[#allocation377_spill] sm:$0xff] }
 0x35e   : > { %23305 = vst [vmem:[#allocation342_spill] sm:$0xff] %v19168_v33  ;;  %v23312_v13 = vpack.c.bf16 %v23310_v12, %v23311_v35  ;;  %v19187_v47 = vadd.f32 %v23027_v41, %v23313_v10  ;;  %v19190_v22 = vmul.f32 0.2, %v19136_v38  ;;  %v19194_v20 = vadd.f32 %v22759_v9, %v23316_v21  ;;  %10690 = vmatprep.subr.bf16.mxu0 %v13633_v57  ;;  %v23325_v10 = vld [vmem:[#allocation355_spill] sm:$0xff]  ;;  %v23343_v30 = vld [vmem:[#allocation334_spill] sm:$0xff]  ;;  %v23344_v40 = vld [vmem:[#allocation333_spill] sm:$0xff] }
 0x35f   : > { %23307 = vst [vmem:[#allocation210_spill] sm:$0xff] %v19172_v18  ;;  %23309 = vst [vmem:[#allocation206_spill] sm:$0xff] %v19176_v53  ;;  %v19198_v37 = vadd.f32 %v23027_v41, %v23317_v44  ;;  %vm6764_vm14 = vcmp.gt.f32.partialorder %v18892_v36, 0.0  ;;  %10691 = vmatpush1.bf16.msra.mxu0 %v13632_v15  ;;  %v5356_v2 = vsel %vm5228_vm6, %v18453_v16, %v18512_v31  ;;  %v19220_v15 = vld [vmem:[%s21793_s3 + $0x10] ss:$20 sps:$4 sm:$0xff]   ;;  %vm6772_vm6 = vcmp.gt.f32.partialorder %v18901_v60, 0.0  ;;  %v3730_v44 = vpop.f32.mrf.mxu1 }
 0x360   : > { %13816 = vmatprep.subr.msk.bf16.mxu1 %vm18911_vm1, %v23312_v13  ;;  %23314 = vst [vmem:[#allocation345_spill] sm:$0xff] %v19187_v47  ;;  %23315 = vst [vmem:[#allocation323_spill] sm:$0xff] %v19190_v22  ;;  %v5364_v12 = vsel %vm5236_vm3, %v18481_v32, %v18545_v34  ;;  %v6924_v35 = vsel %vm6796_vm12, %v18920_v23, %v18982_v5  ;;  %v6932_v57 = vsel %vm6804_vm13, %v18924_v56, %v18985_v52  ;;  %v23319_v31 = vld [vmem:[#allocation192_spill] sm:$0xff]  ;;  %v23324_v13 = vld [vmem:[#allocation351_spill] sm:$0xff]  ;;  %vm22276_vm12 = vcmask 523264  }
 0x361   : > { %23318 = vst [vmem:[#allocation208_spill] sm:$0xff] %v19220_v15  ;;  %v19225_v32 = vadd.f32 %v23019_v51, %v18629_v54  ;;  %v19229_v16 = vadd.f32 %v23019_v51, %v18699_v45  ;;  %v23320_v34 = vld [vmem:[#allocation188_spill] sm:$0xff]  ;;  %v13467_v56 = vpack.c.bf16 %v5364_v12, %v5356_v2  ;;  %v13563_v5 = vpack.c.bf16 %v6932_v57, %v6924_v35  ;;  %v23339_v51 = vld [vmem:[#allocation161_spill] sm:$0xff]  ;;  %v23353_v22 = vld [vmem:[#allocation98_spill] sm:$0xff] }
 0x362   : > { %v23321_v23 = vpack.c.bf16 %v23319_v31, %v23320_v34  ;;  %v19238_v52 = vmul.f32 0.2, %v19172_v18  ;;  %v19241_v54 = vmul.f32 0.2, %v19176_v53  ;;  %v19245_v45 = vadd.f32 %v14555_v28, %v23324_v13  ;;  %v23326_v35 = vld [vmem:[#allocation72_spill] sm:$0xff]  ;;  %v23328_v34 = vld [vmem:[#allocation306_spill] sm:$0xff]  ;;  %13070 = vmatmul.mubr.msk.bf16.vlgmr.msra.gmra.mxu0 %vm22276_vm12, %v19220_v15 }
 0x363   : > { %v19249_v21 = vadd.f32 %v14505_v11, %v23325_v10  ;;  %v19252_v2 = vmul.f32 0.2, %v19194_v20  ;;  %v19255_v12 = vmul.f32 0.2, %v19198_v37  ;;  %v19259_v57 = vadd.f32 %v23014_v14, %v23326_v35  ;;  %10822 = vmatprep.subr.bf16.mxu0 %v13563_v5  ;;  %v23327_v31 = vld [vmem:[#allocation116_spill] sm:$0xff]  ;;  %v23330_v13 = vld [vmem:[#allocation146_spill] sm:$0xff] }
 0x364   : > { %13819 = vmatpush2.bf16.msk.msra.mxu1 %vm18878_vm5, %v23321_v23  ;;  %23322 = vst [vmem:[#allocation204_spill] sm:$0xff] %v19238_v52  ;;  %23323 = vst [vmem:[#allocation81_spill] sm:$0xff] %v19241_v54  ;;  %v23329_v23 = vld [vmem:[#allocation308_spill] sm:$0xff]  ;;  %v19266_v10 = vadd.f32 %v23014_v14, %v23330_v13  ;;  %v19270_v49 = vadd.f32 %v14523_v17, %v23331_v43  ;;  %v19274_v35 = vadd.f32 %v14555_v28, %v23332_v39  ;;  %v23336_v13 = vld [vmem:[#allocation87_spill] sm:$0xff] }
 0x365   : > { %10773 = vmatprep.subr.bf16.mxu1 %v13467_v56  ;;  %v23333_v56 = vld [vmem:[#allocation124_spill] sm:$0xff]  ;;  %vm23334_vm2 = vcmp.gt.f32.partialorder %v18424_v4, 0.0  ;;  %vm6316_vm3 = vcmp.gt.f32.partialorder %v23335_v29, 0.0  ;;  %vm6324_vm13 = vcmp.gt.f32.partialorder %v23336_v13, 0.0  ;;  %v19285_v14 = vmul.f32 0.2, %v19225_v32 }
 0x366   : > { %v5340_v5 = vsel %vm23334_vm2, %v18424_v4, %v23333_v56  ;;  %v19288_v43 = vmul.f32 0.2, %v19229_v16  ;;  %v23337_v39 = vld [vmem:[#allocation263_spill] sm:$0xff]  ;;  %v23340_v4 = vld [vmem:[#allocation157_spill] sm:$0xff]  ;;  %v23345_v6 = vpack.c.bf16 %v23343_v30, %v23344_v40  ;;  %v23347_v58 = vld [vmem:[#allocation24_spill] sm:$0xff]  ;;  %v23351_v30 = vmov 0  }
 0x367   : > { %v19292_v55 = vadd.f32 %v14523_v17, %v23337_v39  ;;  %v23338_v15 = vld [vmem:[#allocation335_spill] sm:$0xff]  ;;  %v23341_v56 = vpack.c.bf16 %v23339_v51, %v23340_v4  ;;  %v19309_v39 = vadd.f32 %v14505_v11, %v23347_v58  ;;  %v3732_v17 = vpop.f32.mrf.mxu1  ;;  %v23348_v52 = vld [vmem:[#allocation132_spill] sm:$0xff]  ;;  %v23349_v51 = vld [vmem:[#allocation34_spill] sm:$0xff]  ;;  %10718 = vmatprep.mubr.bf16.mxu0 %v23351_v30  ;;  %v19327_v40 = vadd.f32 %v22744_v61, %v19048_v42 }
 0x368   : > { %v19296_v25 = vadd.f32 %v14555_v28, %v23338_v15  ;;  %10823 = vmatpush1.bf16.msra.mxu0 %v23345_v6  ;;  %v5348_v15 = vsel %vm5220_vm11, %v18449_v62, %v23348_v52  ;;  %v6908_v4 = vsel %vm6780_vm4, %v18905_v3, %v23349_v51  ;;  %v23352_v58 = vld [vmem:[#allocation177_spill] sm:$0xff]  ;;  %v8243_v62 = vadd.f32 %v23027_v41, %v3730_v44  ;;  %v23354_v3 = vld [vmem:[#allocation94_spill] sm:$0xff]  ;;  %v23358_v47 = vld [vmem:[#allocation363_spill] sm:$0xff] }
 0x369   : > { %13822 = vmatpush2.bf16.msk.msra.mxu1 %vm18563_vm10, %v23341_v56  ;;  %v23350_v56 = vld [vmem:[#allocation30_spill] sm:$0xff]  ;;  %v13459_v52 = vpack.c.bf16 %v5348_v15, %v5340_v5  ;;  %v19333_v51 = vmul.f32 0.2, %v19270_v49  ;;  %v8236_v42 = vadd.f32 %v22759_v9, %v19178_v27  ;;  %v8244_v15 = vadd.f32 %v23027_v41, %v3732_v17  ;;  %v23359_v18 = vld [vmem:[#allocation32_spill] sm:$0xff]  ;;  %v23366_v53 = vld [vmem:[#allocation331_spill] sm:$0xff] }
 0x36a   : > { %v6916_v6 = vsel %vm6788_vm0, %v18909_v50, %v23350_v56  ;;  %v19336_v50 = vmul.f32 0.2, %v19274_v35  ;;  %v19340_v56 = vadd.f32 %v22744_v61, %v19082_v24  ;;  %v19347_v44 = vld [vmem:[%s21793_s3 + $0x38] ss:$20 sps:$4 sm:$0xff]   ;;  %v19350_v5 = vmul.f32 0.2, %v19296_v25 }
 0x36b   : > { %v13555_v28 = vpack.c.bf16 %v6916_v6, %v6908_v4  ;;  %10775 = vmatprep.subr.bf16.mxu1 %v13459_v52  ;;  %v23355_v4 = vld [vmem:[#allocation329_spill] sm:$0xff]  ;;  %v23356_v6 = vld [vmem:[#allocation391_spill] sm:$0xff]  ;;  %v23357_v54 = vld [vmem:[#allocation166_spill] sm:$0xff]  ;;  %v19365_v33 = vadd.f32 %v14505_v11, %v23359_v18  ;;  %v19369_v17 = vmul.f32 0.2, %v19309_v39  ;;  %v6892_v48 = vsel %vm6764_vm14, %v18892_v36, %v23366_v53  ;;  %13071 = vmatmul.mubr.msk.bf16.gmra.mxu0 %vm22276_vm12, %v19347_v44 }
 0x36c   : > { %v5324_v24 = vsel %vm5196_vm8, %v18408_v19, %v23355_v4  ;;  %v5332_v27 = vsel %vm5204_vm9, %v18420_v0, %v23356_v6  ;;  %v23360_v19 = vld [vmem:[#allocation153_spill] sm:$0xff]  ;;  %v23363_v0 = vld [vmem:[#allocation330_spill] sm:$0xff]  ;;  %v8371_v18 = vmul.f32 0.2, %v8243_v62  ;;  %vm8307_vm4 = vcmp.gt.f32.partialorder %v8243_v62, 0.0  ;;  %10728 = vmatprep.mubr.bf16.mxu0 %v23351_v30 }
 0x36d   : > { %10824 = vmatprep.subr.bf16.mxu0 %v13555_v28  ;;  %v8235_v28 = vadd.f32 %v22759_v9, %v19118_v63  ;;  %v23361_v52 = vld [vmem:[#allocation149_spill] sm:$0xff]  ;;  %v13451_v11 = vpack.c.bf16 %v5332_v27, %v5324_v24  ;;  %v8356_v63 = vmul.f32 0.2, %v19340_v56  ;;  %v8372_v24 = vmul.f32 0.2, %v8244_v15  ;;  %v23399_v7 = vld [vmem:[#allocation110_spill] sm:$0xff] }
 0x36e   : > { %v23362_v4 = vpack.c.bf16 %v23360_v19, %v23361_v52  ;;  %v23364_v6 = vld [vmem:[#allocation325_spill] sm:$0xff]  ;;  %v23367_v19 = vld [vmem:[#allocation42_spill] sm:$0xff]  ;;  %vm23369_vm14 = vcmp.gt.f32.partialorder %v18368_v46, 0.0  ;;  %vm8300_vm9 = vcmp.gt.f32.partialorder %v8236_v42, 0.0  ;;  %vm23376_vm0 = vcmp.gt.f32.partialorder %v23328_v34, 0.0 }
 0x36f   : > { %v23365_v41 = vpack.c.bf16 %v23363_v0, %v23364_v6  ;;  %v6900_v52 = vsel %vm6772_vm6, %v18901_v60, %v23367_v19  ;;  %vm8299_vm11 = vcmp.gt.f32.partialorder %v8235_v28, 0.0  ;;  %v8363_v53 = vmul.f32 0.2, %v8235_v28  ;;  %v23370_v60 = vld [vmem:[#allocation145_spill] sm:$0xff] }
 0x370   : > { %13825 = vmatpush2.bf16.msk.msra.mxu1 %vm18563_vm10, %v23362_v4  ;;  %v13547_v27 = vpack.c.bf16 %v6900_v52, %v6892_v48  ;;  %v23368_v4 = vld [vmem:[#allocation197_spill] sm:$0xff]  ;;  %vm8308_vm6 = vcmp.gt.f32.partialorder %v8244_v15, 0.0  ;;  %vm23378_vm8 = vcmp.gt.f32.partialorder %v23329_v23, 0.0  ;;  %vm6806_vm12 = vcmp.gt.f32.partialorder %v19093_v8, 0.0 }
 0x371   : > { %10825 = vmatpush1.bf16.msra.mxu0 %v23365_v41  ;;  %v8364_v41 = vmul.f32 0.2, %v8236_v42  ;;  %10777 = vmatprep.subr.bf16.mxu1 %v13451_v11  ;;  %v5308_v36 = vsel %vm23369_vm14, %v18368_v46, %v23368_v4  ;;  %v23371_v0 = vld [vmem:[#allocation141_spill] sm:$0xff]  ;;  %v19407_v11 = vsel %vm8307_vm4, %v8243_v62, %v8371_v18  ;;  %vm23374_vm14 = vcmp.gt.f32.partialorder %v23327_v31, 0.0  ;;  %v23377_v4 = vld [vmem:[#allocation38_spill] sm:$0xff]  ;;  %v23379_v62 = vld [vmem:[#allocation320_spill] sm:$0xff] }
 0x372   : > { %v23372_v6 = vpack.c.bf16 %v23370_v60, %v23371_v0  ;;  %10826 = vmatprep.subr.bf16.mxu0 %v13547_v27  ;;  %v23373_v46 = vld [vmem:[#allocation201_spill] sm:$0xff]  ;;  %v6884_v60 = vsel %vm23378_vm8, %v23329_v23, %v23377_v4  ;;  %vm7828_vm4 = vcmp.gt.f32.partialorder %v19198_v37, 0.0  ;;  %vm8251_vm2 = vcmp.gt.f32.partialorder %v19259_v57, 0.0  ;;  %v23380_v18 = vld [vmem:[#allocation318_spill] sm:$0xff] }
 0x373   : > { %v5316_v48 = vsel %vm23374_vm14, %v23327_v31, %v23373_v46  ;;  %v23375_v19 = vld [vmem:[#allocation41_spill] sm:$0xff]  ;;  %v23381_v27 = vpack.c.bf16 %v23379_v62, %v23380_v18  ;;  %v23383_v46 = vld [vmem:[#allocation268_spill] sm:$0xff]  ;;  %v8428_v4 = vsel %vm8300_vm9, %v8236_v42, %v8364_v41  ;;  %v8436_v9 = vsel %vm8308_vm6, %v8244_v15, %v8372_v24  ;;  %v23390_v62 = vld [vmem:[#allocation138_spill] sm:$0xff] }
 0x374   : > { %13828 = vmatpush2.bf16.msk.msra.mxu1 %vm18563_vm10, %v23372_v6  ;;  %v6876_v52 = vsel %vm23376_vm0, %v23328_v34, %v23375_v19  ;;  %v13443_v31 = vpack.c.bf16 %v5316_v48, %v5308_v36  ;;  %v23382_v6 = vld [vmem:[#allocation82_spill] sm:$0xff]  ;;  %v6452_v23 = vsel %vm6324_vm13, %v23336_v13, %v23383_v46  ;;  %v23384_v48 = vld [vmem:[#allocation252_spill] sm:$0xff]  ;;  %vm23385_vm0 = vcmp.gt.f32.partialorder %v23346_v59, 0.0  ;;  %v23386_v15 = vld [vmem:[#allocation9_spill] sm:$0xff] }
 0x375   : > { %10827 = vmatpush1.bf16.msra.mxu0 %v23381_v27  ;;  %v13539_v0 = vpack.c.bf16 %v6884_v60, %v6876_v52  ;;  %v6444_v34 = vsel %vm6316_vm3, %v23335_v29, %v23382_v6  ;;  %v19440_v36 = vld [vmem:[%s21793_s3 + $0x60] ss:$20 sps:$4 sm:$0xff]   ;;  %v6428_v29 = vsel %vm23385_vm0, %v23346_v59, %v23384_v48  ;;  %v8355_v52 = vmul.f32 0.2, %v19327_v40  ;;  %v23391_v59 = vld [vmem:[#allocation133_spill] sm:$0xff] }
 0x376   : > { %v13531_v19 = vpack.c.bf16 %v6452_v23, %v6444_v34  ;;  %v8427_v13 = vsel %vm8299_vm11, %v8235_v28, %v8363_v53  ;;  %10779 = vmatprep.subr.bf16.mxu1 %v13443_v31  ;;  %v13659_v42 = vpack.c.bf16 %v8436_v9, %v8428_v4  ;;  %vm23387_vm13 = vcmp.gt.f32.partialorder %v23352_v58, 0.0  ;;  %v23388_v24 = vld [vmem:[#allocation264_spill] sm:$0xff]  ;;  %v23394_v28 = vld [vmem:[#allocation90_spill] sm:$0xff]  ;;  %v23396_v53 = vld [vmem:[#allocation359_spill] sm:$0xff] }
 0x377   : > { %10828 = vmatprep.subr.bf16.mxu0 %v13539_v0  ;;  %v6436_v41 = vsel %vm23387_vm13, %v23352_v58, %v23386_v15  ;;  %v23389_v60 = vld [vmem:[#allocation300_spill] sm:$0xff]  ;;  %v23392_v18 = vpack.c.bf16 %v23390_v62, %v23391_v59  ;;  %vm23393_vm11 = vcmp.gt.f32.partialorder %v19340_v56, 0.0  ;;  %vm23395_vm6 = vcmp.gt.f32.partialorder %v23353_v22, 0.0  ;;  %v23398_v0 = vld [vmem:[#allocation107_spill] sm:$0xff]  ;;  %v23401_v34 = vld [vmem:[#allocation314_spill] sm:$0xff] }
 0x378   : > { %v13523_v27 = vpack.c.bf16 %v6436_v41, %v6428_v29  ;;  %v8420_v9 = vsel %vm23393_vm11, %v19340_v56, %v8356_v63  ;;  %v19467_v58 = vsel %vm23395_vm6, %v23353_v22, %v23394_v28  ;;  %vm23397_vm14 = vcmp.gt.f32.partialorder %v23354_v3, 0.0  ;;  %v23400_v6 = vld [vmem:[#allocation316_spill] sm:$0xff]  ;;  %v23404_v23 = vld [vmem:[#allocation282_spill] sm:$0xff]  ;;  %v23407_v4 = vld [vmem:[#allocation237_spill] sm:$0xff] }
 0x379   : > { %13831 = vmatpush2.bf16.msk.msra.mxu1 %vm18563_vm10, %v23392_v18  ;;  %v19473_v31 = vsel %vm23397_vm14, %v23354_v3, %v23396_v53  ;;  %vm8276_vm13 = vcmp.gt.f32.partialorder %v19296_v25, 0.0  ;;  %v8347_v56 = vmul.f32 0.2, %v19365_v33  ;;  %v13658_v63 = vpack.c.bf16 %v19407_v11, %v8427_v13  ;;  %v23403_v3 = vld [vmem:[#allocation272_spill] sm:$0xff]  ;;  %v23409_v29 = vld [vmem:[#allocation247_spill] sm:$0xff]  ;;  %v23418_v28 = vld [vmem:[#allocation358_spill] sm:$0xff] }
 0x37a   : > { %v23402_v22 = vpack.c.bf16 %v23400_v6, %v23401_v34  ;;  %10903 = vmatprep.subr.bf16.mxu1 %v13659_v42  ;;  %v13515_v46 = vpack.c.bf16 %v19473_v31, %v19467_v58  ;;  %vm8283_vm14 = vcmp.gt.f32.partialorder %v19365_v33, 0.0  ;;  %vm23405_vm10 = vcmask 523264   ;;  %v23412_v42 = vld [vmem:[#allocation102_spill] sm:$0xff]  ;;  %v23414_v15 = vld [vmem:[#allocation91_spill] sm:$0xff]  ;;  %v23415_v41 = vld [vmem:[#allocation260_spill] sm:$0xff] }
 0x37b   : > { %13072 = vmatmul.mubr.msk.bf16.gmra.mxu0 %vm23405_vm10, %v19440_v36  ;;  %vm23406_vm0 = vcmp.gt.f32.partialorder %v19309_v39, 0.0  ;;  %vm23408_vm9 = vcmp.gt.f32.partialorder %v23357_v54, 0.0  ;;  %vm23410_vm6 = vcmp.gt.f32.partialorder %v23358_v47, 0.0  ;;  %vm8275_vm8 = vcmp.gt.f32.partialorder %v19274_v35, 0.0  ;;  %v23416_v62 = vld [vmem:[#allocation356_spill] sm:$0xff]  ;;  %v23419_v53 = vld [vmem:[#allocation255_spill] sm:$0xff] }
 0x37c   : > { %10829 = vmatpush1.bf16.msra.mxu0 %v23402_v22  ;;  %v8412_v11 = vsel %vm23406_vm0, %v19309_v39, %v19369_v17  ;;  %v19498_v48 = vsel %vm23408_vm9, %v23357_v54, %v23407_v4  ;;  %v19504_v13 = vsel %vm23410_vm6, %v23358_v47, %v23409_v29  ;;  %vm23413_vm0 = vcmp.gt.f32.partialorder %v19327_v40, 0.0  ;;  %v14125_v54 = vld [vmem:[%s21793_s3] ss:$20 sps:$4 sm:$0xff]   ;;  %10738 = vmatprep.mubr.bf16.mxu0 %v23351_v30  ;;  %v19628_v31 = vld [vmem:[%s21793_s3 + $0x28] ss:$20 sps:$4 sm:$0xff]  }
 0x37d   : > { %10830 = vmatprep.subr.bf16.mxu0 %v13531_v19  ;;  %v23411_v19 = vld [vmem:[#allocation99_spill] sm:$0xff]  ;;  %v8419_v39 = vsel %vm23413_vm0, %v19327_v40, %v8355_v52  ;;  %10782 = vmatmul.mubr.bf16.vlgmr.msra.gmra.mxu1 %v14125_v54  ;;  %v13651_v17 = vpack.c.bf16 %v8420_v9, %v8412_v11  ;;  %v13507_v47 = vpack.c.bf16 %v19504_v13, %v19498_v48  ;;  %v8315_v59 = vmul.f32 0.2, %v19259_v57  ;;  %v23417_v9 = vld [vmem:[#allocation93_spill] sm:$0xff]  ;;  %v23421_v6 = vld [vmem:[#allocation284_spill] sm:$0xff] }
 0x37e   : > { %vm8260_vm0 = vcmp.gt.f32.partialorder %v19229_v16, 0.0  ;;  %v8331_v40 = vmul.f32 0.2, %v19292_v55  ;;  %10904 = vmatpush1.bf16.msra.mxu1 %v13658_v63  ;;  %v8404_v52 = vsel %vm8276_vm13, %v19296_v25, %v19350_v5  ;;  %v14126_v18 = vld [vmem:[%s21793_s3 + $0x2c] ss:$20 sps:$4 sm:$0xff]   ;;  %vm4662_vm9 = vcmp.gt.f32.partialorder %v23417_v9, 0.0 }
 0x37f   : > { %10791 = vmatprep.mubr.bf16.mxu1 %v14126_v18  ;;  %vm8252_vm11 = vcmp.gt.f32.partialorder %v19266_v10, 0.0  ;;  %v8316_v63 = vmul.f32 0.2, %v19266_v10  ;;  %vm8267_vm3 = vcmp.gt.f32.partialorder %v19292_v55, 0.0  ;;  %v8411_v25 = vsel %vm8283_vm14, %v19365_v33, %v8347_v56  ;;  %v23420_v5 = vld [vmem:[#allocation287_spill] sm:$0xff]  ;;  %10905 = vmatprep.subr.bf16.mxu1 %v13651_v17  ;;  %v23428_v54 = vld [vmem:[#allocation281_spill] sm:$0xff] }
 0x380   : > { %v23422_v34 = vpack.c.bf16 %v23420_v5, %v23421_v6  ;;  %vm23423_vm13 = vcmp.gt.f32.partialorder %v19225_v32, 0.0  ;;  %v8403_v11 = vsel %vm8275_vm8, %v19274_v35, %v19336_v50  ;;  %v13650_v4 = vpack.c.bf16 %v8419_v39, %v8411_v25  ;;  %v19560_v56 = vld [vmem:[%s21793_s3 + $0x88] ss:$20 sps:$4 sm:$0xff]   ;;  %v23429_v17 = vld [vmem:[#allocation278_spill] sm:$0xff]  ;;  %23439 = vst [vmem:[#allocation202_spill] sm:$0xff] %v19628_v31 }
 0x381   : > { %v19547_v22 = vsel %vm23423_vm13, %v19225_v32, %v19285_v14  ;;  %vm23424_vm14 = vcmp.gt.f32.partialorder %v19270_v49, 0.0  ;;  %v23425_v29 = vld [vmem:[#allocation83_spill] sm:$0xff]  ;;  %v23426_v14 = vld [vmem:[#allocation85_spill] sm:$0xff]  ;;  %vm7796_vm10 = vcmp.gt.f32.partialorder %v19245_v45, 0.0  ;;  %vm7820_vm8 = vcmp.gt.f32.partialorder %v19194_v20, 0.0  ;;  %v23436_v18 = vld [vmem:[#allocation100_spill] sm:$0xff] }
 0x382   : > { %10831 = vmatpush1.bf16.msra.mxu0 %v23422_v34  ;;  %v8396_v33 = vsel %vm23424_vm14, %v19270_v49, %v19333_v51  ;;  %vm4638_vm13 = vcmp.gt.f32.partialorder %v23425_v29, 0.0  ;;  %vm4646_vm6 = vcmp.gt.f32.partialorder %v23426_v14, 0.0  ;;  %v23427_v32 = vld [vmem:[#allocation361_spill] sm:$0xff]  ;;  %v8388_v49 = vsel %vm8260_vm0, %v19229_v16, %v19288_v43  ;;  %10906 = vmatpush1.bf16.msra.mxu1 %v13650_v4  ;;  %v23438_v58 = vld [vmem:[#allocation14_spill] sm:$0xff]  ;;  %v23442_v25 = vld [vmem:[#allocation315_spill] sm:$0xff] }
 0x383   : > { %10832 = vmatprep.subr.bf16.mxu0 %v13523_v27  ;;  %v19567_v35 = vadd.f32 %v22744_v61, %v23427_v32  ;;  %v13643_v50 = vpack.c.bf16 %v8404_v52, %v8396_v33  ;;  %v19577_v51 = vsel %vm8251_vm2, %v19259_v57, %v8315_v59  ;;  %v8395_v27 = vsel %vm8267_vm3, %v19292_v55, %v8331_v40  ;;  %v23444_v6 = vld [vmem:[#allocation104_spill] sm:$0xff]  ;;  %v23448_v4 = vld [vmem:[#allocation381_spill] sm:$0xff]  ;;  %v23450_v32 = vld [vmem:[#allocation387_spill] sm:$0xff] }
 0x384   : > { %v19586_v39 = vsel %vm7828_vm4, %v19198_v37, %v19255_v12  ;;  %v19592_v16 = vsel %vm6806_vm12, %v19093_v8, %v19132_v26  ;;  %vm7772_vm2 = vcmp.gt.f32.partialorder %v19136_v38, 0.0  ;;  %v19596_v57 = vmul.f32 0.2, %v19245_v45  ;;  %v23431_v8 = vld [vmem:[#allocation108_spill] sm:$0xff]  ;;  %v23432_v26 = vld [vmem:[#allocation111_spill] sm:$0xff]  ;;  %v23468_v13 = vld [vmem:[#allocation86_spill] sm:$0xff] }
 0x385   : > { %v13634_v55 = vpack.c.bf16 %v19547_v22, %v19577_v51  ;;  %v13642_v43 = vpack.c.bf16 %v8403_v11, %v8395_v27  ;;  %v23430_v59 = vpack.c.bf16 %v23428_v54, %v23429_v17  ;;  %10907 = vmatprep.subr.bf16.mxu1 %v13643_v50  ;;  %v8380_v37 = vsel %vm8252_vm11, %v19266_v10, %v8316_v63  ;;  %v23434_v10 = vld [vmem:[#allocation218_spill] sm:$0xff]  ;;  %v23437_v63 = vld [vmem:[#allocation59_spill] sm:$0xff]  ;;  %v23445_v34 = vld [vmem:[#allocation64_spill] sm:$0xff] }
 0x386   : > { %vm7804_vm3 = vcmp.gt.f32.partialorder %v19249_v21, 0.0  ;;  %vm23433_vm0 = vcmask 523264   ;;  %v13635_v12 = vpack.c.bf16 %v8388_v49, %v8380_v37  ;;  %v7948_v40 = vsel %vm7820_vm8, %v19194_v20, %v19252_v2  ;;  %10792 = vmatmul.mubr.bf16.gmra.mxu1 %v19628_v31  ;;  %v23446_v22 = vld [vmem:[#allocation365_spill] sm:$0xff]  ;;  %v23452_v49 = vld [vmem:[#allocation92_spill] sm:$0xff]  ;;  %v23453_v51 = vld [vmem:[#allocation95_spill] sm:$0xff] }
 0x387   : > { %10833 = vmatpush1.bf16.msra.mxu0 %v23430_v59  ;;  %vm23435_vm11 = vcmp.gt.f32.partialorder %v19079_v1, 0.0  ;;  %v13627_v20 = vpack.c.bf16 %v19586_v39, %v7948_v40  ;;  %vm23441_vm8 = vcmp.gt.f32.partialorder %v23388_v24, 0.0  ;;  %v7868_v11 = vmul.f32 0.2, %v19249_v21  ;;  %10908 = vmatpush1.bf16.msra.mxu1 %v13642_v43  ;;  %v23454_v39 = vld [vmem:[#allocation275_spill] sm:$0xff]  ;;  %v23457_v54 = vld [vmem:[#allocation422_spill] sm:$0xff] }
 0x388   : > { %10834 = vmatprep.subr.bf16.mxu0 %v13515_v46  ;;  %13073 = vmatmul.mubr.msk.bf16.gmra.mxu0 %vm23433_vm0, %v19560_v56  ;;  %v6926_v52 = vsel %vm23435_vm11, %v19079_v1, %v23434_v10  ;;  %v23440_v46 = vld [vmem:[#allocation426_spill] sm:$0xff]  ;;  %vm23443_vm0 = vcmp.gt.f32.partialorder %v23389_v60, 0.0  ;;  %v7876_v27 = vmul.f32 0.2, %v19567_v35  ;;  %v23459_v17 = vld [vmem:[#allocation424_spill] sm:$0xff]  ;;  %v23462_v40 = vld [vmem:[#allocation137_spill] sm:$0xff] }
 0x389   : > { %v13565_v2 = vpack.c.bf16 %v19592_v16, %v6926_v52  ;;  %v19637_v1 = vsel %vm23441_vm8, %v23388_v24, %v23440_v46  ;;  %v19643_v5 = vsel %vm23443_vm0, %v23389_v60, %v23442_v25  ;;  %v19652_v24 = vld [vmem:[%s21793_s3 + $0x54] ss:$20 sps:$4 sm:$0xff]   ;;  %vm23449_vm8 = vcmp.gt.f32.partialorder %v23398_v0, 0.0  ;;  %10909 = vmatprep.subr.bf16.mxu1 %v13635_v12  ;;  %v23466_v46 = vld [vmem:[#allocation379_spill] sm:$0xff] }
 0x38a   : > { %23447 = vst [vmem:[#allocation198_spill] sm:$0xff] %v19652_v24  ;;  %10801 = vmatprep.mubr.bf16.mxu1 %v19652_v24  ;;  %v19661_v33 = vsel %vm23449_vm8, %v23398_v0, %v23448_v4  ;;  %vm23451_vm0 = vcmp.gt.f32.partialorder %v23399_v7, 0.0  ;;  %v23455_v16 = vld [vmem:[#allocation270_spill] sm:$0xff]  ;;  %vm23458_vm8 = vcmp.gt.f32.partialorder %v23403_v3, 0.0  ;;  %v23461_v37 = vld [vmem:[#allocation84_spill] sm:$0xff]  ;;  %vm7812_vm4 = vcmp.gt.f32.partialorder %v19567_v35, 0.0 }
 0x38b   : > { %v19667_v50 = vsel %vm23451_vm0, %v23399_v7, %v23450_v32  ;;  %v23456_v43 = vpack.c.bf16 %v23454_v39, %v23455_v16  ;;  %v19681_v7 = vsel %vm23458_vm8, %v23403_v3, %v23457_v54  ;;  %vm23460_vm0 = vcmp.gt.f32.partialorder %v23404_v23, 0.0  ;;  %v23463_v12 = vld [vmem:[#allocation280_spill] sm:$0xff]  ;;  %v23470_v25 = vld [vmem:[#allocation211_spill] sm:$0xff]  ;;  %v23471_v32 = vld [vmem:[#allocation294_spill] sm:$0xff]  ;;  %10910 = vmatpush1.bf16.msra.mxu1 %v13634_v55 }
 0x38c   : > { %v19687_v59 = vsel %vm23460_vm0, %v23404_v23, %v23459_v17  ;;  %v19699_v3 = vld [vmem:[%s21793_s3 + $0xc] ss:$20 sps:$4 sm:$0xff]   ;;  %vm23465_vm8 = vcmp.gt.f32.partialorder %v23411_v19, 0.0  ;;  %vm23467_vm0 = vcmp.gt.f32.partialorder %v23412_v42, 0.0  ;;  %vm4648_vm14 = vcmp.gt.f32.partialorder %v23468_v13, 0.0  ;;  %v23477_v17 = vld [vmem:[#allocation374_spill] sm:$0xff]  ;;  %11041 = vmatprep.subr.bf16.mxu1 %v13565_v2 }
 0x38d   : > { %10835 = vmatpush1.bf16.msra.mxu0 %v23456_v43  ;;  %10854 = vmatprep.mubr.bf16.mxu0 %v19699_v3  ;;  %v23464_v10 = vld [vmem:[#allocation376_spill] sm:$0xff]  ;;  %v19714_v48 = vsel %vm23467_vm0, %v23412_v42, %v23466_v46  ;;  %vm5190_vm12 = vcmp.gt.f32.partialorder %v23470_v25, 0.0  ;;  %v23473_v39 = vld [vmem:[#allocation269_spill] sm:$0xff]  ;;  %vm23474_vm0 = vcmp.gt.f32.partialorder %v23416_v62, 0.0  ;;  %vm23476_vm11 = vcmp.gt.f32.partialorder %v23414_v15, 0.0  ;;  %v23482_v55 = vld [vmem:[#allocation206_spill] sm:$0xff] }
 0x38e   : > { %10836 = vmatprep.subr.bf16.mxu0 %v13507_v47  ;;  %v19708_v52 = vsel %vm23465_vm8, %v23411_v19, %v23464_v10  ;;  %v23469_v47 = vld [vmem:[#allocation71_spill] sm:$0xff]  ;;  %vm23472_vm8 = vcmp.gt.f32.partialorder %v23415_v41, 0.0  ;;  %v19731_v42 = vsel %vm23474_vm0, %v23416_v62, %v23473_v39  ;;  %v23475_v16 = vld [vmem:[#allocation372_spill] sm:$0xff]  ;;  %vm7788_vm0 = vcmp.gt.f32.partialorder %v23482_v55, 0.0  ;;  %v23484_v39 = vld [vmem:[#allocation262_spill] sm:$0xff] }
 0x38f   : > { %v19725_v19 = vsel %vm23472_vm8, %v23415_v41, %v23471_v32  ;;  %v19737_v43 = vsel %vm23476_vm11, %v23414_v15, %v23475_v16  ;;  %v19745_v41 = vsel %vm4662_vm9, %v23417_v9, %v23477_v17  ;;  %v23478_v10 = vld [vmem:[#allocation271_spill] sm:$0xff]  ;;  %vm23479_vm8 = vcmp.gt.f32.partialorder %v23418_v28, 0.0  ;;  %v23480_v46 = vld [vmem:[#allocation288_spill] sm:$0xff]  ;;  %v23541_v24 = vld [vmem:[#allocation394_spill] sm:$0xff] }
 0x390   : > { %v19751_v62 = vsel %vm23479_vm8, %v23418_v28, %v23478_v10  ;;  %vm23481_vm11 = vcmp.gt.f32.partialorder %v23419_v53, 0.0  ;;  %v23483_v32 = vld [vmem:[#allocation267_spill] sm:$0xff]  ;;  %v7940_v9 = vsel %vm7812_vm4, %v19567_v35, %v7876_v27  ;;  %v23486_v10 = vld [vmem:[#allocation342_spill] sm:$0xff]  ;;  %v7924_v2 = vsel %vm7796_vm10, %v19245_v45, %v19596_v57  ;;  %v23492_v57 = vld [vmem:[#allocation364_spill] sm:$0xff] }
 0x391   : > { %v19757_v15 = vsel %vm23481_vm11, %v23419_v53, %v23480_v46  ;;  %v23485_v16 = vpack.c.bf16 %v23483_v32, %v23484_v39  ;;  %vm7276_vm9 = vcmp.gt.f32.partialorder %v23486_v10, 0.0  ;;  %v23487_v53 = vld [vmem:[#allocation210_spill] sm:$0xff]  ;;  %v19789_v39 = vmul.f32 0.2, %v23486_v10  ;;  %v23495_v28 = vld [vmem:[#allocation81_spill] sm:$0xff]  ;;  %v23498_v4 = vld [vmem:[#allocation155_spill] sm:$0xff] }
 0x392   : > { %vm7780_vm8 = vcmp.gt.f32.partialorder %v23487_v53, 0.0  ;;  %v23488_v46 = vld [vmem:[#allocation366_spill] sm:$0xff]  ;;  %vm5216_vm10 = vcmp.gt.f32.partialorder %v23492_v57, 0.0  ;;  %v7916_v54 = vsel %vm7788_vm0, %v23482_v55, %v23495_v28  ;;  %v23502_v28 = vld [vmem:[#allocation204_spill] sm:$0xff]  ;;  %v23503_v60 = vld [vmem:[#allocation383_spill] sm:$0xff]  ;;  %vm23504_vm11 = vcmp.gt.f32.partialorder %v23431_v8, 0.0 }
 0x393   : > { %10837 = vmatpush1.bf16.msra.mxu0 %v23485_v16  ;;  %v19780_v35 = vsel %vm4638_vm13, %v23425_v29, %v23488_v46  ;;  %v23489_v27 = vld [vmem:[#allocation370_spill] sm:$0xff]  ;;  %v7932_v29 = vsel %vm7804_vm3, %v19249_v21, %v7868_v11  ;;  %v23494_v46 = vld [vmem:[#allocation164_spill] sm:$0xff]  ;;  %v23497_v11 = vld [vmem:[#allocation323_spill] sm:$0xff]  ;;  %v13611_v55 = vpack.c.bf16 %v7924_v2, %v7916_v54  ;;  %v7908_v0 = vsel %vm7780_vm8, %v23487_v53, %v23502_v28 }
 0x394   : > { %10838 = vmatprep.subr.bf16.mxu0 %v13627_v20  ;;  %v19786_v32 = vsel %vm4646_vm6, %v23426_v14, %v23489_v27  ;;  %v23490_v20 = vld [vmem:[#allocation345_spill] sm:$0xff]  ;;  %v23493_v16 = vld [vmem:[#allocation162_spill] sm:$0xff]  ;;  %vm5240_vm13 = vcmp.gt.f32.partialorder %v23494_v46, 0.0  ;;  %v13619_v17 = vpack.c.bf16 %v7940_v9, %v7932_v29  ;;  %v19821_v14 = vsel %vm7772_vm2, %v19136_v38, %v23497_v11  ;;  %v23500_v29 = vld [vmem:[#allocation400_spill] sm:$0xff] }
 0x395   : > { %vm7284_vm4 = vcmp.gt.f32.partialorder %v23490_v20, 0.0  ;;  %v19795_v45 = vld [vmem:[%s21793_s3 + $0x50] ss:$20 sps:$4 sm:$0xff]   ;;  %vm5232_vm6 = vcmp.gt.f32.partialorder %v23493_v16, 0.0  ;;  %v7348_v27 = vmul.f32 0.2, %v23490_v20 }
 0x396   : > { %23491 = vst [vmem:[#allocation144_spill] sm:$0xff] %v19795_v45  ;;  %10802 = vmatmul.mubr.bf16.gmra.mxu1 %v19795_v45  ;;  %v19814_v21 = vld [vmem:[%s21793_s3 + $0x7c] ss:$20 sps:$4 sm:$0xff]   ;;  %vm23507_vm2 = vcmp.gt.f32.partialorder %v23432_v26, 0.0  ;;  %v23511_v53 = vld [vmem:[#allocation172_spill] sm:$0xff]  ;;  %vm23512_vm8 = vcmp.gt.f32.partialorder %v23437_v63, 0.0 }
 0x397   : > { %23496 = vst [vmem:[#allocation326_spill] sm:$0xff] %v19814_v21  ;;  %10811 = vmatprep.mubr.bf16.mxu1 %v19814_v21  ;;  %v23499_v9 = vld [vmem:[#allocation401_spill] sm:$0xff]  ;;  %v19835_v21 = vsel %vm23504_vm11, %v23431_v8, %v23503_v60  ;;  %v23506_v38 = vld [vmem:[#allocation390_spill] sm:$0xff]  ;;  %v19851_v8 = vsel %vm23512_vm8, %v23437_v63, %v23511_v53  ;;  %v23514_v60 = vld [vmem:[#allocation228_spill] sm:$0xff]  ;;  %vm23515_vm11 = vcmp.gt.f32.partialorder %v23438_v58, 0.0  ;;  %vm23523_vm8 = vcmp.gt.f32.partialorder %v23444_v6, 0.0 }
 0x398   : > { %v23501_v23 = vpack.c.bf16 %v23499_v9, %v23500_v29  ;;  %23505 = vst [vmem:[#allocation324_spill] sm:$0xff] %v19835_v21  ;;  %v19841_v11 = vsel %vm23507_vm2, %v23432_v26, %v23506_v38  ;;  %v23509_v9 = vld [vmem:[#allocation140_spill] sm:$0xff]  ;;  %23513 = vst [vmem:[#allocation200_spill] sm:$0xff] %v19851_v8  ;;  %v19857_v26 = vsel %vm23515_vm11, %v23438_v58, %v23514_v60  ;;  %v23517_v2 = vld [vmem:[#allocation378_spill] sm:$0xff]  ;;  %vm23518_vm2 = vcmp.gt.f32.partialorder %v23436_v18, 0.0 }
 0x399   : > { %23508 = vst [vmem:[#allocation25_spill] sm:$0xff] %v19841_v11  ;;  %23516 = vst [vmem:[#allocation196_spill] sm:$0xff] %v19857_v26  ;;  %v23520_v29 = vld [vmem:[#allocation209_spill] sm:$0xff]  ;;  %v23522_v38 = vld [vmem:[#allocation380_spill] sm:$0xff]  ;;  %vm23526_vm11 = vcmp.gt.f32.partialorder %v23445_v34, 0.0 }
 0x39a   : > { %10839 = vmatpush2.bf16.msra.mxu0 %v23501_v23  ;;  %v23510_v23 = vld [vmem:[#allocation63_spill] sm:$0xff]  ;;  %v23521_v28 = vld [vmem:[#allocation97_spill] sm:$0xff]  ;;  %v19873_v53 = vsel %vm23523_vm8, %v23444_v6, %v23522_v38  ;;  %v23531_v54 = vld [vmem:[#allocation130_spill] sm:$0xff]  ;;  %vm23533_vm8 = vcmp.gt.f32.partialorder %v23452_v49, 0.0 }
 0x39b   : > { %10840 = vmatprep.subr.bf16.mxu0 %v13619_v17  ;;  %v19863_v17 = vsel %vm23518_vm2, %v23436_v18, %v23517_v2  ;;  %vm6782_vm0 = vcmp.gt.f32.partialorder %v23521_v28, 0.0  ;;  %23524 = vst [vmem:[#allocation347_spill] sm:$0xff] %v19873_v53  ;;  %v23525_v58 = vld [vmem:[#allocation55_spill] sm:$0xff]  ;;  %v23528_v18 = vld [vmem:[#allocation169_spill] sm:$0xff]  ;;  %vm23529_vm2 = vcmp.gt.f32.partialorder %v23446_v22, 0.0  ;;  %v23539_v45 = vld [vmem:[#allocation28_spill] sm:$0xff] }
 0x39c   : > { %23519 = vst [vmem:[#allocation322_spill] sm:$0xff] %v19863_v17  ;;  %v19879_v60 = vsel %vm23526_vm11, %v23445_v34, %v23525_v58  ;;  %v19885_v2 = vsel %vm23529_vm2, %v23446_v22, %v23528_v18  ;;  %v23532_v38 = vld [vmem:[#allocation373_spill] sm:$0xff]  ;;  %v23535_v58 = vld [vmem:[#allocation375_spill] sm:$0xff]  ;;  %vm23536_vm11 = vcmp.gt.f32.partialorder %v23453_v51, 0.0  ;;  %vm23550_vm2 = vcmp.gt.f32.partialorder %v23461_v37, 0.0  ;;  %v23577_v8 = vld [vmem:[#allocation16_spill] sm:$0xff] }
 0x39d   : > { %23527 = vst [vmem:[#allocation349_spill] sm:$0xff] %v19879_v60  ;;  %23530 = vst [vmem:[#allocation194_spill] sm:$0xff] %v19885_v2  ;;  %v19896_v34 = vsel %vm23533_vm8, %v23452_v49, %v23532_v38  ;;  %v19902_v22 = vsel %vm23536_vm11, %v23453_v51, %v23535_v58  ;;  %v23538_v18 = vld [vmem:[#allocation295_spill] sm:$0xff]  ;;  %v23543_v60 = vld [vmem:[#allocation156_spill] sm:$0xff]  ;;  %vm23544_vm8 = vcmp.gt.f32.partialorder %v23462_v40, 0.0  ;;  %vm23547_vm11 = vcmp.gt.f32.partialorder %v23463_v12, 0.0 }
 0x39e   : > { %23534 = vst [vmem:[#allocation190_spill] sm:$0xff] %v19896_v34  ;;  %23537 = vst [vmem:[#allocation279_spill] sm:$0xff] %v19902_v22  ;;  %v23540_v63 = vld [vmem:[#allocation395_spill] sm:$0xff]  ;;  %v19915_v49 = vsel %vm23544_vm8, %v23462_v40, %v23543_v60  ;;  %v23546_v38 = vld [vmem:[#allocation285_spill] sm:$0xff]  ;;  %vm23556_vm8 = vcmp.gt.f32.partialorder %v23469_v47, 0.0  ;;  %v13603_v34 = vpack.c.bf16 %v7908_v0, %v19821_v14 }
 0x39f   : > { %v23542_v31 = vpack.c.bf16 %v23540_v63, %v23541_v24  ;;  %23545 = vst [vmem:[#allocation369_spill] sm:$0xff] %v19915_v49  ;;  %v19921_v51 = vsel %vm23547_vm11, %v23463_v12, %v23546_v38  ;;  %v23549_v58 = vld [vmem:[#allocation368_spill] sm:$0xff]  ;;  %v23552_v24 = vld [vmem:[#allocation301_spill] sm:$0xff]  ;;  %v23553_v40 = vld [vmem:[#allocation371_spill] sm:$0xff] }
 0x3a0   : > { %23548 = vst [vmem:[#allocation377_spill] sm:$0xff] %v19921_v51  ;;  %v19936_v60 = vsel %vm4648_vm14, %v23468_v13, %v23553_v40  ;;  %v23555_v12 = vld [vmem:[#allocation20_spill] sm:$0xff]  ;;  %v23561_v63 = vld [vmem:[#allocation283_spill] sm:$0xff]  ;;  %v23567_v22 = vld [vmem:[#allocation321_spill] sm:$0xff] }
 0x3a1   : > { %10841 = vmatpush2.bf16.msra.mxu0 %v23542_v31  ;;  %v19927_v31 = vsel %vm23550_vm2, %v23461_v37, %v23549_v58  ;;  %23554 = vst [vmem:[#allocation188_spill] sm:$0xff] %v19936_v60  ;;  %v19942_v38 = vsel %vm23556_vm8, %v23469_v47, %v23555_v12  ;;  %v23558_v37 = vld [vmem:[#allocation152_spill] sm:$0xff]  ;;  %v23562_v6 = vld [vmem:[#allocation327_spill] sm:$0xff]  ;;  %v23568_v2 = vld [vmem:[#allocation214_spill] sm:$0xff]  ;;  %v7404_v12 = vsel %vm7276_vm9, %v23486_v10, %v19789_v39  ;;  %vm23585_vm9 = vcmp.gt.f32.partialorder %v23498_v4, 0.0 }
 0x3a2   : > { %23551 = vst [vmem:[#allocation192_spill] sm:$0xff] %v19927_v31  ;;  %10842 = vmatprep.subr.bf16.mxu0 %v13611_v55  ;;  %23557 = vst [vmem:[#allocation351_spill] sm:$0xff] %v19942_v38  ;;  %v19948_v55 = vsel %vm5190_vm12, %v23470_v25, %v23558_v37  ;;  %v23560_v58 = vld [vmem:[#allocation276_spill] sm:$0xff]  ;;  %v23563_v13 = vld [vmem:[#allocation27_spill] sm:$0xff]  ;;  %v7412_v38 = vsel %vm7284_vm4, %v23490_v20, %v7348_v27  ;;  %v19997_v27 = vpop.f32.mrf.mxu0  ;;  %vm23590_vm4 = vcmp.gt.f32.partialorder %v23509_v9, 0.0 }
 0x3a3   : > { %23559 = vst [vmem:[#allocation355_spill] sm:$0xff] %v19948_v55  ;;  %vm7260_vm14 = vcmp.gt.f32.partialorder %v23563_v13, 0.0  ;;  %v23564_v40 = vld [vmem:[#allocation212_spill] sm:$0xff]  ;;  %v19958_v47 = vld [vmem:[%s21793_s3 + $0x78] ss:$20 sps:$4 sm:$0xff]   ;;  %23580 = vst [vmem:[#allocation116_spill] sm:$0xff] %v19997_v27 }
 0x3a4   : > { %v7332_v49 = vmul.f32 0.2, %v23564_v40  ;;  %23565 = vst [vmem:[#allocation72_spill] sm:$0xff] %v19958_v47  ;;  %10812 = vmatmul.mubr.bf16.gmra.mxu1 %v19958_v47  ;;  %v23566_v37 = vld [vmem:[#allocation22_spill] sm:$0xff]  ;;  %vm7268_vm8 = vcmp.gt.f32.partialorder %v23564_v40, 0.0  ;;  %v23569_v47 = vld [vmem:[#allocation33_spill] sm:$0xff] }
 0x3a5   : > { %vm6790_vm12 = vcmp.gt.f32.partialorder %v23566_v37, 0.0  ;;  %v6854_v51 = vmul.f32 0.2, %v23566_v37  ;;  %10927 = vmatprep.mubr.bf16.mxu1 %v23351_v30  ;;  %v23570_v17 = vld [vmem:[#allocation11_spill] sm:$0xff]  ;;  %v23571_v55 = vld [vmem:[#allocation385_spill] sm:$0xff]  ;;  %v23572_v0 = vld [vmem:[#allocation384_spill] sm:$0xff] }
 0x3a6   : > { %v7188_v25 = vadd.f32 %v23570_v17, %v23569_v47  ;;  %v23573_v14 = vpack.c.bf16 %v23571_v55, %v23572_v0  ;;  %v23574_v31 = vld [vmem:[#allocation79_spill] sm:$0xff]  ;;  %v23575_v60 = vld [vmem:[#allocation357_spill] sm:$0xff]  ;;  %v23579_v10 = vld [vmem:[#allocation216_spill] sm:$0xff]  ;;  %v7396_v20 = vsel %vm7268_vm8, %v23564_v40, %v7332_v49  ;;  %v13833_v49 = vpack.c.bf16 %v7412_v38, %v7404_v12 }
 0x3a7   : > { %vm6288_vm11 = vcmp.gt.f32.partialorder %v23574_v31, 0.0  ;;  %vm6296_vm2 = vcmp.gt.f32.partialorder %v23575_v60, 0.0  ;;  %v23576_v53 = vld [vmem:[#allocation37_spill] sm:$0xff]  ;;  %v23578_v26 = vld [vmem:[#allocation339_spill] sm:$0xff]  ;;  %v7388_v39 = vsel %vm7260_vm14, %v23563_v13, %v23579_v10  ;;  %v6918_v40 = vsel %vm6790_vm12, %v23566_v37, %v6854_v51  ;;  %v23584_v10 = vld [vmem:[#allocation360_spill] sm:$0xff] }
 0x3a8   : > { %10843 = vmatpush2.bf16.msra.mxu0 %v23573_v14  ;;  %v7172_v47 = vadd.f32 %v23577_v8, %v23576_v53  ;;  %vm7244_vm3 = vcmp.gt.f32.partialorder %v23578_v26, 0.0  ;;  %v7308_v21 = vmul.f32 0.2, %v23578_v26  ;;  %v23581_v55 = vld [vmem:[#allocation175_spill] sm:$0xff]  ;;  %v23582_v0 = vld [vmem:[#allocation233_spill] sm:$0xff]  ;;  %v23587_v27 = vld [vmem:[#allocation362_spill] sm:$0xff]  ;;  %v23658_v37 = vpack.c.bf16 %v19667_v50, %v19661_v33 }
 0x3a9   : > { %10844 = vmatprep.subr.bf16.mxu0 %v13603_v34  ;;  %v20003_v53 = vsel %vm5232_vm6, %v23493_v16, %v23581_v55  ;;  %v20009_v14 = vsel %vm5240_vm13, %v23494_v46, %v23582_v0  ;;  %v23583_v13 = vld [vmem:[#allocation163_spill] sm:$0xff]  ;;  %v20026_v46 = vsel %vm23585_vm9, %v23498_v4, %v23584_v10  ;;  %v7316_v55 = vmul.f32 0.2, %v7188_v25  ;;  %v23589_v38 = vld [vmem:[#allocation158_spill] sm:$0xff]  ;;  %v23634_v16 = vld [vmem:[#allocation205_spill] sm:$0xff] }
 0x3aa   : > { %v20015_v34 = vsel %vm5216_vm10, %v23492_v57, %v23583_v13  ;;  %v23586_v0 = vld [vmem:[#allocation367_spill] sm:$0xff]  ;;  %v20037_v51 = vsel %vm23590_vm4, %v23509_v9, %v23589_v38  ;;  %v23591_v12 = vld [vmem:[#allocation286_spill] sm:$0xff]  ;;  %vm23592_vm10 = vcmp.gt.f32.partialorder %v23510_v23, 0.0  ;;  %vm7252_vm6 = vcmp.gt.f32.partialorder %v7188_v25, 0.0  ;;  %v23595_v9 = vld [vmem:[#allocation148_spill] sm:$0xff]  ;;  %v20060_v38 = vpop.f32.mrf.mxu0 }
 0x3ab   : > { %v23588_v11 = vpack.c.bf16 %v23586_v0, %v23587_v27  ;;  %v20043_v4 = vsel %vm23592_vm10, %v23510_v23, %v23591_v12  ;;  %vm23596_vm13 = vcmp.gt.f32.partialorder %v23520_v29, 0.0  ;;  %v7292_v23 = vmul.f32 0.2, %v23568_v2  ;;  %v23600_v57 = vld [vmem:[#allocation154_spill] sm:$0xff]  ;;  %v23603_v13 = vld [vmem:[#allocation39_spill] sm:$0xff]  ;;  %v23666_v50 = vld [vmem:[#allocation309_spill] sm:$0xff] }
 0x3ac   : > { %v20057_v10 = vsel %vm23596_vm13, %v23520_v29, %v23595_v9  ;;  %v13839_v0 = vpack.c.bf16 %v7396_v20, %v7388_v39  ;;  %vm23599_vm14 = vcmask 523264   ;;  %vm7236_vm12 = vcmp.gt.f32.partialorder %v7172_v47, 0.0  ;;  %v23605_v9 = vld [vmem:[#allocation21_spill] sm:$0xff]  ;;  %v23665_v33 = vld [vmem:[#allocation310_spill] sm:$0xff] }
 0x3ad   : > { %10845 = vmatpush2.bf16.msra.mxu0 %v23588_v11  ;;  %v23594_v11 = vld [vmem:[#allocation18_spill] sm:$0xff]  ;;  %23597 = vst [vmem:[#allocation306_spill] sm:$0xff] %v20057_v10  ;;  %vm23606_vm8 = vcmp.gt.f32.partialorder %v23539_v45, 0.0  ;;  %vm23608_vm9 = vcmp.gt.f32.partialorder %v23538_v18, 0.0  ;;  %vm23615_vm4 = vcmp.gt.f32.partialorder %v23552_v24, 0.0  ;;  %vm23620_vm10 = vcmp.gt.f32.partialorder %v23560_v58, 0.0 }
 0x3ae   : > { %13834 = vmatprep.subr.msk.bf16.mxu0 %vm18911_vm1, %v13833_v49  ;;  %v6910_v27 = vsel %vm6782_vm0, %v23521_v28, %v23594_v11  ;;  %v23598_v49 = vld [vmem:[#allocation208_spill] sm:$0xff]  ;;  %vm23601_vm0 = vcmp.gt.f32.partialorder %v23531_v54, 0.0  ;;  %v23602_v11 = vld [vmem:[#allocation31_spill] sm:$0xff]  ;;  %v6902_v39 = vsel %vm23606_vm8, %v23539_v45, %v23605_v9 }
 0x3af   : > { %13074 = vmatmul.mubr.msk.bf16.vlgmr.msra.gmra.mxu1 %vm23599_vm14, %v23598_v49  ;;  %v13557_v12 = vpack.c.bf16 %v6918_v40, %v6910_v27  ;;  %v20068_v28 = vsel %vm23601_vm0, %v23531_v54, %v23600_v57  ;;  %v23604_v29 = vpack.c.bf16 %v23602_v11, %v23603_v13  ;;  %v23607_v40 = vld [vmem:[#allocation428_spill] sm:$0xff]  ;;  %v7300_v57 = vmul.f32 0.2, %v7172_v47  ;;  %v23610_v49 = vld [vmem:[#allocation195_spill] sm:$0xff] }
 0x3b0   : > { %10937 = vmatprep.mubr.bf16.mxu1 %v23351_v30  ;;  %v20084_v54 = vsel %vm23608_vm9, %v23538_v18, %v23607_v40  ;;  %v7372_v27 = vsel %vm7244_vm3, %v23578_v26, %v7308_v21  ;;  %v7380_v13 = vsel %vm7252_vm6, %v7188_v25, %v7316_v55  ;;  %v23611_v45 = vld [vmem:[#allocation203_spill] sm:$0xff]  ;;  %vm23618_vm3 = vcmp.gt.f32.partialorder %v23562_v6, 0.0  ;;  %v23629_v26 = vld [vmem:[#allocation240_spill] sm:$0xff] }
 0x3b1   : > { %11042 = vmatpush1.bf16.msra.mxu1 %v23604_v29  ;;  %23609 = vst [vmem:[#allocation308_spill] sm:$0xff] %v20084_v54  ;;  %v23612_v11 = vpack.c.bf16 %v23610_v49, %v23611_v45  ;;  %v23614_v9 = vld [vmem:[#allocation319_spill] sm:$0xff]  ;;  %vm23623_vm6 = vcmp.gt.f32.partialorder %v23561_v63, 0.0  ;;  %v20122_v49 = vpop.f32.mrf.mxu0  ;;  %vm23627_vm14 = vcmp.gt.f32.partialorder %v23568_v2, 0.0  ;;  %vm23632_vm0 = vcmp.gt.f32.partialorder %v23567_v22, 0.0  ;;  %v23663_v29 = vld [vmem:[#allocation410_spill] sm:$0xff] }
 0x3b2   : > { %11043 = vmatprep.subr.bf16.mxu1 %v13557_v12  ;;  %v20099_v18 = vsel %vm23615_vm4, %v23552_v24, %v23614_v9  ;;  %v23617_v40 = vld [vmem:[#allocation431_spill] sm:$0xff]  ;;  %v23622_v12 = vld [vmem:[#allocation425_spill] sm:$0xff]  ;;  %v7364_v45 = vsel %vm7236_vm12, %v7172_v47, %v7300_v57 }
 0x3b3   : > { %13837 = vmatpush2.bf16.msk.msra.mxu0 %vm18878_vm5, %v23612_v11  ;;  %23616 = vst [vmem:[#allocation146_spill] sm:$0xff] %v20099_v18  ;;  %v6894_v21 = vsel %vm23618_vm3, %v23562_v6, %v23617_v40  ;;  %v23619_v25 = vld [vmem:[#allocation423_spill] sm:$0xff]  ;;  %v20119_v24 = vsel %vm23623_vm6, %v23561_v63, %v23622_v12  ;;  %v23626_v11 = vld [vmem:[#allocation277_spill] sm:$0xff]  ;;  %v13845_v40 = vpack.c.bf16 %v7380_v13, %v7372_v27  ;;  %v23631_v63 = vld [vmem:[#allocation430_spill] sm:$0xff]  ;;  %v20166_v57 = vpop.f32.mrf.mxu0 }
 0x3b4   : > { %13840 = vmatprep.subr.msk.bf16.mxu0 %vm18911_vm1, %v13839_v0  ;;  %v20113_v55 = vsel %vm23620_vm10, %v23560_v58, %v23619_v25  ;;  %23624 = vst [vmem:[#allocation312_spill] sm:$0xff] %v20119_v24  ;;  %v23625_v0 = vld [vmem:[#allocation317_spill] sm:$0xff]  ;;  %v13549_v6 = vpack.c.bf16 %v6902_v39, %v6894_v21  ;;  %v6336_v9 = vmul.f32 0.2, %v23626_v11  ;;  %v7356_v58 = vsel %vm23627_vm14, %v23568_v2, %v7292_v23  ;;  %v23628_v25 = vld [vmem:[#allocation250_spill] sm:$0xff] }
 0x3b5   : > { %23621 = vst [vmem:[#allocation76_spill] sm:$0xff] %v20113_v55  ;;  %vm6750_vm13 = vcmp.gt.f32.partialorder %v23625_v0, 0.0  ;;  %v23630_v20 = vpack.c.bf16 %v23628_v25, %v23629_v26  ;;  %v6886_v12 = vsel %vm23632_vm0, %v23567_v22, %v23631_v63  ;;  %v23633_v39 = vld [vmem:[#allocation289_spill] sm:$0xff]  ;;  %vm6272_vm12 = vcmp.gt.f32.partialorder %v23626_v11, 0.0  ;;  %v23643_v13 = vld [vmem:[#allocation74_spill] sm:$0xff]  ;;  %v23644_v26 = vld [vmem:[#allocation75_spill] sm:$0xff] }
 0x3b6   : > { %v6344_v21 = vmul.f32 0.2, %v23633_v39  ;;  %v23635_v55 = vld [vmem:[#allocation273_spill] sm:$0xff]  ;;  %vm6280_vm8 = vcmp.gt.f32.partialorder %v23633_v39, 0.0 }
 0x3b7   : > { %11044 = vmatpush1.bf16.msra.mxu1 %v23630_v20  ;;  %v23636_v24 = vpack.c.bf16 %v23634_v16, %v23635_v55  ;;  %v23637_v2 = vld [vmem:[#allocation73_spill] sm:$0xff]  ;;  %v23645_v55 = vpack.c.bf16 %v23643_v13, %v23644_v26  ;;  %v23669_v26 = vld [vmem:[#allocation127_spill] sm:$0xff] }
 0x3b8   : > { %11045 = vmatprep.subr.bf16.mxu1 %v13549_v6  ;;  %v20148_v23 = vsel %vm6288_vm11, %v23574_v31, %v23637_v2  ;;  %v23639_v20 = vld [vmem:[#allocation421_spill] sm:$0xff]  ;;  %v20183_v25 = vsel %vm6280_vm8, %v23633_v39, %v6344_v21  ;;  %v23654_v2 = vld [vmem:[#allocation26_spill] sm:$0xff]  ;;  %v23731_v31 = vld [vmem:[#allocation207_spill] sm:$0xff] }
 0x3b9   : > { %13843 = vmatpush2.bf16.msk.msra.mxu0 %vm18878_vm5, %v23636_v24  ;;  %23638 = vst [vmem:[#allocation124_spill] sm:$0xff] %v20148_v23  ;;  %v20154_v22 = vsel %vm6296_vm2, %v23575_v60, %v23639_v20  ;;  %v23641_v47 = vld [vmem:[#allocation429_spill] sm:$0xff]  ;;  %vm23642_vm2 = vcmask 523264   ;;  %v13851_v60 = vpack.c.bf16 %v7364_v45, %v7356_v58  ;;  %v23646_v24 = vld [vmem:[#allocation19_spill] sm:$0xff]  ;;  %23650 = vst [vmem:[#allocation263_spill] sm:$0xff] %v20183_v25  ;;  %v20189_v45 = vpop.f32.mrf.mxu0 }
 0x3ba   : > { %23640 = vst [vmem:[#allocation243_spill] sm:$0xff] %v20154_v22  ;;  %13846 = vmatprep.subr.msk.bf16.mxu0 %vm18911_vm1, %v13845_v40  ;;  %v6878_v16 = vsel %vm6750_vm13, %v23625_v0, %v23641_v47  ;;  %13075 = vmatmul.mubr.msk.bf16.gmra.mxu1 %vm23642_vm2, %v19347_v44  ;;  %v23647_v6 = vld [vmem:[#allocation17_spill] sm:$0xff]  ;;  %v20180_v0 = vsel %vm6272_vm12, %v23626_v11, %v6336_v9  ;;  %v23651_v58 = vld [vmem:[#allocation88_spill] sm:$0xff]  ;;  %v23655_v20 = vld [vmem:[#allocation23_spill] sm:$0xff] }
 0x3bb   : > { %v13541_v27 = vpack.c.bf16 %v6886_v12, %v6878_v16  ;;  %11046 = vmatpush1.bf16.msra.mxu1 %v23645_v55  ;;  %10947 = vmatprep.mubr.bf16.mxu1 %v23351_v30  ;;  %v23648_v40 = vpack.c.bf16 %v23646_v24, %v23647_v6  ;;  %23649 = vst [vmem:[#allocation87_spill] sm:$0xff] %v20180_v0  ;;  %v23652_v63 = vld [vmem:[#allocation89_spill] sm:$0xff]  ;;  %v20212_v21 = vpop.f32.mrf.mxu0  ;;  %vm23662_vm11 = vmmov %vm23642_vm2  ;;  %v23664_v16 = vld [vmem:[#allocation6_spill] sm:$0xff] }
 0x3bc   : > { %v23653_v12 = vpack.c.bf16 %v23651_v58, %v23652_v63  ;;  %v23656_v47 = vpack.c.bf16 %v23654_v2, %v23655_v20  ;;  %v23657_v11 = vpack.c.bf16 %v19643_v5, %v19637_v1  ;;  %v7766_v1 = vadd.f32 %v23664_v16, %v23663_v29  ;;  %v20221_v5 = vld [vmem:[%s21793_s3 + $0x8] ss:$20 sps:$4 sm:$0xff]   ;;  %v23670_v55 = vld [vmem:[#allocation126_spill] sm:$0xff]  ;;  %vm23688_vm9 = vmmov %vm23642_vm2 }
 0x3bd   : > { %13849 = vmatpush2.bf16.msk.msra.mxu0 %vm18878_vm5, %v23648_v40  ;;  %11047 = vmatprep.subr.bf16.mxu1 %v13541_v27  ;;  %v23667_v27 = vpack.c.bf16 %v23665_v33, %v23666_v50  ;;  %v23671_v24 = vpack.c.bf16 %v23669_v26, %v23670_v55  ;;  %v23673_v6 = vld [vmem:[#allocation409_spill] sm:$0xff]  ;;  %v23674_v40 = vld [vmem:[#allocation4_spill] sm:$0xff]  ;;  %v23675_v63 = vpack.c.bf16 %v19714_v48, %v19708_v52  ;;  %v20247_v2 = vpop.f32.mrf.mxu0  ;;  %v23681_v9 = vld [vmem:[#allocation118_spill] sm:$0xff] }
 0x3be   : > { %13852 = vmatprep.subr.msk.bf16.mxu0 %vm18911_vm1, %v13851_v60  ;;  %vm20208_vm1 = vmpackc.low %vm14811_vm15, %vm14811_vm15  ;;  %v23668_v60 = vld [vmem:[#allocation7_spill] sm:$0xff]  ;;  %v7758_v58 = vadd.f32 %v23674_v40, %v23673_v6  ;;  %v7894_v20 = vmul.f32 0.2, %v7766_v1  ;;  %vm7830_vm15 = vcmp.gt.f32.partialorder %v7766_v1, 0.0  ;;  %v23680_v48 = vld [vmem:[#allocation120_spill] sm:$0xff]  ;;  %v23683_v33 = vpack.c.bf16 %v19731_v42, %v19725_v19 }
 0x3bf   : > { %11048 = vmatpush1.bf16.msra.mxu1 %v23653_v12  ;;  %v313_v13 = vadd.s32 640, %v23668_v60  ;;  %v20244_v12 = vld [vmem:[%s21793_s3 + $0x34] ss:$20 sps:$4 sm:$0xff]   ;;  %v23682_v29 = vpack.c.bf16 %v23680_v48, %v23681_v9  ;;  %v20269_v6 = vpop.f32.mrf.mxu0  ;;  %v23696_v9 = vpack.c.bf16 %v19757_v15, %v19751_v62  ;;  %v20304_v62 = vpop.f32.mrf.mxu1 }
 0x3c0   : > { %11049 = vmatprep.subr.bf16.mxu1 %v23657_v11  ;;  %v23678_v11 = vld [vmem:[#allocation303_spill] sm:$0xff]  ;;  %v23684_v50 = vld [vmem:[#allocation402_spill] sm:$0xff]  ;;  %v7886_v55 = vmul.f32 0.2, %v7758_v58  ;;  %23700 = vst [vmem:[#allocation335_spill] sm:$0xff] %v20304_v62  ;;  %v23733_v25 = vld [vmem:[#allocation49_spill] sm:$0xff] }
 0x3c1   : > { %13855 = vmatpush2.bf16.msk.msra.mxu0 %vm18878_vm5, %v23656_v47  ;;  %v23677_v47 = vld [vmem:[#allocation304_spill] sm:$0xff]  ;;  %v337_v52 = vand.u32 15, %v313_v13  ;;  %vm7822_vm5 = vcmp.gt.f32.partialorder %v7758_v58, 0.0  ;;  %v20306_v15 = vpop.f32.mrf.mxu0  ;;  %v23750_v62 = vld [vmem:[#allocation46_spill] sm:$0xff] }
 0x3c2   : > { %10968 = vmatprep.subr.bf16.mxu0 %v23658_v37  ;;  %13076 = vmatmul.mubr.msk.bf16.gmra.mxu1 %vm23662_vm11, %v19440_v36  ;;  %v23672_v36 = vpack.c.bf16 %v19687_v59, %v19681_v7  ;;  %v23676_v7 = vld [vmem:[#allocation403_spill] sm:$0xff]  ;;  %v23679_v37 = vpack.c.bf16 %v23677_v47, %v23678_v11  ;;  %v23687_v13 = vld [vmem:[#allocation12_spill] sm:$0xff]  ;;  %v7958_v11 = vsel %vm7830_vm15, %v7766_v1, %v7894_v20 }
 0x3c3   : > { %11050 = vmatpush1.bf16.msra.mxu1 %v23667_v27  ;;  %10957 = vmatprep.mubr.bf16.mxu1 %v23351_v30  ;;  %v7750_v59 = vadd.f32 %v22744_v61, %v23676_v7  ;;  %v23685_v27 = vld [vmem:[#allocation5_spill] sm:$0xff]  ;;  %vm345_vm4 = vcmp.ne.s32.totalorder %v337_v52, 0  ;;  %v7950_v1 = vsel %vm7822_vm5, %v7758_v58, %v7886_v55  ;;  %v23704_v55 = vld [vmem:[#allocation292_spill] sm:$0xff] }
 0x3c4   : > { %10855 = vmatmul.mubr.bf16.vlgmr.msra.gmra.mxu0 %v20221_v5  ;;  %11051 = vmatprep.subr.bf16.mxu1 %v23672_v36  ;;  %v7742_v26 = vadd.f32 %v23685_v27, %v23684_v50  ;;  %v336_v36 = vand.u32 15, %v23687_v13  ;;  %v20278_v7 = vld [vmem:[%s21793_s3 + $0x30] ss:$20 sps:$4 sm:$0xff]   ;;  %v23699_v13 = vpack.c.bf16 %v19786_v32, %v19780_v35  ;;  %v13629_v52 = vpack.c.bf16 %v7958_v11, %v7950_v1  ;;  %vm20308_vm13 = vmpackc.low %vm345_vm4, %vm345_vm4 }
 0x3c5   : > { %13858 = vmatpush1.bf16.msk.msra.mxu0 %vm20208_vm1, %v23671_v24  ;;  %10864 = vmatprep.mubr.bf16.mxu0 %v20244_v12  ;;  %v23686_v24 = vpack.c.bf16 %v19745_v41, %v19737_v43  ;;  %v7878_v42 = vmul.f32 0.2, %v7750_v59  ;;  %v23690_v43 = vld [vmem:[#allocation298_spill] sm:$0xff]  ;;  %v23691_v41 = vld [vmem:[#allocation297_spill] sm:$0xff]  ;;  %vm7814_vm3 = vcmp.gt.f32.partialorder %v7750_v59, 0.0  ;;  %v23703_v35 = vld [vmem:[#allocation392_spill] sm:$0xff]  ;;  %v7198_v0 = vadd.f32 %v23685_v27, %v23731_v31 }
 0x3c6   : > { %10970 = vmatprep.subr.bf16.mxu0 %v23675_v63  ;;  %v23689_v63 = vld [vmem:[#allocation398_spill] sm:$0xff]  ;;  %v23692_v47 = vpack.c.bf16 %v23690_v43, %v23691_v41  ;;  %vm344_vm10 = vcmp.ne.s32.totalorder %v336_v36, 0  ;;  %vm7806_vm6 = vcmp.gt.f32.partialorder %v7742_v26, 0.0  ;;  %v7718_v32 = vadd.f32 %v23577_v8, %v23703_v35  ;;  %v23705_v43 = vld [vmem:[#allocation291_spill] sm:$0xff] }
 0x3c7   : > { %11052 = vmatpush1.bf16.msra.mxu1 %v23679_v37  ;;  %v7734_v19 = vadd.f32 %v23570_v17, %v23689_v63  ;;  %v23693_v37 = vld [vmem:[#allocation113_spill] sm:$0xff]  ;;  %v23706_v41 = vpack.c.bf16 %v23704_v55, %v23705_v43  ;;  %v7942_v36 = vsel %vm7814_vm3, %v7750_v59, %v7878_v42  ;;  %vm20324_vm0 = vmpackc.low %vm344_vm10, %vm344_vm10  ;;  %v23715_v1 = vld [vmem:[#allocation66_spill] sm:$0xff]  ;;  %v20336_v42 = vpop.f32.mrf.mxu1 }
 0x3c8   : > { %11053 = vmatprep.subr.bf16.mxu1 %v23683_v33  ;;  %v23698_v33 = vld [vmem:[#allocation10_spill] sm:$0xff]  ;;  %v23717_v43 = vld [vmem:[#allocation160_spill] sm:$0xff]  ;;  %vm7782_vm8 = vcmp.gt.f32.partialorder %v7718_v32, 0.0 }
 0x3c9   : > { %13861 = vmatpush1.bf16.msk.msra.mxu0 %vm20208_vm1, %v23682_v29  ;;  %v23697_v29 = vld [vmem:[#allocation396_spill] sm:$0xff]  ;;  %v20301_v20 = vld [vmem:[%s21793_s3 + $0x5c] ss:$20 sps:$4 sm:$0xff]   ;;  %v7862_v58 = vmul.f32 0.2, %v7734_v19  ;;  %vm7798_vm14 = vcmp.gt.f32.partialorder %v7734_v19, 0.0 }
 0x3ca   : > { %10972 = vmatprep.subr.bf16.mxu0 %v23686_v24  ;;  %13077 = vmatmul.mubr.msk.bf16.gmra.mxu1 %vm23688_vm9, %v19560_v56  ;;  %v23694_v56 = vld [vmem:[#allocation112_spill] sm:$0xff]  ;;  %v7726_v50 = vadd.f32 %v23698_v33, %v23697_v29  ;;  %v7870_v24 = vmul.f32 0.2, %v7742_v26  ;;  %vm7262_vm9 = vcmp.gt.f32.partialorder %v7198_v0, 0.0 }
 0x3cb   : > { %11054 = vmatpush1.bf16.msra.mxu1 %v23692_v47  ;;  %v23695_v48 = vpack.c.bf16 %v23693_v37, %v23694_v56  ;;  %11073 = vmatprep.mubr.bf16.mxu1 %v19699_v3  ;;  %v23707_v47 = vld [vmem:[#allocation105_spill] sm:$0xff]  ;;  %v23708_v37 = vld [vmem:[#allocation103_spill] sm:$0xff]  ;;  %v23712_v56 = vld [vmem:[#allocation386_spill] sm:$0xff]  ;;  %v315_v3 = vadd.s32 896, %v23668_v60 }
 0x3cc   : > { %10865 = vmatmul.mubr.bf16.gmra.mxu0 %v20278_v7  ;;  %11055 = vmatprep.subr.bf16.mxu1 %v23696_v9  ;;  %v23709_v11 = vpack.c.bf16 %v23707_v47, %v23708_v37  ;;  %v7854_v29 = vmul.f32 0.2, %v7726_v50  ;;  %v7934_v59 = vsel %vm7806_vm6, %v7742_v26, %v7870_v24  ;;  %vm7790_vm12 = vcmp.gt.f32.partialorder %v7726_v50, 0.0  ;;  %v20345_v37 = vld [vmem:[%s21793_s3 + $0x58] ss:$20 sps:$4 sm:$0xff]  }
 0x3cd   : > { %13864 = vmatpush1.bf16.msk.msra.mxu0 %vm20208_vm1, %v23695_v48  ;;  %10874 = vmatprep.mubr.bf16.mxu0 %v20301_v20  ;;  %v23713_v48 = vld [vmem:[#allocation13_spill] sm:$0xff]  ;;  %v13621_v55 = vpack.c.bf16 %v7942_v36, %v7934_v59  ;;  %v7846_v47 = vmul.f32 0.2, %v7718_v32  ;;  %v7926_v24 = vsel %vm7798_vm14, %v7734_v19, %v7862_v58  ;;  %v23722_v36 = vld [vmem:[#allocation131_spill] sm:$0xff]  ;;  %v23723_v59 = vld [vmem:[#allocation60_spill] sm:$0xff]  ;;  %v20369_v58 = vpop.f32.mrf.mxu1 }
 0x3ce   : > { %10974 = vmatprep.subr.bf16.mxu0 %v23699_v13  ;;  %v7710_v9 = vadd.f32 %v23713_v48, %v23712_v56  ;;  %v23714_v13 = vld [vmem:[#allocation67_spill] sm:$0xff]  ;;  %v23719_v56 = vld [vmem:[#allocation382_spill] sm:$0xff] }
 0x3cf   : > { %11056 = vmatpush1.bf16.msra.mxu1 %v23706_v41  ;;  %v23716_v35 = vpack.c.bf16 %v23714_v13, %v23715_v1  ;;  %v7222_v41 = vadd.f32 %v23664_v16, %v23717_v43  ;;  %v23721_v13 = vld [vmem:[#allocation68_spill] sm:$0xff]  ;;  %v7214_v1 = vadd.f32 %v23674_v40, %v23722_v36 }
 0x3d0   : > { %11057 = vmatprep.subr.bf16.mxu1 %v13629_v52  ;;  %v20338_v52 = vpop.f32.mrf.mxu0  ;;  %v23724_v43 = vld [vmem:[#allocation56_spill] sm:$0xff]  ;;  %vm7774_vm2 = vcmp.gt.f32.partialorder %v7710_v9, 0.0 }
 0x3d1   : > { %13867 = vmatpush1.bf16.msk.msra.mxu0 %vm20208_vm1, %v23709_v11  ;;  %v23718_v11 = vld [vmem:[#allocation77_spill] sm:$0xff]  ;;  %v23725_v44 = vpack.c.bf16 %v23723_v59, %v23724_v43  ;;  %v20366_v19 = vld [vmem:[%s21793_s3 + $0x84] ss:$20 sps:$4 sm:$0xff]   ;;  %v7350_v36 = vmul.f32 0.2, %v7222_v41  ;;  %vm7286_vm11 = vcmp.gt.f32.partialorder %v7222_v41, 0.0 }
 0x3d2   : > { %13870 = vmatprep.subr.msk.bf16.mxu0 %vm20308_vm13, %v23716_v35  ;;  %v23720_v26 = vpack.c.bf16 %v23718_v11, %v23719_v56  ;;  %v7838_v35 = vmul.f32 0.2, %v7710_v9  ;;  %v7918_v11 = vsel %vm7790_vm12, %v7726_v50, %v7854_v29  ;;  %v23728_v59 = vld [vmem:[#allocation417_spill] sm:$0xff]  ;;  %v7910_v29 = vsel %vm7782_vm8, %v7718_v32, %v7846_v47  ;;  %v23730_v43 = vld [vmem:[#allocation58_spill] sm:$0xff] }
 0x3d3   : > { %v13613_v56 = vpack.c.bf16 %v7926_v24, %v7918_v11  ;;  %v7342_v24 = vmul.f32 0.2, %v7214_v1  ;;  %v23732_v11 = vld [vmem:[#allocation53_spill] sm:$0xff]  ;;  %vm7278_vm15 = vcmp.gt.f32.partialorder %v7214_v1, 0.0  ;;  %v7414_v23 = vsel %vm7286_vm11, %v7222_v41, %v7350_v36  ;;  %v20398_v31 = vld [vmem:[%s21793_s3 + $0x80] ss:$20 sps:$4 sm:$0xff]  }
 0x3d4   : > { %10875 = vmatmul.mubr.bf16.gmra.mxu0 %v20345_v37  ;;  %11058 = vmatpush2.bf16.msra.mxu1 %v23720_v26  ;;  %v23726_v26 = vld [vmem:[#allocation193_spill] sm:$0xff]  ;;  %v7326_v36 = vmul.f32 0.2, %v7198_v0 }
 0x3d5   : > { %13873 = vmatpush1.bf16.msk.msra.mxu0 %vm20324_vm0, %v23721_v13  ;;  %11059 = vmatprep.subr.bf16.mxu1 %v13621_v55  ;;  %v20371_v55 = vpop.f32.mrf.mxu0  ;;  %v7206_v13 = vadd.f32 %v22744_v61, %v23726_v26  ;;  %v23734_v26 = vpack.c.bf16 %v23732_v11, %v23733_v25  ;;  %v23737_v25 = vld [vmem:[#allocation413_spill] sm:$0xff]  ;;  %v23740_v11 = vld [vmem:[#allocation51_spill] sm:$0xff] }
 0x3d6   : > { %13876 = vmatprep.subr.msk.bf16.mxu0 %vm20308_vm13, %v23725_v44  ;;  %10884 = vmatprep.mubr.bf16.mxu0 %v20366_v19  ;;  %v23727_v44 = vld [vmem:[#allocation418_spill] sm:$0xff]  ;;  %v7390_v18 = vsel %vm7262_vm9, %v7198_v0, %v7326_v36  ;;  %v23759_v36 = vld [vmem:[#allocation251_spill] sm:$0xff] }
 0x3d7   : > { %v23729_v50 = vpack.c.bf16 %v23727_v44, %v23728_v59  ;;  %v7902_v44 = vsel %vm7774_vm2, %v7710_v9, %v7838_v35  ;;  %v20389_v59 = vpop.f32.mrf.mxu1  ;;  %v20391_v32 = vpop.f32.mrf.mxu0  ;;  %v23738_v9 = vld [vmem:[#allocation411_spill] sm:$0xff]  ;;  %vm7270_vm5 = vcmp.gt.f32.partialorder %v7206_v13, 0.0  ;;  %v23758_v0 = vld [vmem:[#allocation254_spill] sm:$0xff] }
 0x3d8   : > { %23735 = vst [vmem:[#allocation161_spill] sm:$0xff] %v20389_v59  ;;  %v13605_v47 = vpack.c.bf16 %v7910_v29, %v7902_v44  ;;  %v23739_v35 = vpack.c.bf16 %v23737_v25, %v23738_v9  ;;  %v23741_v29 = vld [vmem:[#allocation266_spill] sm:$0xff]  ;;  %v23742_v44 = vld [vmem:[#allocation45_spill] sm:$0xff] }
 0x3d9   : > { %11060 = vmatpush2.bf16.msra.mxu1 %v23729_v50  ;;  %13879 = vmatpush1.bf16.msk.msra.mxu0 %vm20324_vm0, %v23730_v43  ;;  %v23736_v50 = vld [vmem:[#allocation139_spill] sm:$0xff]  ;;  %v7334_v43 = vmul.f32 0.2, %v7206_v13  ;;  %v7182_v41 = vadd.f32 %v23698_v33, %v23741_v29  ;;  %v20420_v9 = vpop.f32.mrf.mxu1  ;;  %v23755_v59 = vld [vmem:[#allocation353_spill] sm:$0xff] }
 0x3da   : > { %11061 = vmatprep.subr.bf16.mxu1 %v13613_v56  ;;  %13882 = vmatprep.subr.msk.bf16.mxu0 %vm20308_vm13, %v23734_v26  ;;  %v7190_v56 = vadd.f32 %v23570_v17, %v23736_v50  ;;  %v7406_v26 = vsel %vm7278_vm15, %v7214_v1, %v7342_v24  ;;  %v23743_v50 = vld [vmem:[#allocation43_spill] sm:$0xff]  ;;  %23745 = vst [vmem:[#allocation157_spill] sm:$0xff] %v20420_v9  ;;  %v23746_v1 = vld [vmem:[#allocation274_spill] sm:$0xff] }
 0x3db   : > { %v23744_v22 = vpack.c.bf16 %v23742_v44, %v23743_v50  ;;  %v20417_v25 = vld [vmem:[%s21793_s3 + $0x4] ss:$20 sps:$4 sm:$0xff]   ;;  %v7174_v24 = vadd.f32 %v23577_v8, %v23746_v1  ;;  %v7398_v29 = vsel %vm7270_vm5, %v7206_v13, %v7334_v43  ;;  %v23747_v44 = vld [vmem:[#allocation405_spill] sm:$0xff]  ;;  %v7310_v54 = vmul.f32 0.2, %v7182_v41 }
 0x3dc   : > { %10885 = vmatmul.mubr.bf16.gmra.mxu0 %v20398_v31  ;;  %vm7254_vm4 = vcmp.gt.f32.partialorder %v7190_v56, 0.0  ;;  %v23752_v1 = vld [vmem:[#allocation259_spill] sm:$0xff]  ;;  %v23753_v9 = vld [vmem:[#allocation258_spill] sm:$0xff]  ;;  %vm7246_vm3 = vcmp.gt.f32.partialorder %v7182_v41, 0.0  ;;  %v13935_v43 = vpack.c.bf16 %v7398_v29, %v7390_v18 }
 0x3dd   : > { %11062 = vmatpush2.bf16.msra.mxu1 %v23739_v35  ;;  %13885 = vmatpush1.bf16.msk.msra.mxu0 %vm20324_vm0, %v23740_v11  ;;  %v20422_v35 = vpop.f32.mrf.mxu0  ;;  %v7318_v11 = vmul.f32 0.2, %v7190_v56  ;;  %v23754_v13 = vpack.c.bf16 %v23752_v1, %v23753_v9  ;;  %vm7238_vm10 = vcmp.gt.f32.partialorder %v7174_v24, 0.0  ;;  %v23760_v9 = vpack.c.bf16 %v23758_v0, %v23759_v36  ;;  %v23766_v0 = vld [vmem:[#allocation142_spill] sm:$0xff] }
 0x3de   : > { %11063 = vmatprep.subr.bf16.mxu1 %v13605_v47  ;;  %13888 = vmatprep.subr.msk.bf16.mxu0 %vm20308_vm13, %v23744_v22  ;;  %v13929_v47 = vpack.c.bf16 %v7414_v23, %v7406_v26  ;;  %v23748_v22 = vld [vmem:[#allocation404_spill] sm:$0xff]  ;;  %v23751_v23 = vld [vmem:[#allocation217_spill] sm:$0xff]  ;;  %v7374_v29 = vsel %vm7246_vm3, %v7182_v41, %v7310_v54  ;;  %v23769_v54 = vld [vmem:[#allocation239_spill] sm:$0xff] }
 0x3df   : > { %11000 = vmatprep.mubr.bf16.mxu0 %v20417_v25  ;;  %v23749_v50 = vpack.c.bf16 %v23747_v44, %v23748_v22  ;;  %v7166_v26 = vadd.f32 %v23713_v48, %v23751_v23  ;;  %v20441_v44 = vpop.f32.mrf.mxu1  ;;  %v3801_v22 = vpop.f32.mrf.mxu0  ;;  %v23761_v23 = vld [vmem:[#allocation248_spill] sm:$0xff] }
 0x3e1   : > { %11064 = vmatpush2.bf16.msra.mxu1 %v23749_v50  ;;  %13891 = vmatpush1.bf16.msk.msra.mxu0 %vm20324_vm0, %v23750_v62  ;;  %v7302_v62 = vmul.f32 0.2, %v7174_v24  ;;  %v7382_v50 = vsel %vm7254_vm4, %v7190_v56, %v7318_v11  ;;  %v7294_v18 = vmul.f32 0.2, %v7166_v26  ;;  %v23762_v56 = vld [vmem:[#allocation242_spill] sm:$0xff]  ;;  %vm7230_vm6 = vcmp.gt.f32.partialorder %v7166_v26, 0.0  ;;  %v3803_v1 = vpop.f32.mrf.mxu0 }
 0x3e2   : > { %13930 = vmatprep.subr.msk.bf16.mxu1 %vm20308_vm13, %v13929_v47  ;;  %13894 = vmatprep.subr.msk.bf16.mxu0 %vm20308_vm13, %v23754_v13  ;;  %v23756_v47 = vld [vmem:[#allocation352_spill] sm:$0xff]  ;;  %v23763_v11 = vpack.c.bf16 %v23761_v23, %v23762_v56 }
 0x3e3   : > { %v23757_v10 = vpack.c.bf16 %v23755_v59, %v23756_v47  ;;  %v20460_v59 = vpop.f32.mrf.mxu1  ;;  %v7366_v13 = vsel %vm7238_vm10, %v7174_v24, %v7302_v62  ;;  %v23765_v47 = vld [vmem:[#allocation135_spill] sm:$0xff]  ;;  %v3805_v56 = vpop.f32.mrf.mxu0 }
 0x3e4   : > { %23764 = vst [vmem:[#allocation147_spill] sm:$0xff] %v20460_v59  ;;  %v23767_v36 = vpack.c.bf16 %v23765_v47, %v23766_v0  ;;  %v23775_v47 = vld [vmem:[#allocation119_spill] sm:$0xff] }
 0x3e5   : > { %13933 = vmatpush2.bf16.msk.msra.mxu1 %vm20324_vm0, %v23757_v10  ;;  %13897 = vmatpush2.bf16.msk.msra.mxu0 %vm20324_vm0, %v23760_v9  ;;  %v13941_v10 = vpack.c.bf16 %v7382_v50, %v7374_v29  ;;  %v7358_v50 = vsel %vm7230_vm6, %v7166_v26, %v7294_v18  ;;  %v23771_v9 = vld [vmem:[#allocation236_spill] sm:$0xff]  ;;  %v23772_v29 = vld [vmem:[#allocation230_spill] sm:$0xff]  ;;  %v20479_v62 = vpop.f32.mrf.mxu1  ;;  %v20493_v26 = vpop.f32.mrf.mxu0  ;;  %v23781_v18 = vld [vmem:[#allocation225_spill] sm:$0xff] }
 0x3e6   : > { %13936 = vmatprep.subr.msk.bf16.mxu1 %vm20308_vm13, %v13935_v43  ;;  %13900 = vmatprep.subr.msk.bf16.mxu0 %vm20308_vm13, %v23763_v11  ;;  %v23768_v43 = vld [vmem:[#allocation245_spill] sm:$0xff]  ;;  %v23773_v23 = vpack.c.bf16 %v23771_v9, %v23772_v29  ;;  %v13947_v24 = vpack.c.bf16 %v7366_v13, %v7358_v50  ;;  %v23774_v11 = vld [vmem:[#allocation151_spill] sm:$0xff]  ;;  %23780 = vst [vmem:[#allocation334_spill] sm:$0xff] %v20493_v26 }
 0x3e7   : > { %v23770_v41 = vpack.c.bf16 %v23768_v43, %v23769_v54  ;;  %v23776_v0 = vpack.c.bf16 %v23774_v11, %v23775_v47  ;;  %v23778_v43 = vld [vmem:[#allocation227_spill] sm:$0xff]  ;;  %v23782_v13 = vld [vmem:[#allocation221_spill] sm:$0xff] }
 0x3e8   : > { %v23783_v54 = vpack.c.bf16 %v23781_v18, %v23782_v13  ;;  %v23784_v50 = vld [vmem:[#allocation191_spill] sm:$0xff]  ;;  %v23797_v18 = vld [vmem:[#allocation196_spill] sm:$0xff] }
 0x3e9   : > { %13939 = vmatpush2.bf16.msk.msra.mxu1 %vm20324_vm0, %v23767_v36  ;;  %13903 = vmatpush2.bf16.msk.msra.mxu0 %vm20324_vm0, %v23770_v41  ;;  %v23777_v36 = vld [vmem:[#allocation234_spill] sm:$0xff]  ;;  %v20500_v41 = vpop.f32.mrf.mxu1  ;;  %v23785_v9 = vld [vmem:[#allocation123_spill] sm:$0xff]  ;;  %v23798_v13 = vld [vmem:[#allocation200_spill] sm:$0xff] }
 0x3ea   : > { %13942 = vmatprep.subr.msk.bf16.mxu1 %vm20308_vm13, %v13941_v10  ;;  %13906 = vmatprep.subr.msk.bf16.mxu0 %vm20308_vm13, %v23773_v23  ;;  %v23779_v10 = vpack.c.bf16 %v23777_v36, %v23778_v43  ;;  %v23786_v29 = vpack.c.bf16 %v23784_v50, %v23785_v9  ;;  %v23787_v23 = vld [vmem:[#allocation223_spill] sm:$0xff]  ;;  %v23800_v9 = vld [vmem:[#allocation129_spill] sm:$0xff]  ;;  %v23969_v43 = vld [vmem:[#allocation308_spill] sm:$0xff] }
 0x3eb   : > { %v23788_v11 = vld [vmem:[#allocation219_spill] sm:$0xff]  ;;  %v20527_v50 = vpop.f32.mrf.mxu1 }
 0x3ec   : > { %v23789_v47 = vpack.c.bf16 %v23787_v23, %v23788_v11  ;;  %v8246_v11 = vadd.f32 %v23664_v16, %v3805_v56  ;;  %v8238_v56 = vadd.f32 %v23674_v40, %v3801_v22  ;;  %v23820_v22 = vld [vmem:[#allocation279_spill] sm:$0xff] }
 0x3ed   : > { %13945 = vmatpush2.bf16.msk.msra.mxu1 %vm20324_vm0, %v23776_v0  ;;  %13909 = vmatpush2.bf16.msk.msra.mxu0 %vm20324_vm0, %v23779_v10  ;;  %v23791_v0 = vld [vmem:[#allocation324_spill] sm:$0xff]  ;;  %v20522_v10 = vpop.f32.mrf.mxu0 }
 0x3ee   : > { %13948 = vmatprep.subr.msk.bf16.mxu1 %vm20308_vm13, %v13947_v24  ;;  %13912 = vmatprep.subr.msk.bf16.mxu0 %vm20308_vm13, %v23783_v54  ;;  %v23790_v24 = vld [vmem:[#allocation25_spill] sm:$0xff]  ;;  %vm20518_vm13 = vmpackc.low %vm14837_vm7, %vm14837_vm7  ;;  %23796 = vst [vmem:[#allocation333_spill] sm:$0xff] %v20522_v10  ;;  %v23799_v54 = vpack.c.bf16 %v23797_v18, %v23798_v13  ;;  %v23810_v18 = vld [vmem:[#allocation15_spill] sm:$0xff]  ;;  %vm8310_vm14 = vcmp.gt.f32.partialorder %v8246_v11, 0.0  ;;  %vm8302_vm12 = vcmp.gt.f32.partialorder %v8238_v56, 0.0 }
 0x3ef   : > { %v23792_v36 = vpack.c.bf16 %v23790_v24, %v23791_v0  ;;  %v23804_v24 = vld [vmem:[#allocation184_spill] sm:$0xff]  ;;  %v20546_v60 = vpop.f32.mrf.mxu0  ;;  %v338_v13 = vand.u32 15, %v23810_v18 }
 0x3f0   : > { %23809 = vst [vmem:[#allocation171_spill] sm:$0xff] %v20546_v60  ;;  %v23818_v18 = vld [vmem:[#allocation180_spill] sm:$0xff] }
 0x3f1   : > { %13951 = vmatpush2.bf16.msk.msra.mxu1 %vm20324_vm0, %v23786_v29  ;;  %13915 = vmatpush2.bf16.msk.msra.mxu0 %vm20324_vm0, %v23789_v47  ;;  %v23801_v29 = vld [vmem:[#allocation125_spill] sm:$0xff]  ;;  %vm20573_vm7 = vcmp.ne.s32.totalorder %v338_v13, 0  ;;  %v8222_v13 = vadd.f32 %v23685_v27, %v20338_v52  ;;  %v23839_v60 = vld [vmem:[#allocation192_spill] sm:$0xff] }
 0x3f2   : > { %11187 = vmatprep.subr.bf16.mxu1 %v23792_v36  ;;  %10992 = vmatprep.subr.bf16.mxu0 %v23799_v54  ;;  %v23802_v23 = vpack.c.bf16 %v23800_v9, %v23801_v29  ;;  %v23803_v47 = vld [vmem:[#allocation185_spill] sm:$0xff]  ;;  %v23806_v36 = vld [vmem:[#allocation347_spill] sm:$0xff]  ;;  %v23811_v54 = vld [vmem:[#allocation194_spill] sm:$0xff] }
 0x3f3   : > { %v23805_v0 = vpack.c.bf16 %v23803_v47, %v23804_v24  ;;  %v23812_v9 = vld [vmem:[#allocation349_spill] sm:$0xff]  ;;  %v8245_v47 = vadd.f32 %v23664_v16, %v3803_v1  ;;  %v20571_v1 = vpop.f32.mrf.mxu0  ;;  %vm8286_vm5 = vcmp.gt.f32.partialorder %v8222_v13, 0.0  ;;  %vm20652_vm9 = vmpackc.low %vm20573_vm7, %vm20573_vm7 }
 0x3f4   : > { %11074 = vmatmul.mubr.bf16.vlgmr.msra.gmra.mxu1 %v20221_v5  ;;  %v23807_v5 = vld [vmem:[#allocation322_spill] sm:$0xff]  ;;  %v23813_v29 = vpack.c.bf16 %v23811_v54, %v23812_v9  ;;  %v23814_v24 = vld [vmem:[#allocation121_spill] sm:$0xff]  ;;  %23823 = vst [vmem:[#allocation24_spill] sm:$0xff] %v20571_v1 }
 0x3f5   : > { %13954 = vmatpush1.bf16.msk.msra.mxu1 %vm20518_vm13, %v23802_v23  ;;  %11083 = vmatprep.mubr.bf16.mxu1 %v20244_v12  ;;  %v23808_v63 = vpack.c.bf16 %v23806_v36, %v23807_v5  ;;  %v20552_v12 = vpop.f32.mrf.mxu1  ;;  %v339_v23 = vand.u32 15, %v315_v3  ;;  %v8230_v36 = vadd.f32 %v22744_v61, %v20391_v32  ;;  %v8374_v5 = vmul.f32 0.2, %v8246_v11  ;;  %v23821_v3 = vld [vmem:[#allocation190_spill] sm:$0xff]  ;;  %v23833_v52 = vld [vmem:[#allocation109_spill] sm:$0xff] }
 0x3f6   : > { %13918 = vmatpush2.bf16.msk.msra.mxu0 %vm20208_vm1, %v23805_v0  ;;  %v23815_v0 = vld [vmem:[#allocation117_spill] sm:$0xff]  ;;  %v23822_v9 = vpack.c.bf16 %v23820_v22, %v23821_v3  ;;  %v8366_v3 = vmul.f32 0.2, %v8238_v56  ;;  %vm8309_vm8 = vcmp.gt.f32.partialorder %v8245_v47, 0.0 }
 0x3f7   : > { %11189 = vmatprep.subr.bf16.mxu1 %v23808_v63  ;;  %10994 = vmatprep.subr.bf16.mxu0 %v23813_v29  ;;  %v23816_v10 = vpack.c.bf16 %v23814_v24, %v23815_v0  ;;  %v23817_v63 = vld [vmem:[#allocation181_spill] sm:$0xff]  ;;  %v8237_v24 = vadd.f32 %v23674_v40, %v20422_v35  ;;  %v20592_v22 = vpop.f32.mrf.mxu1  ;;  %vm20594_vm0 = vcmp.ne.s32.totalorder %v339_v23, 0  ;;  %v20601_v35 = vadd.f32 %v23577_v8, %v20122_v49  ;;  %v23835_v49 = vld [vmem:[#allocation174_spill] sm:$0xff] }
 0x3f8   : > { %v23819_v54 = vpack.c.bf16 %v23817_v63, %v23818_v18  ;;  %v23827_v0 = vld [vmem:[#allocation377_spill] sm:$0xff]  ;;  %v8358_v23 = vmul.f32 0.2, %v8230_v36  ;;  %vm8294_vm2 = vcmp.gt.f32.partialorder %v8230_v36, 0.0  ;;  %vm20634_vm11 = vmpackc.low %vm20594_vm0, %vm20594_vm0 }
 0x3f9   : > { %13957 = vmatpush1.bf16.msk.msra.mxu1 %vm20518_vm13, %v23816_v10  ;;  %v23826_v10 = vld [vmem:[#allocation343_spill] sm:$0xff]  ;;  %v23828_v63 = vld [vmem:[#allocation369_spill] sm:$0xff]  ;;  %vm8301_vm15 = vcmp.gt.f32.partialorder %v8237_v24, 0.0 }
 0x3fa   : > { %13921 = vmatpush2.bf16.msk.msra.mxu0 %vm20208_vm1, %v23819_v54  ;;  %11191 = vmatprep.subr.bf16.mxu1 %v23822_v9  ;;  %v20579_v32 = vadd.f32 %v23674_v40, %v23826_v10  ;;  %v23829_v18 = vpack.c.bf16 %v23827_v0, %v23828_v63  ;;  %v20588_v54 = vadd.f32 %v23713_v48, %v20060_v38  ;;  %v8373_v10 = vmul.f32 0.2, %v8245_v47  ;;  %v23832_v0 = vld [vmem:[#allocation114_spill] sm:$0xff]  ;;  %v23848_v9 = vld [vmem:[#allocation101_spill] sm:$0xff] }
 0x3fb   : > { %v8229_v38 = vadd.f32 %v22744_v61, %v20371_v55  ;;  %v23834_v63 = vpack.c.bf16 %v23832_v0, %v23833_v52  ;;  %v23838_v55 = vld [vmem:[#allocation188_spill] sm:$0xff]  ;;  %v8438_v0 = vsel %vm8310_vm14, %v8246_v11, %v8374_v5  ;;  %v20622_v52 = vpop.f32.mrf.mxu0  ;;  %v8213_v11 = vadd.f32 %v23570_v17, %v20247_v2 }
 0x3fc   : > { %10996 = vmatprep.subr.bf16.mxu0 %v23829_v18  ;;  %11084 = vmatmul.mubr.bf16.gmra.mxu1 %v20278_v7  ;;  %v8214_v7 = vadd.f32 %v23570_v17, %v20269_v6  ;;  %v23836_v18 = vld [vmem:[#allocation173_spill] sm:$0xff]  ;;  %v23840_v26 = vpack.c.bf16 %v23838_v55, %v23839_v60  ;;  %v8221_v6 = vadd.f32 %v23685_v27, %v20306_v15  ;;  %v20640_v60 = vpop.f32.mrf.mxu1  ;;  %v23850_v2 = vmov 0 }
 0x3fd   : > { %13960 = vmatpush1.bf16.msk.msra.mxu1 %vm20518_vm13, %v23834_v63  ;;  %11093 = vmatprep.mubr.bf16.mxu1 %v20301_v20  ;;  %v23837_v1 = vpack.c.bf16 %v23835_v49, %v23836_v18  ;;  %v8206_v20 = vadd.f32 %v23698_v33, %v20212_v21  ;;  %v8365_v63 = vmul.f32 0.2, %v8237_v24  ;;  %v23841_v49 = vld [vmem:[#allocation355_spill] sm:$0xff]  ;;  %v8350_v21 = vmul.f32 0.2, %v8222_v13 }
 0x3fe   : > { %11193 = vmatprep.subr.bf16.mxu1 %v23840_v26  ;;  %v23842_v18 = vld [vmem:[#allocation351_spill] sm:$0xff]  ;;  %v23844_v26 = vmov 0  ;;  %v8430_v15 = vsel %vm8302_vm12, %v8238_v56, %v8366_v3  ;;  %v8357_v5 = vmul.f32 0.2, %v8229_v38  ;;  %v23851_v2 = vsel %vm20652_vm9, 4294967295, %v23850_v2 }
 0x3ff   : > { %13924 = vmatpush2.bf16.msk.msra.mxu0 %vm20208_vm1, %v23837_v1  ;;  %v23843_v59 = vpack.c.bf16 %v23841_v49, %v23842_v18  ;;  %v23845_v26 = vsel %vm20634_vm11, 4294967295, %v23844_v26  ;;  %v23847_v1 = vld [vmem:[#allocation106_spill] sm:$0xff]  ;;  %v13661_v49 = vpack.c.bf16 %v8438_v0, %v8430_v15  ;;  %23852 = vst [vmem:[#allocation34_spill] sm:$0xff] %v23851_v2  ;;  %v8198_v56 = vadd.f32 %v23577_v8, %v20166_v57  ;;  %v23857_v0 = vld [vmem:[#allocation65_spill] sm:$0xff] }
 0x400   : > { %23846 = vst [vmem:[#allocation132_spill] sm:$0xff] %v23845_v26  ;;  %v23849_v55 = vpack.c.bf16 %v23847_v1, %v23848_v9  ;;  %v8342_v3 = vmul.f32 0.2, %v8214_v7  ;;  %vm8293_vm4 = vcmp.gt.f32.partialorder %v8229_v38, 0.0  ;;  %v23856_v1 = vld [vmem:[#allocation70_spill] sm:$0xff]  ;;  %v8422_v29 = vsel %vm8294_vm2, %v8230_v36, %v8358_v23  ;;  %v20669_v9 = vpop.f32.mrf.mxu0  ;;  %v23930_v2 = vld [vmem:[#allocation189_spill] sm:$0xff] }
 0x401   : > { %10998 = vmatprep.subr.bf16.mxu0 %v23843_v59  ;;  %v8437_v59 = vsel %vm8309_vm8, %v8245_v47, %v8373_v10  ;;  %v23853_v47 = vld [vmem:[#allocation168_spill] sm:$0xff]  ;;  %v23854_v10 = vld [vmem:[#allocation167_spill] sm:$0xff]  ;;  %v23858_v15 = vpack.c.bf16 %v23856_v1, %v23857_v0  ;;  %23859 = vst [vmem:[#allocation30_spill] sm:$0xff] %v20669_v9  ;;  %v8205_v57 = vadd.f32 %v23698_v33, %v20189_v45  ;;  %vm8278_vm3 = vcmp.gt.f32.partialorder %v8214_v7, 0.0 }
 0x402   : > { %13963 = vmatpush1.bf16.msk.msra.mxu1 %vm20518_vm13, %v23849_v55  ;;  %v23855_v18 = vpack.c.bf16 %v23853_v47, %v23854_v10  ;;  %v8349_v55 = vmul.f32 0.2, %v8221_v6  ;;  %v8429_v47 = vsel %vm8301_vm15, %v8237_v24, %v8365_v63  ;;  %v8334_v39 = vmul.f32 0.2, %v8206_v20  ;;  %v20674_v10 = vpop.f32.mrf.mxu1  ;;  %v20682_v45 = vld [vmem:[%s21793_s3] ss:$20 sps:$4 sm:$0xff]   ;;  %v20696_v0 = vpop.f32.mrf.mxu0 }
 0x403   : > { %13966 = vmatprep.subr.msk.bf16.mxu1 %vm20634_vm11, %v23858_v15  ;;  %v8414_v1 = vsel %vm8286_vm5, %v8222_v13, %v8350_v21  ;;  %vm8270_vm10 = vcmp.gt.f32.partialorder %v8206_v20, 0.0  ;;  %v8341_v36 = vmul.f32 0.2, %v8213_v11  ;;  %v8421_v23 = vsel %vm8293_vm4, %v8229_v38, %v8357_v5  ;;  %v23860_v24 = vld [vmem:[#allocation69_spill] sm:$0xff]  ;;  %23865 = vst [vmem:[#allocation177_spill] sm:$0xff] %v20696_v0  ;;  %v23866_v15 = vld [vmem:[#allocation116_spill] sm:$0xff] }
 0x404   : > { %13927 = vmatpush2.bf16.msk.msra.mxu0 %vm20208_vm1, %v23855_v18  ;;  %vm8285_vm1 = vcmp.gt.f32.partialorder %v8221_v6, 0.0  ;;  %v13660_v18 = vpack.c.bf16 %v8437_v59, %v8429_v47  ;;  %11094 = vmatmul.mubr.bf16.gmra.mxu1 %v20345_v37  ;;  %v13653_v63 = vpack.c.bf16 %v8422_v29, %v8414_v1  ;;  %v23861_v59 = vld [vmem:[#allocation346_spill] sm:$0xff]  ;;  %v8326_v37 = vmul.f32 0.2, %v8198_v56  ;;  %v23862_v21 = vld [vmem:[#allocation61_spill] sm:$0xff] }
 0x405   : > { %11122 = vmatprep.subr.bf16.mxu0 %v13661_v49  ;;  %v6744_v13 = vadd.f32 %v23664_v16, %v23861_v59  ;;  %vm8277_vm6 = vcmp.gt.f32.partialorder %v8213_v11, 0.0  ;;  %v23863_v38 = vld [vmem:[#allocation57_spill] sm:$0xff]  ;;  %v8406_v49 = vsel %vm8278_vm3, %v8214_v7, %v8342_v3  ;;  %v8189_v47 = vadd.f32 %v23713_v48, %v23866_v15  ;;  %v20708_v3 = vpop.f32.mrf.mxu1  ;;  %11103 = vmatprep.mubr.bf16.mxu1 %v20366_v19 }
 0x406   : > { %13969 = vmatpush1.bf16.msk.msra.mxu1 %vm20652_vm9, %v23860_v24  ;;  %v23864_v5 = vpack.c.bf16 %v23862_v21, %v23863_v38  ;;  %vm8262_vm7 = vcmp.gt.f32.partialorder %v8198_v56, 0.0  ;;  %v8333_v29 = vmul.f32 0.2, %v8205_v57  ;;  %v8413_v1 = vsel %vm8285_vm1, %v8221_v6, %v8349_v55 }
 0x407   : > { %11001 = vmatmul.mubr.bf16.vlgmr.msra.gmra.mxu0 %v20682_v45  ;;  %v8318_v24 = vmul.f32 0.2, %v20588_v54  ;;  %vm8269_vm14 = vcmp.gt.f32.partialorder %v8205_v57, 0.0  ;;  %v13652_v7 = vpack.c.bf16 %v8421_v23, %v8413_v1  ;;  %v8398_v59 = vsel %vm8270_vm10, %v8206_v20, %v8334_v39  ;;  %v23868_v20 = vld [vmem:[#allocation54_spill] sm:$0xff]  ;;  %v20730_v1 = vpop.f32.mrf.mxu1 }
 0x408   : > { %11123 = vmatpush1.bf16.msra.mxu0 %v13660_v18  ;;  %13972 = vmatprep.subr.msk.bf16.mxu1 %vm20634_vm11, %v23864_v5  ;;  %v20704_v18 = vld [vmem:[%s21793_s3 + $0x2c] ss:$20 sps:$4 sm:$0xff]   ;;  %vm8254_vm0 = vcmp.gt.f32.partialorder %v20588_v54, 0.0  ;;  %v8325_v6 = vmul.f32 0.2, %v20601_v35  ;;  %v8405_v55 = vsel %vm8277_vm6, %v8213_v11, %v8341_v36  ;;  %v13645_v21 = vpack.c.bf16 %v8406_v49, %v8398_v59  ;;  %v23869_v39 = vld [vmem:[#allocation50_spill] sm:$0xff]  ;;  %v20726_v11 = vpop.f32.mrf.mxu0 }
 0x409   : > { %11124 = vmatprep.subr.bf16.mxu0 %v13653_v63  ;;  %11010 = vmatprep.mubr.bf16.mxu0 %v20704_v18  ;;  %v23867_v63 = vld [vmem:[#allocation62_spill] sm:$0xff]  ;;  %v6864_v38 = vmul.f32 0.2, %v20579_v32  ;;  %v6872_v23 = vmul.f32 0.2, %v6744_v13  ;;  %vm8261_vm12 = vcmp.gt.f32.partialorder %v20601_v35, 0.0  ;;  %v23870_v19 = vpack.c.bf16 %v23868_v20, %v23869_v39 }
 0x40a   : > { %13975 = vmatpush1.bf16.msk.msra.mxu1 %vm20652_vm9, %v23867_v63  ;;  %v8390_v5 = vsel %vm8262_vm7, %v8198_v56, %v8326_v37  ;;  %23871 = vst [vmem:[#allocation98_spill] sm:$0xff] %v20726_v11  ;;  %vm6800_vm8 = vcmp.gt.f32.partialorder %v20579_v32, 0.0  ;;  %vm6808_vm2 = vcmp.gt.f32.partialorder %v6744_v13, 0.0  ;;  %v8317_v36 = vmul.f32 0.2, %v8189_v47  ;;  %v23872_v37 = vld [vmem:[#allocation202_spill] sm:$0xff] }
 0x40b   : > { %13978 = vmatprep.subr.msk.bf16.mxu1 %vm20634_vm11, %v23870_v19  ;;  %v8397_v49 = vsel %vm8269_vm14, %v8205_v57, %v8333_v29  ;;  %vm8253_vm15 = vcmp.gt.f32.partialorder %v8189_v47, 0.0  ;;  %v8389_v56 = vsel %vm8261_vm12, %v20601_v35, %v8325_v6  ;;  %v23873_v59 = vld [vmem:[#allocation52_spill] sm:$0xff]  ;;  %v20750_v35 = vpop.f32.mrf.mxu1  ;;  %v23879_v19 = vld [vmem:[#allocation47_spill] sm:$0xff] }
 0x40c   : > { %11125 = vmatpush1.bf16.msra.mxu0 %v13652_v7  ;;  %v13644_v15 = vpack.c.bf16 %v8405_v55, %v8397_v49  ;;  %v8382_v7 = vsel %vm8254_vm0, %v20588_v54, %v8318_v24  ;;  %11104 = vmatmul.mubr.bf16.gmra.mxu1 %v20398_v31  ;;  %v23874_v29 = vld [vmem:[#allocation48_spill] sm:$0xff]  ;;  %v6928_v31 = vsel %vm6800_vm8, %v20579_v32, %v6864_v38  ;;  %v20752_v24 = vpop.f32.mrf.mxu0  ;;  %v23881_v38 = vld [vmem:[#allocation257_spill] sm:$0xff]  ;;  %vm23932_vm8 = vcmask 523264  }
 0x40d   : > { %11126 = vmatprep.subr.bf16.mxu0 %v13645_v21  ;;  %v13637_v57 = vpack.c.bf16 %v8390_v5, %v8382_v7  ;;  %v23875_v55 = vld [vmem:[#allocation44_spill] sm:$0xff]  ;;  %v6936_v54 = vsel %vm6808_vm2, %v6744_v13, %v6872_v23  ;;  %23877 = vst [vmem:[#allocation94_spill] sm:$0xff] %v20752_v24  ;;  %v8381_v6 = vsel %vm8253_vm15, %v8189_v47, %v8317_v36  ;;  %v23878_v21 = vld [vmem:[#allocation198_spill] sm:$0xff]  ;;  %v20755_v39 = vpop.f32.mrf.mxu1  ;;  %v23880_v13 = vld [vmem:[#allocation261_spill] sm:$0xff] }
 0x40e   : > { %13981 = vmatpush1.bf16.msk.msra.mxu1 %vm20652_vm9, %v23873_v59  ;;  %v23876_v63 = vpack.c.bf16 %v23874_v29, %v23875_v55  ;;  %v13636_v20 = vpack.c.bf16 %v8389_v56, %v8381_v6  ;;  %11219 = vmatprep.mubr.bf16.mxu1 %v20417_v25  ;;  %v13567_v32 = vpack.c.bf16 %v6936_v54, %v6928_v31  ;;  %v20768_v5 = vpop.f32.mrf.mxu0  ;;  %v23884_v25 = vld [vmem:[#allocation144_spill] sm:$0xff]  ;;  %v23888_v56 = vld [vmem:[#allocation249_spill] sm:$0xff]  ;;  %v23895_v31 = vld [vmem:[#allocation246_spill] sm:$0xff] }
 0x40f   : > { %11011 = vmatmul.mubr.bf16.gmra.mxu0 %v23872_v37  ;;  %v23882_v23 = vpack.c.bf16 %v23880_v13, %v23881_v38  ;;  %v20766_v47 = vpop.f32.mrf.mxu1  ;;  %23883 = vst [vmem:[#allocation329_spill] sm:$0xff] %v20768_v5  ;;  %v23885_v49 = vld [vmem:[#allocation256_spill] sm:$0xff]  ;;  %v23896_v54 = vld [vmem:[#allocation241_spill] sm:$0xff]  ;;  %v23900_v13 = vld [vmem:[#allocation238_spill] sm:$0xff] }
 0x410   : > { %11127 = vmatpush1.bf16.msra.mxu0 %v13644_v15  ;;  %13984 = vmatprep.subr.msk.bf16.mxu1 %vm20634_vm11, %v23876_v63  ;;  %v23886_v15 = vld [vmem:[#allocation253_spill] sm:$0xff]  ;;  %v23889_v37 = vld [vmem:[#allocation244_spill] sm:$0xff]  ;;  %v20786_v55 = vpop.f32.mrf.mxu0  ;;  %v23897_v6 = vpack.c.bf16 %v23895_v31, %v23896_v54  ;;  %v23908_v31 = vld [vmem:[#allocation143_spill] sm:$0xff] }
 0x411   : > { %11128 = vmatprep.subr.bf16.mxu0 %v13637_v57  ;;  %11020 = vmatprep.mubr.bf16.mxu0 %v23878_v21  ;;  %v20770_v36 = vpop.f32.mrf.mxu1  ;;  %v23887_v7 = vpack.c.bf16 %v23885_v49, %v23886_v15  ;;  %v23890_v59 = vpack.c.bf16 %v23888_v56, %v23889_v37  ;;  %v23891_v57 = vld [vmem:[#allocation326_spill] sm:$0xff]  ;;  %23893 = vst [vmem:[#allocation166_spill] sm:$0xff] %v20786_v55  ;;  %v23898_v21 = vld [vmem:[#allocation340_spill] sm:$0xff]  ;;  %v23916_v5 = vld [vmem:[#allocation215_spill] sm:$0xff] }
 0x412   : > { %13987 = vmatpush1.bf16.msk.msra.mxu1 %vm20652_vm9, %v23879_v19  ;;  %v23899_v19 = vld [vmem:[#allocation80_spill] sm:$0xff]  ;;  %v7192_v54 = vadd.f32 %v23570_v17, %v23908_v31  ;;  %v7176_v31 = vadd.f32 %v23577_v8, %v23916_v5  ;;  %v23917_v24 = vld [vmem:[#allocation226_spill] sm:$0xff] }
 0x413   : > { %13990 = vmatprep.subr.msk.bf16.mxu1 %vm20634_vm11, %v23882_v23  ;;  %v20784_v29 = vpop.f32.mrf.mxu1  ;;  %v23901_v38 = vld [vmem:[#allocation232_spill] sm:$0xff] }
 0x414   : > { %11129 = vmatpush1.bf16.msra.mxu0 %v13636_v20  ;;  %23892 = vst [vmem:[#allocation391_spill] sm:$0xff] %v20784_v29  ;;  %v6720_v20 = vadd.f32 %v23685_v27, %v23898_v21  ;;  %v23902_v23 = vpack.c.bf16 %v23900_v13, %v23901_v38  ;;  %v23905_v15 = vld [vmem:[#allocation328_spill] sm:$0xff]  ;;  %v23911_v13 = vld [vmem:[#allocation213_spill] sm:$0xff]  ;;  %vm7256_vm10 = vcmp.gt.f32.partialorder %v7192_v54, 0.0  ;;  %vm7240_vm0 = vcmp.gt.f32.partialorder %v7176_v31, 0.0 }
 0x415   : > { %11260 = vmatprep.subr.bf16.mxu0 %v13567_v32  ;;  %v20788_v63 = vpop.f32.mrf.mxu1  ;;  %v6728_v32 = vadd.f32 %v22744_v61, %v23899_v19  ;;  %v23906_v56 = vld [vmem:[#allocation336_spill] sm:$0xff]  ;;  %v7168_v38 = vadd.f32 %v23713_v48, %v23911_v13 }
 0x416   : > { %13993 = vmatpush2.bf16.msk.msra.mxu1 %vm20652_vm9, %v23887_v7  ;;  %23894 = vst [vmem:[#allocation363_spill] sm:$0xff] %v20788_v63  ;;  %v20810_v7 = vadd.f32 %v23713_v48, %v23905_v15  ;;  %v6704_v37 = vadd.f32 %v23698_v33, %v23906_v56  ;;  %v23910_v21 = vld [vmem:[#allocation96_spill] sm:$0xff]  ;;  %v23913_v15 = vld [vmem:[#allocation235_spill] sm:$0xff]  ;;  %v6848_v56 = vmul.f32 0.2, %v6720_v20  ;;  %vm6784_vm4 = vcmp.gt.f32.partialorder %v6720_v20, 0.0 }
 0x417   : > { %11021 = vmatmul.mubr.bf16.gmra.mxu0 %v23884_v25  ;;  %13996 = vmatprep.subr.msk.bf16.mxu1 %vm20634_vm11, %v23890_v59  ;;  %v20804_v25 = vpop.f32.mrf.mxu0  ;;  %v20806_v49 = vpop.f32.mrf.mxu1  ;;  %v23907_v59 = vld [vmem:[#allocation265_spill] sm:$0xff]  ;;  %v6712_v19 = vadd.f32 %v23570_v17, %v23910_v21  ;;  %vm6792_vm3 = vcmp.gt.f32.partialorder %v6728_v32, 0.0  ;;  %v23923_v5 = vld [vmem:[#allocation332_spill] sm:$0xff]  ;;  %vm7232_vm6 = vcmp.gt.f32.partialorder %v7168_v38, 0.0 }
 0x418   : > { %11030 = vmatprep.mubr.bf16.mxu0 %v23891_v57  ;;  %23903 = vst [vmem:[#allocation32_spill] sm:$0xff] %v20804_v25  ;;  %23904 = vst [vmem:[#allocation153_spill] sm:$0xff] %v20806_v49  ;;  %v7184_v57 = vadd.f32 %v23698_v33, %v23907_v59  ;;  %v23914_v25 = vld [vmem:[#allocation229_spill] sm:$0xff]  ;;  %v6856_v59 = vmul.f32 0.2, %v6728_v32  ;;  %vm6752_vm5 = vcmp.gt.f32.partialorder %v20810_v7, 0.0  ;;  %v6912_v63 = vsel %vm6784_vm4, %v6720_v20, %v6848_v56 }
 0x419   : > { %v23915_v55 = vpack.c.bf16 %v23913_v15, %v23914_v25  ;;  %v20838_v21 = vpop.f32.mrf.mxu0  ;;  %v6840_v26 = vmul.f32 0.2, %v6712_v19  ;;  %v23926_v49 = vld [vmem:[#allocation220_spill] sm:$0xff]  ;;  %vm6768_vm7 = vcmp.gt.f32.partialorder %v6704_v37, 0.0  ;;  %vm6776_vm14 = vcmp.gt.f32.partialorder %v6712_v19, 0.0 }
 0x41a   : > { %13999 = vmatpush2.bf16.msk.msra.mxu1 %vm20652_vm9, %v23897_v6  ;;  %v20818_v6 = vpop.f32.mrf.mxu1  ;;  %23920 = vst [vmem:[#allocation330_spill] sm:$0xff] %v20838_v21  ;;  %v7296_v21 = vmul.f32 0.2, %v7168_v38  ;;  %vm7248_vm1 = vcmp.gt.f32.partialorder %v7184_v57, 0.0  ;;  %v6816_v20 = vmul.f32 0.2, %v20810_v7  ;;  %v8248_v56 = vadd.f32 %v23664_v16, %v20730_v1 }
 0x41b   : > { %14002 = vmatprep.subr.msk.bf16.mxu1 %vm20634_vm11, %v23902_v23  ;;  %23909 = vst [vmem:[#allocation149_spill] sm:$0xff] %v20818_v6  ;;  %v23912_v23 = vld [vmem:[#allocation72_spill] sm:$0xff]  ;;  %v23918_v6 = vld [vmem:[#allocation222_spill] sm:$0xff]  ;;  %v20861_v9 = vpop.f32.mrf.mxu0  ;;  %v23936_v1 = vld [vmem:[#allocation231_spill] sm:$0xff] }
 0x41c   : > { %v23919_v11 = vpack.c.bf16 %v23917_v24, %v23918_v6  ;;  %v20840_v13 = vpop.f32.mrf.mxu1  ;;  %v6832_v24 = vmul.f32 0.2, %v6704_v37  ;;  %v7312_v6 = vmul.f32 0.2, %v7184_v57  ;;  %23929 = vst [vmem:[#allocation42_spill] sm:$0xff] %v20861_v9  ;;  %v23939_v9 = vpack.c.bf16 %v20026_v46, %v20015_v34 }
 0x41d   : > { %23921 = vst [vmem:[#allocation325_spill] sm:$0xff] %v20840_v13  ;;  %v23925_v13 = vld [vmem:[#allocation224_spill] sm:$0xff]  ;;  %v8240_v34 = vadd.f32 %v23674_v40, %v20674_v10  ;;  %vm8312_vm15 = vcmp.gt.f32.partialorder %v8248_v56, 0.0 }
 0x41e   : > { %14005 = vmatpush2.bf16.msk.msra.mxu1 %vm20652_vm9, %v23915_v55  ;;  %v23922_v55 = vld [vmem:[#allocation199_spill] sm:$0xff]  ;;  %v20849_v15 = vpop.f32.mrf.mxu1  ;;  %v23927_v0 = vpack.c.bf16 %v23925_v13, %v23926_v49  ;;  %v20865_v13 = vsel %vm7248_vm1, %v7184_v57, %v7312_v6  ;;  %v20884_v57 = vld [vmem:[%s21793_s3 + $0x10] ss:$20 sps:$4 sm:$0xff]  }
 0x41f   : > { %11031 = vmatmul.mubr.bf16.gmra.mxu0 %v23912_v23  ;;  %14008 = vmatprep.subr.msk.bf16.mxu1 %vm20634_vm11, %v23919_v11  ;;  %v7200_v25 = vadd.f32 %v23685_v27, %v23922_v55  ;;  %v20847_v23 = vadd.f32 %v23577_v8, %v23923_v5  ;;  %v7320_v11 = vmul.f32 0.2, %v7192_v54  ;;  %23924 = vst [vmem:[#allocation331_spill] sm:$0xff] %v20849_v15  ;;  %v7304_v55 = vmul.f32 0.2, %v7176_v31 }
 0x420   : > { %11146 = vmatprep.mubr.bf16.mxu0 %v23351_v30  ;;  %v23928_v5 = vpack.c.bf16 %v20009_v14, %v20003_v53  ;;  %v6920_v15 = vsel %vm6792_vm3, %v6728_v32, %v6856_v59  ;;  %v20863_v29 = vpop.f32.mrf.mxu1  ;;  %v20871_v53 = vadd.f32 %v22744_v61, %v23930_v2  ;;  %v20877_v32 = vsel %vm7232_vm6, %v7168_v38, %v7296_v21  ;;  %v23933_v2 = vld [vmem:[#allocation186_spill] sm:$0xff]  ;;  %vm23950_vm3 = vmmov %vm23932_vm8 }
 0x421   : > { %v7328_v49 = vmul.f32 0.2, %v7200_v25  ;;  %vm7264_vm12 = vcmp.gt.f32.partialorder %v7200_v25, 0.0  ;;  %23931 = vst [vmem:[#allocation197_spill] sm:$0xff] %v20877_v32  ;;  %v13559_v6 = vpack.c.bf16 %v6920_v15, %v6912_v63  ;;  %v6824_v38 = vmul.f32 0.2, %v20847_v23 }
 0x422   : > { %14011 = vmatpush2.bf16.msk.msra.mxu1 %vm20652_vm9, %v23927_v0  ;;  %v20867_v0 = vsel %vm7256_vm10, %v7192_v54, %v7320_v11  ;;  %v20873_v14 = vpop.f32.mrf.mxu1  ;;  %v23934_v54 = vld [vmem:[#allocation183_spill] sm:$0xff]  ;;  %v20894_v21 = vsel %vm7240_vm0, %v7176_v31, %v7304_v55  ;;  %v23937_v11 = vld [vmem:[#allocation29_spill] sm:$0xff]  ;;  %v6896_v32 = vsel %vm6768_vm7, %v6704_v37, %v6832_v24  ;;  %vm6760_vm2 = vcmp.gt.f32.partialorder %v20847_v23, 0.0  ;;  %v23941_v24 = vld [vmem:[#allocation416_spill] sm:$0xff] }
 0x423   : > { %11211 = vmatprep.subr.bf16.mxu1 %v23928_v5  ;;  %v23935_v59 = vpack.c.bf16 %v23933_v2, %v23934_v54  ;;  %v23938_v5 = vpack.c.bf16 %v23936_v1, %v23937_v11  ;;  %v6904_v2 = vsel %vm6776_vm14, %v6712_v19, %v6840_v26  ;;  %v20904_v54 = vpop.f32.mrf.mxu0  ;;  %v20912_v31 = vsel %vm7264_vm12, %v7200_v25, %v7328_v49  ;;  %v23940_v26 = vld [vmem:[#allocation187_spill] sm:$0xff]  ;;  %v23942_v49 = vld [vmem:[#allocation182_spill] sm:$0xff]  ;;  %v23945_v11 = vld [vmem:[#allocation8_spill] sm:$0xff] }
 0x424   : > { %v20918_v46 = vmul.f32 0.2, %v20871_v53  ;;  %v8232_v37 = vadd.f32 %v22744_v61, %v20592_v22  ;;  %v8247_v19 = vadd.f32 %v23664_v16, %v20708_v3  ;;  %v20932_v10 = vadd.f32 %v23674_v40, %v23941_v24  ;;  %v23955_v63 = vld [vmem:[#allocation341_spill] sm:$0xff] }
 0x425   : > { %v20936_v15 = vadd.f32 %v23713_v48, %v20336_v42  ;;  %v8376_v55 = vmul.f32 0.2, %v8248_v56  ;;  %v13551_v22 = vpack.c.bf16 %v6904_v2, %v6896_v32  ;;  %v8239_v3 = vadd.f32 %v23674_v40, %v20640_v60  ;;  %v10600_v2 = vpop.f32.mrf.mxu0 }
 0x426   : > { %14014 = vmatpush2.bf16.msk.msra.mxu1 %vm20518_vm13, %v23935_v59  ;;  %v20906_v59 = vpop.f32.mrf.mxu1  ;;  %v23948_v42 = vpack.c.bf16 %v20043_v4, %v20037_v51  ;;  %v6880_v24 = vsel %vm6752_vm5, %v20810_v7, %v6816_v20  ;;  %v6888_v32 = vsel %vm6760_vm2, %v20847_v23, %v6824_v38  ;;  %v8216_v60 = vadd.f32 %v23570_v17, %v20479_v62  ;;  %v23951_v62 = vld [vmem:[#allocation178_spill] sm:$0xff] }
 0x427   : > { %13078 = vmatmul.mubr.msk.bf16.vlgmr.msra.gmra.mxu0 %vm23932_vm8, %v20884_v57  ;;  %11213 = vmatprep.subr.bf16.mxu1 %v23939_v9  ;;  %v20922_v9 = vadd.f32 %v23674_v40, %v23940_v26  ;;  %v20961_v40 = vadd.f32 %v23577_v8, %v20369_v58  ;;  %v8224_v51 = vadd.f32 %v23685_v27, %v20527_v50  ;;  %v8368_v4 = vmul.f32 0.2, %v8240_v34  ;;  %v20972_v58 = vld [vmem:[%s21793_s3 + $0x38] ss:$20 sps:$4 sm:$0xff]   ;;  %v23952_v50 = vld [vmem:[#allocation176_spill] sm:$0xff]  ;;  %vm23972_vm8 = vmmov %vm23950_vm3 }
 0x428   : > { %11261 = vmatpush1.bf16.msra.mxu0 %v23938_v5  ;;  %11156 = vmatprep.mubr.bf16.mxu0 %v23351_v30  ;;  %v20928_v25 = vpop.f32.mrf.mxu1  ;;  %v23946_v5 = vld [vmem:[#allocation40_spill] sm:$0xff]  ;;  %v8231_v7 = vadd.f32 %v22744_v61, %v20552_v12  ;;  %v8360_v20 = vmul.f32 0.2, %v8232_v37  ;;  %vm8304_vm5 = vcmp.gt.f32.partialorder %v8240_v34, 0.0  ;;  %v8375_v23 = vmul.f32 0.2, %v8247_v19 }
 0x429   : > { %11262 = vmatprep.subr.bf16.mxu0 %v13559_v6  ;;  %v23943_v6 = vld [vmem:[#allocation179_spill] sm:$0xff]  ;;  %v23947_v26 = vpack.c.bf16 %v23945_v11, %v23946_v5  ;;  %vm8311_vm4 = vcmp.gt.f32.partialorder %v8247_v19, 0.0  ;;  %v13543_v12 = vpack.c.bf16 %v6888_v32, %v6880_v24  ;;  %v8208_v11 = vadd.f32 %v23698_v33, %v20441_v44 }
 0x42a   : > { %v23944_v1 = vpack.c.bf16 %v23942_v49, %v23943_v6  ;;  %v20957_v49 = vpop.f32.mrf.mxu1  ;;  %v23953_v6 = vpack.c.bf16 %v23951_v62, %v23952_v50  ;;  %v8223_v5 = vadd.f32 %v23685_v27, %v20500_v41  ;;  %vm8296_vm1 = vcmp.gt.f32.partialorder %v8232_v37, 0.0  ;;  %v23957_v62 = vld [vmem:[#allocation306_spill] sm:$0xff]  ;;  %v23959_v24 = vld [vmem:[#allocation147_spill] sm:$0xff] }
 0x42b   : > { %23949 = vst [vmem:[#allocation145_spill] sm:$0xff] %v20957_v49  ;;  %v23958_v50 = vpack.c.bf16 %v20068_v28, %v23957_v62  ;;  %vm8303_vm10 = vcmp.gt.f32.partialorder %v8239_v3, 0.0  ;;  %v8432_v44 = vsel %vm8304_vm5, %v8240_v34, %v8368_v4  ;;  %vm8288_vm6 = vcmp.gt.f32.partialorder %v8224_v51, 0.0  ;;  %v23964_v4 = vld [vmem:[#allocation157_spill] sm:$0xff] }
 0x42c   : > { %14017 = vmatpush2.bf16.msk.msra.mxu1 %vm20518_vm13, %v23944_v1  ;;  %11263 = vmatpush1.bf16.msra.mxu0 %v23947_v26  ;;  %v10673_v38 = vpop.f32.mrf.mxu1  ;;  %v8440_v1 = vsel %vm8312_vm15, %v8248_v56, %v8376_v55  ;;  %v8367_v26 = vmul.f32 0.2, %v8239_v3  ;;  %v8215_v56 = vadd.f32 %v23570_v17, %v23959_v24  ;;  %v8352_v55 = vmul.f32 0.2, %v8224_v51 }
 0x42d   : > { %11215 = vmatprep.subr.bf16.mxu1 %v23948_v42  ;;  %11264 = vmatprep.subr.bf16.mxu0 %v13551_v22  ;;  %v20982_v22 = vadd.f32 %v10673_v38, %v10600_v2  ;;  %v23954_v42 = vld [vmem:[#allocation344_spill] sm:$0xff]  ;;  %v8359_v41 = vmul.f32 0.2, %v8231_v7  ;;  %v8439_v32 = vsel %vm8311_vm4, %v8247_v19, %v8375_v23  ;;  %v23960_v2 = vld [vmem:[#allocation161_spill] sm:$0xff]  ;;  %v8344_v28 = vmul.f32 0.2, %v8216_v60 }
 0x42e   : > { %v23956_v49 = vpack.c.bf16 %v23954_v42, %v23955_v63  ;;  %v13663_v63 = vpack.c.bf16 %v8440_v1, %v8432_v44  ;;  %vm8295_vm7 = vcmp.gt.f32.partialorder %v8231_v7, 0.0  ;;  %v23961_v38 = vld [vmem:[#allocation170_spill] sm:$0xff]  ;;  %v8424_v34 = vsel %vm8296_vm1, %v8232_v37, %v8360_v20  ;;  %v23966_v1 = vld [vmem:[#allocation337_spill] sm:$0xff] }
 0x42f   : > { %13079 = vmatmul.mubr.msk.bf16.gmra.mxu0 %vm23950_vm3, %v20972_v58  ;;  %vm8280_vm14 = vcmp.gt.f32.partialorder %v8216_v60, 0.0  ;;  %v8351_v62 = vmul.f32 0.2, %v8223_v5  ;;  %v8431_v19 = vsel %vm8303_vm10, %v8239_v3, %v8367_v26  ;;  %v23965_v23 = vld [vmem:[#allocation338_spill] sm:$0xff]  ;;  %v8336_v24 = vmul.f32 0.2, %v8208_v11  ;;  %v21019_v26 = vpop.permute.xlu0 %11440 }
 0x430   : > { %14020 = vmatpush2.bf16.msk.msra.mxu1 %vm20518_vm13, %v23953_v6  ;;  %11265 = vmatpush1.bf16.msra.mxu0 %v23956_v49  ;;  %v8200_v49 = vadd.f32 %v23577_v8, %v23960_v2  ;;  %v23962_v6 = vld [vmem:[#allocation165_spill] sm:$0xff]  ;;  %vm8287_vm0 = vcmp.gt.f32.partialorder %v8223_v5, 0.0  ;;  %v13662_v44 = vpack.c.bf16 %v8439_v32, %v8431_v19  ;;  %v23968_v2 = vld [vmem:[#allocation146_spill] sm:$0xff]  ;;  %v8416_v37 = vsel %vm8288_vm6, %v8224_v51, %v8352_v55  ;;  %v23975_v19 = vld [vmem:[#allocation307_spill] sm:$0xff] }
 0x431   : > { %11217 = vmatprep.subr.bf16.mxu1 %v23958_v50  ;;  %11266 = vmatprep.subr.bf16.mxu0 %v13543_v12  ;;  %v23963_v42 = vpack.c.bf16 %v23961_v38, %v23962_v6  ;;  %v8207_v12 = vadd.f32 %v23698_v33, %v23964_v4  ;;  %v23967_v50 = vpack.c.bf16 %v23965_v23, %v23966_v1  ;;  %v8343_v20 = vmul.f32 0.2, %v8215_v56  ;;  %v21026_v32 = vld [vmem:[%s21793_s3 + $0x60] ss:$20 sps:$4 sm:$0xff]  }
 0x432   : > { %11166 = vmatprep.mubr.bf16.mxu0 %v23351_v30  ;;  %v23970_v38 = vpack.c.bf16 %v23968_v2, %v23969_v43  ;;  %v8423_v6 = vsel %vm8295_vm7, %v8231_v7, %v8359_v41  ;;  %v13655_v3 = vpack.c.bf16 %v8424_v34, %v8416_v37  ;;  %v8328_v4 = vmul.f32 0.2, %v8200_v49  ;;  %v23974_v34 = vld [vmem:[#allocation311_spill] sm:$0xff]  ;;  %v23977_v2 = vld [vmem:[#allocation312_spill] sm:$0xff] }
 0x433   : > { %vm8279_vm12 = vcmp.gt.f32.partialorder %v8215_v56, 0.0  ;;  %v8408_v51 = vsel %vm8280_vm14, %v8216_v60, %v8344_v28  ;;  %vm8264_vm2 = vcmp.gt.f32.partialorder %v8200_v49, 0.0  ;;  %v8335_v55 = vmul.f32 0.2, %v8207_v12  ;;  %vm23991_vm14 = vmmov %vm23972_vm8 }
 0x434   : > { %14023 = vmatpush2.bf16.msk.msra.mxu1 %vm20518_vm13, %v23963_v42  ;;  %11267 = vmatpush1.bf16.msra.mxu0 %v23967_v50  ;;  %vm8272_vm13 = vcmp.gt.f32.partialorder %v8208_v11, 0.0  ;;  %v23971_v42 = vld [vmem:[#allocation78_spill] sm:$0xff]  ;;  %v8415_v41 = vsel %vm8287_vm0, %v8223_v5, %v8351_v62  ;;  %v23976_v23 = vpack.c.bf16 %v23974_v34, %v23975_v19  ;;  %v8320_v1 = vmul.f32 0.2, %v20936_v15  ;;  %v23986_v34 = vld [vmem:[#allocation243_spill] sm:$0xff]  ;;  %v23987_v19 = vld [vmem:[#allocation124_spill] sm:$0xff] }
 0x435   : > { %11341 = vmatprep.subr.bf16.mxu1 %v13663_v63  ;;  %11268 = vmatprep.subr.bf16.mxu0 %v23970_v38  ;;  %v7768_v63 = vadd.f32 %v23664_v16, %v23971_v42  ;;  %vm8271_vm15 = vcmp.gt.f32.partialorder %v8207_v12, 0.0  ;;  %v13654_v50 = vpack.c.bf16 %v8423_v6, %v8415_v41  ;;  %v8400_v60 = vsel %vm8272_vm13, %v8208_v11, %v8336_v24  ;;  %v23980_v38 = vld [vmem:[#allocation115_spill] sm:$0xff]  ;;  %v23981_v6 = vld [vmem:[#allocation412_spill] sm:$0xff] }
 0x436   : > { %vm8256_vm5 = vcmp.gt.f32.partialorder %v20936_v15, 0.0  ;;  %v8327_v5 = vmul.f32 0.2, %v20961_v40  ;;  %v8407_v28 = vsel %vm8279_vm12, %v8215_v56, %v8343_v20  ;;  %v13647_v62 = vpack.c.bf16 %v8408_v51, %v8400_v60  ;;  %v23983_v51 = vld [vmem:[#allocation305_spill] sm:$0xff] }
 0x437   : > { %11220 = vmatmul.mubr.bf16.vlgmr.msra.gmra.mxu1 %v20682_v45  ;;  %13080 = vmatmul.mubr.msk.bf16.gmra.mxu0 %vm23972_vm8, %v21026_v32  ;;  %v23973_v45 = vld [vmem:[#allocation335_spill] sm:$0xff]  ;;  %vm7272_vm4 = vcmp.gt.f32.partialorder %v20871_v53, 0.0  ;;  %v21050_v37 = vadd.f32 %v23664_v16, %v23980_v38  ;;  %v7752_v11 = vadd.f32 %v22744_v61, %v23981_v6  ;;  %vm8263_vm3 = vcmp.gt.f32.partialorder %v20961_v40, 0.0  ;;  %v21062_v16 = vpop.permute.xlu0 %11450  ;;  %v21101_v6 = vpop.permute.xlu1 %11445 }
 0x438   : > { %11342 = vmatpush1.bf16.msra.mxu1 %v13662_v44  ;;  %v8191_v7 = vadd.f32 %v23713_v48, %v23973_v45  ;;  %11269 = vmatpush1.bf16.msra.mxu0 %v23976_v23  ;;  %v23978_v44 = vld [vmem:[#allocation76_spill] sm:$0xff]  ;;  %v8392_v24 = vsel %vm8264_vm2, %v8200_v49, %v8328_v4  ;;  %v7896_v20 = vmul.f32 0.2, %v7768_v63  ;;  %v23984_v45 = vld [vmem:[#allocation302_spill] sm:$0xff]  ;;  %vm7832_vm1 = vcmp.gt.f32.partialorder %v7768_v63, 0.0 }
 0x439   : > { %11343 = vmatprep.subr.bf16.mxu1 %v13655_v3  ;;  %v23979_v43 = vpack.c.bf16 %v23977_v2, %v23978_v44  ;;  %11176 = vmatprep.mubr.bf16.mxu0 %v23351_v30  ;;  %v23982_v3 = vld [vmem:[#allocation406_spill] sm:$0xff]  ;;  %v23985_v41 = vpack.c.bf16 %v23983_v51, %v23984_v45  ;;  %v23988_v49 = vpack.c.bf16 %v23986_v34, %v23987_v19  ;;  %vm7280_vm6 = vcmp.gt.f32.partialorder %v20922_v9, 0.0  ;;  %v14146_v23 = vld [vmem:[%s21793_s3 + $0x28] ss:$20 sps:$4 sm:$0xff]  }
 0x43a   : > { %11229 = vmatprep.mubr.bf16.mxu1 %v20704_v18  ;;  %v7744_v56 = vadd.f32 %v23685_v27, %v23982_v3  ;;  %v8319_v42 = vmul.f32 0.2, %v8191_v7  ;;  %v8399_v18 = vsel %vm8271_vm15, %v8207_v12, %v8335_v55  ;;  %vm8255_vm10 = vcmp.gt.f32.partialorder %v8191_v7, 0.0  ;;  %v23990_v44 = vld [vmem:[#allocation399_spill] sm:$0xff]  ;;  %v24000_v19 = vld [vmem:[#allocation334_spill] sm:$0xff] }
 0x43b   : > { %11270 = vmatprep.subr.bf16.mxu0 %v23979_v43  ;;  %v13646_v61 = vpack.c.bf16 %v8407_v28, %v8399_v18  ;;  %v8384_v27 = vsel %vm8256_vm5, %v20936_v15, %v8320_v1  ;;  %v7888_v12 = vmul.f32 0.2, %v20932_v10  ;;  %v8391_v4 = vsel %vm8263_vm3, %v20961_v40, %v8327_v5  ;;  %v21088_v40 = vld [vmem:[%s21793_s3 + $0x88] ss:$20 sps:$4 sm:$0xff]  }
 0x43c   : > { %11344 = vmatpush1.bf16.msra.mxu1 %v13654_v50  ;;  %11271 = vmatpush1.bf16.msra.mxu0 %v23985_v41  ;;  %v13639_v55 = vpack.c.bf16 %v8392_v24, %v8384_v27  ;;  %v23989_v50 = vld [vmem:[#allocation393_spill] sm:$0xff]  ;;  %v7736_v15 = vadd.f32 %v23570_v17, %v23990_v44  ;;  %v7880_v1 = vmul.f32 0.2, %v7752_v11  ;;  %vm7824_vm7 = vcmp.gt.f32.partialorder %v20932_v10, 0.0  ;;  %v23993_v5 = vld [vmem:[#allocation299_spill] sm:$0xff]  ;;  %v23994_v17 = vld [vmem:[#allocation296_spill] sm:$0xff] }
 0x43d   : > { %11345 = vmatprep.subr.bf16.mxu1 %v13647_v62  ;;  %11272 = vmatprep.subr.bf16.mxu0 %v23988_v49  ;;  %v21080_v2 = vadd.f32 %v23577_v8, %v23989_v50  ;;  %v23992_v43 = vld [vmem:[#allocation397_spill] sm:$0xff]  ;;  %vm7816_vm0 = vcmp.gt.f32.partialorder %v7752_v11, 0.0  ;;  %v8383_v8 = vsel %vm8255_vm10, %v8191_v7, %v8319_v42  ;;  %v23995_v28 = vpack.c.bf16 %v23993_v5, %v23994_v17  ;;  %v23996_v18 = vld [vmem:[#allocation263_spill] sm:$0xff]  ;;  %v10710_v50 = vpop.f32.mrf.mxu0 }
 0x43e   : > { %v7728_v60 = vadd.f32 %v23698_v33, %v23992_v43  ;;  %v7960_v62 = vsel %vm7832_vm1, %v7768_v63, %v7896_v20  ;;  %v7344_v38 = vmul.f32 0.2, %v20922_v9  ;;  %vm7288_vm13 = vcmp.gt.f32.partialorder %v21050_v37, 0.0  ;;  %v23997_v33 = vld [vmem:[#allocation87_spill] sm:$0xff]  ;;  %v14148_v7 = vld [vmem:[%s21793_s3 + $0x54] ss:$20 sps:$4 sm:$0xff]  }
 0x43f   : > { %11230 = vmatmul.mubr.bf16.gmra.mxu1 %v14146_v23  ;;  %13081 = vmatmul.mubr.msk.bf16.gmra.mxu0 %vm23991_vm14, %v21088_v40  ;;  %v7872_v24 = vmul.f32 0.2, %v7744_v56  ;;  %v13638_v3 = vpack.c.bf16 %v8391_v4, %v8383_v8  ;;  %v23998_v51 = vpack.c.bf16 %v23996_v18, %v23997_v33  ;;  %v7352_v42 = vmul.f32 0.2, %v21050_v37  ;;  %v23999_v63 = vld [vmem:[#allocation389_spill] sm:$0xff]  ;;  %v10712_v17 = vpop.f32.mrf.mxu0 }
 0x440   : > { %11346 = vmatpush1.bf16.msra.mxu1 %v13646_v61  ;;  %11273 = vmatpush1.bf16.msra.mxu0 %v23995_v28  ;;  %v7712_v20 = vadd.f32 %v23713_v48, %v23999_v63  ;;  %vm7808_vm12 = vcmp.gt.f32.partialorder %v7744_v56, 0.0  ;;  %v7952_v45 = vsel %vm7824_vm7, %v20932_v10, %v7888_v12  ;;  %v14149_v41 = vld [vmem:[%s21793_s3 + $0xc] ss:$20 sps:$4 sm:$0xff]   ;;  %v21118_v61 = vpop.permute.xlu0 %11501  ;;  %v7864_v34 = vmul.f32 0.2, %v7736_v15 }
 0x441   : > { %11347 = vmatprep.subr.bf16.mxu1 %v13639_v55  ;;  %11274 = vmatprep.subr.bf16.mxu0 %v23998_v51  ;;  %v10638_v49 = vadd.f32 %v20750_v35, %v24000_v19  ;;  %v13631_v27 = vpack.c.bf16 %v7960_v62, %v7952_v45  ;;  %v7944_v48 = vsel %vm7816_vm0, %v7752_v11, %v7880_v1  ;;  %vm7784_vm8 = vcmp.gt.f32.partialorder %v21080_v2, 0.0  ;;  %v24001_v12 = vld [vmem:[#allocation293_spill] sm:$0xff]  ;;  %v24002_v55 = vld [vmem:[#allocation290_spill] sm:$0xff]  ;;  %v24005_v62 = vld [vmem:[#allocation171_spill] sm:$0xff] }
 0x442   : > { %11239 = vmatprep.mubr.bf16.mxu1 %v14148_v7  ;;  %11292 = vmatprep.mubr.bf16.mxu0 %v14149_v41  ;;  %v7848_v4 = vmul.f32 0.2, %v21080_v2  ;;  %v7856_v10 = vmul.f32 0.2, %v7728_v60  ;;  %vm7800_vm2 = vcmp.gt.f32.partialorder %v7736_v15, 0.0  ;;  %v24003_v23 = vpack.c.bf16 %v24001_v12, %v24002_v55  ;;  %v24004_v44 = vld [vmem:[#allocation333_spill] sm:$0xff] }
 0x443   : > { %vm7792_vm15 = vcmp.gt.f32.partialorder %v7728_v60, 0.0  ;;  %v10640_v43 = vadd.f32 %v20755_v39, %v24004_v44  ;;  %v10711_v35 = vadd.f32 %v10710_v50, %v10638_v49  ;;  %v7936_v8 = vsel %vm7808_vm12, %v7744_v56, %v7872_v24  ;;  %v14150_v28 = vld [vmem:[%s21793_s3 + $0x50] ss:$20 sps:$4 sm:$0xff]   ;;  %v21140_v39 = vpop.permute.xlu1 %11496 }
 0x444   : > { %11348 = vmatpush1.bf16.msra.mxu1 %v13638_v3  ;;  %11275 = vmatpush1.bf16.msra.mxu0 %v24003_v23  ;;  %v21135_v11 = vsel %vm7272_vm4, %v20871_v53, %v20918_v46  ;;  %vm7776_vm5 = vcmp.gt.f32.partialorder %v7712_v20, 0.0  ;;  %v7840_v1 = vmul.f32 0.2, %v7712_v20  ;;  %v13623_v5 = vpack.c.bf16 %v7944_v48, %v7936_v8  ;;  %v14151_v46 = vld [vmem:[%s21793_s3 + $0x7c] ss:$20 sps:$4 sm:$0xff]   ;;  %v21166_v41 = vpop.permute.xlu0 %11506  ;;  %v24013_v44 = vld [vmem:[#allocation420_spill] sm:$0xff] }
 0x445   : > { %11276 = vmatprep.subr.bf16.mxu0 %v13631_v27  ;;  %v10642_v56 = vadd.f32 %v20766_v47, %v24005_v62  ;;  %v11478_v24 = vmul.f32 %v21019_v26, %v10711_v35  ;;  %v10713_v3 = vadd.f32 %v10712_v17, %v10640_v43  ;;  %v7928_v53 = vsel %vm7800_vm2, %v7736_v15, %v7864_v34  ;;  %v24006_v47 = vld [vmem:[#allocation388_spill] sm:$0xff]  ;;  %v24007_v51 = vld [vmem:[#allocation122_spill] sm:$0xff]  ;;  %v10714_v15 = vpop.f32.mrf.mxu0  ;;  %v24012_v23 = vld [vmem:[#allocation363_spill] sm:$0xff] }
 0x446   : > { %v21152_v18 = vsel %vm7280_vm6, %v20922_v9, %v7344_v38  ;;  %v21157_v33 = vsel %vm7288_vm13, %v21050_v37, %v7352_v42  ;;  %v24008_v7 = vpack.c.bf16 %v24006_v47, %v24007_v51  ;;  %v7920_v63 = vsel %vm7792_vm15, %v7728_v60, %v7856_v10  ;;  %v24009_v9 = vld [vmem:[#allocation24_spill] sm:$0xff]  ;;  %v24010_v60 = vld [vmem:[#allocation391_spill] sm:$0xff]  ;;  %v24011_v55 = vld [vmem:[#allocation30_spill] sm:$0xff] }
 0x447   : > { %11240 = vmatmul.mubr.bf16.gmra.mxu1 %v14150_v28  ;;  %v7912_v45 = vsel %vm7784_vm8, %v21080_v2, %v7848_v4  ;;  %v10644_v38 = vadd.f32 %v20770_v36, %v24009_v9  ;;  %v11534_v34 = vadd.f32 %v21140_v39, %v11478_v24  ;;  %v11479_v37 = vmul.f32 %v21019_v26, %v10713_v3  ;;  %v10716_v48 = vpop.f32.mrf.mxu0  ;;  %v24014_v43 = vld [vmem:[#allocation419_spill] sm:$0xff]  ;;  %v24017_v24 = vld [vmem:[#allocation153_spill] sm:$0xff]  ;;  %vm24045_vm8 = vmmov %vm23991_vm14 }
 0x448   : > { %11249 = vmatprep.mubr.bf16.mxu1 %v14151_v46  ;;  %11277 = vmatpush2.bf16.msra.mxu0 %v24008_v7  ;;  %v10715_v42 = vadd.f32 %v10714_v15, %v10642_v56  ;;  %v14031_v19 = vpack.c.bf16 %v21135_v11, %v20912_v31  ;;  %v10648_v49 = vadd.f32 %v24010_v60, %v20622_v52  ;;  %v21193_v62 = vld [vmem:[%s21796_s6] sm:$0xff]  ;;  %v24016_v56 = vld [vmem:[#allocation177_spill] sm:$0xff] }
 0x449   : > { %11278 = vmatprep.subr.bf16.mxu0 %v13623_v5  ;;  %v13615_v27 = vpack.c.bf16 %v7928_v53, %v7920_v63  ;;  %v7904_v2 = vsel %vm7776_vm5, %v7712_v20, %v7840_v1  ;;  %v11535_v4 = vadd.f32 %v21140_v39, %v11479_v37  ;;  %v10717_v10 = vadd.f32 %v10716_v48, %v10644_v38  ;;  %v10720_v52 = vpop.f32.mrf.mxu0  ;;  %v21186_v20 = vpop.permute.xlu1 %11455  ;;  %v24018_v53 = vld [vmem:[#allocation98_spill] sm:$0xff]  ;;  %v24019_v46 = vld [vmem:[#allocation149_spill] sm:$0xff] }
 0x44a   : > { %v11480_v36 = vmul.f32 %v21101_v6, %v10715_v42  ;;  %vm11550_vm4 = vcmp.gt.f32.partialorder %v11534_v34, 0.0  ;;  %v14025_v12 = vpack.c.bf16 %v21157_v33, %v21152_v18  ;;  %v10650_v50 = vadd.f32 %v24012_v23, %v24011_v55  ;;  %v21202_v47 = vld [vmem:[%s21796_s6 + $0x8] sm:$0xff]  ;;  %v21208_v63 = vpop.permute.xlu0 %11511 }
 0x44b   : > { %v24015_v35 = vpack.c.bf16 %v24013_v44, %v24014_v43  ;;  %v13607_v8 = vpack.c.bf16 %v7912_v45, %v7904_v2  ;;  %v11566_v5 = vmul.f32 0.2, %v11534_v34  ;;  %v11481_v17 = vmul.f32 %v21101_v6, %v10717_v10  ;;  %v10722_v33 = vpop.f32.mrf.mxu0  ;;  %v14152_v15 = vld [vmem:[%s21793_s3 + $0x78] ss:$20 sps:$4 sm:$0xff]   ;;  %v21226_v43 = vld [vmem:[%s21796_s6 + $0x10] sm:$0xff] }
 0x44c   : > { %v11536_v1 = vadd.f32 %v21118_v61, %v11480_v36  ;;  %v10721_v28 = vadd.f32 %v10720_v52, %v10648_v49  ;;  %vm11551_vm3 = vcmp.gt.f32.partialorder %v11535_v4, 0.0  ;;  %v10652_v3 = vadd.f32 %v24017_v24, %v24016_v56  ;;  %v24020_v45 = vld [vmem:[#allocation94_spill] sm:$0xff]  ;;  %v24021_v9 = vld [vmem:[#allocation325_spill] sm:$0xff]  ;;  %v24022_v49 = vld [vmem:[#allocation415_spill] sm:$0xff] }
 0x44d   : > { %11279 = vmatpush2.bf16.msra.mxu0 %v24015_v35  ;;  %v10654_v18 = vadd.f32 %v24019_v46, %v24018_v53  ;;  %v11567_v51 = vmul.f32 0.2, %v11535_v4  ;;  %v11582_v7 = vsel %vm11550_vm4, %v11534_v34, %v11566_v5  ;;  %v10658_v38 = vadd.f32 %v24021_v9, %v24020_v45  ;;  %v10724_v48 = vpop.f32.mrf.mxu0  ;;  %v24025_v35 = vld [vmem:[#allocation329_spill] sm:$0xff]  ;;  %v24026_v52 = vld [vmem:[#allocation331_spill] sm:$0xff]  ;;  %v21235_v56 = vpop.permute.xlu1 %11460 }
 0x44e   : > { %11280 = vmatprep.subr.bf16.mxu0 %v13615_v27  ;;  %v11537_v37 = vadd.f32 %v21118_v61, %v11481_v17  ;;  %v11482_v42 = vmul.f32 %v21062_v16, %v10721_v28  ;;  %v10723_v60 = vadd.f32 %v10722_v33, %v10650_v50  ;;  %v24023_v27 = vld [vmem:[#allocation414_spill] sm:$0xff]  ;;  %v11598_v36 = vmul.f32 %v11582_v7, %v21193_v62  ;;  %v24027_v33 = vld [vmem:[#allocation408_spill] sm:$0xff] }
 0x44f   : > { %11250 = vmatmul.mubr.bf16.gmra.mxu1 %v14152_v15  ;;  %v24024_v34 = vpack.c.bf16 %v24022_v49, %v24023_v27  ;;  %v11583_v2 = vsel %vm11551_vm3, %v11535_v4, %v11567_v51  ;;  %vm11552_vm1 = vcmp.gt.f32.partialorder %v11536_v1, 0.0  ;;  %v11568_v10 = vmul.f32 0.2, %v11536_v1  ;;  %v10726_v5 = vpop.f32.mrf.mxu0  ;;  %v21233_v17 = vld [vmem:[%s21796_s6 + $0x18] sm:$0xff]  ;;  %vm24058_vm3 = vmmov %vm24045_vm8 }
 0x450   : > { %11365 = vmatprep.mubr.bf16.mxu1 %v23351_v30  ;;  %v11538_v55 = vadd.f32 %v21166_v41, %v11482_v42  ;;  %v11483_v23 = vmul.f32 %v21062_v16, %v10723_v60  ;;  %v10725_v44 = vadd.f32 %v10724_v48, %v10652_v3  ;;  %v11599_v50 = vmul.f32 %v11583_v2, %v21202_v47  ;;  %v24028_v51 = vld [vmem:[#allocation407_spill] sm:$0xff]  ;;  %v21243_v42 = vpop.permute.xlu0 %11516  ;;  %v21370_v60 = vld [vmem:[%s21796_s6 + $0x50] sm:$0xff] }
 0x451   : > { %11281 = vmatpush2.bf16.msra.mxu0 %v24024_v34  ;;  %v10660_v4 = vadd.f32 %v24026_v52, %v24025_v35  ;;  %vm11553_vm10 = vcmp.gt.f32.partialorder %v11537_v37, 0.0  ;;  %v11584_v28 = vsel %vm11552_vm1, %v11536_v1, %v11568_v10  ;;  %v10727_v53 = vadd.f32 %v10726_v5, %v10654_v18  ;;  %v10730_v18 = vpop.f32.mrf.mxu0  ;;  %v24031_v34 = vld [vmem:[#allocation166_spill] sm:$0xff]  ;;  %v21255_v2 = vld [vmem:[%s21796_s6 + $0x20] sm:$0xff]  ;;  %24053 = vst [vmem:[#allocation320_spill] sm:$0xff] %v21370_v60 }
 0x452   : > { %11282 = vmatprep.subr.bf16.mxu0 %v13607_v8  ;;  %v11569_v8 = vmul.f32 0.2, %v11537_v37  ;;  %v11539_v24 = vadd.f32 %v21166_v41, %v11483_v23  ;;  %v11484_v3 = vmul.f32 %v21186_v20, %v10725_v44  ;;  %v11614_v46 = vadd.f32 %v11599_v50, %v11598_v36  ;;  %v21264_v23 = vpop.f32.mrf.mxu1  ;;  %v24032_v44 = vld [vmem:[#allocation32_spill] sm:$0xff]  ;;  %v24033_v5 = vld [vmem:[#allocation354_spill] sm:$0xff] }
 0x453   : > { %v24029_v7 = vpack.c.bf16 %v24027_v33, %v24028_v51  ;;  %v11600_v45 = vmul.f32 %v11584_v28, %v21226_v43  ;;  %vm11554_vm6 = vcmp.gt.f32.partialorder %v11538_v55, 0.0  ;;  %v11570_v9 = vmul.f32 0.2, %v11538_v55  ;;  %v10732_v50 = vpop.f32.mrf.mxu0  ;;  %v21284_v33 = vpop.permute.xlu1 %11465  ;;  %v21399_v28 = vld [vmem:[%s21796_s6 + $0x60] sm:$0xff] }
 0x454   : > { %v11585_v15 = vsel %vm11553_vm10, %v11537_v37, %v11569_v8  ;;  %v11540_v1 = vadd.f32 %v21208_v63, %v11484_v3  ;;  %v11485_v49 = vmul.f32 %v21186_v20, %v10727_v53  ;;  %11615 = vadd.xlane.f32.xlu0 %v11614_v46  ;;  %vm11555_vm7 = vcmp.gt.f32.partialorder %v11539_v24, 0.0  ;;  %v24034_v8 = vld [vmem:[#allocation350_spill] sm:$0xff]  ;;  %v21282_v46 = vpop.f32.mrf.mxu1  ;;  %24059 = vst [vmem:[#allocation82_spill] sm:$0xff] %v21399_v28 }
 0x455   : > { %11283 = vmatpush2.bf16.msra.mxu0 %v24029_v7  ;;  %v11601_v27 = vmul.f32 %v11585_v15, %v21233_v17  ;;  %v10662_v37 = vadd.f32 %v20863_v29, %v24031_v34  ;;  %v10731_v48 = vadd.f32 %v10730_v18, %v10658_v38  ;;  %v11571_v36 = vmul.f32 0.2, %v11539_v24  ;;  %v10734_v51 = vpop.f32.mrf.mxu0  ;;  %v21296_v7 = vld [vmem:[%s21796_s6 + $0x38] sm:$0xff] }
 0x456   : > { %14026 = vmatprep.subr.msk.bf16.mxu0 %vm20634_vm11, %v14025_v12  ;;  %v21260_v12 = vld [vmem:[%s21796_s6 + $0x28] sm:$0xff]  ;;  %v11586_v10 = vsel %vm11554_vm6, %v11538_v55, %v11570_v9  ;;  %v10664_v29 = vadd.f32 %v20873_v14, %v24032_v44  ;;  %v11541_v38 = vadd.f32 %v21208_v63, %v11485_v49  ;;  %vm11556_vm0 = vcmp.gt.f32.partialorder %v11540_v1, 0.0  ;;  %v21280_v14 = vld [vmem:[%s21796_s6 + $0x30] sm:$0xff]  ;;  %v21301_v9 = vpop.f32.mrf.mxu1  ;;  %v21303_v49 = vpop.permute.xlu0 %11521 }
 0x457   : > { %13082 = vmatmul.mubr.msk.bf16.vlgmr.msra.gmra.mxu1 %vm23991_vm14, %v20884_v57  ;;  %v11617_v35 = vadd.f32 %v11601_v27, %v11600_v45  ;;  %v11486_v52 = vmul.f32 %v21235_v56, %v10731_v48  ;;  %v24035_v55 = vpack.c.bf16 %v24033_v5, %v24034_v8  ;;  %v10733_v57 = vadd.f32 %v10732_v50, %v10660_v4  ;;  %v24037_v18 = vld [vmem:[#allocation330_spill] sm:$0xff]  ;;  %v10736_v34 = vpop.f32.mrf.mxu0 }
 0x458   : > { %11375 = vmatprep.mubr.bf16.mxu1 %v23351_v30  ;;  %v11587_v3 = vsel %vm11555_vm7, %v11539_v24, %v11571_v36  ;;  %v11572_v53 = vmul.f32 0.2, %v11540_v1  ;;  %v11602_v4 = vmul.f32 %v11586_v10, %v21255_v2  ;;  %vm11557_vm13 = vcmp.gt.f32.partialorder %v11541_v38, 0.0  ;;  %v21316_v8 = vpop.f32.mrf.mxu1 }
 0x459   : > { %14029 = vmatpush2.bf16.msk.msra.mxu0 %vm20652_vm9, %v24035_v55  ;;  %11618 = vadd.xlane.f32.xlu1 %v11617_v35  ;;  %v11603_v24 = vmul.f32 %v11587_v3, %v21260_v12  ;;  %v11573_v15 = vmul.f32 0.2, %v11541_v38  ;;  %v11542_v45 = vadd.f32 %v21243_v42, %v11486_v52  ;;  %v11487_v31 = vmul.f32 %v21235_v56, %v10733_v57  ;;  %v24038_v35 = vld [vmem:[#allocation348_spill] sm:$0xff]  ;;  %v24042_v55 = vld [vmem:[#allocation42_spill] sm:$0xff] }
 0x45a   : > { %14032 = vmatprep.subr.msk.bf16.mxu0 %vm20634_vm11, %v14031_v19  ;;  %v10735_v11 = vadd.f32 %v10734_v51, %v10662_v37  ;;  %v11588_v19 = vsel %vm11556_vm0, %v11540_v1, %v11572_v53  ;;  %v10668_v27 = vadd.f32 %v20906_v59, %v24037_v18  ;;  %v24039_v37 = vld [vmem:[#allocation136_spill] sm:$0xff]  ;;  %v10737_v1 = vadd.f32 %v10736_v34, %v10664_v29  ;;  %v24041_v59 = vld [vmem:[#allocation197_spill] sm:$0xff]  ;;  %v10740_v53 = vpop.f32.mrf.mxu0 }
 0x45b   : > { %v11620_v48 = vadd.f32 %v11603_v24, %v11602_v4  ;;  %v11589_v36 = vsel %vm11557_vm13, %v11541_v38, %v11573_v15  ;;  %v11604_v10 = vmul.f32 %v11588_v19, %v21280_v14  ;;  %v11543_v44 = vadd.f32 %v21243_v42, %v11487_v31  ;;  %v21345_v19 = vld [vmem:[%s21796_s6 + $0x48] sm:$0xff] }
 0x45c   : > { %v11488_v50 = vmul.f32 %v21284_v33, %v10735_v11  ;;  %v24040_v52 = vpack.c.bf16 %v24038_v35, %v24039_v37  ;;  %v11605_v5 = vmul.f32 %v11589_v36, %v21296_v7  ;;  %v14043_v38 = vpack.c.bf16 %v20894_v21, %v24041_v59  ;;  %v21332_v21 = vld [vmem:[%s21796_s6 + $0x40] sm:$0xff]  ;;  %v10742_v11 = vpop.f32.mrf.mxu0  ;;  %24048 = vst [vmem:[#allocation41_spill] sm:$0xff] %v21345_v19  ;;  %v21357_v35 = vpop.permute.xlu0 %11526 }
 0x45d   : > { %v10670_v57 = vadd.f32 %v20928_v25, %v24042_v55  ;;  %v24043_v3 = vpack.c.bf16 %v20867_v0, %v20865_v13  ;;  %11621 = vadd.xlane.f32.xlu1 %v11620_v48  ;;  %vm11558_vm12 = vcmp.gt.f32.partialorder %v11542_v45, 0.0  ;;  %v11574_v29 = vmul.f32 0.2, %v11542_v45  ;;  %24044 = vst [vmem:[#allocation141_spill] sm:$0xff] %v21332_v21  ;;  %v21336_v13 = vpop.f32.mrf.mxu1  ;;  %v21338_v0 = vpop.permute.xlu1 %11470  ;;  %v24047_v25 = vld [vmem:[#allocation145_spill] sm:$0xff]  ;;  %v24049_v48 = vld [vmem:[#allocation150_spill] sm:$0xff] }
 0x45e   : > { %14035 = vmatpush2.bf16.msk.msra.mxu0 %vm20652_vm9, %v24040_v52  ;;  %v11544_v51 = vadd.f32 %v21303_v49, %v11488_v50  ;;  %v11489_v4 = vmul.f32 %v21284_v33, %v10737_v1  ;;  %v10741_v24 = vadd.f32 %v10740_v53, %v10668_v27  ;;  %v11623_v15 = vadd.f32 %v11605_v5, %v11604_v10  ;;  %v24050_v36 = vld [vmem:[#allocation159_spill] sm:$0xff] }
 0x45f   : > { %14038 = vmatprep.subr.msk.bf16.mxu0 %vm20634_vm11, %v24043_v3  ;;  %13083 = vmatmul.mubr.msk.bf16.gmra.mxu1 %vm24045_vm8, %v20972_v58  ;;  %24046 = vst [vmem:[#allocation201_spill] sm:$0xff] %v21338_v0  ;;  %v10672_v31 = vadd.f32 %v24047_v25, %v20904_v54  ;;  %vm11559_vm2 = vcmp.gt.f32.partialorder %v11543_v44, 0.0  ;;  %v11575_v18 = vmul.f32 0.2, %v11543_v44  ;;  %v11590_v27 = vsel %vm11558_vm12, %v11542_v45, %v11574_v29  ;;  %v21355_v50 = vpop.f32.mrf.mxu1  ;;  %v10744_v45 = vpop.f32.mrf.mxu0 }
 0x460   : > { %11385 = vmatprep.mubr.bf16.mxu1 %v23351_v30  ;;  %v11545_v58 = vadd.f32 %v21303_v49, %v11489_v4  ;;  %v11490_v34 = vmul.f32 %v21338_v0, %v10741_v24  ;;  %v24051_v10 = vpack.c.bf16 %v24049_v48, %v24050_v36  ;;  %v10743_v54 = vadd.f32 %v10742_v11, %v10670_v57  ;;  %v24055_v24 = vld [vmem:[#allocation128_spill] sm:$0xff] }
 0x461   : > { %11624 = vadd.xlane.f32.xlu0 %v11623_v15  ;;  %vm11560_vm15 = vcmp.gt.f32.partialorder %v11544_v51, 0.0  ;;  %24052 = vst [vmem:[#allocation38_spill] sm:$0xff] %v21357_v35  ;;  %v11591_v37 = vsel %vm11559_vm2, %v11543_v44, %v11575_v18  ;;  %v11606_v52 = vmul.f32 %v11590_v27, %v21332_v21  ;;  %v11576_v1 = vmul.f32 0.2, %v11544_v51  ;;  %v21365_v3 = vpop.f32.mrf.mxu1  ;;  %v10746_v53 = vpop.f32.mrf.mxu0  ;;  %v21375_v44 = vld [vmem:[%s21796_s6 + $0x58] sm:$0xff] }
 0x462   : > { %14041 = vmatpush2.bf16.msk.msra.mxu0 %vm20652_vm9, %v24051_v10  ;;  %v11546_v5 = vadd.f32 %v21357_v35, %v11490_v34  ;;  %v11491_v59 = vmul.f32 %v21338_v0, %v10743_v54  ;;  %v10745_v55 = vadd.f32 %v10744_v45, %v10672_v31  ;;  %v11607_v57 = vmul.f32 %v11591_v37, %v21345_v19  ;;  %v24056_v15 = vld [vmem:[#allocation134_spill] sm:$0xff] }
 0x463   : > { %14044 = vmatprep.subr.msk.bf16.mxu0 %vm20634_vm11, %v14043_v38  ;;  %24054 = vst [vmem:[#allocation318_spill] sm:$0xff] %v21375_v44  ;;  %vm11561_vm11 = vcmp.gt.f32.partialorder %v11545_v58, 0.0  ;;  %v11577_v38 = vmul.f32 0.2, %v11545_v58  ;;  %v11592_v29 = vsel %vm11560_vm15, %v11544_v51, %v11576_v1  ;;  %v24057_v25 = vpack.c.bf16 %v24055_v24, %v24056_v15  ;;  %v21385_v18 = vpop.f32.mrf.mxu1  ;;  %v14154_v45 = vld [vmem:[%s21793_s3 + $0x34] ss:$20 sps:$4 sm:$0xff]  }
 0x464   : > { %v11547_v4 = vadd.f32 %v21357_v35, %v11491_v59  ;;  %v10747_v31 = vadd.f32 %v10746_v53, %v20982_v22  ;;  %v11626_v11 = vadd.f32 %v11607_v57, %v11606_v52  ;;  %vm11562_vm5 = vcmp.gt.f32.partialorder %v11546_v5, 0.0  ;;  %v14153_v22 = vld [vmem:[%s21793_s3 + $0x8] ss:$20 sps:$4 sm:$0xff]  }
 0x465   : > { %v11593_v27 = vsel %vm11561_vm11, %v11545_v58, %v11577_v38  ;;  %v11578_v34 = vmul.f32 0.2, %v11546_v5  ;;  %v11608_v48 = vmul.f32 %v11592_v29, %v21370_v60  ;;  %v21391_v36 = vpop.f32.mrf.mxu1  ;;  %v21404_v58 = vld [vmem:[%s21796_s6 + $0x68] sm:$0xff]  ;;  %v14155_v38 = vld [vmem:[%s21793_s3 + $0x30] ss:$20 sps:$4 sm:$0xff]  }
 0x466   : > { %14047 = vmatpush2.bf16.msk.msra.mxu0 %vm20652_vm9, %v24057_v25  ;;  %11627 = vadd.xlane.f32.xlu0 %v11626_v11  ;;  %v11609_v51 = vmul.f32 %v11593_v27, %v21375_v44  ;;  %vm11563_vm4 = vcmp.gt.f32.partialorder %v11547_v4, 0.0  ;;  %24060 = vst [vmem:[#allocation268_spill] sm:$0xff] %v21404_v58  ;;  %v11579_v10 = vmul.f32 0.2, %v11547_v4  ;;  %vm24061_vm9 = vmmov %vm24058_vm3  ;;  %v14156_v29 = vld [vmem:[%s21793_s3 + $0x5c] ss:$20 sps:$4 sm:$0xff]  }
 0x467   : > { %13084 = vmatmul.mubr.msk.bf16.gmra.mxu1 %vm24058_vm3, %v21026_v32  ;;  %v11594_v54 = vsel %vm11562_vm5, %v11546_v5, %v11578_v34  ;;  %v21410_v37 = vpop.f32.mrf.mxu1  ;;  %v14158_v11 = vld [vmem:[%s21793_s3 + $0x84] ss:$20 sps:$4 sm:$0xff]   ;;  %v21440_v34 = vpop.permute.xlu1 %11475 }
 0x468   : > { %11395 = vmatprep.mubr.bf16.mxu1 %v23351_v30  ;;  %v11629_v32 = vadd.f32 %v11609_v51, %v11608_v48  ;;  %v11595_v52 = vsel %vm11563_vm4, %v11547_v4, %v11579_v10  ;;  %v11610_v1 = vmul.f32 %v11594_v54, %v21399_v28  ;;  %24063 = vst [vmem:[#allocation9_spill] sm:$0xff] %v21440_v34 }
 0x469   : > { %11293 = vmatmul.mubr.bf16.vlgmr.msra.gmra.mxu0 %v14153_v22  ;;  %v11611_v59 = vmul.f32 %v11595_v52, %v21404_v58  ;;  %v21414_v57 = vpop.f32.mrf.mxu1  ;;  %v11492_v51 = vmul.f32 %v21440_v34, %v10745_v55  ;;  %v11493_v22 = vmul.f32 %v21440_v34, %v10747_v31  ;;  %v21456_v31 = vld [vmem:[%s21796_s6 + $0x70] sm:$0xff] }
 0x46a   : > { %11302 = vmatprep.mubr.bf16.mxu0 %v14154_v45  ;;  %11630 = vadd.xlane.f32.xlu0 %v11629_v32  ;;  %v14159_v45 = vld [vmem:[%s21793_s3 + $0x80] ss:$20 sps:$4 sm:$0xff]   ;;  %24065 = vst [vmem:[#allocation300_spill] sm:$0xff] %v21456_v31 }
 0x46b   : > { %v11632_v53 = vadd.f32 %v11611_v59, %v11610_v1  ;;  %v21416_v5 = vpop.f32.mrf.mxu1  ;;  %v21444_v32 = vpop.permute.xlu1 %11531 }
 0x46c   : > { %24064 = vst [vmem:[#allocation264_spill] sm:$0xff] %v21444_v32  ;;  %v11548_v52 = vadd.f32 %v21444_v32, %v11492_v51  ;;  %v11549_v1 = vadd.f32 %v21444_v32, %v11493_v22 }
 0x46d   : > { %v21420_v30 = vpop.f32.mrf.mxu1 }
 0x46e   : > { %11633 = vadd.xlane.f32.xlu0 %v11632_v53  ;;  %vm11564_vm1 = vcmp.gt.f32.partialorder %v11548_v52, 0.0  ;;  %vm11565_vm10 = vcmp.gt.f32.partialorder %v11549_v1, 0.0  ;;  %v11580_v55 = vmul.f32 0.2, %v11548_v52 }
 0x46f   : > { %13085 = vmatmul.mubr.msk.bf16.gmra.mxu1 %vm24061_vm9, %v21088_v40  ;;  %v21428_v4 = vpop.f32.mrf.mxu1  ;;  %v14157_v40 = vld [vmem:[%s21793_s3 + $0x58] ss:$20 sps:$4 sm:$0xff]  }
 0x471   : > { %11303 = vmatmul.mubr.bf16.gmra.mxu0 %v14155_v38  ;;  %v21430_v24 = vpop.f32.mrf.mxu1 }
 0x472   : > { %11312 = vmatprep.mubr.bf16.mxu0 %v14156_v29  ;;  %v21461_v29 = vld [vmem:[%s21796_s6 + $0x78] sm:$0xff] }
 0x473   : > { %v21432_v15 = vpop.f32.mrf.mxu1  ;;  %24066 = vst [vmem:[#allocation138_spill] sm:$0xff] %v21461_v29 }
 0x474   : > { %24062 = vst [vmem:[#allocation252_spill] sm:$0xff] %v21432_v15 }
 0x475   : > { %v10929_v25 = vpop.f32.mrf.mxu1 }
 0x477   : > { %v10931_v27 = vpop.f32.mrf.mxu1 }
 0x479   : > { %11313 = vmatmul.mubr.bf16.gmra.mxu0 %v14157_v40  ;;  %v10933_v48 = vpop.f32.mrf.mxu1  ;;  %v11581_v40 = vmul.f32 0.2, %v11549_v1 }
 0x47a   : > { %11322 = vmatprep.mubr.bf16.mxu0 %v14158_v11  ;;  %v11596_v11 = vsel %vm11564_vm1, %v11548_v52, %v11580_v55 }
 0x47b   : > { %v10935_v10 = vpop.f32.mrf.mxu1  ;;  %v11597_v22 = vsel %vm11565_vm10, %v11549_v1, %v11581_v40  ;;  %v11612_v32 = vmul.f32 %v11596_v11, %v21456_v31 }
 0x47c   : > { %v11613_v34 = vmul.f32 %v11597_v22, %v21461_v29 }
 0x47d   : > { %v10939_v54 = vpop.f32.mrf.mxu1 }
 0x47e   : > { %v21469_v19 = vadd.f32 %v11613_v34, %v11612_v32 }
 0x47f   : > { %v10941_v59 = vpop.f32.mrf.mxu1 }
 0x480   : > { %24067 = vst [vmem:[#allocation133_spill] sm:$0xff] %v21469_v19 }
 0x481   : > { %11323 = vmatmul.mubr.bf16.gmra.mxu0 %v14159_v45  ;;  %v10943_v53 = vpop.f32.mrf.mxu1 }
 0x483   : > { %v21451_v38 = vpop.f32.mrf.mxu1 }
 0x484   : > { %v10856_v51 = vpop.f32.mrf.mxu0 }
 0x485   : > { %v10857_v45 = vadd.f32 %v10856_v51, %v21264_v23  ;;  %v21466_v58 = vpop.f32.mrf.mxu1 }
 0x486   : > { %v10858_v28 = vpop.f32.mrf.mxu0 }
 0x487   : > { %v10859_v44 = vadd.f32 %v10858_v28, %v21282_v46  ;;  %v10930_v60 = vadd.f32 %v10929_v25, %v10857_v45  ;;  %v21473_v23 = vpop.f32.mrf.mxu1 }
 0x488   : > { %v10860_v21 = vpop.f32.mrf.mxu0 }
 0x489   : > { %v11668_v15 = vmul.f32 %v21019_v26, %v10930_v60  ;;  %v10861_v52 = vadd.f32 %v10860_v21, %v21301_v9  ;;  %v10932_v1 = vadd.f32 %v10931_v27, %v10859_v44  ;;  %v10953_v44 = vpop.f32.mrf.mxu1 }
 0x48a   : > { %v10862_v55 = vpop.f32.mrf.mxu0 }
 0x48b   : > { %v11684_v40 = vadd.f32 %v11668_v15, %v21140_v39  ;;  %v11669_v11 = vmul.f32 %v21019_v26, %v10932_v1  ;;  %v10863_v51 = vadd.f32 %v10862_v55, %v21316_v8  ;;  %v10934_v22 = vadd.f32 %v10933_v48, %v10861_v52 }
 0x48c   : > { %v10866_v46 = vpop.f32.mrf.mxu0 }
 0x48d   : > { %v11685_v28 = vadd.f32 %v11669_v11, %v21140_v39  ;;  %v11670_v25 = vmul.f32 %v21101_v6, %v10934_v22  ;;  %v10867_v60 = vadd.f32 %v10866_v46, %v21336_v13  ;;  %v10936_v34 = vadd.f32 %v10935_v10, %v10863_v51 }
 0x48e   : > { %v10868_v9 = vpop.f32.mrf.mxu0  ;;  %vm11700_vm6 = vcmp.gt.f32.partialorder %v11684_v40, 0.0  ;;  %v11716_v21 = vmul.f32 0.2, %v11684_v40 }
 0x48f   : > { %v11686_v27 = vadd.f32 %v11670_v25, %v21118_v61  ;;  %v11671_v15 = vmul.f32 %v21101_v6, %v10936_v34  ;;  %v10869_v32 = vadd.f32 %v10868_v9, %v21355_v50  ;;  %v10940_v8 = vadd.f32 %v10939_v54, %v10867_v60  ;;  %v10955_v25 = vpop.f32.mrf.mxu1 }
 0x490   : > { %v10870_v48 = vpop.f32.mrf.mxu0  ;;  %vm11701_vm7 = vcmp.gt.f32.partialorder %v11685_v28, 0.0  ;;  %v11717_v45 = vmul.f32 0.2, %v11685_v28  ;;  %v11732_v52 = vsel %vm11700_vm6, %v11684_v40, %v11716_v21 }
 0x491   : > { %v11687_v1 = vadd.f32 %v11671_v15, %v21118_v61  ;;  %v11672_v13 = vmul.f32 %v21062_v16, %v10940_v8  ;;  %v10871_v10 = vadd.f32 %v10870_v48, %v21365_v3  ;;  %v10942_v55 = vadd.f32 %v10941_v59, %v10869_v32 }
 0x492   : > { %v10872_v11 = vpop.f32.mrf.mxu0  ;;  %v11733_v51 = vsel %vm11701_vm7, %v11685_v28, %v11717_v45  ;;  %v11748_v22 = vmul.f32 %v11732_v52, %v21193_v62  ;;  %vm11702_vm14 = vcmp.gt.f32.partialorder %v11686_v27, 0.0  ;;  %v11718_v46 = vmul.f32 0.2, %v11686_v27 }
 0x493   : > { %v11688_v50 = vadd.f32 %v11672_v13, %v21166_v41  ;;  %v11673_v54 = vmul.f32 %v21062_v16, %v10942_v55  ;;  %v10873_v40 = vadd.f32 %v10872_v11, %v21385_v18  ;;  %v10944_v60 = vadd.f32 %v10943_v53, %v10871_v10  ;;  %v10959_v53 = vpop.f32.mrf.mxu1 }
 0x494   : > { %v10876_v34 = vpop.f32.mrf.mxu0  ;;  %v11749_v9 = vmul.f32 %v11733_v51, %v21202_v47  ;;  %vm11703_vm0 = vcmp.gt.f32.partialorder %v11687_v1, 0.0  ;;  %v11719_v3 = vmul.f32 0.2, %v11687_v1  ;;  %v11734_v59 = vsel %vm11702_vm14, %v11686_v27, %v11718_v46 }
 0x495   : > { %v11689_v28 = vadd.f32 %v11673_v54, %v21166_v41  ;;  %v11674_v21 = vmul.f32 %v21186_v20, %v10944_v60  ;;  %v10877_v15 = vadd.f32 %v10876_v34, %v21391_v36  ;;  %v10946_v32 = vadd.f32 %v21451_v38, %v10873_v40  ;;  %v10961_v60 = vpop.f32.mrf.mxu1 }
 0x496   : > { %v10878_v8 = vpop.f32.mrf.mxu0  ;;  %v11764_v48 = vadd.f32 %v11749_v9, %v11748_v22  ;;  %v11735_v45 = vsel %vm11703_vm0, %v11687_v1, %v11719_v3  ;;  %v11750_v18 = vmul.f32 %v11734_v59, %v21226_v43  ;;  %vm11704_vm13 = vcmp.gt.f32.partialorder %v11688_v50, 0.0 }
 0x497   : > { %v11690_v52 = vadd.f32 %v11674_v21, %v21208_v63  ;;  %v11675_v13 = vmul.f32 %v21186_v20, %v10946_v32  ;;  %v10879_v27 = vadd.f32 %v10878_v8, %v21410_v37  ;;  %v10950_v10 = vadd.f32 %v21466_v58, %v10877_v15 }
 0x498   : > { %11765 = vadd.xlane.f32.xlu0 %v11764_v48  ;;  %v10880_v55 = vpop.f32.mrf.mxu0  ;;  %v11751_v36 = vmul.f32 %v11735_v45, %v21233_v17  ;;  %vm11705_vm12 = vcmp.gt.f32.partialorder %v11689_v28, 0.0  ;;  %v11720_v38 = vmul.f32 0.2, %v11688_v50  ;;  %v11721_v11 = vmul.f32 0.2, %v11689_v28 }
 0x499   : > { %v11691_v1 = vadd.f32 %v11675_v13, %v21208_v63  ;;  %v11676_v51 = vmul.f32 %v21235_v56, %v10950_v10  ;;  %v10881_v22 = vadd.f32 %v10880_v55, %v21414_v57  ;;  %v10952_v46 = vadd.f32 %v21473_v23, %v10879_v27 }
 0x49a   : > { %v10882_v54 = vpop.f32.mrf.mxu0  ;;  %v11767_v40 = vadd.f32 %v11751_v36, %v11750_v18  ;;  %v11736_v37 = vsel %vm11704_vm13, %v11688_v50, %v11720_v38  ;;  %v11737_v58 = vsel %vm11705_vm12, %v11689_v28, %v11721_v11  ;;  %vm11706_vm8 = vcmp.gt.f32.partialorder %v11690_v52, 0.0  ;;  %v10963_v18 = vpop.f32.mrf.mxu1 }
 0x49b   : > { %v11692_v34 = vadd.f32 %v11676_v51, %v21243_v42  ;;  %v11677_v9 = vmul.f32 %v21235_v56, %v10952_v46  ;;  %v10883_v3 = vadd.f32 %v10882_v54, %v21416_v5  ;;  %v10954_v59 = vadd.f32 %v10953_v44, %v10881_v22 }
 0x49c   : > { %11768 = vadd.xlane.f32.xlu0 %v11767_v40  ;;  %v10886_v21 = vpop.f32.mrf.mxu0  ;;  %v11752_v57 = vmul.f32 %v11736_v37, %v21255_v2  ;;  %v11753_v23 = vmul.f32 %v11737_v58, %v21260_v12  ;;  %vm11707_vm2 = vcmp.gt.f32.partialorder %v11691_v1, 0.0  ;;  %v11722_v15 = vmul.f32 0.2, %v11690_v52  ;;  %v10965_v46 = vpop.f32.mrf.mxu1  ;;  %v24068_v58 = vld [vmem:[#allocation252_spill] sm:$0xff] }
 0x49d   : > { %v11693_v50 = vadd.f32 %v11677_v9, %v21243_v42  ;;  %v11678_v28 = vmul.f32 %v21284_v33, %v10954_v59  ;;  %v10887_v32 = vadd.f32 %v10886_v21, %v21420_v30  ;;  %v10956_v8 = vadd.f32 %v10955_v25, %v10883_v3 }
 0x49e   : > { %v10888_v48 = vpop.f32.mrf.mxu0  ;;  %v11770_v45 = vadd.f32 %v11753_v23, %v11752_v57  ;;  %v11723_v5 = vmul.f32 0.2, %v11691_v1  ;;  %v11738_v44 = vsel %vm11706_vm8, %v11690_v52, %v11722_v15  ;;  %vm11708_vm15 = vcmp.gt.f32.partialorder %v11692_v34, 0.0  ;;  %v24070_v15 = vld [vmem:[#allocation41_spill] sm:$0xff] }
 0x49f   : > { %v11679_v13 = vmul.f32 %v21284_v33, %v10956_v8  ;;  %v10889_v27 = vadd.f32 %v10888_v48, %v21428_v4  ;;  %v10960_v10 = vadd.f32 %v10959_v53, %v10887_v32  ;;  %v11694_v55 = vadd.f32 %v11678_v28, %v21303_v49 }
 0x4a0   : > { %11771 = vadd.xlane.f32.xlu0 %v11770_v45  ;;  %v10890_v36 = vpop.f32.mrf.mxu0  ;;  %v11739_v38 = vsel %vm11707_vm2, %v11691_v1, %v11723_v5  ;;  %vm11709_vm11 = vcmp.gt.f32.partialorder %v11693_v50, 0.0  ;;  %v11724_v30 = vmul.f32 0.2, %v11692_v34  ;;  %v11754_v4 = vmul.f32 %v11738_v44, %v21280_v14 }
 0x4a1   : > { %v11695_v25 = vadd.f32 %v11679_v13, %v21303_v49  ;;  %v11680_v11 = vmul.f32 %v21338_v0, %v10960_v10  ;;  %v10891_v52 = vadd.f32 %v10890_v36, %v21430_v24  ;;  %v10962_v51 = vadd.f32 %v10961_v60, %v10889_v27  ;;  %v24069_v60 = vld [vmem:[#allocation141_spill] sm:$0xff]  ;;  %v24072_v13 = vld [vmem:[#allocation318_spill] sm:$0xff] }
 0x4a2   : > { %v10892_v22 = vpop.f32.mrf.mxu0  ;;  %v11755_v53 = vmul.f32 %v11739_v38, %v21296_v7  ;;  %v11725_v54 = vmul.f32 0.2, %v11693_v50  ;;  %v11740_v40 = vsel %vm11708_vm15, %v11692_v34, %v11724_v30  ;;  %vm11710_vm5 = vcmp.gt.f32.partialorder %v11694_v55, 0.0  ;;  %v24073_v30 = vld [vmem:[#allocation268_spill] sm:$0xff] }
 0x4a3   : > { %v11696_v1 = vadd.f32 %v11680_v11, %v21357_v35  ;;  %v11681_v37 = vmul.f32 %v21338_v0, %v10962_v51  ;;  %v10893_v9 = vadd.f32 %v10892_v22, %v24068_v58  ;;  %v10964_v3 = vadd.f32 %v10963_v18, %v10891_v52  ;;  %v24074_v52 = vld [vmem:[#allocation82_spill] sm:$0xff] }
 0x4a4   : > { %v11773_v59 = vadd.f32 %v11755_v53, %v11754_v4  ;;  %v11741_v24 = vsel %vm11709_vm11, %v11693_v50, %v11725_v54  ;;  %v11756_v21 = vmul.f32 %v11740_v40, %v24069_v60  ;;  %vm11711_vm4 = vcmp.gt.f32.partialorder %v11695_v25, 0.0  ;;  %v24071_v50 = vld [vmem:[#allocation320_spill] sm:$0xff] }
 0x4a5   : > { %v11697_v57 = vadd.f32 %v11681_v37, %v21357_v35  ;;  %v10966_v23 = vadd.f32 %v10965_v46, %v10893_v9  ;;  %v11757_v28 = vmul.f32 %v11741_v24, %v24070_v15  ;;  %v11726_v34 = vmul.f32 0.2, %v11694_v55  ;;  %v24076_v54 = vld [vmem:[#allocation264_spill] sm:$0xff] }
 0x4a6   : > { %11774 = vadd.xlane.f32.xlu1 %v11773_v59  ;;  %v11727_v32 = vmul.f32 0.2, %v11695_v25  ;;  %vm11712_vm3 = vcmp.gt.f32.partialorder %v11696_v1, 0.0  ;;  %v11728_v18 = vmul.f32 0.2, %v11696_v1 }
 0x4a7   : > { %v11776_v8 = vadd.f32 %v11757_v28, %v11756_v21  ;;  %vm11713_vm9 = vcmp.gt.f32.partialorder %v11697_v57, 0.0  ;;  %v11742_v48 = vsel %vm11710_vm5, %v11694_v55, %v11726_v34  ;;  %v11729_v5 = vmul.f32 0.2, %v11697_v57  ;;  %v24075_v55 = vld [vmem:[#allocation9_spill] sm:$0xff] }
 0x4a8   : > { %v11743_v45 = vsel %vm11711_vm4, %v11695_v25, %v11727_v32  ;;  %v11758_v44 = vmul.f32 %v11742_v48, %v24071_v50  ;;  %v11744_v10 = vsel %vm11712_vm3, %v11696_v1, %v11728_v18  ;;  %v11682_v25 = vmul.f32 %v24075_v55, %v10964_v3 }
 0x4a9   : > { %v11759_v27 = vmul.f32 %v11743_v45, %v24072_v13  ;;  %v11745_v36 = vsel %vm11713_vm9, %v11697_v57, %v11729_v5  ;;  %v11760_v51 = vmul.f32 %v11744_v10, %v24074_v52  ;;  %v11683_v53 = vmul.f32 %v24075_v55, %v10966_v23 }
 0x4aa   : > { %11777 = vadd.xlane.f32.xlu1 %v11776_v8  ;;  %v11761_v11 = vmul.f32 %v11745_v36, %v24073_v30  ;;  %v11698_v40 = vadd.f32 %v11682_v25, %v24076_v54 }
 0x4ab   : > { %v11779_v38 = vadd.f32 %v11759_v27, %v11758_v44  ;;  %v11699_v37 = vadd.f32 %v11683_v53, %v24076_v54 }
 0x4ac   : > { %v11782_v22 = vadd.f32 %v11761_v11, %v11760_v51  ;;  %vm11714_vm1 = vcmp.gt.f32.partialorder %v11698_v40, 0.0  ;;  %v11730_v9 = vmul.f32 0.2, %v11698_v40 }
 0x4ad   : > { %vm11715_vm10 = vcmp.gt.f32.partialorder %v11699_v37, 0.0  ;;  %v11731_v59 = vmul.f32 0.2, %v11699_v37 }
 0x4ae   : > { %11780 = vadd.xlane.f32.xlu1 %v11779_v38  ;;  %v11746_v57 = vsel %vm11714_vm1, %v11698_v40, %v11730_v9 }
 0x4af   : > { %v11747_v28 = vsel %vm11715_vm10, %v11699_v37, %v11731_v59  ;;  %v11762_v3 = vmul.f32 %v11746_v57, %v21456_v31 }
 0x4b0   : > { %v11763_v23 = vmul.f32 %v11747_v28, %v21461_v29 }
 0x4b2   : > { %11783 = vadd.xlane.f32.xlu1 %v11782_v22  ;;  %v21543_v8 = vadd.f32 %v11763_v23, %v11762_v3 }
 0x4b4   : > { %v11075_v4 = vpop.f32.mrf.mxu1  ;;  %24077 = vst [vmem:[#allocation90_spill] sm:$0xff] %v21543_v8 }
 0x4b6   : > { %v11077_v46 = vpop.f32.mrf.mxu1 }
 0x4b8   : > { %v11079_v1 = vpop.f32.mrf.mxu1 }
 0x4ba   : > { %v11081_v58 = vpop.f32.mrf.mxu1 }
 0x4bc   : > { %v11085_v21 = vpop.f32.mrf.mxu1 }
 0x4be   : > { %v11087_v48 = vpop.f32.mrf.mxu1 }
 0x4c0   : > { %v11089_v5 = vpop.f32.mrf.mxu1 }
 0x4c2   : > { %v11091_v10 = vpop.f32.mrf.mxu1 }
 0x4c4   : > { %v11095_v11 = vpop.f32.mrf.mxu1 }
 0x4c6   : > { %v11097_v25 = vpop.f32.mrf.mxu1 }
 0x4c7   : > { %v11002_v24 = vpop.f32.mrf.mxu0 }
 0x4c8   : > { %v11099_v37 = vpop.f32.mrf.mxu1  ;;  %v11076_v3 = vadd.f32 %v11075_v4, %v11002_v24 }
 0x4c9   : > { %v11004_v34 = vpop.f32.mrf.mxu0 }
 0x4ca   : > { %v11101_v57 = vpop.f32.mrf.mxu1  ;;  %v11078_v8 = vadd.f32 %v11077_v46, %v11004_v34 }
 0x4cb   : > { %v11006_v32 = vpop.f32.mrf.mxu0 }
 0x4cc   : > { %v11105_v31 = vpop.f32.mrf.mxu1  ;;  %v11080_v52 = vadd.f32 %v11079_v1, %v11006_v32 }
 0x4cd   : > { %v11008_v45 = vpop.f32.mrf.mxu0 }
 0x4ce   : > { %v11082_v55 = vadd.f32 %v11081_v58, %v11008_v45  ;;  %v11107_v60 = vpop.f32.mrf.mxu1 }
 0x4cf   : > { %v11012_v18 = vpop.f32.mrf.mxu0 }
 0x4d0   : > { %v11086_v19 = vadd.f32 %v11085_v21, %v11012_v18 }
 0x4d1   : > { %v11014_v44 = vpop.f32.mrf.mxu0 }
 0x4d3   : > { %v11016_v27 = vpop.f32.mrf.mxu0 }
 0x4d4   : > { %v11090_v1 = vadd.f32 %v11089_v5, %v11016_v27 }
 0x4d5   : > { %v11018_v36 = vpop.f32.mrf.mxu0 }
 0x4d7   : > { %v11022_v38 = vpop.f32.mrf.mxu0 }
 0x4d9   : > { %v11024_v51 = vpop.f32.mrf.mxu0 }
 0x4db   : > { %v11026_v22 = vpop.f32.mrf.mxu0 }
 0x4dc   : > { %v11100_v21 = vadd.f32 %v11099_v37, %v11026_v22 }
 0x4dd   : > { %v11028_v53 = vpop.f32.mrf.mxu0 }
 0x4df   : > { %v11032_v40 = vpop.f32.mrf.mxu0 }
 0x4e1   : > { %v11034_v9 = vpop.f32.mrf.mxu0 }
 0x4e3   : > { %v21545_v59 = vpop.f32.mrf.mxu0 }
 0x4e5   : > { %v21547_v28 = vpop.f32.mrf.mxu0 }
 0x4e6   : > { %24078 = vst [vmem:[#allocation359_spill] sm:$0xff] %v21547_v28  ;;  %v11088_v28 = vadd.f32 %v11087_v48, %v11014_v44  ;;  %v21562_v44 = vadd.f32 %v11105_v31, %v11032_v40  ;;  %v21570_v40 = vadd.f32 %v11107_v60, %v11034_v9 }
 0x4e7   : > { %v11148_v23 = vpop.f32.mrf.mxu0 }
 0x4e8   : > { %v11149_v29 = vadd.f32 %v11148_v23, %v11076_v3 }
 0x4e9   : > { %v11150_v30 = vpop.f32.mrf.mxu0 }
 0x4ea   : > { %v11817_v13 = vmul.f32 %v21019_v26, %v11149_v29  ;;  %v11151_v54 = vadd.f32 %v11150_v30, %v11078_v8  ;;  %v11092_v29 = vadd.f32 %v11091_v10, %v11018_v36  ;;  %v11096_v30 = vadd.f32 %v11095_v11, %v11022_v38 }
 0x4eb   : > { %v11152_v50 = vpop.f32.mrf.mxu0  ;;  %v11098_v8 = vadd.f32 %v11097_v25, %v11024_v51 }
 0x4ec   : > { %v11833_v15 = vadd.f32 %v11817_v13, %v21140_v39  ;;  %v11818_v35 = vmul.f32 %v21019_v26, %v11151_v54  ;;  %v11153_v0 = vadd.f32 %v11152_v50, %v11080_v52  ;;  %v21555_v54 = vpop.f32.mrf.mxu1 }
 0x4ed   : > { %v11154_v4 = vpop.f32.mrf.mxu0 }
 0x4ee   : > { %v11834_v46 = vadd.f32 %v11818_v35, %v21140_v39  ;;  %v11819_v24 = vmul.f32 %v21101_v6, %v11153_v0  ;;  %v11155_v34 = vadd.f32 %v11154_v4, %v11082_v55  ;;  %vm11849_vm6 = vcmp.gt.f32.partialorder %v11833_v15, 0.0  ;;  %v21564_v38 = vpop.f32.mrf.mxu1 }
 0x4ef   : > { %v11158_v32 = vpop.f32.mrf.mxu0  ;;  %v11865_v58 = vmul.f32 0.2, %v11833_v15  ;;  %v21558_v55 = vadd.f32 %v11101_v57, %v11028_v53 }
 0x4f0   : > { %v11835_v13 = vadd.f32 %v11819_v24, %v21118_v61  ;;  %v11820_v50 = vmul.f32 %v21101_v6, %v11155_v34  ;;  %v11159_v52 = vadd.f32 %v11158_v32, %v11086_v19  ;;  %vm11850_vm7 = vcmp.gt.f32.partialorder %v11834_v46, 0.0 }
 0x4f1   : > { %v11160_v48 = vpop.f32.mrf.mxu0  ;;  %v11866_v35 = vmul.f32 0.2, %v11834_v46  ;;  %v11881_v0 = vsel %vm11849_vm6, %v11833_v15, %v11865_v58 }
 0x4f2   : > { %v11836_v45 = vadd.f32 %v11820_v50, %v21118_v61  ;;  %v11821_v18 = vmul.f32 %v21062_v16, %v11159_v52  ;;  %v11161_v5 = vadd.f32 %v11160_v48, %v11088_v28  ;;  %vm11851_vm14 = vcmp.gt.f32.partialorder %v11835_v13, 0.0 }
 0x4f3   : > { %v11162_v27 = vpop.f32.mrf.mxu0  ;;  %v11882_v10 = vsel %vm11850_vm7, %v11834_v46, %v11866_v35  ;;  %v11867_v36 = vmul.f32 0.2, %v11835_v13  ;;  %v11897_v51 = vmul.f32 %v11881_v0, %v21193_v62 }
 0x4f4   : > { %v11837_v19 = vadd.f32 %v11821_v18, %v21166_v41  ;;  %v11822_v11 = vmul.f32 %v21062_v16, %v11161_v5  ;;  %v11163_v15 = vadd.f32 %v11162_v27, %v11090_v1  ;;  %v11898_v25 = vmul.f32 %v11882_v10, %v21202_v47 }
 0x4f5   : > { %v11164_v22 = vpop.f32.mrf.mxu0  ;;  %vm11852_vm0 = vcmp.gt.f32.partialorder %v11836_v45, 0.0  ;;  %v11868_v53 = vmul.f32 0.2, %v11836_v45  ;;  %v11883_v31 = vsel %vm11851_vm14, %v11835_v13, %v11867_v36 }
 0x4f6   : > { %v11838_v37 = vadd.f32 %v11822_v11, %v21166_v41  ;;  %v11823_v57 = vmul.f32 %v21186_v20, %v11163_v15  ;;  %v11165_v28 = vadd.f32 %v11164_v22, %v11092_v29  ;;  %v11913_v4 = vadd.f32 %v11898_v25, %v11897_v51 }
 0x4f7   : > { %v21574_v3 = vpop.f32.mrf.mxu1  ;;  %v11168_v23 = vpop.f32.mrf.mxu0  ;;  %v11884_v46 = vsel %vm11852_vm0, %v11836_v45, %v11868_v53  ;;  %vm11853_vm13 = vcmp.gt.f32.partialorder %v11837_v19, 0.0  ;;  %v11869_v62 = vmul.f32 0.2, %v11837_v19  ;;  %v11899_v60 = vmul.f32 %v11883_v31, %v21226_v43 }
 0x4f8   : > { %v11839_v24 = vadd.f32 %v11823_v57, %v21208_v63  ;;  %v11824_v47 = vmul.f32 %v21186_v20, %v11165_v28  ;;  %v11169_v34 = vadd.f32 %v11168_v23, %v11096_v30  ;;  %11914 = vadd.xlane.f32.xlu1 %v11913_v4  ;;  %v11900_v29 = vmul.f32 %v11884_v46, %v21233_v17  ;;  %v24080_v4 = vld [vmem:[#allocation133_spill] sm:$0xff] }
 0x4f9   : > { %v21579_v9 = vpop.f32.mrf.mxu1  ;;  %v11170_v1 = vpop.f32.mrf.mxu0  ;;  %vm11854_vm12 = vcmp.gt.f32.partialorder %v11838_v37, 0.0  ;;  %v11870_v32 = vmul.f32 0.2, %v11838_v37  ;;  %v11885_v58 = vsel %vm11853_vm13, %v11837_v19, %v11869_v62 }
 0x4fa   : > { %v11840_v13 = vadd.f32 %v11824_v47, %v21208_v63  ;;  %v11825_v50 = vmul.f32 %v21235_v56, %v11169_v34  ;;  %v11171_v52 = vadd.f32 %v11170_v1, %v11098_v8  ;;  %v11901_v48 = vmul.f32 %v11885_v58, %v21255_v2  ;;  %v24081_v47 = vld [vmem:[#allocation201_spill] sm:$0xff] }
 0x4fb   : > { %v21585_v35 = vpop.f32.mrf.mxu1  ;;  %v11172_v30 = vpop.f32.mrf.mxu0  ;;  %v11916_v43 = vadd.f32 %v11900_v29, %v11899_v60  ;;  %v11886_v0 = vsel %vm11854_vm12, %v11838_v37, %v11870_v32  ;;  %vm11855_vm8 = vcmp.gt.f32.partialorder %v11839_v24, 0.0  ;;  %v11871_v45 = vmul.f32 0.2, %v11839_v24  ;;  %v24082_v32 = vld [vmem:[#allocation141_spill] sm:$0xff] }
 0x4fc   : > { %v11841_v18 = vadd.f32 %v11825_v50, %v21243_v42  ;;  %v11826_v17 = vmul.f32 %v21235_v56, %v11171_v52  ;;  %v11173_v5 = vadd.f32 %v11172_v30, %v11100_v21  ;;  %v11902_v27 = vmul.f32 %v11886_v0, %v21260_v12  ;;  %v24084_v30 = vld [vmem:[#allocation41_spill] sm:$0xff] }
 0x4fd   : > { %v21590_v10 = vpop.f32.mrf.mxu1  ;;  %v11110_v8 = vadd.f32 %v21555_v54, %v21545_v59  ;;  %11917 = vadd.xlane.f32.xlu0 %v11916_v43  ;;  %v11174_v2 = vpop.f32.mrf.mxu0  ;;  %vm11856_vm2 = vcmp.gt.f32.partialorder %v11840_v13, 0.0  ;;  %v11872_v36 = vmul.f32 0.2, %v11840_v13  ;;  %v11887_v19 = vsel %vm11855_vm8, %v11839_v24, %v11871_v45 }
 0x4fe   : > { %v11842_v11 = vadd.f32 %v11826_v17, %v21243_v42  ;;  %v11827_v15 = vmul.f32 %v21284_v33, %v11173_v5  ;;  %v11175_v51 = vadd.f32 %v11174_v2, %v21558_v55  ;;  %v11919_v22 = vadd.f32 %v11902_v27, %v11901_v48  ;;  %v24079_v55 = vld [vmem:[#allocation359_spill] sm:$0xff]  ;;  %v24085_v5 = vld [vmem:[#allocation9_spill] sm:$0xff] }
 0x4ff   : > { %v21597_v21 = vpop.f32.mrf.mxu1  ;;  %v11178_v12 = vpop.f32.mrf.mxu0  ;;  %v11888_v25 = vsel %vm11856_vm2, %v11840_v13, %v11872_v36  ;;  %v11903_v53 = vmul.f32 %v11887_v19, %v21280_v14  ;;  %vm11857_vm15 = vcmp.gt.f32.partialorder %v11841_v18, 0.0  ;;  %v11873_v59 = vmul.f32 0.2, %v11841_v18  ;;  %v24083_v13 = vld [vmem:[#allocation38_spill] sm:$0xff] }
 0x500   : > { %v11843_v54 = vadd.f32 %v11827_v15, %v21303_v49  ;;  %v11828_v31 = vmul.f32 %v21284_v33, %v11175_v51  ;;  %v11179_v37 = vadd.f32 %v11178_v12, %v21562_v44  ;;  %11920 = vadd.xlane.f32.xlu1 %v11919_v22  ;;  %v11904_v57 = vmul.f32 %v11888_v25, %v21296_v7  ;;  %v24086_v15 = vld [vmem:[#allocation320_spill] sm:$0xff] }
 0x501   : > { %v21604_v28 = vpop.f32.mrf.mxu1  ;;  %v11112_v23 = vadd.f32 %v21564_v38, %v24079_v55  ;;  %11636 = vadd.xlane.f32.xlu0 %v24080_v4  ;;  %v11180_v46 = vpop.f32.mrf.mxu0  ;;  %vm11858_vm11 = vcmp.gt.f32.partialorder %v11842_v11, 0.0  ;;  %v11874_v14 = vmul.f32 0.2, %v11842_v11  ;;  %v11889_v62 = vsel %vm11857_vm15, %v11841_v18, %v11873_v59  ;;  %v24087_v22 = vld [vmem:[#allocation264_spill] sm:$0xff] }
 0x502   : > { %v11844_v24 = vadd.f32 %v11828_v31, %v21303_v49  ;;  %v11829_v34 = vmul.f32 %v24081_v47, %v11179_v37  ;;  %v11181_v44 = vadd.f32 %v11180_v46, %v21570_v40  ;;  %v11922_v60 = vadd.f32 %v11904_v57, %v11903_v53  ;;  %v24088_v53 = vld [vmem:[#allocation318_spill] sm:$0xff]  ;;  %v21630_v57 = vpop.xlane.xlu0 %11615 }
 0x503   : > { %v21612_v1 = vpop.f32.mrf.mxu1  ;;  %v11182_v7 = vpop.f32.mrf.mxu0  ;;  %v11890_v29 = vsel %vm11858_vm11, %v11842_v11, %v11874_v14  ;;  %v11905_v58 = vmul.f32 %v11889_v62, %v24082_v32  ;;  %vm11859_vm5 = vcmp.gt.f32.partialorder %v11843_v54, 0.0  ;;  %v11875_v38 = vmul.f32 0.2, %v11843_v54 }
 0x504   : > { %v11845_v50 = vadd.f32 %v11829_v34, %v24083_v13  ;;  %v11830_v52 = vmul.f32 %v24081_v47, %v11181_v44  ;;  %v11183_v48 = vadd.f32 %v11182_v7, %v11110_v8  ;;  %11923 = vadd.xlane.f32.xlu1 %v11922_v60  ;;  %v11906_v43 = vmul.f32 %v11890_v29, %v24084_v30  ;;  %v24090_v44 = vld [vmem:[#allocation268_spill] sm:$0xff]  ;;  %v24092_v30 = vld [vmem:[#allocation138_spill] sm:$0xff] }
 0x505   : > { %v21618_v0 = vpop.f32.mrf.mxu1  ;;  %v11184_v40 = vpop.f32.mrf.mxu0  ;;  %vm11860_vm4 = vcmp.gt.f32.partialorder %v11844_v24, 0.0  ;;  %v11876_v45 = vmul.f32 0.2, %v11844_v24  ;;  %v11891_v18 = vsel %vm11859_vm5, %v11843_v54, %v11875_v38 }
 0x506   : > { %v11846_v17 = vadd.f32 %v11830_v52, %v24083_v13  ;;  %v11831_v27 = vmul.f32 %v24085_v5, %v11183_v48  ;;  %v11185_v2 = vadd.f32 %v11184_v40, %v11112_v23  ;;  %v11925_v36 = vadd.f32 %v11906_v43, %v11905_v58  ;;  %v21639_v32 = vpop.xlane.xlu0 %11624  ;;  %v24091_v52 = vld [vmem:[#allocation300_spill] sm:$0xff] }
 0x507   : > { %v21622_v19 = vpop.f32.mrf.mxu1  ;;  %v11892_v11 = vsel %vm11860_vm4, %v11844_v24, %v11876_v45  ;;  %v11907_v8 = vmul.f32 %v11891_v18, %v24086_v15  ;;  %vm11861_vm3 = vcmp.gt.f32.partialorder %v11845_v50, 0.0  ;;  %v11877_v51 = vmul.f32 0.2, %v11845_v50  ;;  %v24089_v24 = vld [vmem:[#allocation82_spill] sm:$0xff] }
 0x508   : > { %v11847_v12 = vadd.f32 %v11831_v27, %v24087_v22  ;;  %v11832_v25 = vmul.f32 %v24085_v5, %v11185_v2  ;;  %11926 = vadd.xlane.f32.xlu1 %v11925_v36  ;;  %v11908_v59 = vmul.f32 %v11892_v11, %v24088_v53  ;;  %vm11862_vm9 = vcmp.gt.f32.partialorder %v11846_v17, 0.0 }
 0x509   : > { %v21628_v54 = vpop.f32.mrf.mxu1  ;;  %v11878_v31 = vmul.f32 0.2, %v11846_v17  ;;  %v11893_v37 = vsel %vm11861_vm3, %v11845_v50, %v11877_v51 }
 0x50a   : > { %v11848_v55 = vadd.f32 %v11832_v25, %v24087_v22  ;;  %v11928_v23 = vadd.f32 %v11908_v59, %v11907_v8  ;;  %vm11863_vm1 = vcmp.gt.f32.partialorder %v11847_v12, 0.0  ;;  %v11879_v14 = vmul.f32 0.2, %v11847_v12 }
 0x50b   : > { %v21633_v4 = vpop.f32.mrf.mxu1  ;;  %v11894_v46 = vsel %vm11862_vm9, %v11846_v17, %v11878_v31  ;;  %v11909_v34 = vmul.f32 %v11893_v37, %v24089_v24  ;;  %v21653_v17 = vpop.xlane.xlu0 %11627 }
 0x50c   : > { %11929 = vadd.xlane.f32.xlu1 %v11928_v23  ;;  %v11910_v60 = vmul.f32 %v11894_v46, %v24090_v44  ;;  %vm11864_vm10 = vcmp.gt.f32.partialorder %v11848_v55, 0.0  ;;  %v11880_v7 = vmul.f32 0.2, %v11848_v55  ;;  %v11895_v29 = vsel %vm11863_vm1, %v11847_v12, %v11879_v14 }
 0x50d   : > { %v21635_v62 = vpop.f32.mrf.mxu1  ;;  %v11911_v48 = vmul.f32 %v11895_v29, %v24091_v52 }
 0x50e   : > { %v21643_v38 = vadd.f32 %v11910_v60, %v11909_v34  ;;  %v11896_v50 = vsel %vm11864_vm10, %v11848_v55, %v11880_v7 }
 0x50f   : > { %v21641_v58 = vpop.f32.mrf.mxu1  ;;  %v11912_v43 = vmul.f32 %v11896_v50, %v24092_v30  ;;  %v21657_v11 = vpop.xlane.xlu0 %11630 }
 0x511   : > { %v21647_v40 = vpop.f32.mrf.mxu1  ;;  %v21649_v45 = vadd.f32 %v11912_v43, %v11911_v48 }
 0x513   : > { %v21651_v18 = vpop.f32.mrf.mxu1  ;;  %v21659_v12 = vpop.xlane.xlu0 %11633 }
 0x515   : > { %v21655_v27 = vpop.f32.mrf.mxu1 }
 0x517   : > { %v11367_v2 = vpop.f32.mrf.mxu1 }
 0x519   : > { %v11369_v36 = vpop.f32.mrf.mxu1 }
 0x51b   : > { %v11371_v15 = vpop.f32.mrf.mxu1 }
 0x51d   : > { %v11373_v8 = vpop.f32.mrf.mxu1 }
 0x51f   : > { %v11377_v51 = vpop.f32.mrf.mxu1 }
 0x521   : > { %v11379_v25 = vpop.f32.mrf.mxu1  ;;  %v11766_v59 = vpop.xlane.xlu0 %11765 }
 0x523   : > { %v11381_v53 = vpop.f32.mrf.mxu1 }
 0x525   : > { %v11383_v37 = vpop.f32.mrf.mxu1  ;;  %v11769_v55 = vpop.xlane.xlu0 %11768 }
 0x526   : > { %v11788_v46 = vadd.f32 %v11769_v55, %v11766_v59 }
 0x527   : > { %v11387_v60 = vpop.f32.mrf.mxu1 }
 0x529   : > { %v11294_v31 = vpop.f32.mrf.mxu0  ;;  %v11772_v50 = vpop.xlane.xlu0 %11771 }
 0x52a   : > { %v11295_v23 = vadd.f32 %v11294_v31, %v21574_v3  ;;  %v21665_v48 = vadd.f32 %v11788_v46, %v11772_v50 }
 0x52b   : > { %v11296_v14 = vpop.f32.mrf.mxu0 }
 0x52c   : > { %v11297_v24 = vadd.f32 %v11296_v14, %v21579_v9  ;;  %v11368_v34 = vadd.f32 %v11367_v2, %v11295_v23  ;;  %v11389_v2 = vpop.f32.mrf.mxu1 }
 0x52d   : > { %v11298_v44 = vpop.f32.mrf.mxu0 }
 0x52e   : > { %v11966_v7 = vmul.f32 %v21019_v26, %v11368_v34  ;;  %v11370_v29 = vadd.f32 %v11369_v36, %v11297_v24  ;;  %v11299_v52 = vadd.f32 %v11298_v44, %v21585_v35 }
 0x52f   : > { %v11300_v30 = vpop.f32.mrf.mxu0 }
 0x530   : > { %v11982_v43 = vadd.f32 %v11966_v7, %v21140_v39  ;;  %v11967_v3 = vmul.f32 %v21019_v26, %v11370_v29  ;;  %v11301_v59 = vadd.f32 %v11300_v30, %v21590_v10  ;;  %v11372_v31 = vadd.f32 %v11371_v15, %v11299_v52 }
 0x531   : > { %v11304_v9 = vpop.f32.mrf.mxu0 }
 0x532   : > { %v11983_v55 = vadd.f32 %v11967_v3, %v21140_v39  ;;  %v11968_v23 = vmul.f32 %v21101_v6, %v11372_v31  ;;  %v11374_v36 = vadd.f32 %v11373_v8, %v11301_v59  ;;  %v11305_v14 = vadd.f32 %v11304_v9, %v21597_v21  ;;  %v11391_v39 = vpop.f32.mrf.mxu1 }
 0x533   : > { %v11306_v35 = vpop.f32.mrf.mxu0  ;;  %vm11998_vm6 = vcmp.gt.f32.partialorder %v11982_v43, 0.0  ;;  %v12014_v46 = vmul.f32 0.2, %v11982_v43 }
 0x534   : > { %v11984_v24 = vadd.f32 %v11968_v23, %v21118_v61  ;;  %v11969_v34 = vmul.f32 %v21101_v6, %v11374_v36  ;;  %v11307_v26 = vadd.f32 %v11306_v35, %v21604_v28  ;;  %v11378_v10 = vadd.f32 %v11377_v51, %v11305_v14  ;;  %v14160_v6 = vld [vmem:[%s21796_s6] sm:$0xff] }
 0x535   : > { %v11308_v15 = vpop.f32.mrf.mxu0  ;;  %vm11999_vm7 = vcmp.gt.f32.partialorder %v11983_v55, 0.0  ;;  %v12015_v44 = vmul.f32 0.2, %v11983_v55  ;;  %v12030_v7 = vsel %vm11998_vm6, %v11982_v43, %v12014_v46  ;;  %vm12115_vm6 = vcmask 1040384  }
 0x536   : > { %v11985_v29 = vadd.f32 %v11969_v34, %v21118_v61  ;;  %v11970_v8 = vmul.f32 %v21062_v16, %v11378_v10  ;;  %v11380_v21 = vadd.f32 %v11379_v25, %v11307_v26  ;;  %v11309_v50 = vadd.f32 %v11308_v15, %v21612_v1  ;;  %v14161_v1 = vld [vmem:[%s21796_s6 + $0x8] sm:$0xff] }
 0x537   : > { %v11310_v52 = vpop.f32.mrf.mxu0  ;;  %v12031_v30 = vsel %vm11999_vm7, %v11983_v55, %v12015_v44  ;;  %v12046_v28 = vmul.f32 %v14160_v6, %v12030_v7  ;;  %v12016_v51 = vmul.f32 0.2, %v11984_v24  ;;  %vm12000_vm14 = vcmp.gt.f32.partialorder %v11984_v24, 0.0  ;;  %v11393_v55 = vpop.f32.mrf.mxu1 }
 0x538   : > { %v11971_v3 = vmul.f32 %v21062_v16, %v11380_v21  ;;  %v11311_v43 = vadd.f32 %v11310_v52, %v21618_v0  ;;  %v11382_v59 = vadd.f32 %v11381_v53, %v11309_v50  ;;  %v11986_v61 = vadd.f32 %v11970_v8, %v21166_v41 }
 0x539   : > { %v11314_v31 = vpop.f32.mrf.mxu0  ;;  %v12047_v25 = vmul.f32 %v14161_v1, %v12031_v30  ;;  %vm12001_vm0 = vcmp.gt.f32.partialorder %v11985_v29, 0.0  ;;  %v12017_v9 = vmul.f32 0.2, %v11985_v29  ;;  %v12032_v35 = vsel %vm12000_vm14, %v11984_v24, %v12016_v51  ;;  %v11397_v7 = vpop.f32.mrf.mxu1 }
 0x53a   : > { %v11987_v23 = vadd.f32 %v11971_v3, %v21166_v41  ;;  %v11972_v36 = vmul.f32 %v21186_v20, %v11382_v59  ;;  %v11384_v16 = vadd.f32 %v11383_v37, %v11311_v43  ;;  %v11315_v0 = vadd.f32 %v11314_v31, %v21622_v19  ;;  %v14162_v41 = vld [vmem:[%s21796_s6 + $0x10] sm:$0xff]  ;;  %v14163_v19 = vld [vmem:[%s21796_s6 + $0x18] sm:$0xff]  ;;  %v14164_v31 = vld [vmem:[%s21796_s6 + $0x20] sm:$0xff] }
 0x53b   : > { %v11316_v53 = vpop.f32.mrf.mxu0  ;;  %v12062_v14 = vadd.f32 %v12047_v25, %v12046_v28  ;;  %v12033_v46 = vsel %vm12001_vm0, %v11985_v29, %v12017_v9  ;;  %v12048_v37 = vmul.f32 %v14162_v41, %v12032_v35  ;;  %vm12002_vm13 = vcmp.gt.f32.partialorder %v11986_v61, 0.0  ;;  %v11399_v3 = vpop.f32.mrf.mxu1 }
 0x53c   : > { %v11988_v34 = vadd.f32 %v11972_v36, %v21208_v63  ;;  %v11973_v26 = vmul.f32 %v21186_v20, %v11384_v16  ;;  %v11317_v10 = vadd.f32 %v11316_v53, %v21628_v54  ;;  %v11388_v15 = vadd.f32 %v11387_v60, %v11315_v0  ;;  %v24093_v16 = vld [vmem:[#allocation90_spill] sm:$0xff] }
 0x53d   : > { %12063 = vadd.xlane.f32.xlu1 %v12062_v14  ;;  %v11318_v44 = vpop.f32.mrf.mxu0  ;;  %v12049_v24 = vmul.f32 %v14163_v19, %v12033_v46  ;;  %vm12003_vm12 = vcmp.gt.f32.partialorder %v11987_v23, 0.0  ;;  %v12018_v50 = vmul.f32 0.2, %v11986_v61  ;;  %v12019_v52 = vmul.f32 0.2, %v11987_v23  ;;  %v11401_v53 = vpop.f32.mrf.mxu1 }
 0x53e   : > { %v11989_v20 = vadd.f32 %v11973_v26, %v21208_v63  ;;  %v11974_v54 = vmul.f32 %v21235_v56, %v11388_v15  ;;  %v11390_v60 = vadd.f32 %v11389_v2, %v11317_v10  ;;  %v11319_v29 = vadd.f32 %v11318_v44, %v21633_v4  ;;  %v14166_v15 = vld [vmem:[%s21796_s6 + $0x30] sm:$0xff] }
 0x53f   : > { %v11320_v8 = vpop.f32.mrf.mxu0  ;;  %v12065_v21 = vadd.f32 %v12049_v24, %v12048_v37  ;;  %vm12004_vm8 = vcmp.gt.f32.partialorder %v11988_v34, 0.0  ;;  %v12034_v2 = vsel %vm12002_vm13, %v11986_v61, %v12018_v50  ;;  %v12035_v4 = vsel %vm12003_vm12, %v11987_v23, %v12019_v52  ;;  %v14165_v61 = vld [vmem:[%s21796_s6 + $0x28] sm:$0xff] }
 0x540   : > { %v11975_v30 = vmul.f32 %v21235_v56, %v11390_v60  ;;  %v11321_v6 = vadd.f32 %v11320_v8, %v21635_v62  ;;  %v11392_v28 = vadd.f32 %v11391_v39, %v11319_v29  ;;  %v11990_v51 = vadd.f32 %v11974_v54, %v21243_v42 }
 0x541   : > { %12066 = vadd.xlane.f32.xlu0 %v12065_v21  ;;  %11932 = vadd.xlane.f32.xlu1 %v21643_v38  ;;  %v11324_v63 = vpop.f32.mrf.mxu0  ;;  %vm12005_vm2 = vcmp.gt.f32.partialorder %v11989_v20, 0.0  ;;  %v12050_v38 = vmul.f32 %v14164_v31, %v12034_v2  ;;  %v12051_v1 = vmul.f32 %v14165_v61, %v12035_v4  ;;  %v12020_v25 = vmul.f32 0.2, %v11988_v34 }
 0x542   : > { %v11991_v43 = vadd.f32 %v11975_v30, %v21243_v42  ;;  %v11976_v56 = vmul.f32 %v21284_v33, %v11392_v28  ;;  %v11325_v62 = vadd.f32 %v11324_v63, %v21641_v58  ;;  %v11394_v39 = vadd.f32 %v11393_v55, %v11321_v6 }
 0x543   : > { %v11326_v59 = vpop.f32.mrf.mxu0  ;;  %v12021_v9 = vmul.f32 0.2, %v11989_v20  ;;  %v12068_v36 = vadd.f32 %v12051_v1, %v12050_v38  ;;  %v12036_v14 = vsel %vm12004_vm8, %v11988_v34, %v12020_v25  ;;  %vm12006_vm15 = vcmp.gt.f32.partialorder %v11990_v51, 0.0  ;;  %v14167_v34 = vld [vmem:[%s21796_s6 + $0x38] sm:$0xff]  ;;  %v14172_v1 = vld [vmem:[%s21796_s6 + $0x60] sm:$0xff] }
 0x544   : > { %v11992_v42 = vadd.f32 %v11976_v56, %v21303_v49  ;;  %v11977_v23 = vmul.f32 %v21284_v33, %v11394_v39  ;;  %v11327_v58 = vadd.f32 %v11326_v59, %v21647_v40  ;;  %v11398_v55 = vadd.f32 %v11397_v7, %v11325_v62 }
 0x545   : > { %11786 = vadd.xlane.f32.xlu1 %v24093_v16  ;;  %v11328_v0 = vpop.f32.mrf.mxu0  ;;  %v12037_v35 = vsel %vm12005_vm2, %v11989_v20, %v12021_v9  ;;  %12069 = vadd.xlane.f32.xlu0 %v12068_v36  ;;  %v12052_v44 = vmul.f32 %v14166_v15, %v12036_v14  ;;  %vm12007_vm11 = vcmp.gt.f32.partialorder %v11991_v43, 0.0  ;;  %v12022_v37 = vmul.f32 0.2, %v11990_v51  ;;  %v11403_v20 = vpop.f32.mrf.mxu1  ;;  %v14173_v9 = vld [vmem:[%s21796_s6 + $0x68] sm:$0xff]  ;;  %v14174_v36 = vld [vmem:[%s21796_s6 + $0x78] sm:$0xff] }
 0x546   : > { %v11993_v46 = vadd.f32 %v11977_v23, %v21303_v49  ;;  %v11978_v26 = vmul.f32 %v24081_v47, %v11398_v55  ;;  %v11329_v10 = vadd.f32 %v11328_v0, %v21651_v18  ;;  %v11400_v33 = vadd.f32 %v11399_v3, %v11327_v58  ;;  %v14175_v0 = vld [vmem:[%s21796_s6 + $0x70] sm:$0xff] }
 0x547   : > { %v11330_v40 = vpop.f32.mrf.mxu0  ;;  %v12053_v41 = vmul.f32 %v14167_v34, %v12037_v35  ;;  %v12023_v54 = vmul.f32 0.2, %v11991_v43  ;;  %v12038_v60 = vsel %vm12006_vm15, %v11990_v51, %v12022_v37  ;;  %vm12008_vm5 = vcmp.gt.f32.partialorder %v11992_v42, 0.0  ;;  %v11619_v35 = vpop.xlane.xlu1 %11618 }
 0x548   : > { %v11994_v49 = vadd.f32 %v11978_v26, %v24083_v13  ;;  %v11979_v19 = vmul.f32 %v24081_v47, %v11400_v33  ;;  %v11331_v18 = vadd.f32 %v11330_v40, %v21655_v27  ;;  %v11402_v24 = vadd.f32 %v11401_v53, %v11329_v10  ;;  %v14168_v47 = vld [vmem:[%s21796_s6 + $0x40] sm:$0xff] }
 0x549   : > { %v12071_v7 = vadd.f32 %v12053_v41, %v12052_v44  ;;  %11935 = vadd.xlane.f32.xlu1 %v21649_v45  ;;  %v12054_v50 = vmul.f32 %v14168_v47, %v12038_v60  ;;  %v12039_v27 = vsel %vm12007_vm11, %v11991_v43, %v12023_v54  ;;  %vm12009_vm4 = vcmp.gt.f32.partialorder %v11993_v46, 0.0  ;;  %v14170_v43 = vld [vmem:[%s21796_s6 + $0x50] sm:$0xff]  ;;  %v21775_v54 = vld [vmem:[#allocation3] sm:$0x1] }
 0x54a   : > { %v11995_v29 = vadd.f32 %v11979_v19, %v24083_v13  ;;  %v11980_v8 = vmul.f32 %v24085_v5, %v11402_v24  ;;  %v11404_v21 = vadd.f32 %v11403_v20, %v11331_v18  ;;  %v12024_v45 = vmul.f32 0.2, %v11992_v42  ;;  %v14169_v13 = vld [vmem:[%s21796_s6 + $0x48] sm:$0xff] }
 0x54b   : > { %12072 = vadd.xlane.f32.xlu0 %v12071_v7  ;;  %v12025_v52 = vmul.f32 0.2, %v11993_v46  ;;  %v12055_v28 = vmul.f32 %v14169_v13, %v12039_v27  ;;  %vm12010_vm3 = vcmp.gt.f32.partialorder %v11994_v49, 0.0  ;;  %v12026_v2 = vmul.f32 0.2, %v11994_v49 }
 0x54c   : > { %v11996_v30 = vadd.f32 %v11980_v8, %v24087_v22  ;;  %v11981_v6 = vmul.f32 %v24085_v5, %v11404_v21  ;;  %v12040_v51 = vsel %vm12008_vm5, %v11992_v42, %v12024_v45  ;;  %vm12011_vm9 = vcmp.gt.f32.partialorder %v11995_v29, 0.0  ;;  %v14171_v5 = vld [vmem:[%s21796_s6 + $0x58] sm:$0xff] }
 0x54d   : > { %v12041_v63 = vsel %vm12009_vm4, %v11993_v46, %v12025_v52  ;;  %v12074_v3 = vadd.f32 %v12055_v28, %v12054_v50  ;;  %v12056_v56 = vmul.f32 %v14170_v43, %v12040_v51  ;;  %v12027_v39 = vmul.f32 0.2, %v11995_v29  ;;  %v11622_v46 = vpop.xlane.xlu1 %11621 }
 0x54e   : > { %v11997_v4 = vadd.f32 %v11981_v6, %v24087_v22  ;;  %v12057_v62 = vmul.f32 %v14171_v5, %v12041_v63  ;;  %v12042_v59 = vsel %vm12010_vm3, %v11994_v49, %v12026_v2  ;;  %v12028_v31 = vmul.f32 0.2, %v11996_v30 }
 0x54f   : > { %12075 = vadd.xlane.f32.xlu0 %v12074_v3  ;;  %vm12012_vm1 = vcmp.gt.f32.partialorder %v11996_v30, 0.0  ;;  %v12043_v22 = vsel %vm12011_vm9, %v11995_v29, %v12027_v39  ;;  %v12058_v25 = vmul.f32 %v14172_v1, %v12042_v59  ;;  %v11638_v26 = vadd.f32 %v11619_v35, %v21630_v57 }
 0x550   : > { %v12077_v38 = vadd.f32 %v12057_v62, %v12056_v56  ;;  %vm12013_vm10 = vcmp.gt.f32.partialorder %v11997_v4, 0.0  ;;  %v12029_v61 = vmul.f32 0.2, %v11997_v4  ;;  %v12059_v42 = vmul.f32 %v14173_v9, %v12043_v22 }
 0x551   : > { %v12044_v58 = vsel %vm12012_vm1, %v11996_v30, %v12028_v31  ;;  %v11639_v10 = vadd.f32 %v11638_v26, %v11622_v46  ;;  %v11775_v7 = vpop.xlane.xlu1 %11774  ;;  %vm12117_vm7 = vcmask 1041408   ;;  %vm12119_vm14 = vcmask 1042432  }
 0x552   : > { %v12045_v23 = vsel %vm12013_vm10, %v11997_v4, %v12029_v61  ;;  %v12080_v55 = vadd.f32 %v12059_v42, %v12058_v25  ;;  %v12060_v53 = vmul.f32 %v14175_v0, %v12044_v58  ;;  %v11790_v13 = vadd.f32 %v21665_v48, %v11775_v7 }
 0x553   : > { %12078 = vadd.xlane.f32.xlu0 %v12077_v38  ;;  %v12061_v16 = vmul.f32 %v14174_v36, %v12045_v23  ;;  %v11640_v33 = vadd.f32 %v11639_v10, %v21639_v32 }
 0x555   : > { %v12083_v14 = vadd.f32 %v12061_v16, %v12060_v53  ;;  %v11641_v40 = vadd.f32 %v11640_v33, %v21653_v17  ;;  %v11778_v60 = vpop.xlane.xlu1 %11777 }
 0x556   : > { %v11791_v51 = vadd.f32 %v11790_v13, %v11778_v60 }
 0x557   : > { %12081 = vadd.xlane.f32.xlu0 %v12080_v55  ;;  %v11642_v44 = vadd.f32 %v11641_v40, %v21657_v11 }
 0x559   : > { %v11643_v34 = vadd.f32 %v11642_v44, %v21659_v12  ;;  %v11781_v11 = vpop.xlane.xlu1 %11780 }
 0x55a   : > { %v11792_v3 = vadd.f32 %v11791_v51, %v11781_v11  ;;  %v24094_v51 = vlaneseq }
 0x55b   : > { %12084 = vadd.xlane.f32.xlu0 %v12083_v14 }
 0x55d   : > { %v11784_v8 = vpop.xlane.xlu1 %11783 }
 0x55e   : > { %v11793_v56 = vadd.f32 %v11792_v3, %v11784_v8 }
 0x581   : > { %v11915_v12 = vpop.xlane.xlu1 %11914 }
 0x586   : > { %v11918_v15 = vpop.xlane.xlu0 %11917 }
 0x587   : > { %v11937_v28 = vadd.f32 %v11918_v15, %v11915_v12 }
 0x589   : > { %v11921_v50 = vpop.xlane.xlu1 %11920 }
 0x58a   : > { %v11637_v41 = vpop.xlane.xlu0 %11636  ;;  %v11938_v63 = vadd.f32 %v11937_v28, %v11921_v50 }
 0x58b   : > { %v11644_v37 = vadd.f32 %v11643_v34, %v11637_v41 }
 0x58d   : > { %v11645_v49 = vrot.slane %v11644_v37, 4  ;;  %v11924_v27 = vpop.xlane.xlu1 %11923 }
 0x58e   : > { %v11939_v43 = vadd.f32 %v11938_v63, %v11924_v27  ;;  %v11665_v63 = vshrl.u32 %v24094_v51, 7 }
 0x58f   : > { %v11646_v19 = vadd.f32 %v11645_v49, %v11644_v37 }
 0x591   : > { %v11647_v18 = vrot.slane %v11646_v19, 2  ;;  %v11927_v45 = vpop.xlane.xlu1 %11926 }
 0x592   : > { %v11940_v5 = vadd.f32 %v11939_v43, %v11927_v45 }
 0x593   : > { %v11648_v24 = vadd.f32 %v11647_v18, %v11646_v19 }
 0x595   : > { %v11649_v20 = vrot.slane %v11648_v24, 1  ;;  %v11930_v30 = vpop.xlane.xlu1 %11929 }
 0x596   : > { %v11941_v39 = vadd.f32 %v11940_v5, %v11930_v30 }
 0x597   : > { %v11650_v57 = vadd.f32 %v11649_v20, %v11648_v24 }
 0x599   : > { %v11652_v32 = vadd.f32 %v21775_v54, %v11650_v57 }
 0x59b   : > { %v11653_v17 = vsub.f32 0.0, %v11652_v32 }
 0x59d   : > { %v11654_v29 = vmul.f32 1.442695, %v11653_v17 }
 0x59f   : > { %14092 = vpow2.f32 %v11654_v29 }
 0x5ac   : > { %v14093_v21 = vpop.eup %14092 }
 0x5ad   : > { %v11656_v47 = vadd.f32 1.0, %v14093_v21 }
 0x5af   : > { %14094 = vrcp.f32 %v11656_v47 }
 0x5bc   : > { %v14095_v52 = vpop.eup %14094 }
 0x5bd   : > { %11661 = vperm.xlu1 %14059, %v14095_v52  }
 0x5c6   : > { %v12064_v6 = vpop.xlane.xlu1 %12063 }
 0x5ca   : > { %v12067_v2 = vpop.xlane.xlu0 %12066  ;;  %v11933_v4 = vpop.xlane.xlu1 %11932 }
 0x5cb   : > { %v11942_v38 = vadd.f32 %v11941_v39, %v11933_v4  ;;  %v12086_v0 = vadd.f32 %v12067_v2, %v12064_v6 }
 0x5ce   : > { %v11787_v62 = vpop.xlane.xlu1 %11786  ;;  %v12070_v31 = vpop.xlane.xlu0 %12069 }
 0x5cf   : > { %v11794_v59 = vadd.f32 %v11793_v56, %v11787_v62  ;;  %v12087_v35 = vadd.f32 %v12086_v0, %v12070_v31 }
 0x5d1   : > { %v11795_v61 = vrot.slane %v11794_v59, 4 }
 0x5d2   : > { %v11936_v22 = vpop.xlane.xlu1 %11935 }
 0x5d3   : > { %v11796_v1 = vadd.f32 %v11795_v61, %v11794_v59  ;;  %v11943_v25 = vadd.f32 %v11942_v38, %v11936_v22 }
 0x5d4   : > { %v12073_v9 = vpop.xlane.xlu0 %12072 }
 0x5d5   : > { %v11797_v48 = vrot.slane %v11796_v1, 2  ;;  %v11944_v42 = vrot.slane %v11943_v25, 4  ;;  %v12088_v33 = vadd.f32 %v12087_v35, %v12073_v9 }
 0x5d7   : > { %v11798_v23 = vadd.f32 %v11797_v48, %v11796_v1  ;;  %v11945_v58 = vadd.f32 %v11944_v42, %v11943_v25 }
 0x5d8   : > { %v12076_v16 = vpop.xlane.xlu0 %12075 }
 0x5d9   : > { %v11799_v55 = vrot.slane %v11798_v23, 1  ;;  %v11946_v36 = vrot.slane %v11945_v58, 2  ;;  %v12089_v44 = vadd.f32 %v12088_v33, %v12076_v16 }
 0x5db   : > { %v11800_v53 = vadd.f32 %v11799_v55, %v11798_v23  ;;  %v11947_v14 = vadd.f32 %v11946_v36, %v11945_v58 }
 0x5dc   : > { %v12079_v10 = vpop.xlane.xlu0 %12078 }
 0x5dd   : > { %v11801_v46 = vadd.f32 %v11800_v53, %v21775_v54  ;;  %v11948_v26 = vrot.slane %v11947_v14, 1  ;;  %v12090_v49 = vadd.f32 %v12089_v44, %v12079_v10 }
 0x5df   : > { %v11802_v40 = vsub.f32 0.0, %v11801_v46  ;;  %v11949_v15 = vadd.f32 %v11948_v26, %v11947_v14 }
 0x5e0   : > { %v12082_v37 = vpop.xlane.xlu0 %12081 }
 0x5e1   : > { %v11803_v34 = vmul.f32 1.442695, %v11802_v40  ;;  %v11950_v41 = vadd.f32 %v11949_v15, %v21775_v54  ;;  %v12091_v18 = vadd.f32 %v12090_v49, %v12082_v37 }
 0x5e3   : > { %14096 = vpow2.f32 %v11803_v34  ;;  %v11951_v19 = vsub.f32 0.0, %v11950_v41 }
 0x5e4   : > { %v12085_v7 = vpop.xlane.xlu0 %12084 }
 0x5e5   : > { %v11952_v24 = vmul.f32 1.442695, %v11951_v19  ;;  %v12092_v20 = vadd.f32 %v12091_v18, %v12085_v7 }
 0x5e7   : > { %14098 = vpow2.f32 %v11952_v24  ;;  %v12093_v57 = vrot.slane %v12092_v20, 4 }
 0x5e9   : > { %v12094_v32 = vadd.f32 %v12093_v57, %v12092_v20 }
 0x5eb   : > { %v12095_v60 = vrot.slane %v12094_v32, 2 }
 0x5ed   : > { %v12096_v17 = vadd.f32 %v12095_v60, %v12094_v32 }
 0x5ef   : > { %v12097_v11 = vrot.slane %v12096_v17, 1 }
 0x5f0   : > { %v14097_v29 = vpop.eup %14096 }
 0x5f1   : > { %v11805_v8 = vadd.f32 1.0, %v14097_v29  ;;  %v12098_v12 = vadd.f32 %v12097_v11, %v12096_v17 }
 0x5f3   : > { %14100 = vrcp.f32 %v11805_v8  ;;  %v12099_v47 = vadd.f32 %v12098_v12, %v21775_v54  ;;  %v11666_v54 = vsub.s32 0, %v11665_v63 }
 0x5f4   : > { %v14099_v21 = vpop.eup %14098 }
 0x5f5   : > { %v11954_v50 = vadd.f32 1.0, %v14099_v21  ;;  %v12100_v27 = vsub.f32 0.0, %v12099_v47 }
 0x5f7   : > { %14102 = vrcp.f32 %v11954_v50  ;;  %v12101_v45 = vmul.f32 1.442695, %v12100_v27 }
 0x5f9   : > { %14104 = vpow2.f32 %v12101_v45 }
 0x600   : > { %v14101_v52 = vpop.eup %14100 }
 0x601   : > { %11810 = vperm.xlu0 %14058, %v14101_v52  }
 0x604   : > { %v14103_v30 = vpop.eup %14102 }
 0x605   : > { %11959 = vperm.xlu1 %14059, %v14103_v30  }
 0x606   : > { %v14105_v6 = vpop.eup %14104 }
 0x607   : > { %v12103_v13 = vadd.f32 1.0, %v14105_v6 }
 0x609   : > { %14106 = vrcp.f32 %v12103_v13 }
 0x616   : > { %v14107_v28 = vpop.eup %14106 }
 0x617   : > { %12108 = vperm.xlu1 %14059, %v14107_v28  }
 0x638   : > { %v11662_v2 = vpop.permute.xlu1 %11661 }
 0x639   : > { %v11667_v5 = vrot.slane %v11662_v2, %v11666_v54 }
 0x67c   : > { %v11811_v4 = vpop.permute.xlu0 %11810 }
 0x67d   : > { %v11816_v43 = vrot.slane %v11811_v4, %v11666_v54 }
 0x67f   : > { %v12116_v39 = vsel %vm12115_vm6, %v11667_v5, %v11816_v43 }
 0x680   : > { %v11960_v3 = vpop.permute.xlu1 %11959 }
 0x681   : > { %v11965_v56 = vrot.slane %v11960_v3, %v11666_v54 }
 0x683   : > { %v12118_v31 = vsel %vm12117_vm7, %v12116_v39, %v11965_v56 }
 0x692   : > { %v12109_v62 = vpop.permute.xlu1 %12108 }
 0x693   : > { %v12114_v59 = vrot.slane %v12109_v62, %v11666_v54 }
 0x695   : > { %v12120_v38 = vsel %vm12119_vm14, %v12118_v31, %v12114_v59 }
 0x696   : > { %12121 = vst [vmem:[%s305_s9] sm:$0xf] %v12120_v38 }
 0x697 PF: > { %s20_s29 = sadd.s32 1, %s14182_s29  }
 0x698   : > { %p17_p4 = scmp.ge.s32.totalorder %s20_s29, 4  }
 0x69a   :  { %19 = sbr.rel (!%p17_p4) target bundleno = 3 (0x3), region = 82 }

</bundles_post_ra>
